<compile_context>
chip_gen: v7x
topology: tpu7x:2x2x1
jax: 0.10.0
libtpu: 0.0.40
codegen_flags: <defaults>
</compile_context>

<pallas_src>
import jax
import jax.numpy as jnp
from jax.experimental import pallas as pl
from jax.experimental.pallas import tpu as pltpu


# -----------------------------------------------------------------------------
# Kernel
# -----------------------------------------------------------------------------
def make_kernel(N, BM, C, H):
    """N = query tokens per grid step (one batch element), BM = flattened cond tokens."""
    hd = C // H

    def layernorm(t):  # elementwise_affine=False, eps=1e-6
        mu = jnp.mean(t, axis=-1, keepdims=True)
        var = jnp.mean(jnp.square(t - mu), axis=-1, keepdims=True)
        return (t - mu) * jax.lax.rsqrt(var + 1e-6)

    def softmax(s):  # f32 in, f32 out; divide moved to the EUP
        s = s - jnp.max(s, axis=-1, keepdims=True)
        e = jnp.exp(s)
        return e * pl.reciprocal(jnp.sum(e, axis=-1, keepdims=True), approx=True)

    def mm(a, w_ref, b_ref):  # bf16 MXU matmul, f32 accumulation, f32 bias add
        return (jnp.dot(a.astype(jnp.bfloat16), w_ref[...],
                        preferred_element_type=jnp.float32) + b_ref[...])

    def mha(q, k, v, nq, nk):
        # q weights were pre-scaled by 1/sqrt(hd) in the wrapper.
        q3 = q.reshape(nq, H, hd).astype(jnp.bfloat16)
        k3 = k.reshape(nk, H, hd).astype(jnp.bfloat16)
        v3 = v.reshape(nk, H, hd).astype(jnp.bfloat16)
        s = jnp.einsum("nhd,mhd->hnm", q3, k3,
                       preferred_element_type=jnp.float32)          # (H, nq, nk)
        p = softmax(s).astype(jnp.bfloat16)
        o = jnp.einsum("hnm,mhd->nhd", p, v3,
                       preferred_element_type=jnp.float32)          # (nq, H, hd)
        return o.reshape(nq, C)

    def kernel(x_ref, y_ref,
               wq, bq, wk, bk, wv, bv, aw, ab,
               cqw, cqb, ckw, ckb, cvw, cvb, cpw, cpb,
               f1w, f1b, f2w, f2b,
               out_ref):
        x = x_ref[...].astype(jnp.float32)   # (N, C)   residual stream, f32
        yb = y_ref[...]                      # (BM, C)  cond tokens, already bf16

        # ---------------- self-attention (pre-LN, per batch element) ----------------
        xn = layernorm(x)
        q = mm(xn, wq, bq)
        k = mm(xn, wk, bk)
        v = mm(xn, wv, bv)
        x = x + mm(mha(q, k, v, N, N), aw, ab)

        # ----- cross-attention: mask=None path -> queries attend to the full -------
        # ----- batch-flattened cond sequence (recomputed per tile, y is resident) --
        qc = mm(x, cqw, cqb)
        kc = jnp.dot(yb, ckw[...], preferred_element_type=jnp.float32) + ckb[...]
        vc = jnp.dot(yb, cvw[...], preferred_element_type=jnp.float32) + cvb[...]
        x = x + mm(mha(qc, kc, vc, N, BM), cpw, cpb)

        # --------------------------------- MLP --------------------------------------
        xn2 = layernorm(x)
        h = mm(xn2, f1w, f1b)
        h = jax.nn.gelu(h, approximate=True)       # GELU(tanh)
        h = mm(h, f2w, f2b)
        out_ref[...] = (x + h).astype(out_ref.dtype)

    return kernel


# -----------------------------------------------------------------------------
# Wrapper
# -----------------------------------------------------------------------------
def slot_editor_block(x, y, params, num_heads):
    B, N, C = x.shape
    M = y.shape[1]
    H = num_heads
    hd = C // H
    scale = hd ** -0.5
    f32, bf16 = jnp.float32, jnp.bfloat16

    # Split fused qkv / kv weights into lane-aligned (C, C) blocks, fold the attention
    # scale into the q weights/biases, and cast weights to bf16 (halves VMEM footprint).
    qkv_w, qkv_b = params["qkv_w"], params["qkv_b"]
    wq = (qkv_w[:, 0 * C:1 * C] * scale).astype(bf16)
    wk = qkv_w[:, 1 * C:2 * C].astype(bf16)
    wv = qkv_w[:, 2 * C:3 * C].astype(bf16)
    bq = (qkv_b[:, 0 * C:1 * C] * scale).astype(f32)
    bk = qkv_b[:, 1 * C:2 * C].astype(f32)
    bv = qkv_b[:, 2 * C:3 * C].astype(f32)

    kv_w, kv_b = params["kv_w"], params["kv_b"]
    cqw = (params["q_w"] * scale).astype(bf16)
    cqb = (params["q_b"] * scale).astype(f32)
    ckw = kv_w[:, 0:C].astype(bf16)
    cvw = kv_w[:, C:2 * C].astype(bf16)
    ckb = kv_b[:, 0:C].astype(f32)
    cvb = kv_b[:, C:2 * C].astype(f32)

    weights = [
        wq, bq, wk, bk, wv, bv,
        params["attn_proj_w"].astype(bf16), params["attn_proj_b"].astype(f32),
        cqw, cqb, ckw, ckb, cvw, cvb,
        params["c_proj_w"].astype(bf16), params["c_proj_b"].astype(f32),
        params["fc1_w"].astype(bf16), params["fc1_b"].astype(f32),
        params["fc2_w"].astype(bf16), params["fc2_b"].astype(f32),
    ]

    x2 = x.reshape(B * N, C).astype(f32)
    y2 = y.reshape(B * M, C).astype(bf16)   # only feeds matmuls -> ship as bf16

    kernel = make_kernel(N, B * M, C, H)

    def resident_spec(arr):                 # full block, same index every grid step
        zeros = (0,) * arr.ndim
        return pl.BlockSpec(arr.shape, lambda b, z=zeros: z)

    in_specs = (
        [pl.BlockSpec((N, C), lambda b: (b, 0)),          # one batch element per step
         pl.BlockSpec((B * M, C), lambda b: (0, 0))]      # flattened cond, resident
        + [resident_spec(w) for w in weights]
    )

    out = pl.pallas_call(
        kernel,
        out_shape=jax.ShapeDtypeStruct((B * N, C), x.dtype),
        grid=(B,),
        in_specs=in_specs,
        out_specs=pl.BlockSpec((N, C), lambda b: (b, 0)),
        compiler_params=pltpu.CompilerParams(
            dimension_semantics=("parallel",),            # megacore on v7x
            vmem_limit_bytes=64 * 1024 * 1024,            # headroom beyond default scope
        ),
    )(x2, y2, *weights)
    return out.reshape(B, N, C)


# -----------------------------------------------------------------------------
# Params + pure-JAX reference (f32) of SlotEditor_Block.forward (mask=None)
# -----------------------------------------------------------------------------
def init_params(key, C, mlp_ratio=4.0):
    hidden = int(C * mlp_ratio)
    ks = jax.random.split(key, 14)
    w = lambda k, s: (0.05 * jax.random.normal(k, s)).astype(jnp.float32)
    return {
        "qkv_w": w(ks[0], (C, 3 * C)),      "qkv_b": w(ks[1], (1, 3 * C)),
        "attn_proj_w": w(ks[2], (C, C)),    "attn_proj_b": w(ks[3], (1, C)),
        "q_w": w(ks[4], (C, C)),            "q_b": w(ks[5], (1, C)),
        "kv_w": w(ks[6], (C, 2 * C)),       "kv_b": w(ks[7], (1, 2 * C)),
        "c_proj_w": w(ks[8], (C, C)),       "c_proj_b": w(ks[9], (1, C)),
        "fc1_w": w(ks[10], (C, hidden)),    "fc1_b": w(ks[11], (1, hidden)),
        "fc2_w": w(ks[12], (hidden, C)),    "fc2_b": w(ks[13], (1, C)),
    }


def reference(x, y, p, H):
    B, N, C = x.shape
    M = y.shape[1]
    hd = C // H
    scale = hd ** -0.5

    def ln(t):
        mu = t.mean(-1, keepdims=True)
        var = ((t - mu) ** 2).mean(-1, keepdims=True)
        return (t - mu) / jnp.sqrt(var + 1e-6)

    # self-attention (timm Attention, qkv_bias=True)
    xn = ln(x)
    qkv = (xn @ p["qkv_w"] + p["qkv_b"][0]).reshape(B, N, 3, H, hd)
    q, k, v = qkv[:, :, 0], qkv[:, :, 1], qkv[:, :, 2]
    a = jax.nn.softmax(jnp.einsum("bnhd,bmhd->bhnm", q, k) * scale, axis=-1)
    o = jnp.einsum("bhnm,bmhd->bnhd", a, v).reshape(B, N, C)
    x = x + o @ p["attn_proj_w"] + p["attn_proj_b"][0]

    # cross-attention (batch flattened, default 1/sqrt(hd) scale, mask=None)
    qf = (x.reshape(B * N, C) @ p["q_w"] + p["q_b"][0]).reshape(B * N, H, hd)
    kv = (y.reshape(B * M, C) @ p["kv_w"] + p["kv_b"][0]).reshape(B * M, 2, H, hd)
    kf, vf = kv[:, 0], kv[:, 1]
    a = jax.nn.softmax(jnp.einsum("nhd,mhd->hnm", qf, kf) * scale, axis=-1)
    o = jnp.einsum("hnm,mhd->nhd", a, vf).reshape(B, N, C)
    x = x + o @ p["c_proj_w"] + p["c_proj_b"][0]

    # MLP with tanh-GELU
    h = jax.nn.gelu(ln(x) @ p["fc1_w"] + p["fc1_b"][0], approximate=True)
    x = x + h @ p["fc2_w"] + p["fc2_b"][0]
    return x


if __name__ == "__main__":
    # small shapes consistent with SlotEditor_Block (hidden_size multiple of 128 for
    # lane-dense activations; B slots + flattened cond tokens)
    B, N, M, C, H = 2, 8, 16, 128, 4
    key = jax.random.PRNGKey(0)
    kx, ky, kp = jax.random.split(key, 3)
    x = jax.random.normal(kx, (B, N, C), jnp.float32)
    y = jax.random.normal(ky, (B, M, C), jnp.float32)
    params = init_params(kp, C, mlp_ratio=4.0)

    out = slot_editor_block(x, y, params, num_heads=H)
    out = jax.block_until_ready(out)

    ref = reference(x, y, params, H)
    assert out.shape == (B, N, C)
    # bf16 MXU inputs (f32 accumulation) + approx reciprocal -> ~1e-2-level error
    assert jnp.allclose(out, ref, rtol=5e-2, atol=5e-2), (
        float(jnp.max(jnp.abs(out - ref))))
    print("KERNEL_OK")
</pallas_src>

<mosaic_0001>
module attributes {stable_mosaic.version = 11 : i64} {
  func.func @kernel(%arg0: i32, %arg1: memref<8x128xf32, #tpu.memory_space<vmem>>, %arg2: memref<32x128xbf16, #tpu.memory_space<vmem>>, %arg3: memref<128x128xbf16, #tpu.memory_space<vmem>>, %arg4: memref<1x128xf32, #tpu.memory_space<vmem>>, %arg5: memref<128x128xbf16, #tpu.memory_space<vmem>>, %arg6: memref<1x128xf32, #tpu.memory_space<vmem>>, %arg7: memref<128x128xbf16, #tpu.memory_space<vmem>>, %arg8: memref<1x128xf32, #tpu.memory_space<vmem>>, %arg9: memref<128x128xbf16, #tpu.memory_space<vmem>>, %arg10: memref<1x128xf32, #tpu.memory_space<vmem>>, %arg11: memref<128x128xbf16, #tpu.memory_space<vmem>>, %arg12: memref<1x128xf32, #tpu.memory_space<vmem>>, %arg13: memref<128x128xbf16, #tpu.memory_space<vmem>>, %arg14: memref<1x128xf32, #tpu.memory_space<vmem>>, %arg15: memref<128x128xbf16, #tpu.memory_space<vmem>>, %arg16: memref<1x128xf32, #tpu.memory_space<vmem>>, %arg17: memref<128x128xbf16, #tpu.memory_space<vmem>>, %arg18: memref<1x128xf32, #tpu.memory_space<vmem>>, %arg19: memref<128x512xbf16, #tpu.memory_space<vmem>>, %arg20: memref<1x512xf32, #tpu.memory_space<vmem>>, %arg21: memref<512x128xbf16, #tpu.memory_space<vmem>>, %arg22: memref<1x128xf32, #tpu.memory_space<vmem>>, %arg23: memref<8x128xf32, #tpu.memory_space<vmem>>) attributes {dimension_semantics = [#tpu.dimension_semantics<parallel>], iteration_bounds = array<i64: 2>, scalar_prefetch = 0 : i64, scratch_operands = 0 : i64, tpu.core_type = #tpu.core_type<tc>, window_params = [{transform_indices = @transform_0, window_bounds = array<i64: 8, 128>}, {pipeline_mode = #tpu.pipeline_mode<synchronous>, transform_indices = @transform_1, window_bounds = array<i64: 32, 128>}, {pipeline_mode = #tpu.pipeline_mode<synchronous>, transform_indices = @transform_2, window_bounds = array<i64: 128, 128>}, {pipeline_mode = #tpu.pipeline_mode<synchronous>, transform_indices = @transform_3, window_bounds = array<i64: 1, 128>}, {pipeline_mode = #tpu.pipeline_mode<synchronous>, transform_indices = @transform_4, window_bounds = array<i64: 128, 128>}, {pipeline_mode = #tpu.pipeline_mode<synchronous>, transform_indices = @transform_5, window_bounds = array<i64: 1, 128>}, {pipeline_mode = #tpu.pipeline_mode<synchronous>, transform_indices = @transform_6, window_bounds = array<i64: 128, 128>}, {pipeline_mode = #tpu.pipeline_mode<synchronous>, transform_indices = @transform_7, window_bounds = array<i64: 1, 128>}, {pipeline_mode = #tpu.pipeline_mode<synchronous>, transform_indices = @transform_8, window_bounds = array<i64: 128, 128>}, {pipeline_mode = #tpu.pipeline_mode<synchronous>, transform_indices = @transform_9, window_bounds = array<i64: 1, 128>}, {pipeline_mode = #tpu.pipeline_mode<synchronous>, transform_indices = @transform_10, window_bounds = array<i64: 128, 128>}, {pipeline_mode = #tpu.pipeline_mode<synchronous>, transform_indices = @transform_11, window_bounds = array<i64: 1, 128>}, {pipeline_mode = #tpu.pipeline_mode<synchronous>, transform_indices = @transform_12, window_bounds = array<i64: 128, 128>}, {pipeline_mode = #tpu.pipeline_mode<synchronous>, transform_indices = @transform_13, window_bounds = array<i64: 1, 128>}, {pipeline_mode = #tpu.pipeline_mode<synchronous>, transform_indices = @transform_14, window_bounds = array<i64: 128, 128>}, {pipeline_mode = #tpu.pipeline_mode<synchronous>, transform_indices = @transform_15, window_bounds = array<i64: 1, 128>}, {pipeline_mode = #tpu.pipeline_mode<synchronous>, transform_indices = @transform_16, window_bounds = array<i64: 128, 128>}, {pipeline_mode = #tpu.pipeline_mode<synchronous>, transform_indices = @transform_17, window_bounds = array<i64: 1, 128>}, {pipeline_mode = #tpu.pipeline_mode<synchronous>, transform_indices = @transform_18, window_bounds = array<i64: 128, 512>}, {pipeline_mode = #tpu.pipeline_mode<synchronous>, transform_indices = @transform_19, window_bounds = array<i64: 1, 512>}, {pipeline_mode = #tpu.pipeline_mode<synchronous>, transform_indices = @transform_20, window_bounds = array<i64: 512, 128>}, {pipeline_mode = #tpu.pipeline_mode<synchronous>, transform_indices = @transform_21, window_bounds = array<i64: 1, 128>}, {transform_indices = @transform_22, window_bounds = array<i64: 8, 128>}]} {
    %c0 = arith.constant 0 : index
    %c0_0 = arith.constant 0 : index
    %0 = vector.load %arg1[%c0, %c0_0] : memref<8x128xf32, #tpu.memory_space<vmem>>, vector<8x128xf32>
    %c0_1 = arith.constant 0 : index
    %c0_2 = arith.constant 0 : index
    %1 = vector.load %arg2[%c0_1, %c0_2] : memref<32x128xbf16, #tpu.memory_space<vmem>>, vector<32x128xbf16>
    %cst = arith.constant dense<0.000000e+00> : vector<8xf32>
    %2 = vector.multi_reduction <add>, %0, %cst [1] : vector<8x128xf32> to vector<8xf32>
    %3 = vector.shape_cast %2 : vector<8xf32> to vector<8x1xf32>
    %cst_3 = arith.constant 1.280000e+02 : f32
    %4 = vector.broadcast %cst_3 : f32 to vector<8x1xf32>
    %5 = arith.divf %3, %4 : vector<8x1xf32>
    %6 = vector.broadcast %5 : vector<8x1xf32> to vector<8x128xf32>
    %7 = arith.subf %0, %6 : vector<8x128xf32>
    %8 = arith.mulf %7, %7 : vector<8x128xf32>
    %cst_4 = arith.constant dense<0.000000e+00> : vector<8xf32>
    %9 = vector.multi_reduction <add>, %8, %cst_4 [1] : vector<8x128xf32> to vector<8xf32>
    %10 = vector.shape_cast %9 : vector<8xf32> to vector<8x1xf32>
    %cst_5 = arith.constant 1.280000e+02 : f32
    %11 = vector.broadcast %cst_5 : f32 to vector<8x1xf32>
    %12 = arith.divf %10, %11 : vector<8x1xf32>
    %13 = vector.broadcast %5 : vector<8x1xf32> to vector<8x128xf32>
    %14 = arith.subf %0, %13 : vector<8x128xf32>
    %cst_6 = arith.constant 9.99999997E-7 : f32
    %15 = vector.broadcast %cst_6 : f32 to vector<8x1xf32>
    %16 = arith.addf %12, %15 : vector<8x1xf32>
    %17 = math.rsqrt %16 : vector<8x1xf32>
    %18 = vector.broadcast %17 : vector<8x1xf32> to vector<8x128xf32>
    %19 = arith.mulf %14, %18 : vector<8x128xf32>
    %20 = arith.truncf %19 : vector<8x128xf32> to vector<8x128xbf16>
    %c0_7 = arith.constant 0 : index
    %c0_8 = arith.constant 0 : index
    %21 = vector.load %arg3[%c0_7, %c0_8] : memref<128x128xbf16, #tpu.memory_space<vmem>>, vector<128x128xbf16>
    %cst_9 = arith.constant dense<0.000000e+00> : vector<8x128xf32>
    %22 = tpu.matmul %20, %21, %cst_9 {dimension_numbers = #tpu.dot_dimension_numbers<[1], [0], [0], [1], [0, 0, 1, 1], [], []>} : vector<8x128xbf16>, vector<128x128xbf16>, vector<8x128xf32> -> vector<8x128xf32>
    %c0_10 = arith.constant 0 : index
    %c0_11 = arith.constant 0 : index
    %23 = vector.load %arg4[%c0_10, %c0_11] : memref<1x128xf32, #tpu.memory_space<vmem>>, vector<1x128xf32>
    %24 = vector.broadcast %23 : vector<1x128xf32> to vector<8x128xf32>
    %25 = arith.addf %22, %24 : vector<8x128xf32>
    %26 = arith.truncf %19 : vector<8x128xf32> to vector<8x128xbf16>
    %c0_12 = arith.constant 0 : index
    %c0_13 = arith.constant 0 : index
    %27 = vector.load %arg5[%c0_12, %c0_13] : memref<128x128xbf16, #tpu.memory_space<vmem>>, vector<128x128xbf16>
    %cst_14 = arith.constant dense<0.000000e+00> : vector<8x128xf32>
    %28 = tpu.matmul %26, %27, %cst_14 {dimension_numbers = #tpu.dot_dimension_numbers<[1], [0], [0], [1], [0, 0, 1, 1], [], []>} : vector<8x128xbf16>, vector<128x128xbf16>, vector<8x128xf32> -> vector<8x128xf32>
    %c0_15 = arith.constant 0 : index
    %c0_16 = arith.constant 0 : index
    %29 = vector.load %arg6[%c0_15, %c0_16] : memref<1x128xf32, #tpu.memory_space<vmem>>, vector<1x128xf32>
    %30 = vector.broadcast %29 : vector<1x128xf32> to vector<8x128xf32>
    %31 = arith.addf %28, %30 : vector<8x128xf32>
    %32 = arith.truncf %19 : vector<8x128xf32> to vector<8x128xbf16>
    %c0_17 = arith.constant 0 : index
    %c0_18 = arith.constant 0 : index
    %33 = vector.load %arg7[%c0_17, %c0_18] : memref<128x128xbf16, #tpu.memory_space<vmem>>, vector<128x128xbf16>
    %cst_19 = arith.constant dense<0.000000e+00> : vector<8x128xf32>
    %34 = tpu.matmul %32, %33, %cst_19 {dimension_numbers = #tpu.dot_dimension_numbers<[1], [0], [0], [1], [0, 0, 1, 1], [], []>} : vector<8x128xbf16>, vector<128x128xbf16>, vector<8x128xf32> -> vector<8x128xf32>
    %c0_20 = arith.constant 0 : index
    %c0_21 = arith.constant 0 : index
    %35 = vector.load %arg8[%c0_20, %c0_21] : memref<1x128xf32, #tpu.memory_space<vmem>>, vector<1x128xf32>
    %36 = vector.broadcast %35 : vector<1x128xf32> to vector<8x128xf32>
    %37 = arith.addf %34, %36 : vector<8x128xf32>
    %38 = vector.shape_cast %25 : vector<8x128xf32> to vector<8x4x32xf32>
    %39 = arith.truncf %38 : vector<8x4x32xf32> to vector<8x4x32xbf16>
    %40 = vector.shape_cast %31 : vector<8x128xf32> to vector<8x4x32xf32>
    %41 = arith.truncf %40 : vector<8x4x32xf32> to vector<8x4x32xbf16>
    %42 = vector.shape_cast %37 : vector<8x128xf32> to vector<8x4x32xf32>
    %43 = arith.truncf %42 : vector<8x4x32xf32> to vector<8x4x32xbf16>
    "tpu.trace_start"() <{level = 10 : i32, message = "nhd,mhd->hnm"}> : () -> ()
    %cst_22 = arith.constant dense<0.000000e+00> : vector<4x8x8xf32>
    %44 = tpu.matmul %39, %41, %cst_22 {dimension_numbers = #tpu.dot_dimension_numbers<[2], [2], [0], [0], [0, 1, 0, 0, 1, 0], [1], [1]>} : vector<8x4x32xbf16>, vector<8x4x32xbf16>, vector<4x8x8xf32> -> vector<4x8x8xf32>
    "tpu.trace_stop"() : () -> ()
    %cst_23 = arith.constant dense<0xFF800000> : vector<4x8xf32>
    %45 = vector.multi_reduction <maximumf>, %44, %cst_23 [2] : vector<4x8x8xf32> to vector<4x8xf32>
    %46 = vector.shape_cast %45 : vector<4x8xf32> to vector<4x8x1xf32>
    %47 = vector.broadcast %46 : vector<4x8x1xf32> to vector<4x8x8xf32>
    %48 = arith.subf %44, %47 : vector<4x8x8xf32>
    %49 = math.exp %48 : vector<4x8x8xf32>
    %cst_24 = arith.constant dense<0.000000e+00> : vector<4x8xf32>
    %50 = vector.multi_reduction <add>, %49, %cst_24 [2] : vector<4x8x8xf32> to vector<4x8xf32>
    %51 = vector.shape_cast %50 : vector<4x8xf32> to vector<4x8x1xf32>
    %52 = tpu.reciprocal %51 {approx = true} : vector<4x8x1xf32> -> vector<4x8x1xf32>
    %53 = vector.broadcast %52 : vector<4x8x1xf32> to vector<4x8x8xf32>
    %54 = arith.mulf %49, %53 : vector<4x8x8xf32>
    %55 = arith.truncf %54 : vector<4x8x8xf32> to vector<4x8x8xbf16>
    "tpu.trace_start"() <{level = 10 : i32, message = "hnm,mhd->nhd"}> : () -> ()
    %cst_25 = arith.constant dense<0.000000e+00> : vector<4x32x8xf32>
    %56 = tpu.matmul %43, %55, %cst_25 {dimension_numbers = #tpu.dot_dimension_numbers<[0], [2], [2], [1], [0, 1, 0, 2, 1, 1], [1], [0]>} : vector<8x4x32xbf16>, vector<4x8x8xbf16>, vector<4x32x8xf32> -> vector<4x32x8xf32>
    %57 = tpu.transpose %56, [2, 0, 1] : vector<4x32x8xf32> -> vector<8x4x32xf32>
    "tpu.trace_stop"() : () -> ()
    %58 = vector.shape_cast %57 : vector<8x4x32xf32> to vector<8x128xf32>
    %59 = arith.truncf %58 : vector<8x128xf32> to vector<8x128xbf16>
    %c0_26 = arith.constant 0 : index
    %c0_27 = arith.constant 0 : index
    %60 = vector.load %arg9[%c0_26, %c0_27] : memref<128x128xbf16, #tpu.memory_space<vmem>>, vector<128x128xbf16>
    %cst_28 = arith.constant dense<0.000000e+00> : vector<8x128xf32>
    %61 = tpu.matmul %59, %60, %cst_28 {dimension_numbers = #tpu.dot_dimension_numbers<[1], [0], [0], [1], [0, 0, 1, 1], [], []>} : vector<8x128xbf16>, vector<128x128xbf16>, vector<8x128xf32> -> vector<8x128xf32>
    %c0_29 = arith.constant 0 : index
    %c0_30 = arith.constant 0 : index
    %62 = vector.load %arg10[%c0_29, %c0_30] : memref<1x128xf32, #tpu.memory_space<vmem>>, vector<1x128xf32>
    %63 = vector.broadcast %62 : vector<1x128xf32> to vector<8x128xf32>
    %64 = arith.addf %61, %63 : vector<8x128xf32>
    %65 = arith.addf %0, %64 : vector<8x128xf32>
    %66 = arith.truncf %65 : vector<8x128xf32> to vector<8x128xbf16>
    %c0_31 = arith.constant 0 : index
    %c0_32 = arith.constant 0 : index
    %67 = vector.load %arg11[%c0_31, %c0_32] : memref<128x128xbf16, #tpu.memory_space<vmem>>, vector<128x128xbf16>
    %cst_33 = arith.constant dense<0.000000e+00> : vector<8x128xf32>
    %68 = tpu.matmul %66, %67, %cst_33 {dimension_numbers = #tpu.dot_dimension_numbers<[1], [0], [0], [1], [0, 0, 1, 1], [], []>} : vector<8x128xbf16>, vector<128x128xbf16>, vector<8x128xf32> -> vector<8x128xf32>
    %c0_34 = arith.constant 0 : index
    %c0_35 = arith.constant 0 : index
    %69 = vector.load %arg12[%c0_34, %c0_35] : memref<1x128xf32, #tpu.memory_space<vmem>>, vector<1x128xf32>
    %70 = vector.broadcast %69 : vector<1x128xf32> to vector<8x128xf32>
    %71 = arith.addf %68, %70 : vector<8x128xf32>
    %c0_36 = arith.constant 0 : index
    %c0_37 = arith.constant 0 : index
    %72 = vector.load %arg13[%c0_36, %c0_37] : memref<128x128xbf16, #tpu.memory_space<vmem>>, vector<128x128xbf16>
    %cst_38 = arith.constant dense<0.000000e+00> : vector<32x128xf32>
    %73 = tpu.matmul %1, %72, %cst_38 {dimension_numbers = #tpu.dot_dimension_numbers<[1], [0], [0], [1], [0, 0, 1, 1], [], []>} : vector<32x128xbf16>, vector<128x128xbf16>, vector<32x128xf32> -> vector<32x128xf32>
    %c0_39 = arith.constant 0 : index
    %c0_40 = arith.constant 0 : index
    %74 = vector.load %arg14[%c0_39, %c0_40] : memref<1x128xf32, #tpu.memory_space<vmem>>, vector<1x128xf32>
    %75 = vector.broadcast %74 : vector<1x128xf32> to vector<32x128xf32>
    %76 = arith.addf %73, %75 : vector<32x128xf32>
    %c0_41 = arith.constant 0 : index
    %c0_42 = arith.constant 0 : index
    %77 = vector.load %arg15[%c0_41, %c0_42] : memref<128x128xbf16, #tpu.memory_space<vmem>>, vector<128x128xbf16>
    %cst_43 = arith.constant dense<0.000000e+00> : vector<32x128xf32>
    %78 = tpu.matmul %1, %77, %cst_43 {dimension_numbers = #tpu.dot_dimension_numbers<[1], [0], [0], [1], [0, 0, 1, 1], [], []>} : vector<32x128xbf16>, vector<128x128xbf16>, vector<32x128xf32> -> vector<32x128xf32>
    %c0_44 = arith.constant 0 : index
    %c0_45 = arith.constant 0 : index
    %79 = vector.load %arg16[%c0_44, %c0_45] : memref<1x128xf32, #tpu.memory_space<vmem>>, vector<1x128xf32>
    %80 = vector.broadcast %79 : vector<1x128xf32> to vector<32x128xf32>
    %81 = arith.addf %78, %80 : vector<32x128xf32>
    %82 = vector.shape_cast %71 : vector<8x128xf32> to vector<8x4x32xf32>
    %83 = arith.truncf %82 : vector<8x4x32xf32> to vector<8x4x32xbf16>
    %84 = vector.shape_cast %76 : vector<32x128xf32> to vector<32x4x32xf32>
    %85 = arith.truncf %84 : vector<32x4x32xf32> to vector<32x4x32xbf16>
    %86 = vector.shape_cast %81 : vector<32x128xf32> to vector<32x4x32xf32>
    %87 = arith.truncf %86 : vector<32x4x32xf32> to vector<32x4x32xbf16>
    "tpu.trace_start"() <{level = 10 : i32, message = "nhd,mhd->hnm"}> : () -> ()
    %cst_46 = arith.constant dense<0.000000e+00> : vector<4x8x32xf32>
    %88 = tpu.matmul %83, %85, %cst_46 {dimension_numbers = #tpu.dot_dimension_numbers<[2], [2], [0], [0], [0, 1, 0, 0, 1, 0], [1], [1]>} : vector<8x4x32xbf16>, vector<32x4x32xbf16>, vector<4x8x32xf32> -> vector<4x8x32xf32>
    "tpu.trace_stop"() : () -> ()
    %cst_47 = arith.constant dense<0xFF800000> : vector<4x8xf32>
    %89 = vector.multi_reduction <maximumf>, %88, %cst_47 [2] : vector<4x8x32xf32> to vector<4x8xf32>
    %90 = vector.shape_cast %89 : vector<4x8xf32> to vector<4x8x1xf32>
    %91 = vector.broadcast %90 : vector<4x8x1xf32> to vector<4x8x32xf32>
    %92 = arith.subf %88, %91 : vector<4x8x32xf32>
    %93 = math.exp %92 : vector<4x8x32xf32>
    %cst_48 = arith.constant dense<0.000000e+00> : vector<4x8xf32>
    %94 = vector.multi_reduction <add>, %93, %cst_48 [2] : vector<4x8x32xf32> to vector<4x8xf32>
    %95 = vector.shape_cast %94 : vector<4x8xf32> to vector<4x8x1xf32>
    %96 = tpu.reciprocal %95 {approx = true} : vector<4x8x1xf32> -> vector<4x8x1xf32>
    %97 = vector.broadcast %96 : vector<4x8x1xf32> to vector<4x8x32xf32>
    %98 = arith.mulf %93, %97 : vector<4x8x32xf32>
    %99 = arith.truncf %98 : vector<4x8x32xf32> to vector<4x8x32xbf16>
    "tpu.trace_start"() <{level = 10 : i32, message = "hnm,mhd->nhd"}> : () -> ()
    %cst_49 = arith.constant dense<0.000000e+00> : vector<4x32x8xf32>
    %100 = tpu.matmul %87, %99, %cst_49 {dimension_numbers = #tpu.dot_dimension_numbers<[0], [2], [2], [1], [0, 1, 0, 2, 1, 1], [1], [0]>} : vector<32x4x32xbf16>, vector<4x8x32xbf16>, vector<4x32x8xf32> -> vector<4x32x8xf32>
    %101 = tpu.transpose %100, [2, 0, 1] : vector<4x32x8xf32> -> vector<8x4x32xf32>
    "tpu.trace_stop"() : () -> ()
    %102 = vector.shape_cast %101 : vector<8x4x32xf32> to vector<8x128xf32>
    %103 = arith.truncf %102 : vector<8x128xf32> to vector<8x128xbf16>
    %c0_50 = arith.constant 0 : index
    %c0_51 = arith.constant 0 : index
    %104 = vector.load %arg17[%c0_50, %c0_51] : memref<128x128xbf16, #tpu.memory_space<vmem>>, vector<128x128xbf16>
    %cst_52 = arith.constant dense<0.000000e+00> : vector<8x128xf32>
    %105 = tpu.matmul %103, %104, %cst_52 {dimension_numbers = #tpu.dot_dimension_numbers<[1], [0], [0], [1], [0, 0, 1, 1], [], []>} : vector<8x128xbf16>, vector<128x128xbf16>, vector<8x128xf32> -> vector<8x128xf32>
    %c0_53 = arith.constant 0 : index
    %c0_54 = arith.constant 0 : index
    %106 = vector.load %arg18[%c0_53, %c0_54] : memref<1x128xf32, #tpu.memory_space<vmem>>, vector<1x128xf32>
    %107 = vector.broadcast %106 : vector<1x128xf32> to vector<8x128xf32>
    %108 = arith.addf %105, %107 : vector<8x128xf32>
    %109 = arith.addf %65, %108 : vector<8x128xf32>
    %cst_55 = arith.constant dense<0.000000e+00> : vector<8xf32>
    %110 = vector.multi_reduction <add>, %109, %cst_55 [1] : vector<8x128xf32> to vector<8xf32>
    %111 = vector.shape_cast %110 : vector<8xf32> to vector<8x1xf32>
    %cst_56 = arith.constant 1.280000e+02 : f32
    %112 = vector.broadcast %cst_56 : f32 to vector<8x1xf32>
    %113 = arith.divf %111, %112 : vector<8x1xf32>
    %114 = vector.broadcast %113 : vector<8x1xf32> to vector<8x128xf32>
    %115 = arith.subf %109, %114 : vector<8x128xf32>
    %116 = arith.mulf %115, %115 : vector<8x128xf32>
    %cst_57 = arith.constant dense<0.000000e+00> : vector<8xf32>
    %117 = vector.multi_reduction <add>, %116, %cst_57 [1] : vector<8x128xf32> to vector<8xf32>
    %118 = vector.shape_cast %117 : vector<8xf32> to vector<8x1xf32>
    %cst_58 = arith.constant 1.280000e+02 : f32
    %119 = vector.broadcast %cst_58 : f32 to vector<8x1xf32>
    %120 = arith.divf %118, %119 : vector<8x1xf32>
    %121 = vector.broadcast %113 : vector<8x1xf32> to vector<8x128xf32>
    %122 = arith.subf %109, %121 : vector<8x128xf32>
    %cst_59 = arith.constant 9.99999997E-7 : f32
    %123 = vector.broadcast %cst_59 : f32 to vector<8x1xf32>
    %124 = arith.addf %120, %123 : vector<8x1xf32>
    %125 = math.rsqrt %124 : vector<8x1xf32>
    %126 = vector.broadcast %125 : vector<8x1xf32> to vector<8x128xf32>
    %127 = arith.mulf %122, %126 : vector<8x128xf32>
    %128 = arith.truncf %127 : vector<8x128xf32> to vector<8x128xbf16>
    %c0_60 = arith.constant 0 : index
    %c0_61 = arith.constant 0 : index
    %129 = vector.load %arg19[%c0_60, %c0_61] : memref<128x512xbf16, #tpu.memory_space<vmem>>, vector<128x512xbf16>
    %cst_62 = arith.constant dense<0.000000e+00> : vector<8x512xf32>
    %130 = tpu.matmul %128, %129, %cst_62 {dimension_numbers = #tpu.dot_dimension_numbers<[1], [0], [0], [1], [0, 0, 1, 1], [], []>} : vector<8x128xbf16>, vector<128x512xbf16>, vector<8x512xf32> -> vector<8x512xf32>
    %c0_63 = arith.constant 0 : index
    %c0_64 = arith.constant 0 : index
    %131 = vector.load %arg20[%c0_63, %c0_64] : memref<1x512xf32, #tpu.memory_space<vmem>>, vector<1x512xf32>
    %132 = vector.broadcast %131 : vector<1x512xf32> to vector<8x512xf32>
    %133 = arith.addf %130, %132 : vector<8x512xf32>
    %134 = arith.mulf %133, %133 : vector<8x512xf32>
    %135 = arith.mulf %133, %134 : vector<8x512xf32>
    %cst_65 = arith.constant 4.471500e-02 : f32
    %136 = vector.broadcast %cst_65 : f32 to vector<8x512xf32>
    %137 = arith.mulf %136, %135 : vector<8x512xf32>
    %138 = arith.addf %133, %137 : vector<8x512xf32>
    %cst_66 = arith.constant 0.797884583 : f32
    %139 = vector.broadcast %cst_66 : f32 to vector<8x512xf32>
    %140 = arith.mulf %139, %138 : vector<8x512xf32>
    %141 = math.tanh %140 : vector<8x512xf32>
    %cst_67 = arith.constant 1.000000e+00 : f32
    %142 = vector.broadcast %cst_67 : f32 to vector<8x512xf32>
    %143 = arith.addf %142, %141 : vector<8x512xf32>
    %cst_68 = arith.constant 5.000000e-01 : f32
    %144 = vector.broadcast %cst_68 : f32 to vector<8x512xf32>
    %145 = arith.mulf %144, %143 : vector<8x512xf32>
    %146 = arith.mulf %133, %145 : vector<8x512xf32>
    %147 = arith.truncf %146 : vector<8x512xf32> to vector<8x512xbf16>
    %c0_69 = arith.constant 0 : index
    %c0_70 = arith.constant 0 : index
    %148 = vector.load %arg21[%c0_69, %c0_70] : memref<512x128xbf16, #tpu.memory_space<vmem>>, vector<512x128xbf16>
    %cst_71 = arith.constant dense<0.000000e+00> : vector<8x128xf32>
    %149 = tpu.matmul %147, %148, %cst_71 {dimension_numbers = #tpu.dot_dimension_numbers<[1], [0], [0], [1], [0, 0, 1, 1], [], []>} : vector<8x512xbf16>, vector<512x128xbf16>, vector<8x128xf32> -> vector<8x128xf32>
    %c0_72 = arith.constant 0 : index
    %c0_73 = arith.constant 0 : index
    %150 = vector.load %arg22[%c0_72, %c0_73] : memref<1x128xf32, #tpu.memory_space<vmem>>, vector<1x128xf32>
    %151 = vector.broadcast %150 : vector<1x128xf32> to vector<8x128xf32>
    %152 = arith.addf %149, %151 : vector<8x128xf32>
    %153 = arith.addf %109, %152 : vector<8x128xf32>
    %c0_74 = arith.constant 0 : index
    %c0_75 = arith.constant 0 : index
    %154 = vector.load %arg23[%c0_74, %c0_75] : memref<8x128xf32, #tpu.memory_space<vmem>>, vector<8x128xf32>
    tpu.vector_store %arg23[%c0_74, %c0_75], %153 {strides = array<i32>} : memref<8x128xf32, #tpu.memory_space<vmem>>, vector<8x128xf32>,
    return
  }
  func.func @transform_0(%arg0: i32) -> (i32, i32) {
    %c0_i32 = arith.constant 0 : i32
    %c0_i32_0 = arith.constant 0 : i32
    return %arg0, %c0_i32 : i32, i32
  }
  func.func @transform_1(%arg0: i32) -> (i32, i32) {
    %c0_i32 = arith.constant 0 : i32
    %c0_i32_0 = arith.constant 0 : i32
    %c0_i32_1 = arith.constant 0 : i32
    return %c0_i32, %c0_i32_0 : i32, i32
  }
  func.func @transform_2(%arg0: i32) -> (i32, i32) {
    %c0_i32 = arith.constant 0 : i32
    %c0_i32_0 = arith.constant 0 : i32
    %c0_i32_1 = arith.constant 0 : i32
    return %c0_i32, %c0_i32_0 : i32, i32
  }
  func.func @transform_3(%arg0: i32) -> (i32, i32) {
    %c0_i32 = arith.constant 0 : i32
    %c0_i32_0 = arith.constant 0 : i32
    %c0_i32_1 = arith.constant 0 : i32
    return %c0_i32, %c0_i32_0 : i32, i32
  }
  func.func @transform_4(%arg0: i32) -> (i32, i32) {
    %c0_i32 = arith.constant 0 : i32
    %c0_i32_0 = arith.constant 0 : i32
    %c0_i32_1 = arith.constant 0 : i32
    return %c0_i32, %c0_i32_0 : i32, i32
  }
  func.func @transform_5(%arg0: i32) -> (i32, i32) {
    %c0_i32 = arith.constant 0 : i32
    %c0_i32_0 = arith.constant 0 : i32
    %c0_i32_1 = arith.constant 0 : i32
    return %c0_i32, %c0_i32_0 : i32, i32
  }
  func.func @transform_6(%arg0: i32) -> (i32, i32) {
    %c0_i32 = arith.constant 0 : i32
    %c0_i32_0 = arith.constant 0 : i32
    %c0_i32_1 = arith.constant 0 : i32
    return %c0_i32, %c0_i32_0 : i32, i32
  }
  func.func @transform_7(%arg0: i32) -> (i32, i32) {
    %c0_i32 = arith.constant 0 : i32
    %c0_i32_0 = arith.constant 0 : i32
    %c0_i32_1 = arith.constant 0 : i32
    return %c0_i32, %c0_i32_0 : i32, i32
  }
  func.func @transform_8(%arg0: i32) -> (i32, i32) {
    %c0_i32 = arith.constant 0 : i32
    %c0_i32_0 = arith.constant 0 : i32
    %c0_i32_1 = arith.constant 0 : i32
    return %c0_i32, %c0_i32_0 : i32, i32
  }
  func.func @transform_9(%arg0: i32) -> (i32, i32) {
    %c0_i32 = arith.constant 0 : i32
    %c0_i32_0 = arith.constant 0 : i32
    %c0_i32_1 = arith.constant 0 : i32
    return %c0_i32, %c0_i32_0 : i32, i32
  }
  func.func @transform_10(%arg0: i32) -> (i32, i32) {
    %c0_i32 = arith.constant 0 : i32
    %c0_i32_0 = arith.constant 0 : i32
    %c0_i32_1 = arith.constant 0 : i32
    return %c0_i32, %c0_i32_0 : i32, i32
  }
  func.func @transform_11(%arg0: i32) -> (i32, i32) {
    %c0_i32 = arith.constant 0 : i32
    %c0_i32_0 = arith.constant 0 : i32
    %c0_i32_1 = arith.constant 0 : i32
    return %c0_i32, %c0_i32_0 : i32, i32
  }
  func.func @transform_12(%arg0: i32) -> (i32, i32) {
    %c0_i32 = arith.constant 0 : i32
    %c0_i32_0 = arith.constant 0 : i32
    %c0_i32_1 = arith.constant 0 : i32
    return %c0_i32, %c0_i32_0 : i32, i32
  }
  func.func @transform_13(%arg0: i32) -> (i32, i32) {
    %c0_i32 = arith.constant 0 : i32
    %c0_i32_0 = arith.constant 0 : i32
    %c0_i32_1 = arith.constant 0 : i32
    return %c0_i32, %c0_i32_0 : i32, i32
  }
  func.func @transform_14(%arg0: i32) -> (i32, i32) {
    %c0_i32 = arith.constant 0 : i32
    %c0_i32_0 = arith.constant 0 : i32
    %c0_i32_1 = arith.constant 0 : i32
    return %c0_i32, %c0_i32_0 : i32, i32
  }
  func.func @transform_15(%arg0: i32) -> (i32, i32) {
    %c0_i32 = arith.constant 0 : i32
    %c0_i32_0 = arith.constant 0 : i32
    %c0_i32_1 = arith.constant 0 : i32
    return %c0_i32, %c0_i32_0 : i32, i32
  }
  func.func @transform_16(%arg0: i32) -> (i32, i32) {
    %c0_i32 = arith.constant 0 : i32
    %c0_i32_0 = arith.constant 0 : i32
    %c0_i32_1 = arith.constant 0 : i32
    return %c0_i32, %c0_i32_0 : i32, i32
  }
  func.func @transform_17(%arg0: i32) -> (i32, i32) {
    %c0_i32 = arith.constant 0 : i32
    %c0_i32_0 = arith.constant 0 : i32
    %c0_i32_1 = arith.constant 0 : i32
    return %c0_i32, %c0_i32_0 : i32, i32
  }
  func.func @transform_18(%arg0: i32) -> (i32, i32) {
    %c0_i32 = arith.constant 0 : i32
    %c0_i32_0 = arith.constant 0 : i32
    %c0_i32_1 = arith.constant 0 : i32
    return %c0_i32, %c0_i32_0 : i32, i32
  }
  func.func @transform_19(%arg0: i32) -> (i32, i32) {
    %c0_i32 = arith.constant 0 : i32
    %c0_i32_0 = arith.constant 0 : i32
    %c0_i32_1 = arith.constant 0 : i32
    return %c0_i32, %c0_i32_0 : i32, i32
  }
  func.func @transform_20(%arg0: i32) -> (i32, i32) {
    %c0_i32 = arith.constant 0 : i32
    %c0_i32_0 = arith.constant 0 : i32
    %c0_i32_1 = arith.constant 0 : i32
    return %c0_i32, %c0_i32_0 : i32, i32
  }
  func.func @transform_21(%arg0: i32) -> (i32, i32) {
    %c0_i32 = arith.constant 0 : i32
    %c0_i32_0 = arith.constant 0 : i32
    %c0_i32_1 = arith.constant 0 : i32
    return %c0_i32, %c0_i32_0 : i32, i32
  }
  func.func @transform_22(%arg0: i32) -> (i32, i32) {
    %c0_i32 = arith.constant 0 : i32
    %c0_i32_0 = arith.constant 0 : i32
    return %arg0, %c0_i32 : i32, i32
  }
}

</mosaic_0001>

<bundles_post_ra>
// kernel: tpu_custom_call.1
= control target key start
LH: loop header
LB: loop body
LE: loop exit
PB: predicated region body
PF: predicated region fallthrough
CT: control target
= control target key end

     0   :  { %s18644_s0 = inlined_call_operand.hbm [shape: f32[16,128], index: 0, kind: input, shape index: {}]   ;;  %s18645_s1 = inlined_call_operand.hbm [shape: bf16[32,128], index: 1, kind: input, shape index: {}]   ;;  %s18646_s2 = inlined_call_operand.hbm [shape: bf16[128,128], index: 2, kind: input, shape index: {}]   ;;  %s18647_s3 = inlined_call_operand.hbm [shape: f32[1,128], index: 3, kind: input, shape index: {}]   ;;  %s18648_s4 = inlined_call_operand.hbm [shape: bf16[128,128], index: 4, kind: input, shape index: {}]   ;;  %s18649_s5 = inlined_call_operand.hbm [shape: f32[1,128], index: 5, kind: input, shape index: {}]   ;;  %s18650_s6 = inlined_call_operand.hbm [shape: bf16[128,128], index: 6, kind: input, shape index: {}]   ;;  %s18651_s7 = inlined_call_operand.hbm [shape: f32[1,128], index: 7, kind: input, shape index: {}]   ;;  %s18652_s8 = inlined_call_operand.hbm [shape: bf16[128,128], index: 8, kind: input, shape index: {}]   ;;  %s18653_s9 = inlined_call_operand.hbm [shape: f32[1,128], index: 9, kind: input, shape index: {}]   ;;  %s18654_s10 = inlined_call_operand.hbm [shape: bf16[128,128], index: 10, kind: input, shape index: {}]   ;;  %s18655_s11 = inlined_call_operand.hbm [shape: f32[1,128], index: 11, kind: input, shape index: {}]   ;;  %s18656_s12 = inlined_call_operand.hbm [shape: bf16[128,128], index: 12, kind: input, shape index: {}]   ;;  %s18657_s13 = inlined_call_operand.hbm [shape: f32[1,128], index: 13, kind: input, shape index: {}]   ;;  %s18658_s14 = inlined_call_operand.hbm [shape: bf16[128,128], index: 14, kind: input, shape index: {}]   ;;  %s18659_s15 = inlined_call_operand.hbm [shape: f32[1,128], index: 15, kind: input, shape index: {}]   ;;  %s18660_s16 = inlined_call_operand.hbm [shape: bf16[128,128], index: 16, kind: input, shape index: {}]   ;;  %s18661_s17 = inlined_call_operand.hbm [shape: f32[1,128], index: 17, kind: input, shape index: {}]   ;;  %s18662_s18 = inlined_call_operand.hbm [shape: bf16[128,512], index: 18, kind: input, shape index: {}]   ;;  %s18663_s19 = inlined_call_operand.hbm [shape: f32[1,512], index: 19, kind: input, shape index: {}]   ;;  %s18664_s20 = inlined_call_operand.hbm [shape: bf16[512,128], index: 20, kind: input, shape index: {}]   ;;  %s18665_s21 = inlined_call_operand.hbm [shape: f32[1,128], index: 21, kind: input, shape index: {}]   ;;  %s18666_s22 = inlined_call_operand.hbm [shape: f32[16,128], index: 22, kind: output, shape index: {}]  }
   0x1   :  { %18785 = sst [smem:[#allocation98_spill]] %s18644_s0 }
   0x2   :  { %18786 = sst [smem:[#allocation99_spill]] %s18645_s1 }
   0x3   :  { %18787 = sst [smem:[#allocation100_spill]] %s18646_s2 }
   0x4   :  { %18788 = sst [smem:[#allocation101_spill]] %s18647_s3 }
   0x5   :  { %18789 = sst [smem:[#allocation102_spill]] %s18648_s4 }
   0x6   :  { %18790 = sst [smem:[#allocation103_spill]] %s18649_s5 }
   0x7   :  { %18791 = sst [smem:[#allocation104_spill]] %s18650_s6 }
   0x8   :  { %18792 = sst [smem:[#allocation105_spill]] %s18651_s7 }
   0x9   :  { %18793 = sst [smem:[#allocation106_spill]] %s18652_s8 }
   0xa   :  { %18794 = sst [smem:[#allocation107_spill]] %s18653_s9 }
   0xb   :  { %18795 = sst [smem:[#allocation108_spill]] %s18654_s10 }
   0xc   :  { %18796 = sst [smem:[#allocation109_spill]] %s18655_s11 }
   0xd   :  { %18797 = sst [smem:[#allocation110_spill]] %s18656_s12 }
   0xe   :  { %18798 = sst [smem:[#allocation111_spill]] %s18662_s18 }
   0xf   :  { %18799 = sst [smem:[#allocation112_spill]] %s18664_s20 }
  0x10   :  { %18800 = sst [smem:[#allocation113_spill]] %s18665_s21 }
  0x11   :  { %18801 = sst [smem:[#allocation114_spill]] %s18666_s22 }
  0x12   :  { %27 = vsyncpa [#allocation3], 0 }
  0x13   :  { %29 = vsyncpa [#allocation3 + $0x1], 0 }
  0x14   :  { %30 = vsyncpa [#allocation6], 0 }
  0x15   :  { %31 = vsyncpa [#allocation9], 0 }
  0x16   :  { %32 = vsyncpa [#allocation12], 0 }
  0x17   :  { %33 = vsyncpa [#allocation15], 0 }
  0x18   :  { %34 = vsyncpa [#allocation18], 0 }
  0x19   :  { %35 = vsyncpa [#allocation21], 0 }
  0x1a   :  { %36 = vsyncpa [#allocation24], 0 }
  0x1b   :  { %37 = vsyncpa [#allocation27], 0 }
  0x1c   :  { %38 = vsyncpa [#allocation30], 0 }
  0x1d   :  { %39 = vsyncpa [#allocation33], 0 }
  0x1e   :  { %40 = vsyncpa [#allocation36], 0 }
  0x1f   :  { %41 = vsyncpa [#allocation4], 0 }
  0x20   :  { %43 = vsyncpa [#allocation4 + $0x1], 0  ;;  %s15140_s3 = smov 0   ;;  %s15142_s28 = smov 0  }
  0x21   :  { %s15144_s29 = smov 0   ;;  %s15146_s30 = smov 0  }
  0x22 LB: > { %18802 = sst [smem:[#allocation51_spill]] %s14976_s3  ;;  %s14990_s4 = smov [#allocation5]   ;;  %s14988_s30 = sphi %s15146_s30, %s15618_s30   ;;  %s14984_s29 = sphi %s15144_s29, %s15630_s29   ;;  %s14980_s28 = sphi %s15142_s28, %s19116_s28   ;;  %s14976_s3 = sphi %s15140_s3, %s19115_s3  }
  0x23   : > { %18803 = sst [smem:[#allocation52_spill]] %s14980_s28  ;;  %s559_s0 = sshll.u32 %s14990_s4, 4  ;;  %s15166_s0 = int_to_ptr.vmem [resolvable:$true] %s559_s0 }
  0x24   : > { %18804 = sst [smem:[#allocation53_spill]] %s14984_s29  ;;  %s15161_s23 = sadd.s32 4294967295, %s14988_s30  }
  0x25   : > { %18805 = sst [smem:[#allocation54_spill]] %s14988_s30  ;;  %p13126_p0 = scmp.ge.s32.totalorder %s14988_s30, 1 }
  0x26   : > { %18806 = sst [smem:[#allocation55_spill]] %s15161_s23  ;;  %p18688_p1 = scmp.eq.s32.totalorder %s15161_s23, 0 }
  0x27   : > { %p547_p2 = scmp.lt.s32.totalorder %s14988_s30, 3  ;;  %s14991_s5 = smov [#allocation8]  }
  0x28   : > { %s586_s24 = sshll.u32 %s14991_s5, 4  ;;  %s14992_s25 = smov [#allocation11]   ;;  %s15181_s24 = int_to_ptr.vmem [resolvable:$true] %s586_s24 }
  0x29   : > { %p15168_p3 = pnand %p13126_p0, %p547_p2  ;;  %s610_s26 = sshll.u32 %s14992_s25, 4  ;;  %s15183_s26 = int_to_ptr.vmem [resolvable:$true] %s610_s26 }
  0x2a   : > { %s18810_s4 = sld [smem:[#allocation99_spill]] }
  0x2b   : > { %s18807_s1 = scalar_select %p15168_p3, 1, 0 }
  0x2c   : > { %p13888_p5 = pneg %p15168_p3 }
  0x2d   : > { %18808 = sst [smem:[#allocation56_spill]] %s18807_s1 }
  0x2e   : > { %p15177_p6 = pnand %p13888_p5, %p18688_p1 }
  0x30   : > { %s14260_s22 = scalar_lea.hbm %s18810_s4, 256  ;;  %p15193_p8 = pneg %p15177_p6 }
  0x31   : > { %p14261_p7 = scmp.ne.s32.totalorder %s18810_s4, %s14260_s22  ;;  %p14267_p11 = scmp.lt.u32.totalorder %s14260_s22, %s18810_s4 }
  0x33   : > { %p14263_p9 = pnand %p15193_p8, %p14261_p7 }
  0x35   : > { %p14264_p10 = pneg %p14263_p9 }
  0x37   : > { %p14269_p12 = pnand %p14267_p11, %p14264_p10 }
  0x39   : > { %14272 = shalt.err (!%p14269_p12)
}
  0x3a   : > { %s14273_s3 = scalar_lea.vmem %s15166_s0, 256  ;;  %p14281_p5 = scmp.lt.s32.totalorder %s15166_s0, %s15166_s0 }
  0x3b   : > { %p14274_p13 = scmp.ne.s32.totalorder %s15166_s0, %s14273_s3  ;;  %p14282_p4 = scmp.lt.s32.totalorder %s14273_s3, %s14273_s3 }
  0x3d   : > { %p14276_p0 = pnand %p14274_p13, %p15193_p8  ;;  %p14283_p7 = por %p14282_p4, %p14281_p5 }
  0x3f   : > { %p14277_p2 = pneg %p14276_p0 }
  0x41   : > { %p14284_p9 = pnand %p14283_p7, %p14277_p2 }
  0x43   : > { %14287 = shalt.err (!%p14284_p9)
}
  0x44   : > { %s18686_s1 = smov 64   ;;  %s18692_s22 = smov 4  }
  0x45   : > { %13891 = dma.hbm_to_vmem [thread:$0]  (!%p15177_p6), %s18810_s4, 256, %s15166_s0, [#allocation6], %s18686_s1, %s18686_s1, %s18692_s22  }
  0x46   : > { %s18812_s28 = sld [smem:[#allocation101_spill]] }
  0x4c   : > { %s18813_s21 = smov %s18812_s28  ;;  %s14288_s3 = scalar_lea.hbm %s18812_s28, 16 }
  0x4d   : > { %p14289_p4 = scmp.ne.s32.totalorder %s18813_s21, %s14288_s3  ;;  %p14295_p12 = scmp.lt.u32.totalorder %s14288_s3, %s18813_s21 }
  0x4f   : > { %p14291_p10 = pnand %p14289_p4, %p15193_p8 }
  0x51   : > { %p14292_p11 = pneg %p14291_p10 }
  0x53   : > { %p14297_p13 = pnand %p14295_p12, %p14292_p11 }
  0x55   : > { %14300 = shalt.err (!%p14297_p13)
}
  0x56   : > { %s14301_s0 = scalar_lea.vmem %s15181_s24, 16  ;;  %s14308_s28 = scalar_lea.vmem %s15181_s24, 32 }
  0x57   : > { %p14302_p0 = scmp.ne.s32.totalorder %s15181_s24, %s14301_s0  ;;  %p14309_p7 = scmp.lt.s32.totalorder %s15181_s24, %s15181_s24 }
  0x58   : > { %p14310_p9 = scmp.lt.s32.totalorder %s14308_s28, %s14301_s0 }
  0x59   : > { %p14304_p2 = pnand %p14302_p0, %p15193_p8 }
  0x5a   : > { %p14311_p4 = por %p14310_p9, %p14309_p7 }
  0x5b   : > { %p14305_p5 = pneg %p14304_p2 }
  0x5d   : > { %p14312_p10 = pnand %p14311_p4, %p14305_p5 }
  0x5f   : > { %14315 = shalt.err (!%p14312_p10)
}
  0x60   : > { %13897 = dma.hbm_to_vmem [thread:$0]  (!%p15177_p6), %s18813_s21, 16, %s15181_s24, [#allocation9]  }
  0x61   : > { %s18814_s23 = sld [smem:[#allocation103_spill]] }
  0x67   : > { %s14316_s2 = scalar_lea.hbm %s18814_s23, 16 }
  0x68   : > { %p14317_p11 = scmp.ne.s32.totalorder %s18814_s23, %s14316_s2  ;;  %p14323_p0 = scmp.lt.u32.totalorder %s14316_s2, %s18814_s23 }
  0x6a   : > { %p14319_p12 = pnand %p14317_p11, %p15193_p8 }
  0x6c   : > { %p14320_p13 = pneg %p14319_p12 }
  0x6e   : > { %p14325_p2 = pnand %p14323_p0, %p14320_p13 }
  0x70   : > { %14328 = shalt.err (!%p14325_p2)
}
  0x71   : > { %s14329_s24 = scalar_lea.vmem %s15183_s26, 16  ;;  %s14336_s28 = scalar_lea.vmem %s15183_s26, 32 }
  0x72   : > { %p14330_p5 = scmp.ne.s32.totalorder %s15183_s26, %s14329_s24  ;;  %p14337_p4 = scmp.lt.s32.totalorder %s15183_s26, %s15183_s26 }
  0x73   : > { %p14338_p10 = scmp.lt.s32.totalorder %s14336_s28, %s14329_s24 }
  0x74   : > { %p14332_p7 = pnand %p14330_p5, %p15193_p8 }
  0x75   : > { %p14339_p11 = por %p14338_p10, %p14337_p4 }
  0x76   : > { %p14333_p9 = pneg %p14332_p7 }
  0x78   : > { %p14340_p12 = pnand %p14339_p11, %p14333_p9 }
  0x7a   : > { %14343 = shalt.err (!%p14340_p12)
}
  0x7b   : > { %13903 = dma.hbm_to_vmem [thread:$0]  (!%p15177_p6), %s18814_s23, 16, %s15183_s26, [#allocation12]  }
  0x7c   : > { %s14995_s29 = smov [#allocation14]   ;;  %s14996_s2 = smov [#allocation17]  }
  0x7d   : > { %s634_s30 = sshll.u32 %s14995_s29, 4  ;;  %s658_s27 = sshll.u32 %s14996_s2, 4  ;;  %s635_s30 = int_to_ptr.vmem [resolvable:$true] %s634_s30  ;;  %s659_s27 = int_to_ptr.vmem [resolvable:$true] %s658_s27 }
  0x7e   : > { %s18815_s7 = sld [smem:[#allocation105_spill]] }
  0x84   : > { %s14344_s0 = scalar_lea.hbm %s18815_s7, 16 }
  0x85   : > { %p14345_p13 = scmp.ne.s32.totalorder %s18815_s7, %s14344_s0  ;;  %p14351_p5 = scmp.lt.u32.totalorder %s14344_s0, %s18815_s7 }
  0x87   : > { %p14347_p0 = pnand %p14345_p13, %p15193_p8 }
  0x89   : > { %p14348_p2 = pneg %p14347_p0 }
  0x8b   : > { %p14353_p7 = pnand %p14351_p5, %p14348_p2 }
  0x8d   : > { %14356 = shalt.err (!%p14353_p7)
}
  0x8e   : > { %s14357_s26 = scalar_lea.vmem %s635_s30, 16  ;;  %s14364_s20 = scalar_lea.vmem %s635_s30, 32 }
  0x8f   : > { %p14358_p9 = scmp.ne.s32.totalorder %s635_s30, %s14357_s26  ;;  %p14365_p11 = scmp.lt.s32.totalorder %s635_s30, %s635_s30 }
  0x90   : > { %p14366_p12 = scmp.lt.s32.totalorder %s14364_s20, %s14357_s26 }
  0x91   : > { %p14360_p4 = pnand %p14358_p9, %p15193_p8 }
  0x92   : > { %p14367_p1 = por %p14366_p12, %p14365_p11 }
  0x93   : > { %p14361_p10 = pneg %p14360_p4 }
  0x95   : > { %p14368_p3 = pnand %p14367_p1, %p14361_p10 }
  0x97   : > { %14371 = shalt.err (!%p14368_p3)
}
  0x98   : > { %13909 = dma.hbm_to_vmem [thread:$0]  (!%p15177_p6), %s18815_s7, 16, %s635_s30, [#allocation15]  }
  0x99   : > { %s18816_s9 = sld [smem:[#allocation107_spill]] }
  0x9f   : > { %s14372_s3 = scalar_lea.hbm %s18816_s9, 16 }
  0xa0   : > { %p14373_p13 = scmp.ne.s32.totalorder %s18816_s9, %s14372_s3  ;;  %p14379_p3 = scmp.lt.u32.totalorder %s14372_s3, %s18816_s9 }
  0xa2   : > { %p14375_p0 = pnand %p14373_p13, %p15193_p8 }
  0xa4   : > { %p14376_p1 = pneg %p14375_p0 }
  0xa6   : > { %p14381_p2 = pnand %p14379_p3, %p14376_p1 }
  0xa8   : > { %14384 = shalt.err (!%p14381_p2)
}
  0xa9   : > { %s14385_s26 = scalar_lea.vmem %s659_s27, 16  ;;  %s14392_s30 = scalar_lea.vmem %s659_s27, 32 }
  0xaa   : > { %p14386_p5 = scmp.ne.s32.totalorder %s659_s27, %s14385_s26  ;;  %p14393_p4 = scmp.lt.s32.totalorder %s659_s27, %s659_s27 }
  0xab   : > { %p14394_p10 = scmp.lt.s32.totalorder %s14392_s30, %s14385_s26 }
  0xac   : > { %p14388_p7 = pnand %p14386_p5, %p15193_p8 }
  0xad   : > { %p14395_p11 = por %p14394_p10, %p14393_p4 }
  0xae   : > { %p14389_p9 = pneg %p14388_p7 }
  0xb0   : > { %p14396_p12 = pnand %p14395_p11, %p14389_p9 }
  0xb2   : > { %14399 = shalt.err (!%p14396_p12)
}
  0xb3   : > { %13915 = dma.hbm_to_vmem [thread:$0]  (!%p15177_p6), %s18816_s9, 16, %s659_s27, [#allocation18]  }
  0xb4   : > { %s14997_s2 = smov [#allocation20]   ;;  %s14998_s25 = smov [#allocation23]  }
  0xb5   : > { %s682_s1 = sshll.u32 %s14997_s2, 4  ;;  %s706_s3 = sshll.u32 %s14998_s25, 4  ;;  %s683_s1 = int_to_ptr.vmem [resolvable:$true] %s682_s1  ;;  %s707_s3 = int_to_ptr.vmem [resolvable:$true] %s706_s3 }
  0xb6   : > { %s18817_s11 = sld [smem:[#allocation109_spill]] }
  0xbc   : > { %s14400_s28 = scalar_lea.hbm %s18817_s11, 16 }
  0xbd   : > { %p14401_p13 = scmp.ne.s32.totalorder %s18817_s11, %s14400_s28  ;;  %p14407_p3 = scmp.lt.u32.totalorder %s14400_s28, %s18817_s11 }
  0xbf   : > { %p14403_p0 = pnand %p14401_p13, %p15193_p8 }
  0xc1   : > { %p14404_p1 = pneg %p14403_p0 }
  0xc3   : > { %p14409_p2 = pnand %p14407_p3, %p14404_p1 }
  0xc5   : > { %14412 = shalt.err (!%p14409_p2)
}
  0xc6   : > { %s14413_s27 = scalar_lea.vmem %s683_s1, 16  ;;  %s14420_s29 = scalar_lea.vmem %s683_s1, 32 }
  0xc7   : > { %p14414_p5 = scmp.ne.s32.totalorder %s683_s1, %s14413_s27  ;;  %p14421_p4 = scmp.lt.s32.totalorder %s683_s1, %s683_s1 }
  0xc8   : > { %p14422_p10 = scmp.lt.s32.totalorder %s14420_s29, %s14413_s27 }
  0xc9   : > { %p14416_p7 = pnand %p14414_p5, %p15193_p8 }
  0xca   : > { %p14423_p11 = por %p14422_p10, %p14421_p4 }
  0xcb   : > { %p14417_p9 = pneg %p14416_p7 }
  0xcd   : > { %p14424_p12 = pnand %p14423_p11, %p14417_p9 }
  0xcf   : > { %14427 = shalt.err (!%p14424_p12)
}
  0xd0   : > { %13921 = dma.hbm_to_vmem [thread:$0]  (!%p15177_p6), %s18817_s11, 16, %s683_s1, [#allocation21]  }
  0xd1   : > { %s14428_s28 = scalar_lea.hbm %s18657_s13, 16 }
  0xd2   : > { %p14429_p13 = scmp.ne.s32.totalorder %s18657_s13, %s14428_s28  ;;  %p14435_p3 = scmp.lt.u32.totalorder %s14428_s28, %s18657_s13 }
  0xd4   : > { %p14431_p0 = pnand %p14429_p13, %p15193_p8 }
  0xd6   : > { %p14432_p1 = pneg %p14431_p0 }
  0xd8   : > { %p14437_p2 = pnand %p14435_p3, %p14432_p1 }
  0xda   : > { %14440 = shalt.err (!%p14437_p2)
}
  0xdb   : > { %s14441_s27 = scalar_lea.vmem %s707_s3, 16  ;;  %s14448_s1 = scalar_lea.vmem %s707_s3, 32 }
  0xdc   : > { %p14442_p5 = scmp.ne.s32.totalorder %s707_s3, %s14441_s27  ;;  %p14449_p4 = scmp.lt.s32.totalorder %s707_s3, %s707_s3 }
  0xdd   : > { %p14450_p10 = scmp.lt.s32.totalorder %s14448_s1, %s14441_s27 }
  0xde   : > { %p14444_p7 = pnand %p14442_p5, %p15193_p8 }
  0xdf   : > { %p14451_p11 = por %p14450_p10, %p14449_p4 }
  0xe0   : > { %p14445_p9 = pneg %p14444_p7 }
  0xe2   : > { %p14452_p12 = pnand %p14451_p11, %p14445_p9 }
  0xe4   : > { %14455 = shalt.err (!%p14452_p12)
}
  0xe5   : > { %13927 = dma.hbm_to_vmem [thread:$0]  (!%p15177_p6), %s18657_s13, 16, %s707_s3, [#allocation24]  }
  0xe6   : > { %s14999_s25 = smov [#allocation26]   ;;  %s15000_s24 = smov [#allocation29]  }
  0xe7   : > { %s730_s0 = sshll.u32 %s14999_s25, 4  ;;  %s754_s28 = sshll.u32 %s15000_s24, 4  ;;  %s731_s0 = int_to_ptr.vmem [resolvable:$true] %s730_s0  ;;  %s755_s28 = int_to_ptr.vmem [resolvable:$true] %s754_s28 }
  0xe8   : > { %s14456_s30 = scalar_lea.hbm %s18659_s15, 16 }
  0xe9   : > { %p14457_p13 = scmp.ne.s32.totalorder %s18659_s15, %s14456_s30  ;;  %p14463_p3 = scmp.lt.u32.totalorder %s14456_s30, %s18659_s15 }
  0xeb   : > { %p14459_p0 = pnand %p14457_p13, %p15193_p8 }
  0xed   : > { %p14460_p1 = pneg %p14459_p0 }
  0xef   : > { %p14465_p2 = pnand %p14463_p3, %p14460_p1 }
  0xf1   : > { %14468 = shalt.err (!%p14465_p2)
}
  0xf2   : > { %s14469_s3 = scalar_lea.vmem %s731_s0, 16  ;;  %s14476_s2 = scalar_lea.vmem %s731_s0, 32 }
  0xf3   : > { %p14470_p5 = scmp.ne.s32.totalorder %s731_s0, %s14469_s3  ;;  %p14477_p4 = scmp.lt.s32.totalorder %s731_s0, %s731_s0 }
  0xf4   : > { %p14478_p10 = scmp.lt.s32.totalorder %s14476_s2, %s14469_s3 }
  0xf5   : > { %p14472_p7 = pnand %p14470_p5, %p15193_p8 }
  0xf6   : > { %p14479_p11 = por %p14478_p10, %p14477_p4 }
  0xf7   : > { %p14473_p9 = pneg %p14472_p7 }
  0xf9   : > { %p14480_p12 = pnand %p14479_p11, %p14473_p9 }
  0xfb   : > { %14483 = shalt.err (!%p14480_p12)
}
  0xfc   : > { %13933 = dma.hbm_to_vmem [thread:$0]  (!%p15177_p6), %s18659_s15, 16, %s731_s0, [#allocation27]  }
  0xfd   : > { %s14484_s30 = scalar_lea.hbm %s18661_s17, 16 }
  0xfe   : > { %p14485_p13 = scmp.ne.s32.totalorder %s18661_s17, %s14484_s30  ;;  %p14491_p3 = scmp.lt.u32.totalorder %s14484_s30, %s18661_s17 }
 0x100   : > { %p14487_p0 = pnand %p14485_p13, %p15193_p8 }
 0x102   : > { %p14488_p1 = pneg %p14487_p0 }
 0x104   : > { %p14493_p2 = pnand %p14491_p3, %p14488_p1 }
 0x106   : > { %14496 = shalt.err (!%p14493_p2)
}
 0x107   : > { %s14497_s3 = scalar_lea.vmem %s755_s28, 16  ;;  %s14504_s0 = scalar_lea.vmem %s755_s28, 32 }
 0x108   : > { %p14498_p5 = scmp.ne.s32.totalorder %s755_s28, %s14497_s3  ;;  %p14505_p4 = scmp.lt.s32.totalorder %s755_s28, %s755_s28 }
 0x109   : > { %p14506_p10 = scmp.lt.s32.totalorder %s14504_s0, %s14497_s3 }
 0x10a   : > { %p14500_p7 = pnand %p14498_p5, %p15193_p8 }
 0x10b   : > { %p14507_p11 = por %p14506_p10, %p14505_p4 }
 0x10c   : > { %p14501_p9 = pneg %p14500_p7 }
 0x10e   : > { %p14508_p12 = pnand %p14507_p11, %p14501_p9 }
 0x110   : > { %14511 = shalt.err (!%p14508_p12)
}
 0x111   : > { %13939 = dma.hbm_to_vmem [thread:$0]  (!%p15177_p6), %s18661_s17, 16, %s755_s28, [#allocation30]  }
 0x112   : > { %s15001_s24 = smov [#allocation32]   ;;  %s15002_s26 = smov [#allocation7]  }
 0x113   : > { %s778_s18 = sshll.u32 %s15001_s24, 4  ;;  %s572_s30 = sshll.u32 %s15002_s26, 4  ;;  %s779_s18 = int_to_ptr.vmem [resolvable:$true] %s778_s18  ;;  %s573_s30 = int_to_ptr.vmem [resolvable:$true] %s572_s30 }
 0x114   : > { %s14512_s1 = scalar_lea.hbm %s18663_s19, 64 }
 0x115   : > { %p14513_p13 = scmp.ne.s32.totalorder %s18663_s19, %s14512_s1  ;;  %p14519_p3 = scmp.lt.u32.totalorder %s14512_s1, %s18663_s19 }
 0x117   : > { %p14515_p0 = pnand %p14513_p13, %p15193_p8 }
 0x119   : > { %p14516_p1 = pneg %p14515_p0 }
 0x11b   : > { %p14521_p2 = pnand %p14519_p3, %p14516_p1 }
 0x11d   : > { %14524 = shalt.err (!%p14521_p2)
}
 0x11e   : > { %s14525_s28 = scalar_lea.vmem %s779_s18, 64  ;;  %p14533_p4 = scmp.lt.s32.totalorder %s779_s18, %s779_s18 }
 0x11f   : > { %p14526_p5 = scmp.ne.s32.totalorder %s779_s18, %s14525_s28  ;;  %p14534_p10 = scmp.lt.s32.totalorder %s14525_s28, %s14525_s28 }
 0x121   : > { %p14528_p7 = pnand %p14526_p5, %p15193_p8  ;;  %p14535_p11 = por %p14534_p10, %p14533_p4 }
 0x123   : > { %p14529_p9 = pneg %p14528_p7 }
 0x125   : > { %p14536_p12 = pnand %p14535_p11, %p14529_p9 }
 0x127   : > { %14539 = shalt.err (!%p14536_p12)
}
 0x128   : > { %13945 = dma.hbm_to_vmem [thread:$0]  (!%p15177_p6), %s18663_s19, 64, %s779_s18, [#allocation33]  }
 0x129   : > { %s18818_s27 = sld [smem:[#allocation100_spill]] }
 0x12f   : > { %s14540_s1 = scalar_lea.hbm %s18818_s27, 1024 }
 0x130   : > { %p14541_p13 = scmp.ne.s32.totalorder %s18818_s27, %s14540_s1  ;;  %p14547_p3 = scmp.lt.u32.totalorder %s14540_s1, %s18818_s27 }
 0x132   : > { %p14543_p0 = pnand %p14541_p13, %p15193_p8 }
 0x134   : > { %p14544_p1 = pneg %p14543_p0 }
 0x136   : > { %p14549_p2 = pnand %p14547_p3, %p14544_p1 }
 0x138   : > { %14552 = shalt.err (!%p14549_p2)
}
 0x139   : > { %s14553_s28 = scalar_lea.vmem %s573_s30, 1024  ;;  %p14561_p4 = scmp.lt.s32.totalorder %s573_s30, %s573_s30 }
 0x13a   : > { %p14554_p5 = scmp.ne.s32.totalorder %s573_s30, %s14553_s28  ;;  %p14562_p10 = scmp.lt.s32.totalorder %s14553_s28, %s14553_s28 }
 0x13c   : > { %p14556_p7 = pnand %p14554_p5, %p15193_p8  ;;  %p14563_p11 = por %p14562_p10, %p14561_p4 }
 0x13e   : > { %p14557_p9 = pneg %p14556_p7 }
 0x140   : > { %p14564_p12 = pnand %p14563_p11, %p14557_p9 }
 0x142   : > { %14567 = shalt.err (!%p14564_p12)
}
 0x143   : > { %s18819_s18 = smov 64   ;;  %s15003_s26 = smov [#allocation10]  }
 0x144   : > { %13894 = dma.hbm_to_vmem [thread:$0]  (!%p15177_p6), %s18818_s27, 1024, %s573_s30, [#allocation6], %s18819_s18, %s18819_s18, %s18692_s22  }
 0x145   : > { %s596_s20 = sshll.u32 %s15003_s26, 4  ;;  %s15004_s1 = smov [#allocation13]   ;;  %s597_s20 = int_to_ptr.vmem [resolvable:$true] %s596_s20 }
 0x146   : > { %s620_s29 = sshll.u32 %s15004_s1, 4  ;;  %s18820_s2 = sld [smem:[#allocation102_spill]]  ;;  %s621_s29 = int_to_ptr.vmem [resolvable:$true] %s620_s29 }
 0x14c   : > { %s14568_s28 = scalar_lea.hbm %s18820_s2, 1024 }
 0x14d   : > { %p14569_p13 = scmp.ne.s32.totalorder %s18820_s2, %s14568_s28  ;;  %p14575_p3 = scmp.lt.u32.totalorder %s14568_s28, %s18820_s2 }
 0x14f   : > { %p14571_p0 = pnand %p14569_p13, %p15193_p8 }
 0x151   : > { %p14572_p1 = pneg %p14571_p0 }
 0x153   : > { %p14577_p2 = pnand %p14575_p3, %p14572_p1 }
 0x155   : > { %14580 = shalt.err (!%p14577_p2)
}
 0x156   : > { %s14581_s30 = scalar_lea.vmem %s597_s20, 1024  ;;  %p14589_p4 = scmp.lt.s32.totalorder %s597_s20, %s597_s20 }
 0x157   : > { %p14582_p5 = scmp.ne.s32.totalorder %s597_s20, %s14581_s30  ;;  %p14590_p10 = scmp.lt.s32.totalorder %s14581_s30, %s14581_s30 }
 0x159   : > { %p14584_p7 = pnand %p14582_p5, %p15193_p8  ;;  %p14591_p11 = por %p14590_p10, %p14589_p4 }
 0x15b   : > { %p14585_p9 = pneg %p14584_p7 }
 0x15d   : > { %p14592_p12 = pnand %p14591_p11, %p14585_p9 }
 0x15f   : > { %14595 = shalt.err (!%p14592_p12)
}
 0x160   : > { %13900 = dma.hbm_to_vmem [thread:$0]  (!%p15177_p6), %s18820_s2, 1024, %s597_s20, [#allocation9], %s18819_s18, %s18819_s18, %s18692_s22  }
 0x161   : > { %s18821_s26 = sld [smem:[#allocation104_spill]] }
 0x167   : > { %s14596_s1 = scalar_lea.hbm %s18821_s26, 1024 }
 0x168   : > { %p14597_p13 = scmp.ne.s32.totalorder %s18821_s26, %s14596_s1  ;;  %p14603_p3 = scmp.lt.u32.totalorder %s14596_s1, %s18821_s26 }
 0x16a   : > { %p14599_p0 = pnand %p14597_p13, %p15193_p8 }
 0x16c   : > { %p14600_p1 = pneg %p14599_p0 }
 0x16e   : > { %p14605_p2 = pnand %p14603_p3, %p14600_p1 }
 0x170   : > { %14608 = shalt.err (!%p14605_p2)
}
 0x171   : > { %s14609_s30 = scalar_lea.vmem %s621_s29, 1024  ;;  %p14617_p4 = scmp.lt.s32.totalorder %s621_s29, %s621_s29 }
 0x172   : > { %p14610_p5 = scmp.ne.s32.totalorder %s621_s29, %s14609_s30  ;;  %p14618_p10 = scmp.lt.s32.totalorder %s14609_s30, %s14609_s30 }
 0x174   : > { %p14612_p7 = pnand %p14610_p5, %p15193_p8  ;;  %p14619_p11 = por %p14618_p10, %p14617_p4 }
 0x176   : > { %p14613_p9 = pneg %p14612_p7 }
 0x178   : > { %p14620_p12 = pnand %p14619_p11, %p14613_p9 }
 0x17a   : > { %14623 = shalt.err (!%p14620_p12)
}
 0x17b   : > { %13906 = dma.hbm_to_vmem [thread:$0]  (!%p15177_p6), %s18821_s26, 1024, %s621_s29, [#allocation12], %s18819_s18, %s18819_s18, %s18692_s22  }
 0x17c   : > { %s15005_s9 = smov [#allocation16]   ;;  %s15006_s24 = smov [#allocation19]  }
 0x17d   : > { %s644_s4 = sshll.u32 %s15005_s9, 4  ;;  %s668_s1 = sshll.u32 %s15006_s24, 4  ;;  %s645_s4 = int_to_ptr.vmem [resolvable:$true] %s644_s4  ;;  %s669_s1 = int_to_ptr.vmem [resolvable:$true] %s668_s1 }
 0x17e   : > { %s18822_s8 = sld [smem:[#allocation106_spill]] }
 0x184   : > { %s14624_s28 = scalar_lea.hbm %s18822_s8, 1024 }
 0x185   : > { %p14625_p13 = scmp.ne.s32.totalorder %s18822_s8, %s14624_s28  ;;  %p14631_p3 = scmp.lt.u32.totalorder %s14624_s28, %s18822_s8 }
 0x187   : > { %p14627_p0 = pnand %p14625_p13, %p15193_p8 }
 0x189   : > { %p14628_p1 = pneg %p14627_p0 }
 0x18b   : > { %p14633_p2 = pnand %p14631_p3, %p14628_p1 }
 0x18d   : > { %14636 = shalt.err (!%p14633_p2)
}
 0x18e   : > { %s14637_s29 = scalar_lea.vmem %s645_s4, 1024  ;;  %p14645_p4 = scmp.lt.s32.totalorder %s645_s4, %s645_s4 }
 0x18f   : > { %p14638_p5 = scmp.ne.s32.totalorder %s645_s4, %s14637_s29  ;;  %p14646_p10 = scmp.lt.s32.totalorder %s14637_s29, %s14637_s29 }
 0x191   : > { %p14640_p7 = pnand %p14638_p5, %p15193_p8  ;;  %p14647_p11 = por %p14646_p10, %p14645_p4 }
 0x193   : > { %p14641_p9 = pneg %p14640_p7 }
 0x195   : > { %p14648_p12 = pnand %p14647_p11, %p14641_p9 }
 0x197   : > { %14651 = shalt.err (!%p14648_p12)
}
 0x198   : > { %13912 = dma.hbm_to_vmem [thread:$0]  (!%p15177_p6), %s18822_s8, 1024, %s645_s4, [#allocation15], %s18819_s18, %s18819_s18, %s18692_s22  }
 0x199   : > { %s18823_s10 = sld [smem:[#allocation108_spill]] }
 0x19f   : > { %s14652_s3 = scalar_lea.hbm %s18823_s10, 1024 }
 0x1a0   : > { %p14653_p13 = scmp.ne.s32.totalorder %s18823_s10, %s14652_s3  ;;  %p14659_p3 = scmp.lt.u32.totalorder %s14652_s3, %s18823_s10 }
 0x1a2   : > { %p14655_p0 = pnand %p14653_p13, %p15193_p8 }
 0x1a4   : > { %p14656_p1 = pneg %p14655_p0 }
 0x1a6   : > { %p14661_p2 = pnand %p14659_p3, %p14656_p1 }
 0x1a8   : > { %14664 = shalt.err (!%p14661_p2)
}
 0x1a9   : > { %s14665_s20 = scalar_lea.vmem %s669_s1, 1024  ;;  %p14673_p4 = scmp.lt.s32.totalorder %s669_s1, %s669_s1 }
 0x1aa   : > { %p14666_p5 = scmp.ne.s32.totalorder %s669_s1, %s14665_s20  ;;  %p14674_p10 = scmp.lt.s32.totalorder %s14665_s20, %s14665_s20 }
 0x1ac   : > { %p14668_p7 = pnand %p14666_p5, %p15193_p8  ;;  %p14675_p11 = por %p14674_p10, %p14673_p4 }
 0x1ae   : > { %p14669_p9 = pneg %p14668_p7 }
 0x1b0   : > { %p14676_p12 = pnand %p14675_p11, %p14669_p9 }
 0x1b2   : > { %14679 = shalt.err (!%p14676_p12)
}
 0x1b3   : > { %13918 = dma.hbm_to_vmem [thread:$0]  (!%p15177_p6), %s18823_s10, 1024, %s669_s1, [#allocation18], %s18819_s18, %s18819_s18, %s18692_s22  }
 0x1b4   : > { %s15007_s2 = smov [#allocation22]   ;;  %s15008_s9 = smov [#allocation25]  }
 0x1b5   : > { %s692_s7 = sshll.u32 %s15007_s2, 4  ;;  %s716_s24 = sshll.u32 %s15008_s9, 4  ;;  %s693_s7 = int_to_ptr.vmem [resolvable:$true] %s692_s7  ;;  %s717_s24 = int_to_ptr.vmem [resolvable:$true] %s716_s24 }
 0x1b6   : > { %s18824_s12 = sld [smem:[#allocation110_spill]] }
 0x1bc   : > { %s14680_s28 = scalar_lea.hbm %s18824_s12, 1024 }
 0x1bd   : > { %p14681_p13 = scmp.ne.s32.totalorder %s18824_s12, %s14680_s28  ;;  %p14687_p3 = scmp.lt.u32.totalorder %s14680_s28, %s18824_s12 }
 0x1bf   : > { %p14683_p0 = pnand %p14681_p13, %p15193_p8 }
 0x1c1   : > { %p14684_p1 = pneg %p14683_p0 }
 0x1c3   : > { %p14689_p2 = pnand %p14687_p3, %p14684_p1 }
 0x1c5   : > { %14692 = shalt.err (!%p14689_p2)
}
 0x1c6   : > { %s14693_s1 = scalar_lea.vmem %s693_s7, 1024  ;;  %p14701_p4 = scmp.lt.s32.totalorder %s693_s7, %s693_s7 }
 0x1c7   : > { %p14694_p5 = scmp.ne.s32.totalorder %s693_s7, %s14693_s1  ;;  %p14702_p10 = scmp.lt.s32.totalorder %s14693_s1, %s14693_s1 }
 0x1c9   : > { %p14696_p7 = pnand %p14694_p5, %p15193_p8  ;;  %p14703_p11 = por %p14702_p10, %p14701_p4 }
 0x1cb   : > { %p14697_p9 = pneg %p14696_p7 }
 0x1cd   : > { %p14704_p12 = pnand %p14703_p11, %p14697_p9 }
 0x1cf   : > { %14707 = shalt.err (!%p14704_p12)
}
 0x1d0   : > { %13924 = dma.hbm_to_vmem [thread:$0]  (!%p15177_p6), %s18824_s12, 1024, %s693_s7, [#allocation21], %s18819_s18, %s18819_s18, %s18692_s22  }
 0x1d1   : > { %s14708_s0 = scalar_lea.hbm %s18658_s14, 1024 }
 0x1d2   : > { %p14709_p13 = scmp.ne.s32.totalorder %s18658_s14, %s14708_s0  ;;  %p14715_p3 = scmp.lt.u32.totalorder %s14708_s0, %s18658_s14 }
 0x1d4   : > { %p14711_p0 = pnand %p14709_p13, %p15193_p8 }
 0x1d6   : > { %p14712_p1 = pneg %p14711_p0 }
 0x1d8   : > { %p14717_p2 = pnand %p14715_p3, %p14712_p1 }
 0x1da   : > { %14720 = shalt.err (!%p14717_p2)
}
 0x1db   : > { %s14721_s4 = scalar_lea.vmem %s717_s24, 1024  ;;  %p14729_p4 = scmp.lt.s32.totalorder %s717_s24, %s717_s24 }
 0x1dc   : > { %p14722_p5 = scmp.ne.s32.totalorder %s717_s24, %s14721_s4  ;;  %p14730_p10 = scmp.lt.s32.totalorder %s14721_s4, %s14721_s4 }
 0x1de   : > { %p14724_p7 = pnand %p14722_p5, %p15193_p8  ;;  %p14731_p11 = por %p14730_p10, %p14729_p4 }
 0x1e0   : > { %p14725_p9 = pneg %p14724_p7 }
 0x1e2   : > { %p14732_p12 = pnand %p14731_p11, %p14725_p9 }
 0x1e4   : > { %14735 = shalt.err (!%p14732_p12)
}
 0x1e5   : > { %13930 = dma.hbm_to_vmem [thread:$0]  (!%p15177_p6), %s18658_s14, 1024, %s717_s24, [#allocation24], %s18819_s18, %s18819_s18, %s18692_s22  }
 0x1e6   : > { %s15009_s29 = smov [#allocation28]   ;;  %s15010_s9 = smov [#allocation31]  }
 0x1e7   : > { %s740_s2 = sshll.u32 %s15009_s29, 4  ;;  %s764_s3 = sshll.u32 %s15010_s9, 4  ;;  %s741_s2 = int_to_ptr.vmem [resolvable:$true] %s740_s2  ;;  %s765_s3 = int_to_ptr.vmem [resolvable:$true] %s764_s3 }
 0x1e8   : > { %s14736_s25 = scalar_lea.hbm %s18660_s16, 1024 }
 0x1e9   : > { %p14737_p13 = scmp.ne.s32.totalorder %s18660_s16, %s14736_s25  ;;  %p14743_p3 = scmp.lt.u32.totalorder %s14736_s25, %s18660_s16 }
 0x1eb   : > { %p14739_p0 = pnand %p14737_p13, %p15193_p8 }
 0x1ed   : > { %p14740_p1 = pneg %p14739_p0 }
 0x1ef   : > { %p14745_p2 = pnand %p14743_p3, %p14740_p1 }
 0x1f1   : > { %14748 = shalt.err (!%p14745_p2)
}
 0x1f2   : > { %s14749_s24 = scalar_lea.vmem %s741_s2, 1024  ;;  %p14757_p4 = scmp.lt.s32.totalorder %s741_s2, %s741_s2 }
 0x1f3   : > { %p14750_p5 = scmp.ne.s32.totalorder %s741_s2, %s14749_s24  ;;  %p14758_p10 = scmp.lt.s32.totalorder %s14749_s24, %s14749_s24 }
 0x1f5   : > { %p14752_p7 = pnand %p14750_p5, %p15193_p8  ;;  %p14759_p11 = por %p14758_p10, %p14757_p4 }
 0x1f7   : > { %p14753_p9 = pneg %p14752_p7 }
 0x1f9   : > { %p14760_p12 = pnand %p14759_p11, %p14753_p9 }
 0x1fb   : > { %14763 = shalt.err (!%p14760_p12)
}
 0x1fc   : > { %13936 = dma.hbm_to_vmem [thread:$0]  (!%p15177_p6), %s18660_s16, 1024, %s741_s2, [#allocation27], %s18819_s18, %s18819_s18, %s18692_s22  }
 0x1fd   : > { %s18825_s28 = sld [smem:[#allocation111_spill]] }
 0x203   : > { %s18826_s25 = smov %s18825_s28  ;;  %s14764_s30 = scalar_lea.hbm %s18825_s28, 4096 }
 0x204   : > { %p14765_p13 = scmp.ne.s32.totalorder %s18826_s25, %s14764_s30  ;;  %p14771_p3 = scmp.lt.u32.totalorder %s14764_s30, %s18826_s25 }
 0x206   : > { %p14767_p0 = pnand %p14765_p13, %p15193_p8 }
 0x208   : > { %p14768_p1 = pneg %p14767_p0 }
 0x20a   : > { %p14773_p2 = pnand %p14771_p3, %p14768_p1 }
 0x20c   : > { %14776 = shalt.err (!%p14773_p2)
}
 0x20d   : > { %s14777_s1 = scalar_lea.vmem %s765_s3, 4096  ;;  %p14785_p4 = scmp.lt.s32.totalorder %s765_s3, %s765_s3 }
 0x20e   : > { %p14778_p5 = scmp.ne.s32.totalorder %s765_s3, %s14777_s1  ;;  %p14786_p10 = scmp.lt.s32.totalorder %s14777_s1, %s14777_s1 }
 0x210   : > { %p14780_p7 = pnand %p14778_p5, %p15193_p8  ;;  %p14787_p11 = por %p14786_p10, %p14785_p4 }
 0x212   : > { %p14781_p9 = pneg %p14780_p7 }
 0x214   : > { %p14788_p12 = pnand %p14787_p11, %p14781_p9 }
 0x216   : > { %14791 = shalt.err (!%p14788_p12)
}
 0x217   : > { %s15011_s2 = smov 256   ;;  %s15012_s29 = smov 16  }
 0x218   : > { %13942 = dma.hbm_to_vmem [thread:$0]  (!%p15177_p6), %s18826_s25, 4096, %s765_s3, [#allocation30], %s15011_s2, %s15011_s2, %s15012_s29  }
 0x219   : > { %s15013_s28 = smov [#allocation34]   ;;  %s15014_s20 = smov [#allocation35]  }
 0x21a   : > { %s788_s30 = sshll.u32 %s15013_s28, 4  ;;  %s802_s4 = sshll.u32 %s15014_s20, 4  ;;  %s789_s30 = int_to_ptr.vmem [resolvable:$true] %s788_s30  ;;  %s803_s4 = int_to_ptr.vmem [resolvable:$true] %s802_s4 }
 0x21b   : > { %s18827_s1 = sld [smem:[#allocation112_spill]] }
 0x221   : > { %s14792_s22 = scalar_lea.hbm %s18827_s1, 4096 }
 0x222   : > { %p14793_p13 = scmp.ne.s32.totalorder %s18827_s1, %s14792_s22  ;;  %p14799_p3 = scmp.lt.u32.totalorder %s14792_s22, %s18827_s1 }
 0x224   : > { %p14795_p0 = pnand %p14793_p13, %p15193_p8 }
 0x226   : > { %p14796_p1 = pneg %p14795_p0 }
 0x228   : > { %p14801_p2 = pnand %p14799_p3, %p14796_p1 }
 0x22a   : > { %14804 = shalt.err (!%p14801_p2)
}
 0x22b   : > { %s14805_s3 = scalar_lea.vmem %s789_s30, 4096  ;;  %p14813_p4 = scmp.lt.s32.totalorder %s789_s30, %s789_s30 }
 0x22c   : > { %p14806_p5 = scmp.ne.s32.totalorder %s789_s30, %s14805_s3  ;;  %p14814_p10 = scmp.lt.s32.totalorder %s14805_s3, %s14805_s3 }
 0x22e   : > { %p14808_p7 = pnand %p14806_p5, %p15193_p8  ;;  %p14815_p11 = por %p14814_p10, %p14813_p4 }
 0x230   : > { %p14809_p9 = pneg %p14808_p7 }
 0x232   : > { %p14816_p12 = pnand %p14815_p11, %p14809_p9 }
 0x234   : > { %14819 = shalt.err (!%p14816_p12)
}
 0x235   : > { %s18828_s8 = smov 4   ;;  %s18829_s2 = sld [smem:[#allocation113_spill]] }
 0x236   : > { %13948 = dma.hbm_to_vmem [thread:$0]  (!%p15177_p6), %s18827_s1, 4096, %s789_s30, [#allocation33], %s18819_s18, %s18819_s18, %s18828_s8  }
 0x23b   : > { %s14820_s29 = scalar_lea.hbm %s18829_s2, 16 }
 0x23c   : > { %p14821_p13 = scmp.ne.s32.totalorder %s18829_s2, %s14820_s29  ;;  %p14827_p3 = scmp.lt.u32.totalorder %s14820_s29, %s18829_s2 }
 0x23e   : > { %p14823_p0 = pnand %p14821_p13, %p15193_p8 }
 0x240   : > { %p14824_p1 = pneg %p14823_p0 }
 0x242   : > { %p14829_p2 = pnand %p14827_p3, %p14824_p1 }
 0x244   : > { %14832 = shalt.err (!%p14829_p2)
}
 0x245   : > { %s14833_s7 = scalar_lea.vmem %s803_s4, 16  ;;  %s14840_s18 = scalar_lea.vmem %s803_s4, 32 }
 0x246   : > { %p14834_p5 = scmp.ne.s32.totalorder %s803_s4, %s14833_s7  ;;  %p14841_p4 = scmp.lt.s32.totalorder %s803_s4, %s803_s4 }
 0x247   : > { %p14842_p10 = scmp.lt.s32.totalorder %s14840_s18, %s14833_s7 }
 0x248   : > { %p14836_p7 = pnand %p14834_p5, %p15193_p8 }
 0x249   : > { %p14843_p11 = por %p14842_p10, %p14841_p4 }
 0x24a   : > { %p14837_p9 = pneg %p14836_p7 }
 0x24c   : > { %p14844_p12 = pnand %p14843_p11, %p14837_p9 }
 0x24e   : > { %14847 = shalt.err (!%p14844_p12)
}
 0x24f   : > { %s18830_s3 = sld [smem:[#allocation54_spill]]  ;;  %s18831_s8 = sld [smem:[#allocation53_spill]] }
 0x250   : > { %s18832_s10 = sld [smem:[#allocation52_spill]]  ;;  %s18833_s5 = sld [smem:[#allocation51_spill]] }
 0x251   : > { %s18834_s11 = sld [smem:[#allocation55_spill]] }
 0x252   : > { %13951 = dma.hbm_to_vmem [thread:$0]  (!%p15177_p6), %s18829_s2, 16, %s803_s4, [#allocation36]  }
 0x255   : > { %s13125_s12 = sadd.s32 4294967294, %s18830_s3   ;;  %s15618_s30 = sadd.s32 1, %s18830_s3  }
 0x256   : > { %s56_s6 = sadd.s32 1, %s18831_s8  ;;  %s53_s22 = ssub.s32 %s18830_s3, %s15618_s30 }
 0x257   : > { %p63_p8 = scmp.ne.s32.totalorder %s18831_s8, %s18832_s10  ;;  %p54_p13 = scmp.eq.s32.totalorder %s53_s22, 0 }
 0x258   : > { %p64_p0 = scmp.eq.s32.totalorder %s18830_s3, 0  ;;  %p69_p1 = scmp.ne.s32.totalorder %s18832_s10, %s18833_s5 }
 0x259   : > { %p534_p3 = scmp.eq.s32.totalorder %s18834_s11, 1  ;;  %p18835_p5 = scmp.eq.s32.totalorder %s18834_s11, 0 }
 0x25a   : > { %s15630_s29 = scalar_select %p54_p13, %s18831_s8, %s56_s6  }
 0x25b   : > { %p65_p2 = por %p64_p0, %p63_p8  ;;  %p15634_p7 = por %p18835_p5, %p69_p1 }
 0x25c   : > { %p15638_p6 = por %p534_p3, %p63_p8  ;;  %p540_p9 = scmp.eq.s32.totalorder %s13125_s12, 1 }
 0x25d   : > { %p13981_p4 = scmp.lt.s32.totalorder %s18830_s3, 2  ;;  %s813_s0 = sand.u32 1, %s18831_s8  }
 0x25e   : > { %s18837_s4 = scalar_select %p15638_p6, 1, 0 }
 0x25f   : > { %p15644_p10 = por %p540_p9, %p69_p1  ;;  %s13149_s20 = sshll.u32 %s813_s0, 3 }
 0x260   : > { %s13150_s7 = sshll.u32 %s18830_s3, 7  ;;  %s18839_s10 = sld [smem:[#allocation98_spill]] }
 0x261   : > { %s18838_s28 = scalar_select %p15644_p10, 1, 0 }
 0x262   : > { %s817_s11 = scalar_lea.vmem [#allocation2], %s13149_s20  ;;  %p15654_p11 = pnand %p13981_p4, %p65_p2 }
 0x263   : > { %s824_s6 = sshll.u32 %s817_s11, 4  ;;  %s814_s3 = scalar_lea.sflag [#allocation3], %s813_s0  ;;  %s15658_s6 = int_to_ptr.vmem [resolvable:$true] %s824_s6 }
 0x264   : > { %p14850_p8 = pneg %p15654_p11 }
 0x266   : > { %s15652_s5 = scalar_lea.hbm %s18839_s10, %s13150_s7  ;;  %s14853_s7 = scalar_lea.hbm %s18839_s10, 256 }
 0x267   : > { %s14848_s8 = scalar_lea.hbm %s15652_s5, 128  ;;  %p14854_p1 = scmp.lt.u32.totalorder %s15652_s5, %s18839_s10 }
 0x268   : > { %p14849_p12 = scmp.ne.s32.totalorder %s15652_s5, %s14848_s8  ;;  %p14855_p3 = scmp.lt.u32.totalorder %s14853_s7, %s14848_s8 }
 0x269   : > { %p14857_p5 = scmp.lt.u32.totalorder %s14848_s8, %s15652_s5 }
 0x26a   : > { %p14851_p13 = pnand %p14850_p8, %p14849_p12  ;;  %p14856_p2 = por %p14855_p3, %p14854_p1 }
 0x26c   : > { %p14852_p0 = pneg %p14851_p13  ;;  %p14858_p9 = por %p14857_p5, %p14856_p2 }
 0x26e   : > { %p14859_p4 = pnand %p14858_p9, %p14852_p0 }
 0x270   : > { %14862 = shalt.err (!%p14859_p4)
}
 0x271   : > { %s14863_s0 = scalar_lea.vmem %s15658_s6, 128  ;;  %s15015_s11 = smov [#allocation2]  }
 0x272   : > { %p14864_p12 = scmp.ne.s32.totalorder %s15658_s6, %s14863_s0  ;;  %s14868_s22 = sshll.u32 %s15015_s11, 4  ;;  %s14869_s22 = int_to_ptr.vmem [resolvable:$false] %s14868_s22 }
 0x273   : > { %s14870_s20 = scalar_lea.vmem %s14869_s22, 256  ;;  %p14871_p6 = scmp.lt.s32.totalorder %s15658_s6, %s14869_s22 }
 0x274   : > { %p14866_p13 = pnand %p14864_p12, %p14850_p8  ;;  %p14872_p1 = scmp.lt.s32.totalorder %s14870_s20, %s14863_s0 }
 0x276   : > { %p14867_p10 = pneg %p14866_p13  ;;  %p14873_p3 = por %p14872_p1, %p14871_p6 }
 0x278   : > { %p14874_p2 = pnand %p14873_p3, %p14867_p10 }
 0x27a   : > { %14877 = shalt.err (!%p14874_p2)
}
 0x27b   : > { %13955 = dma.hbm_to_vmem [thread:$0]  (!%p15654_p11), %s15652_s5, 128, %s15658_s6, %s814_s3  }
 0x27c   : > { %s18841_s8 = sld [smem:[#allocation56_spill]] }
 0x282   : > { %p18842_p0 = scmp.ne.s32.totalorder %s18841_s8, 0 }
 0x284   : > { %833 = sbr.rel (%p18842_p0) target bundleno = 5948 (0x173c), region = 108 }
 0x28b   : > { %s18843_s7 = sld [smem:[#allocation52_spill]] }
 0x291   : > { %s15688_s18 = sand.u32 1, %s18843_s7  }
 0x292   : > { %s13152_s24 = sshll.u32 %s15688_s18, 3  ;;  %s836_s0 = scalar_lea.sflag [#allocation3], %s15688_s18 }
 0x293   : > { %s15694_s11 = scalar_lea.vmem [#allocation2], %s13152_s24 }
 0x294   : > { %14923 = dma.done.wait (%p15634_p7), %s836_s0, 128  }
 0x295   : > { %14925 = vsyncadd (%p15634_p7), %s836_s0, 4294967168  ;;  %s18844_s5 = sld [smem:[#allocation55_spill]] }
 0x29b   : > { %p18845_p6 = scmp.eq.s32.totalorder %s18844_s5, 0 }
 0x29d   : > { %14927 = dma.done.wait (%p18845_p6), [#allocation6], 1280   ;;  %p18846_p10 = pmov %p18845_p6 }
 0x29e   : > { %p18847_p11 = pmov %p18845_p6 }
 0x29f   : > { %14929 = vsyncadd (%p18846_p10), [#allocation6], 4294966016 }
 0x2a0   : > { %14931 = dma.done.wait (%p18847_p11), [#allocation9], 1040   ;;  %p18848_p8 = pmov %p18845_p6 }
 0x2a1   : > { %p18849_p5 = pmov %p18845_p6 }
 0x2a2   : > { %14933 = vsyncadd (%p18848_p8), [#allocation9], 4294966256 }
 0x2a3   : > { %14935 = dma.done.wait (%p18849_p5), [#allocation12], 1040   ;;  %p18850_p9 = pmov %p18849_p5 }
 0x2a4   : > { %p18851_p7 = pmov %p18849_p5 }
 0x2a5   : > { %14937 = vsyncadd (%p18850_p9), [#allocation12], 4294966256 }
 0x2a6   : > { %14939 = dma.done.wait (%p18851_p7), [#allocation15], 1040   ;;  %p18852_p4 = pmov %p18849_p5 }
 0x2a8   : > { %14941 = vsyncadd (%p18852_p4), [#allocation15], 4294966256  ;;  %p18853_p12 = pmov %p18852_p4 }
 0x2a9   : > { %p18854_p13 = pmov %p18852_p4 }
 0x2aa   : > { %14943 = dma.done.wait (%p18853_p12), [#allocation18], 1040  }
 0x2ab   : > { %14945 = vsyncadd (%p18854_p13), [#allocation18], 4294966256  ;;  %p18855_p1 = pmov %p18852_p4 }
 0x2ad   : > { %14947 = dma.done.wait (%p18855_p1), [#allocation21], 1040   ;;  %p18856_p3 = pmov %p18855_p1 }
 0x2ae   : > { %p18857_p2 = pmov %p18855_p1 }
 0x2af   : > { %14949 = vsyncadd (%p18856_p3), [#allocation21], 4294966256 }
 0x2b0   : > { %14951 = dma.done.wait (%p18857_p2), [#allocation24], 1040   ;;  %p18858_p0 = pmov %p18855_p1 }
 0x2b2   : > { %14953 = vsyncadd (%p18858_p0), [#allocation24], 4294966256  ;;  %p18859_p6 = pmov %p18858_p0 }
 0x2b3   : > { %p18860_p10 = pmov %p18858_p0 }
 0x2b4   : > { %14955 = dma.done.wait (%p18859_p6), [#allocation27], 1040  }
 0x2b5   : > { %14957 = vsyncadd (%p18860_p10), [#allocation27], 4294966256  ;;  %p18861_p11 = pmov %p18858_p0 }
 0x2b6   : > { %p18862_p8 = pmov %p18858_p0 }
 0x2b7   : > { %14959 = dma.done.wait (%p18861_p11), [#allocation30], 4112  }
 0x2b8   : > { %14961 = vsyncadd (%p18862_p8), [#allocation30], 4294963184  ;;  %p18863_p5 = pmov %p18858_p0 }
 0x2b9   : > { %p18864_p9 = pmov %p18858_p0 }
 0x2ba   : > { %14963 = dma.done.wait (%p18863_p5), [#allocation33], 4160  }
 0x2bb   : > { %14965 = vsyncadd (%p18864_p9), [#allocation33], 4294963136  ;;  %p18865_p7 = pmov %p18858_p0 }
 0x2bc   : > { %p18866_p4 = pmov %p18858_p0 }
 0x2bd   : > { %14967 = dma.done.wait (%p18865_p7), [#allocation36], 16  }
 0x2be   : > { %14969 = vsyncadd (%p18866_p4), [#allocation36], 4294967280  ;;  %v985_v0 = vld [vmem:[%s15694_s11] sm:$0xff]  ;;  %v18696_v3 = vmov 0.0   ;;  %v14073_v6 = vld [vmem:[#allocation7 + $0x10] sm:$0xff]   ;;  %vm15017_vm0 = vmmov 0   ;;  %v1351_v54 = vlaneseq }
 0x2bf   : > { %990 = vadd.xlane.f32.xlu0 %v985_v0  ;;  %v14069_v1 = vld [vmem:[#allocation7] sm:$0xff]   ;;  %13520 = vmatprep.subr.bf16.mxu0 %v18696_v3  ;;  %v14071_v4 = vld [vmem:[#allocation7 + $0x8] sm:$0xff]   ;;  %v14074_v7 = vld [vmem:[#allocation10 + $0x10] sm:$0xff]   ;;  %s15018_s9 = smov 32   ;;  %s15019_s6 = smov 96   ;;  %vm2864_vm1 = vcmask 261120  }
 0x2c0   : > { %v14070_v2 = vld [vmem:[#allocation10] sm:$0xff]   ;;  %13540 = vmatprep.subr.bf16.mxu1 %v18696_v3  ;;  %13521 = vmatpush3.bf16.msra.mxu0 %v14069_v1  ;;  %v14072_v5 = vld [vmem:[#allocation10 + $0x8] sm:$0xff]   ;;  %v14075_v8 = vld [vmem:[#allocation7 + $0x18] sm:$0xff]   ;;  %s15020_s12 = smov 64   ;;  %v15021_v52 = vmov 1983009808  }
 0x2c1   : > { %13541 = vmatpush3.bf16.msra.mxu1 %v14070_v2  ;;  %13522 = vmatprep.subr.bf16.mxu0 %v18696_v3  ;;  %v14076_v13 = vld [vmem:[#allocation10 + $0x18] sm:$0xff]   ;;  %v14078_v15 = vld [vmem:[#allocation10 + $0x20] sm:$0xff]   ;;  %v14080_v17 = vld [vmem:[#allocation10 + $0x28] sm:$0xff]   ;;  %v1349_v53 = vunpack.c.l.s4 %v15021_v52  ;;  %v15022_v55 = vmov 1934713408   ;;  %v15794_v58 = vshrl.u32 %v1351_v54, 7 }
 0x2c2   : > { %13542 = vmatprep.subr.bf16.mxu1 %v18696_v3  ;;  %v14077_v14 = vld [vmem:[#allocation7 + $0x20] sm:$0xff]   ;;  %v14079_v16 = vld [vmem:[#allocation7 + $0x28] sm:$0xff]   ;;  %13536 = vmatprep.mubr.msk.bf16.mxu0 %vm15017_vm0, %v18696_v3  ;;  %v14081_v18 = vld [vmem:[#allocation7 + $0x30] sm:$0xff]   ;;  %v1381_v56 = vunpack.c.l.s4 %v15022_v55  ;;  %vm3037_vm2 = vcmask 64512   ;;  %vm4795_vm3 = vcmask 523264   ;;  %vm4797_vm4 = vcmask 785408  }
 0x2c3   : > { %13556 = vmatprep.mubr.msk.bf16.mxu1 %vm15017_vm0, %v18696_v3  ;;  %v14082_v19 = vld [vmem:[#allocation10 + $0x30] sm:$0xff]   ;;  %v14084_v21 = vld [vmem:[#allocation10 + $0x38] sm:$0xff]   ;;  %v14085_v27 = vld [vmem:[#allocation13] sm:$0xff]   ;;  %v1350_v57 = vunpack.c.0.s8 %v1349_v53  ;;  %18867 = vst [vmem:[#allocation57_spill] sm:$0xff] %v15794_v58  ;;  %s13351_s3 = sshll.u32 %s18844_s5, 7  ;;  %s983_s22 = scalar_lea.vmem [#allocation37], %s13152_s24 }
 0x2c4   : > { %13523 = vmatpush3.bf16.msra.mxu0 %v14071_v4  ;;  %v14083_v20 = vld [vmem:[#allocation7 + $0x38] sm:$0xff]   ;;  %v14086_v29 = vld [vmem:[#allocation13 + $0x8] sm:$0xff]   ;;  %v14089_v32 = vld [vmem:[#allocation13 + $0x20] sm:$0xff]   ;;  %v1382_v61 = vunpack.c.0.s8 %v1381_v56  ;;  %s12855_s20 = sshll.u32 %s983_s22, 4  ;;  %s19109_s0 = sld [smem:[#allocation114_spill]]  ;;  %s18602_s20 = int_to_ptr.vmem [resolvable:$true] %s12855_s20 }
 0x2c5   : > { %13543 = vmatpush3.bf16.msra.mxu1 %v14072_v5  ;;  %13524 = vmatprep.subr.bf16.mxu0 %v18696_v3  ;;  %v14087_v30 = vld [vmem:[#allocation13 + $0x10] sm:$0xff]   ;;  %v14088_v31 = vld [vmem:[#allocation13 + $0x18] sm:$0xff]   ;;  %v14090_v33 = vld [vmem:[#allocation13 + $0x28] sm:$0xff]   ;;  %v15797_v62 = vsub.s32 %v1350_v57, %v15794_v58  ;;  %p19110_p13 = scmp.ne.s32.totalorder %s18837_s4, 0  ;;  %s15024_s24 = smov [#allocation37]  }
 0x2c6   : > { %13544 = vmatprep.subr.bf16.mxu1 %v18696_v3  ;;  %v14091_v34 = vld [vmem:[#allocation13 + $0x30] sm:$0xff]   ;;  %v14092_v35 = vld [vmem:[#allocation13 + $0x38] sm:$0xff]   ;;  %v15800_v5 = vsub.s32 %v1382_v61, %v15794_v58  ;;  %s14882_s5 = sshll.u32 %s15024_s24, 4  ;;  %s14883_s5 = int_to_ptr.vmem [resolvable:$false] %s14882_s5 }
 0x2c7   : > { %v13184_v36 = vld [vmem:[#allocation11] ss:$0 sm:$0xff]  ;;  %v13175_v42 = vld [vmem:[#allocation8] ss:$0 sm:$0xff]  ;;  %18868 = vst [vmem:[#allocation58_spill] sm:$0xff] %v15797_v62  ;;  %p14885_p2 = scmp.lt.s32.totalorder %s18602_s20, %s14883_s5 }
 0x2c8   : > { %13525 = vmatpush3.bf16.msra.mxu0 %v14073_v6  ;;  %18869 = vst [vmem:[#allocation59_spill] sm:$0xff] %v15800_v5 }
 0x2c9   : > { %13545 = vmatpush3.bf16.msra.mxu1 %v14074_v7  ;;  %13526 = vmatprep.subr.bf16.mxu0 %v18696_v3 }
 0x2ca   : > { %13546 = vmatprep.subr.bf16.mxu1 %v18696_v3 }
 0x2cc   : > { %13527 = vmatpush3.bf16.msra.mxu0 %v14075_v8 }
 0x2cd   : > { %13528 = vmatprep.subr.bf16.mxu0 %v18696_v3  ;;  %13547 = vmatpush3.bf16.msra.mxu1 %v14076_v13 }
 0x2ce   : > { %13548 = vmatprep.subr.bf16.mxu1 %v18696_v3 }
 0x2d0   : > { %13529 = vmatpush3.bf16.msra.mxu0 %v14077_v14 }
 0x2d1   : > { %13549 = vmatpush3.bf16.msra.mxu1 %v14078_v15  ;;  %13530 = vmatprep.subr.bf16.mxu0 %v18696_v3 }
 0x2d2   : > { %13550 = vmatprep.subr.bf16.mxu1 %v18696_v3 }
 0x2d4   : > { %13531 = vmatpush3.bf16.msra.mxu0 %v14079_v16 }
 0x2d5   : > { %13551 = vmatpush3.bf16.msra.mxu1 %v14080_v17  ;;  %13532 = vmatprep.subr.bf16.mxu0 %v18696_v3 }
 0x2d6   : > { %13552 = vmatprep.subr.bf16.mxu1 %v18696_v3 }
 0x2d8   : > { %13533 = vmatpush3.bf16.msra.mxu0 %v14081_v18 }
 0x2d9   : > { %13553 = vmatpush3.bf16.msra.mxu1 %v14082_v19  ;;  %13534 = vmatprep.subr.bf16.mxu0 %v18696_v3 }
 0x2da   : > { %13554 = vmatprep.subr.bf16.mxu1 %v18696_v3 }
 0x2dc   : > { %13535 = vmatpush3.bf16.msra.mxu0 %v14083_v20 }
 0x2dd   : > { %13555 = vmatpush3.bf16.msra.mxu1 %v14084_v21  ;;  %13560 = vmatprep.subr.bf16.mxu0 %v18696_v3 }
 0x2de   : > { %13580 = vmatprep.subr.bf16.mxu1 %v18696_v3 }
 0x34c   : > { %v991_v9 = vpop.xlane.xlu0 %990 }
 0x34d   : > { %v993_v10 = vmul.f32 0.0078125, %v991_v9 }
 0x34f   : > { %v994_v11 = vsub.f32 %v985_v0, %v993_v10 }
 0x351   : > { %v995_v12 = vmul.f32 %v994_v11, %v994_v11 }
 0x353   : > { %996 = vadd.xlane.f32.xlu0 %v995_v12 }
 0x3e0   : > { %v997_v22 = vpop.xlane.xlu0 %996 }
 0x3e1   : > { %v998_v23 = vmul.f32 0.0078125, %v997_v22 }
 0x3e3   : > { %v999_v24 = vadd.f32 1e-06, %v998_v23 }
 0x3e5   : > { %14215 = vrsqrt.f32 %v999_v24 }
 0x3ef   : > { %v14216_v25 = vpop.eup %14215 }
 0x3f0   : > { %v1001_v26 = vmul.f32 %v14216_v25, %v994_v11 }
 0x3f2   : > { %v1002_v28 = vpack.c.bf16 %v1001_v26, %v1001_v26 }
 0x3f4   : > { %13537 = vmatmul.mubr.bf16.vlgmr.msra.gmra.mrb[0].mxu0 %v1002_v28  ;;  %13557 = vmatmul.mubr.bf16.vlgmr.msra.gmra.mrb[0].mxu1 %v1002_v28 }
 0x3f5   : > { %13561 = vmatpush3.bf16.msra.mxu0 %v14085_v27  ;;  %13576 = vmatprep.mubr.msk.bf16.mxu0 %vm15017_vm0, %v18696_v3 }
 0x3f6   : > { %13562 = vmatprep.subr.bf16.mxu0 %v18696_v3  ;;  %13584 = vmatprep.mubr.msk.bf16.mxu1 %vm15017_vm0, %v18696_v3 }
 0x3f9   : > { %13563 = vmatpush3.bf16.msra.mxu0 %v14086_v29 }
 0x3fa   : > { %13564 = vmatprep.subr.bf16.mxu0 %v18696_v3 }
 0x3fd   : > { %13565 = vmatpush3.bf16.msra.mxu0 %v14087_v30 }
 0x3fe   : > { %13566 = vmatprep.subr.bf16.mxu0 %v18696_v3 }
 0x401   : > { %13567 = vmatpush3.bf16.msra.mxu0 %v14088_v31 }
 0x402   : > { %13568 = vmatprep.subr.bf16.mxu0 %v18696_v3 }
 0x405   : > { %13569 = vmatpush3.bf16.msra.mxu0 %v14089_v32 }
 0x406   : > { %13570 = vmatprep.subr.bf16.mxu0 %v18696_v3 }
 0x409   : > { %13571 = vmatpush3.bf16.msra.mxu0 %v14090_v33 }
 0x40a   : > { %13572 = vmatprep.subr.bf16.mxu0 %v18696_v3 }
 0x40d   : > { %13573 = vmatpush3.bf16.msra.mxu0 %v14091_v34 }
 0x40e   : > { %13574 = vmatprep.subr.bf16.mxu0 %v18696_v3 }
 0x411   : > { %13575 = vmatpush3.bf16.msra.mxu0 %v14092_v35 }
 0x412   : > { %13636 = vmatprep.subr.bf16.mxu0 %v18696_v3 }
 0x414   : > { %13577 = vmatmul.mubr.bf16.vlgmr.msra.gmra.mrb[4].mxu0 %v1002_v28 }
 0x415   : > { %13652 = vmatprep.mubr.msk.bf16.mxu0 %vm15017_vm0, %v18696_v3 }
 0x4c7   : > { %v1108_v37 = vpop.f32.mrb[0].mxu0  ;;  %v1219_v38 = vpop.f32.mrb[0].mxu1 }
 0x4c8   : > { %v1220_v39 = vadd.f32 %v13184_v36, %v1219_v38  ;;  %v13538_v40 = vpop.f32.mrb[1].mxu0  ;;  %v13558_v41 = vpop.f32.mrb[1].mxu1  ;;  %v15783_v47 = vadd.f32 %v13175_v42, %v1108_v37 }
 0x4c9   : > { %v1111_v43 = vpop.f32.mrb[2].mxu0  ;;  %v1222_v44 = vpop.f32.mrb[2].mxu1 }
 0x4ca   : > { %1429 = vrot.lane.b32.xlu0 %v1220_v39, %s15018_s9  ;;  %1423 = vrot.lane.b32.xlu1 %v1220_v39, %s15019_s6  ;;  %v13539_v45 = vpop.f32.mrb[3].mxu0  ;;  %v13559_v46 = vpop.f32.mrb[3].mxu1 }
 0x4ce   : > { %1426 = vrot.lane.b32.xlu1 %v1220_v39, %s15020_s12  ;;  %1337 = vrot.lane.b32.xlu0 %v15783_v47, %s15019_s6 }
 0x4d2   : > { %1340 = vrot.lane.b32.xlu1 %v15783_v47, %s15020_s12 }
 0x4d6   : > { %1343 = vrot.lane.b32.xlu1 %v15783_v47, %s15018_s9 }
 0x4e7   : > { %v15792_v48 = vpop.f32.mrb[4].mxu0 }
 0x4e8   : > { %v13578_v49 = vpop.f32.mrb[5].mxu0 }
 0x4e9   : > { %v1333_v50 = vpop.f32.mrb[6].mxu0 }
 0x4ea   : > { %v13579_v51 = vpop.f32.mrb[7].mxu0 }
 0x53c   : > { %v1430_v59 = vpop.permute.xlu0 %1429  ;;  %v1424_v60 = vpop.permute.xlu1 %1423 }
 0x53d   : > { %v1448_v63 = vcombine.low %v1424_v60, %v1430_v59  ;;  %v1449_v0 = vcombine.high %v1424_v60, %v1430_v59 }
 0x53f   : > { %v1456_v6 = vrot.slane %v1448_v63, %v15797_v62  ;;  %v1463_v7 = vrot.slane %v1449_v0, %v15797_v62 }
 0x540   : > { %v1427_v1 = vpop.permute.xlu1 %1426  ;;  %v15822_v37 = vpop.permute.xlu0 %1337 }
 0x541   : > { %v1432_v2 = vcombine.low %v1220_v39, %v1427_v1  ;;  %v1433_v4 = vcombine.high %v1220_v39, %v1427_v1 }
 0x543   : > { %v1440_v8 = vrot.slane %v1432_v2, %v15797_v62  ;;  %v1447_v9 = vrot.slane %v1433_v4, %v15797_v62 }
 0x544   : > { %v15814_v30 = vpop.permute.xlu1 %1340 }
 0x545   : > { %v1464_v10 = vcombine.low %v1440_v8, %v1456_v6  ;;  %v1481_v11 = vcombine.high %v1447_v9, %v1463_v7  ;;  %v1465_v12 = vcombine.high %v1440_v8, %v1456_v6  ;;  %v1480_v19 = vcombine.low %v1447_v9, %v1463_v7 }
 0x547   : > { %v1472_v13 = vrot.slane %v1464_v10, %v15800_v5  ;;  %v1495_v14 = vrot.slane %v1481_v11, %v15800_v5  ;;  %v1479_v17 = vrot.slane %v1465_v12, %v15800_v5  ;;  %v1488_v22 = vrot.slane %v1480_v19, %v15800_v5 }
 0x548   : > { %v15816_v31 = vpop.permute.xlu1 %1343 }
 0x549   : > { %v1500_v15 = vpack.c.bf16 %v1472_v13, %v1472_v13  ;;  %v1506_v16 = vpack.c.bf16 %v1495_v14, %v1495_v14  ;;  %v1496_v18 = vcombine.high %v1472_v13, %v18696_v3  ;;  %v1502_v20 = vpack.c.bf16 %v1479_v17, %v1479_v17 }
 0x54a   : > { %v1504_v23 = vpack.c.bf16 %v1488_v22, %v1488_v22  ;;  %v1497_v24 = vcombine.high %v1479_v17, %v18696_v3  ;;  %v1498_v26 = vcombine.high %v1488_v22, %v18696_v3  ;;  %v1499_v28 = vcombine.high %v1495_v14, %v18696_v3 }
 0x54b   : > { %1656 = vxpose.xlu1.c.b16.start.end [1/1] (short) (narrow) %v1500_v15, 32  ;;  %1752 = vxpose.xlu0.c.b16.start.end [1/1] (short) (narrow) %v1506_v16, 32  ;;  %v1501_v21 = vpack.c.bf16 %v1496_v18, %v1496_v18 }
 0x54c   : > { %v1503_v25 = vpack.c.bf16 %v1497_v24, %v1497_v24  ;;  %v1505_v27 = vpack.c.bf16 %v1498_v26, %v1498_v26  ;;  %v1507_v29 = vpack.c.bf16 %v1499_v28, %v1499_v28  ;;  %v18694_v26 = vmov 0  }
 0x550   : > { %1688 = vxpose.xlu1.c.b16.start.end [1/1] (short) (narrow) %v1502_v20, 32  ;;  %1672 = vxpose.xlu0.c.b16.start.end [1/1] (short) (narrow) %v1501_v21, 32 }
 0x555   : > { %1720 = vxpose.xlu1.c.b16.start.end [1/1] (short) (narrow) %v1504_v23, 32 }
 0x55a   : > { %1704 = vxpose.xlu1.c.b16.start.end [1/1] (short) (narrow) %v1503_v25, 32 }
 0x55f   : > { %1736 = vxpose.xlu1.c.b16.start.end [1/1] (short) (narrow) %v1505_v27, 32 }
 0x564   : > { %1768 = vxpose.xlu1.c.b16.start.end [1/1] (short) (narrow) %v1507_v29, 32 }
 0x5b1   : > { %v1664_v32 = vpop.trf.xlu1  ;;  %v1760_v39 = vpop.trf.xlu0 }
 0x5b2   : > { %v1812_v50 = vshrl.u32 %v1760_v39, 16  ;;  %v1788_v4 = vshrl.u32 %v1664_v32, 16 }
 0x5b5   : > { %v15818_v33 = vpop.trf.xlu1  ;;  %v15828_v42 = vpop.trf.xlu0 }
 0x5b9   : > { %v1696_v34 = vpop.trf.xlu1  ;;  %v1680_v44 = vpop.trf.xlu0 }
 0x5ba   : > { %v1786_v49 = vpack.i.b16 %v1680_v44, %v1664_v32  ;;  %v1796_v59 = vshrl.u32 %v1696_v34, 16  ;;  %v1789_v60 = vshrl.u32 %v1680_v44, 16 }
 0x5bc   : > { %v1790_v11 = vpack.i.b16 %v1789_v60, %v1788_v4 }
 0x5bd   : > { %v15820_v35 = vpop.trf.xlu1 }
 0x5c1   : > { %v1728_v36 = vpop.trf.xlu1 }
 0x5c2   : > { %v1804_v61 = vshrl.u32 %v1728_v36, 16 }
 0x5c5   : > { %v15824_v38 = vpop.trf.xlu1 }
 0x5c9   : > { %v1712_v40 = vpop.trf.xlu1 }
 0x5ca   : > { %v1797_v51 = vshrl.u32 %v1712_v40, 16  ;;  %v1794_v54 = vpack.i.b16 %v1712_v40, %v1696_v34 }
 0x5cc   : > { %v1798_v6 = vpack.i.b16 %v1797_v51, %v1796_v59 }
 0x5cd   : > { %v15826_v41 = vpop.trf.xlu1 }
 0x5d1   : > { %v1744_v43 = vpop.trf.xlu1 }
 0x5d2   : > { %v1802_v46 = vpack.i.b16 %v1744_v43, %v1728_v36  ;;  %v1805_v52 = vshrl.u32 %v1744_v43, 16 }
 0x5d4   : > { %v1848_v55 = vcombine.low %v1786_v49, %v1802_v46  ;;  %v1849_v63 = vcombine.high %v1786_v49, %v1802_v46  ;;  %v1806_v7 = vpack.i.b16 %v1805_v52, %v1804_v61  ;;  %v1681_v49 = vpop.trf.xlu0  ;;  %v1826_v52 = vpack.i.b16 %v15826_v41, %v15820_v35 }
 0x5d5   : > { %v15830_v45 = vpop.trf.xlu1  ;;  %v1844_v61 = vshrl.u32 %v15828_v42, 16 }
 0x5d6   : > { %v1856_v8 = vrot.slane %v1848_v55, %v15797_v62  ;;  %v1863_v14 = vrot.slane %v1849_v63, %v15797_v62  ;;  %v1916_v16 = vcombine.low %v1790_v11, %v1806_v7  ;;  %v1917_v23 = vcombine.high %v1790_v11, %v1806_v7 }
 0x5d7   : > { %v1829_v63 = vshrl.u32 %v15826_v41, 16  ;;  %v1836_v7 = vshrl.u32 %v15824_v38, 16  ;;  %v1820_v41 = vshrl.u32 %v15818_v33, 16 }
 0x5d8   : > { %v1924_v22 = vrot.slane %v1916_v16, %v15797_v62  ;;  %v1931_v32 = vrot.slane %v1917_v23, %v15797_v62 }
 0x5d9   : > { %v1776_v53 = vpop.trf.xlu1 }
 0x5da   : > { %v1810_v56 = vpack.i.b16 %v1776_v53, %v1760_v39  ;;  %v1813_v57 = vshrl.u32 %v1776_v53, 16  ;;  %v1834_v53 = vpack.i.b16 %v15830_v45, %v15824_v38 }
 0x5dc   : > { %v1814_v0 = vpack.i.b16 %v1813_v57, %v1812_v50  ;;  %v1864_v1 = vcombine.low %v1794_v54, %v1810_v56  ;;  %v1865_v2 = vcombine.high %v1794_v54, %v1810_v56  ;;  %v1818_v54 = vpack.i.b16 %v1681_v49, %v15818_v33 }
 0x5dd   : > { %v1777_v39 = vpop.trf.xlu1 }
 0x5de   : > { %v1872_v9 = vrot.slane %v1864_v1, %v15797_v62  ;;  %v1879_v10 = vrot.slane %v1865_v2, %v15797_v62  ;;  %v1932_v12 = vcombine.low %v1798_v6, %v1814_v0  ;;  %v1933_v21 = vcombine.high %v1798_v6, %v1814_v0 }
 0x5df   : > { %v1842_v44 = vpack.i.b16 %v1777_v39, %v15828_v42  ;;  %v1845_v57 = vshrl.u32 %v1777_v39, 16  ;;  %v1984_v60 = vcombine.low %v1818_v54, %v1834_v53  ;;  %v1837_v0 = vshrl.u32 %v15830_v45, 16 }
 0x5e0   : > { %v1881_v13 = vcombine.high %v1856_v8, %v1872_v9  ;;  %v1880_v15 = vcombine.low %v1856_v8, %v1872_v9  ;;  %v1896_v18 = vcombine.low %v1863_v14, %v1879_v10  ;;  %v1940_v20 = vrot.slane %v1932_v12, %v15797_v62 }
 0x5e1   : > { %v1897_v25 = vcombine.high %v1863_v14, %v1879_v10  ;;  %v1947_v29 = vrot.slane %v1933_v21, %v15797_v62  ;;  %v2000_v55 = vcombine.low %v1826_v52, %v1842_v44  ;;  %v1828_v1 = vshrl.u32 %v15820_v35, 16 }
 0x5e2   : > { %v1895_v17 = vrot.slane %v1881_v13, %v15800_v5  ;;  %v1888_v19 = vrot.slane %v1880_v15, %v15800_v5  ;;  %v1904_v24 = vrot.slane %v1896_v18, %v15800_v5  ;;  %v1949_v28 = vcombine.high %v1924_v22, %v1940_v20 }
 0x5e3   : > { %v1911_v34 = vrot.slane %v1897_v25, %v15800_v5  ;;  %v1948_v36 = vcombine.low %v1924_v22, %v1940_v20  ;;  %v1964_v43 = vcombine.low %v1931_v32, %v1947_v29  ;;  %v1965_v51 = vcombine.high %v1931_v32, %v1947_v29 }
 0x5e4   : > { %2184 = vxpose.xlu1.c.b16.start.end [1/1] (short) (narrow) %v1895_v17, 16  ;;  %2120 = vxpose.xlu0.c.b16.start.end [1/1] (short) (narrow) %v1888_v19, 16  ;;  %v1912_v27 = vcombine.high %v1888_v19, %v18694_v26  ;;  %v1963_v40 = vrot.slane %v1949_v28, %v15800_v5  ;;  %v1913_v56 = vcombine.high %v1895_v17, %v18694_v26  ;;  %v1821_v6 = vshrl.u32 %v1681_v49, 16 }
 0x5e5   : > { %v1956_v46 = vrot.slane %v1948_v36, %v15800_v5  ;;  %v1972_v50 = vrot.slane %v1964_v43, %v15800_v5  ;;  %v1979_v59 = vrot.slane %v1965_v51, %v15800_v5  ;;  %v1914_v2 = vcombine.high %v1904_v24, %v18694_v26 }
 0x5e6   : > { %v2008_v4 = vrot.slane %v2000_v55, %v15797_v62  ;;  %v1846_v8 = vpack.i.b16 %v1845_v57, %v1844_v61  ;;  %v1992_v42 = vrot.slane %v1984_v60, %v15797_v62  ;;  %v1830_v10 = vpack.i.b16 %v1829_v63, %v1828_v1 }
 0x5e7   : > { %v1980_v9 = vcombine.high %v1956_v46, %v18694_v26  ;;  %v1838_v45 = vpack.i.b16 %v1837_v0, %v1836_v7  ;;  %v2001_v11 = vcombine.high %v1826_v52, %v1842_v44  ;;  %v1915_v35 = vcombine.high %v1911_v34, %v18694_v26 }
 0x5e8   : > { %2248 = vxpose.xlu1.c.b16.start.end [1/1] (short) (narrow) %v1904_v24, 16  ;;  %2152 = vxpose.xlu0.c.b16.start.end [1/1] (short) (narrow) %v1912_v27, 16  ;;  %v2016_v12 = vcombine.low %v1992_v42, %v2008_v4  ;;  %v1822_v13 = vpack.i.b16 %v1821_v6, %v1820_v41  ;;  %v1981_v14 = vcombine.high %v1963_v40, %v18694_v26 }
 0x5e9   : > { %v2068_v15 = vcombine.low %v1830_v10, %v1846_v8  ;;  %v1985_v38 = vcombine.high %v1818_v54, %v1834_v53  ;;  %v2017_v18 = vcombine.high %v1992_v42, %v2008_v4  ;;  %v2015_v33 = vrot.slane %v2001_v11, %v15797_v62 }
 0x5ea   : > { %v2052_v16 = vcombine.low %v1822_v13, %v1838_v45  ;;  %v2024_v17 = vrot.slane %v2016_v12, %v15800_v5  ;;  %v1982_v19 = vcombine.high %v1972_v50, %v18694_v26  ;;  %v1983_v25 = vcombine.high %v1979_v59, %v18694_v26 }
 0x5eb   : > { %v2076_v20 = vrot.slane %v2068_v15, %v15797_v62  ;;  %v1999_v21 = vrot.slane %v1985_v38, %v15797_v62  ;;  %v2031_v23 = vrot.slane %v2017_v18, %v15800_v5  ;;  %v2069_v28 = vcombine.high %v1830_v10, %v1846_v8 }
 0x5ec   : > { %2312 = vxpose.xlu1.c.b16.start.end [1/1] (short) (narrow) %v1911_v34, 16  ;;  %2200 = vxpose.xlu0.c.b16.start.end [1/1] (short) (narrow) %v1963_v40, 16  ;;  %v2060_v22 = vrot.slane %v2052_v16, %v15797_v62  ;;  %v2053_v29 = vcombine.high %v1822_v13, %v1838_v45 }
 0x5ed   : > { %v2032_v24 = vcombine.low %v1999_v21, %v2015_v33  ;;  %v2033_v34 = vcombine.high %v1999_v21, %v2015_v33  ;;  %v2083_v40 = vrot.slane %v2069_v28, %v15797_v62  ;;  %v2049_v53 = vcombine.high %v2031_v23, %v18694_v26 }
 0x5ee   : > { %v2084_v27 = vcombine.low %v2060_v22, %v2076_v20  ;;  %v2085_v39 = vcombine.high %v2060_v22, %v2076_v20  ;;  %v2067_v43 = vrot.slane %v2053_v29, %v15797_v62 }
 0x5ef   : > { %v2040_v32 = vrot.slane %v2032_v24, %v15800_v5  ;;  %v2047_v44 = vrot.slane %v2033_v34, %v15800_v5 }
 0x5f0   : > { %2136 = vxpose.xlu1.c.b16.start.end [1/1] (short) (narrow) %v1956_v46, 16  ;;  %2264 = vxpose.xlu0.c.b16.start.end [1/1] (short) (narrow) %v1972_v50, 16  ;;  %v2092_v36 = vrot.slane %v2084_v27, %v15800_v5  ;;  %v2099_v46 = vrot.slane %v2085_v39, %v15800_v5  ;;  %v2100_v49 = vcombine.low %v2067_v43, %v2083_v40 }
 0x5f1   : > { %v2048_v50 = vcombine.high %v2024_v17, %v18694_v26  ;;  %v2101_v52 = vcombine.high %v2067_v43, %v2083_v40  ;;  %v2050_v55 = vcombine.high %v2040_v32, %v18694_v26  ;;  %v2051_v57 = vcombine.high %v2047_v44, %v18694_v26 }
 0x5f2   : > { %v2108_v51 = vrot.slane %v2100_v49, %v15800_v5  ;;  %v2117_v60 = vcombine.high %v2099_v46, %v18694_v26 }
 0x5f3   : > { %v2115_v54 = vrot.slane %v2101_v52, %v15800_v5 }
 0x5f4   : > { %2216 = vxpose.xlu1.c.b16.start.end [1/1] (short) (narrow) %v1913_v56, 16  ;;  %2328 = vxpose.xlu0.c.b16.start.end [1/1] (short) (narrow) %v1979_v59, 16  ;;  %v2116_v56 = vcombine.high %v2092_v36, %v18694_v26  ;;  %v13193_v59 = vld [vmem:[#allocation14] ss:$0 sm:$0xff]  ;;  %v2118_v63 = vcombine.high %v2108_v51, %v18694_v26 }
 0x5f5   : > { %v15891_v61 = vadd.f32 %v13193_v59, %v15792_v48  ;;  %v2119_v0 = vcombine.high %v2115_v54, %v18694_v26 }
 0x5f8   : > { %2280 = vxpose.xlu1.c.b16.start.end [1/1] (short) (narrow) %v1914_v2, 16  ;;  %2168 = vxpose.xlu0.c.b16.start.end [1/1] (short) (narrow) %v1980_v9, 16 }
 0x5fc   : > { %2344 = vxpose.xlu1.c.b16.start.end [1/1] (short) (narrow) %v1915_v35, 16  ;;  %2232 = vxpose.xlu0.c.b16.start.end [1/1] (short) (narrow) %v1981_v14, 16 }
 0x600   : > { %2376 = vxpose.xlu1.c.b16.start.end [1/1] (short) (narrow) %v2024_v17, 16  ;;  %2296 = vxpose.xlu0.c.b16.start.end [1/1] (short) (narrow) %v1982_v19, 16 }
 0x604   : > { %2440 = vxpose.xlu1.c.b16.start.end [1/1] (short) (narrow) %v2031_v23, 16  ;;  %2360 = vxpose.xlu0.c.b16.start.end [1/1] (short) (narrow) %v1983_v25, 16 }
 0x608   : > { %2504 = vxpose.xlu1.c.b16.start.end [1/1] (short) (narrow) %v2040_v32, 16  ;;  %2392 = vxpose.xlu0.c.b16.start.end [1/1] (short) (narrow) %v2092_v36, 16 }
 0x60c   : > { %2568 = vxpose.xlu1.c.b16.start.end [1/1] (short) (narrow) %v2047_v44, 16  ;;  %2456 = vxpose.xlu0.c.b16.start.end [1/1] (short) (narrow) %v2099_v46, 16 }
 0x610   : > { %2408 = vxpose.xlu1.c.b16.start.end [1/1] (short) (narrow) %v2048_v50, 16  ;;  %2520 = vxpose.xlu0.c.b16.start.end [1/1] (short) (narrow) %v2108_v51, 16 }
 0x614   : > { %2472 = vxpose.xlu1.c.b16.start.end [1/1] (short) (narrow) %v2049_v53, 16  ;;  %2584 = vxpose.xlu0.c.b16.start.end [1/1] (short) (narrow) %v2115_v54, 16 }
 0x618   : > { %2536 = vxpose.xlu1.c.b16.start.end [1/1] (short) (narrow) %v2050_v55, 16  ;;  %2424 = vxpose.xlu0.c.b16.start.end [1/1] (short) (narrow) %v2116_v56, 16  ;;  %v1362_v56 = vcombine.low %v15822_v37, %v15816_v31 }
 0x61c   : > { %2600 = vxpose.xlu1.c.b16.start.end [1/1] (short) (narrow) %v2051_v57, 16  ;;  %2488 = vxpose.xlu0.c.b16.start.end [1/1] (short) (narrow) %v2117_v60, 16  ;;  %v1363_v57 = vcombine.high %v15822_v37, %v15816_v31 }
 0x620   : > { %1509 = vrot.lane.b32.xlu1 %v15891_v61, %s15019_s6  ;;  %2552 = vxpose.xlu0.c.b16.start.end [1/1] (short) (narrow) %v2118_v63, 16  ;;  %v1346_v63 = vcombine.low %v15783_v47, %v15814_v30 }
 0x622   : > { %v1354_v31 = vrot.slane %v1346_v63, %v15797_v62 }
 0x624   : > { %1515 = vrot.lane.b32.xlu1 %v15891_v61, %s15018_s9  ;;  %2616 = vxpose.xlu0.c.b16.start.end [1/1] (short) (narrow) %v2119_v0, 16  ;;  %v1347_v0 = vcombine.high %v15783_v47, %v15814_v30 }
 0x626   : > { %v1361_v37 = vrot.slane %v1347_v0, %v15797_v62 }
 0x62d   : > { %1512 = vrot.lane.b32.xlu0 %v15891_v61, %s15020_s12 }
 0x64a   : > { %v2192_v1 = vpop.trf.xlu1  ;;  %v2128_v2 = vpop.trf.xlu0 }
 0x64b   : > { %v2632_v17 = vcombine.low %v2128_v2, %v2192_v1  ;;  %v1370_v2 = vrot.slane %v1362_v56, %v15797_v62 }
 0x64d   : > { %v2639_v25 = vrot.slane %v2632_v17, %v15797_v62 }
 0x64e   : > { %v2256_v4 = vpop.trf.xlu1  ;;  %v2160_v48 = vpop.trf.xlu0 }
 0x652   : > { %v2320_v6 = vpop.trf.xlu1  ;;  %v2208_v7 = vpop.trf.xlu0 }
 0x653   : > { %v2648_v13 = vcombine.low %v2256_v4, %v2320_v6  ;;  %v1377_v4 = vrot.slane %v1363_v57, %v15797_v62 }
 0x655   : > { %v2655_v19 = vrot.slane %v2648_v13, %v15797_v62 }
 0x656   : > { %v2144_v8 = vpop.trf.xlu1  ;;  %v2272_v9 = vpop.trf.xlu0 }
 0x657   : > { %v2682_v18 = vcombine.low %v2144_v8, %v2208_v7  ;;  %v1378_v7 = vcombine.low %v1354_v31, %v1370_v2  ;;  %v1379_v8 = vcombine.high %v1354_v31, %v1370_v2 }
 0x659   : > { %v2689_v27 = vrot.slane %v2682_v18, %v15797_v62  ;;  %v1386_v30 = vrot.slane %v1378_v7, %v15800_v5 }
 0x65a   : > { %v2224_v42 = vpop.trf.xlu1  ;;  %v2336_v41 = vpop.trf.xlu0 }
 0x65b   : > { %v2640_v14 = vcombine.low %v2160_v48, %v2224_v42  ;;  %v2698_v21 = vcombine.low %v2272_v9, %v2336_v41  ;;  %v1394_v9 = vcombine.low %v1361_v37, %v1377_v4  ;;  %v1395_v42 = vcombine.high %v1361_v37, %v1377_v4 }
 0x65d   : > { %v2647_v20 = vrot.slane %v2640_v14, %v15797_v62  ;;  %v2705_v34 = vrot.slane %v2698_v21, %v15797_v62  ;;  %v1410_v14 = vcombine.high %v1386_v30, %v18696_v3 }
 0x65e   : > { %v2288_v10 = vpop.trf.xlu1  ;;  %v2176_v45 = vpop.trf.xlu0 }
 0x65f   : > { %v2664_v32 = vcombine.low %v2639_v25, %v2647_v20 }
 0x661   : > { %v15917_v49 = vrot.slane %v2664_v32, %v15800_v5 }
 0x662   : > { %v2352_v11 = vpop.trf.xlu1  ;;  %v2240_v35 = vpop.trf.xlu0 }
 0x663   : > { %v2656_v12 = vcombine.low %v2288_v10, %v2352_v11  ;;  %v2690_v15 = vcombine.low %v2176_v45, %v2240_v35  ;;  %v1393_v10 = vrot.slane %v1379_v8, %v15800_v5  ;;  %v1402_v45 = vrot.slane %v1394_v9, %v15800_v5 }
 0x664   : > { %v1409_v11 = vrot.slane %v1395_v42, %v15800_v5 }
 0x665   : > { %v2663_v33 = vrot.slane %v2656_v12, %v15797_v62  ;;  %v2697_v22 = vrot.slane %v2690_v15, %v15797_v62  ;;  %v1411_v15 = vcombine.high %v1393_v10, %v18696_v3 }
 0x666   : > { %v15901_v38 = vpop.trf.xlu1  ;;  %v2304_v16 = vpop.trf.xlu0  ;;  %v1413_v17 = vcombine.high %v1409_v11, %v18696_v3 }
 0x667   : > { %v2672_v28 = vcombine.low %v2655_v19, %v2663_v33  ;;  %v2714_v36 = vcombine.low %v2689_v27, %v2697_v22 }
 0x668   : > { %v13205_v27 = vpack.c.bf16 %v1413_v17, %v1411_v15 }
 0x669   : > { %v15914_v44 = vrot.slane %v2672_v28, %v15800_v5  ;;  %v15920_v50 = vrot.slane %v2714_v36, %v15800_v5  ;;  %v13202_v36 = vpack.c.bf16 %v1402_v45, %v1386_v30 }
 0x66a   : > { %v15907_v23 = vpop.trf.xlu1  ;;  %v2368_v24 = vpop.trf.xlu0 }
 0x66b   : > { %v2706_v29 = vcombine.low %v2304_v16, %v2368_v24  ;;  %v15927_v54 = vcombine.low %v15917_v49, %v15914_v44  ;;  %v1412_v16 = vcombine.high %v1402_v45, %v18696_v3  ;;  %v2732_v21 = vcombine.low %v15901_v38, %v15907_v23 }
 0x66c   : > { %v1601_v63 = vrot.slane %v13202_v36, %v15797_v62  ;;  %v2681_v17 = vcombine.high %v15917_v49, %v15914_v44 }
 0x66d   : > { %v2713_v39 = vrot.slane %v2706_v29, %v15797_v62  ;;  %v13204_v25 = vpack.c.bf16 %v1412_v16, %v1410_v14 }
 0x66e   : > { %v2512_v40 = vpop.trf.xlu1  ;;  %v2400_v43 = vpop.trf.xlu0 }
 0x66f   : > { %v2722_v46 = vcombine.low %v2705_v34, %v2713_v39  ;;  %v13203_v39 = vpack.c.bf16 %v1409_v11, %v1393_v10  ;;  %v2836_v10 = vshrl.u32 %v15927_v54, 16 }
 0x671   : > { %v15923_v51 = vrot.slane %v2722_v46, %v15800_v5  ;;  %v2739_v46 = vrot.slane %v2732_v21, %v15797_v62  ;;  %v1609_v0 = vrot.slane %v13203_v39, %v15797_v62  ;;  %v2844_v39 = vshrl.u32 %v2681_v17, 16 }
 0x672   : > { %v2576_v52 = vpop.trf.xlu1  ;;  %v2464_v53 = vpop.trf.xlu0 }
 0x673   : > { %v15931_v55 = vcombine.low %v15920_v50, %v15923_v51  ;;  %v2748_v18 = vcombine.low %v2512_v40, %v2576_v52  ;;  %v2782_v22 = vcombine.low %v2400_v43, %v2464_v53  ;;  %v1626_v43 = vrot.slane %v13204_v25, %v15797_v62 }
 0x674   : > { %v1634_v53 = vrot.slane %v13205_v27, %v15797_v62  ;;  %v2731_v14 = vcombine.high %v15920_v50, %v15923_v51 }
 0x675   : > { %v2834_v60 = vpack.i.b16 %v15931_v55, %v15927_v54  ;;  %v2755_v28 = vrot.slane %v2748_v18, %v15797_v62  ;;  %v2789_v52 = vrot.slane %v2782_v22, %v15797_v62 }
 0x676   : > { %v2416_v59 = vpop.trf.xlu1  ;;  %v2528_v1 = vpop.trf.xlu0  ;;  %v1635_v4 = vcombine.low %v1626_v43, %v1634_v53  ;;  %v2842_v22 = vpack.i.b16 %v2731_v14, %v2681_v17 }
 0x677   : > { %13581 = vmatpush3.bf16.msra.mxu1 %v2834_v60 }
 0x678   : > { %13582 = vmatprep.subr.bf16.mxu1 %v18696_v3  ;;  %v1642_v9 = vrot.slane %v1635_v4, %v15800_v5 }
 0x67a   : > { %v2480_v48 = vpop.trf.xlu1  ;;  %v2592_v6 = vpop.trf.xlu0  ;;  %v1643_v49 = vcombine.high %v1642_v9, %v18694_v26 }
 0x67b   : > { %v2740_v33 = vcombine.low %v2416_v59, %v2480_v48  ;;  %v2798_v32 = vcombine.low %v2528_v1, %v2592_v6  ;;  %v1610_v6 = vcombine.low %v1601_v63, %v1609_v0 }
 0x67d   : > { %v2747_v29 = vrot.slane %v2740_v33, %v15797_v62  ;;  %v2805_v57 = vrot.slane %v2798_v32, %v15797_v62  ;;  %v1617_v30 = vrot.slane %v1610_v6, %v15800_v5 }
 0x67e   : > { %v2544_v41 = vpop.trf.xlu1  ;;  %v2432_v47 = vpop.trf.xlu0 }
 0x67f   : > { %v2764_v56 = vcombine.low %v2739_v46, %v2747_v29  ;;  %v1646_v45 = vpack.i.b16 %v1642_v9, %v1617_v30  ;;  %v1647_v16 = vshrl.u32 %v1617_v30, 16  ;;  %v2845_v29 = vshrl.u32 %v2731_v14, 16 }
 0x681   : > { %v2771_v48 = vrot.slane %v2764_v56, %v15800_v5  ;;  %v2846_v43 = vpack.i.b16 %v2845_v29, %v2844_v39 }
 0x682   : > { %v2608_v35 = vpop.trf.xlu1  ;;  %v2496_v12 = vpop.trf.xlu0 }
 0x683   : > { %v2756_v13 = vcombine.low %v2544_v41, %v2608_v35  ;;  %v2790_v19 = vcombine.low %v2432_v47, %v2496_v12  ;;  %v2837_v47 = vshrl.u32 %v15931_v55, 16  ;;  %v1648_v55 = vshrl.u32 %v1642_v9, 16 }
 0x685   : > { %v2763_v24 = vrot.slane %v2756_v13, %v15797_v62  ;;  %v2797_v34 = vrot.slane %v2790_v19, %v15797_v62  ;;  %v2838_v11 = vpack.i.b16 %v2837_v47, %v2836_v10 }
 0x686   : > { %v2560_v20 = vpop.trf.xlu0 }
 0x687   : > { %v2772_v38 = vcombine.low %v2755_v28, %v2763_v24  ;;  %v2814_v59 = vcombine.low %v2789_v52, %v2797_v34  ;;  %v1618_v34 = vcombine.high %v1617_v30, %v18694_v26 }
 0x689   : > { %v2779_v1 = vrot.slane %v2772_v38, %v15800_v5  ;;  %v2821_v31 = vrot.slane %v2814_v59, %v15800_v5  ;;  %v1652_v46 = vpack.i.b16 %v1643_v49, %v1618_v34  ;;  %v1653_v4 = vshrl.u32 %v1618_v34, 16 }
 0x68a   : > { %v2624_v40 = vpop.trf.xlu0 }
 0x68b   : > { %v2806_v23 = vcombine.low %v2560_v20, %v2624_v40  ;;  %v2780_v7 = vcombine.low %v2771_v48, %v2779_v1  ;;  %v1649_v20 = vpack.i.b16 %v1648_v55, %v1647_v16  ;;  %v2781_v25 = vcombine.high %v2771_v48, %v2779_v1 }
 0x68d   : > { %v2813_v60 = vrot.slane %v2806_v23, %v15797_v62  ;;  %v2852_v13 = vshrl.u32 %v2780_v7, 16 }
 0x68f   : > { %v2822_v2 = vcombine.low %v2805_v57, %v2813_v60  ;;  %v2860_v57 = vshrl.u32 %v2781_v25, 16  ;;  %v1654_v60 = vshrl.u32 %v1643_v49, 16 }
 0x691   : > { %v2829_v37 = vrot.slane %v2822_v2, %v15800_v5 }
 0x692   : > { %v1510_v42 = vpop.permute.xlu1 %1509 }
 0x693   : > { %v2830_v8 = vcombine.low %v2821_v31, %v2829_v37  ;;  %v2831_v21 = vcombine.high %v2821_v31, %v2829_v37  ;;  %v1655_v31 = vpack.i.b16 %v1654_v60, %v1653_v4 }
 0x695   : > { %v2850_v41 = vpack.i.b16 %v2830_v8, %v2780_v7  ;;  %v2853_v35 = vshrl.u32 %v2830_v8, 16  ;;  %v2858_v28 = vpack.i.b16 %v2831_v21, %v2781_v25  ;;  %v2861_v53 = vshrl.u32 %v2831_v21, 16 }
 0x696   : > { %v1516_v12 = vpop.permute.xlu1 %1515 }
 0x697   : > { %13583 = vmatpush3.bf16.msra.mxu1 %v2850_v41  ;;  %v2854_v54 = vpack.i.b16 %v2853_v35, %v2852_v13  ;;  %v1534_v15 = vcombine.low %v1510_v42, %v1516_v12  ;;  %v1535_v24 = vcombine.high %v1510_v42, %v1516_v12  ;;  %v2862_v0 = vpack.i.b16 %v2861_v53, %v2860_v57 }
 0x698   : > { %13588 = vmatprep.subr.bf16.mxu1 %v18696_v3 }
 0x699   : > { %v1542_v50 = vrot.slane %v1534_v15, %v15797_v62  ;;  %v1549_v32 = vrot.slane %v1535_v24, %v15797_v62 }
 0x69a   : > { %13585 = vmatmul.mubr.msk.bf16.vlgmr.msra.gmra.mrb[4].mxu1 %vm2864_vm1, %v1646_v45 }
 0x69b   : > { %13589 = vmatpush3.bf16.msra.mxu1 %v2838_v11  ;;  %13592 = vmatprep.mubr.msk.bf16.mxu1 %vm15017_vm0, %v18696_v3 }
 0x69c   : > { %13590 = vmatprep.subr.bf16.mxu1 %v18696_v3 }
 0x69f   : > { %13591 = vmatpush3.bf16.msra.mxu1 %v2854_v54  ;;  %v1513_v18 = vpop.permute.xlu0 %1512 }
 0x6a0   : > { %v1518_v33 = vcombine.low %v15891_v61, %v1513_v18  ;;  %v1519_v19 = vcombine.high %v15891_v61, %v1513_v18  ;;  %13596 = vmatprep.subr.bf16.mxu1 %v18696_v3 }
 0x6a2   : > { %v1526_v51 = vrot.slane %v1518_v33, %v15797_v62  ;;  %13593 = vmatmul.mubr.msk.bf16.vlgmr.msra.gmra.mrb[8].mxu1 %vm2864_vm1, %v1649_v20  ;;  %v1533_v44 = vrot.slane %v1519_v19, %v15797_v62 }
 0x6a3   : > { %13597 = vmatpush3.bf16.msra.mxu1 %v2842_v22  ;;  %13600 = vmatprep.mubr.msk.bf16.mxu1 %vm15017_vm0, %v18696_v3 }
 0x6a4   : > { %v1550_v61 = vcombine.low %v1526_v51, %v1542_v50  ;;  %13598 = vmatprep.subr.bf16.mxu1 %v18696_v3  ;;  %v1551_v27 = vcombine.high %v1526_v51, %v1542_v50  ;;  %v1566_v23 = vcombine.low %v1533_v44, %v1549_v32  ;;  %v1567_v2 = vcombine.high %v1533_v44, %v1549_v32 }
 0x6a6   : > { %v1558_v36 = vrot.slane %v1550_v61, %v15800_v5  ;;  %v1565_v40 = vrot.slane %v1551_v27, %v15800_v5  ;;  %v1574_v63 = vrot.slane %v1566_v23, %v15800_v5  ;;  %v1581_v6 = vrot.slane %v1567_v2, %v15800_v5 }
 0x6a7   : > { %13599 = vmatpush3.bf16.msra.mxu1 %v2858_v28 }
 0x6a8   : > { %13604 = vmatprep.subr.bf16.mxu1 %v18696_v3  ;;  %v1586_v52 = vpack.c.bf16 %v1558_v36, %v1558_v36  ;;  %v1582_v38 = vcombine.high %v1558_v36, %v18696_v3  ;;  %v1583_v59 = vcombine.high %v1565_v40, %v18696_v3  ;;  %v1588_v1 = vpack.c.bf16 %v1565_v40, %v1565_v40 }
 0x6a9   : > { %v1584_v37 = vcombine.high %v1574_v63, %v18696_v3  ;;  %v1590_v7 = vpack.c.bf16 %v1574_v63, %v1574_v63  ;;  %v1585_v9 = vcombine.high %v1581_v6, %v18696_v3  ;;  %v1592_v42 = vpack.c.bf16 %v1581_v6, %v1581_v6 }
 0x6aa   : > { %13601 = vmatmul.mubr.msk.bf16.vlgmr.msra.gmra.mrb[12].mxu1 %vm2864_vm1, %v1652_v46  ;;  %3086 = vxpose.xlu0.c.b16.start.end [1/1] (short) (narrow) %v1586_v52, 32  ;;  %v1587_v56 = vpack.c.bf16 %v1582_v38, %v1582_v38  ;;  %v1589_v48 = vpack.c.bf16 %v1583_v59, %v1583_v59 }
 0x6ab   : > { %13605 = vmatpush3.bf16.msra.mxu1 %v2846_v43  ;;  %13608 = vmatprep.mubr.msk.bf16.mxu1 %vm15017_vm0, %v18696_v3  ;;  %v1591_v8 = vpack.c.bf16 %v1584_v37, %v1584_v37  ;;  %v1593_v41 = vpack.c.bf16 %v1585_v9, %v1585_v9 }
 0x6ac   : > { %3102 = vxpose.xlu1.c.b16.start.end [1/1] (short) (narrow) %v1587_v56, 32  ;;  %13606 = vmatprep.subr.bf16.mxu1 %v18696_v3 }
 0x6af   : > { %13607 = vmatpush3.bf16.msra.mxu1 %v2862_v0  ;;  %3118 = vxpose.xlu0.c.b16.start.end [1/1] (short) (narrow) %v1588_v1, 32 }
 0x6b1   : > { %3134 = vxpose.xlu1.c.b16.start.end [1/1] (short) (narrow) %v1589_v48, 32 }
 0x6b2   : > { %13609 = vmatmul.mubr.msk.bf16.vlgmr.msra.gmra.mrb[16].mxu1 %vm2864_vm1, %v1655_v31 }
 0x6b4   : > { %3150 = vxpose.xlu0.c.b16.start.end [1/1] (short) (narrow) %v1590_v7, 32 }
 0x6b6   : > { %3166 = vxpose.xlu1.c.b16.start.end [1/1] (short) (narrow) %v1591_v8, 32 }
 0x6b9   : > { %3182 = vxpose.xlu0.c.b16.start.end [1/1] (short) (narrow) %v1592_v42, 32 }
 0x6bb   : > { %3198 = vxpose.xlu1.c.b16.start.end [1/1] (short) (narrow) %v1593_v41, 32 }
 0x710   : > { %v3094_v47 = vpop.trf.xlu0 }
 0x711   : > { %v3218_v19 = vshrl.u32 %v3094_v47, 16 }
 0x712   : > { %v3110_v30 = vpop.trf.xlu1 }
 0x713   : > { %v3219_v20 = vshrl.u32 %v3110_v30, 16  ;;  %v3216_v25 = vpack.i.b16 %v3110_v30, %v3094_v47 }
 0x714   : > { %v3095_v10 = vpop.trf.xlu0 }
 0x715   : > { %v3250_v54 = vshrl.u32 %v3095_v10, 16  ;;  %v3220_v34 = vpack.i.b16 %v3219_v20, %v3218_v19 }
 0x716   : > { %v3111_v45 = vpop.trf.xlu1 }
 0x717   : > { %v3251_v15 = vshrl.u32 %v3111_v45, 16  ;;  %v16014_v22 = vpack.i.b16 %v3111_v45, %v3095_v10 }
 0x718   : > { %v3126_v11 = vpop.trf.xlu0 }
 0x719   : > { %v3252_v44 = vpack.i.b16 %v3251_v15, %v3250_v54  ;;  %v3226_v61 = vshrl.u32 %v3126_v11, 16 }
 0x71a   : > { %v3142_v35 = vpop.trf.xlu1 }
 0x71b   : > { %v3227_v27 = vshrl.u32 %v3142_v35, 16  ;;  %v3224_v40 = vpack.i.b16 %v3142_v35, %v3126_v11 }
 0x71c   : > { %v3127_v12 = vpop.trf.xlu0 }
 0x71d   : > { %v3258_v23 = vshrl.u32 %v3127_v12, 16  ;;  %v3228_v57 = vpack.i.b16 %v3227_v27, %v3226_v61 }
 0x71e   : > { %v3143_v13 = vpop.trf.xlu1 }
 0x71f   : > { %v3259_v43 = vshrl.u32 %v3143_v13, 16  ;;  %v16020_v63 = vpack.i.b16 %v3143_v13, %v3127_v12 }
 0x720   : > { %v3158_v55 = vpop.trf.xlu0 }
 0x721   : > { %v3234_v17 = vshrl.u32 %v3158_v55, 16  ;;  %v3260_v7 = vpack.i.b16 %v3259_v43, %v3258_v23 }
 0x722   : > { %v3174_v14 = vpop.trf.xlu1 }
 0x723   : > { %v3235_v18 = vshrl.u32 %v3174_v14, 16  ;;  %v3232_v24 = vpack.i.b16 %v3174_v14, %v3158_v55 }
 0x724   : > { %v3159_v16 = vpop.trf.xlu0 }
 0x725   : > { %v3266_v33 = vshrl.u32 %v3159_v16, 16  ;;  %v3236_v28 = vpack.i.b16 %v3235_v18, %v3234_v17  ;;  %v3278_v46 = vcombine.low %v3216_v25, %v3232_v24  ;;  %v3279_v8 = vcombine.high %v3216_v25, %v3232_v24 }
 0x726   : > { %v3175_v21 = vpop.trf.xlu1 }
 0x727   : > { %v16016_v50 = vpack.i.b16 %v3175_v21, %v3159_v16  ;;  %v3267_v51 = vshrl.u32 %v3175_v21, 16  ;;  %v3346_v60 = vcombine.low %v3220_v34, %v3236_v28  ;;  %v3286_v37 = vrot.slane %v3278_v46, %v15797_v62 }
 0x728   : > { %v3190_v49 = vpop.trf.xlu0  ;;  %v3347_v15 = vcombine.high %v3220_v34, %v3236_v28  ;;  %v3293_v17 = vrot.slane %v3279_v8, %v15797_v62 }
 0x729   : > { %v3268_v29 = vpack.i.b16 %v3267_v51, %v3266_v33  ;;  %v3415_v32 = vcombine.high %v16014_v22, %v16016_v50  ;;  %v3242_v36 = vshrl.u32 %v3190_v49, 16  ;;  %v3354_v30 = vrot.slane %v3346_v60, %v15797_v62 }
 0x72a   : > { %v3206_v39 = vpop.trf.xlu1  ;;  %v3361_v61 = vrot.slane %v3347_v15, %v15797_v62  ;;  %v3414_v60 = vcombine.low %v16014_v22, %v16016_v50 }
 0x72b   : > { %v3483_v52 = vcombine.high %v3252_v44, %v3268_v29  ;;  %v3240_v38 = vpack.i.b16 %v3206_v39, %v3190_v49  ;;  %v3243_v53 = vshrl.u32 %v3206_v39, 16  ;;  %v3482_v10 = vcombine.low %v3252_v44, %v3268_v29 }
 0x72c   : > { %v3191_v56 = vpop.trf.xlu0  ;;  %v16049_v44 = vrot.slane %v3415_v32, %v15797_v62 }
 0x72d   : > { %v3294_v59 = vcombine.low %v3224_v40, %v3240_v38  ;;  %v3244_v0 = vpack.i.b16 %v3243_v53, %v3242_v36  ;;  %v3295_v1 = vcombine.high %v3224_v40, %v3240_v38  ;;  %v3274_v2 = vshrl.u32 %v3191_v56, 16 }
 0x72e   : > { %v3207_v4 = vpop.trf.xlu1  ;;  %v16042_v21 = vrot.slane %v3482_v10, %v15797_v62  ;;  %v16053_v49 = vrot.slane %v3483_v52, %v15797_v62 }
 0x72f   : > { %v16022_v48 = vpack.i.b16 %v3207_v4, %v3191_v56  ;;  %v3275_v31 = vshrl.u32 %v3207_v4, 16  ;;  %v3302_v6 = vrot.slane %v3294_v59, %v15797_v62  ;;  %v3362_v9 = vcombine.low %v3228_v57, %v3244_v0 }
 0x730   : > { %v3309_v11 = vrot.slane %v3295_v1, %v15797_v62  ;;  %v3363_v35 = vcombine.high %v3228_v57, %v3244_v0  ;;  %v3422_v4 = vrot.slane %v3414_v60, %v15797_v62 }
 0x731   : > { %v3276_v42 = vpack.i.b16 %v3275_v31, %v3274_v2  ;;  %v3431_v41 = vcombine.high %v16020_v63, %v16022_v48  ;;  %v3310_v47 = vcombine.low %v3286_v37, %v3302_v6  ;;  %v3370_v45 = vrot.slane %v3362_v9, %v15797_v62 }
 0x732   : > { %v3311_v14 = vcombine.high %v3286_v37, %v3302_v6  ;;  %v3377_v20 = vrot.slane %v3363_v35, %v15797_v62  ;;  %v3326_v25 = vcombine.low %v3293_v17, %v3309_v11  ;;  %v3327_v32 = vcombine.high %v3293_v17, %v3309_v11 }
 0x733   : > { %v3498_v12 = vcombine.low %v3260_v7, %v3276_v42  ;;  %v3499_v13 = vcombine.high %v3260_v7, %v3276_v42  ;;  %v3318_v55 = vrot.slane %v3310_v47, %v15800_v5  ;;  %v3378_v54 = vcombine.low %v3354_v30, %v3370_v45 }
 0x734   : > { %v16037_v18 = vrot.slane %v3431_v41, %v15797_v62  ;;  %v3379_v19 = vcombine.high %v3354_v30, %v3370_v45  ;;  %v3325_v51 = vrot.slane %v3311_v14, %v15800_v5  ;;  %v3394_v29 = vcombine.low %v3361_v61, %v3377_v20 }
 0x735   : > { %v16033_v16 = vrot.slane %v3498_v12, %v15797_v62  ;;  %3550 = vxpose.xlu0.c.b16.start.end [1/1] (short) (narrow) %v3318_v55, 16  ;;  %v3386_v33 = vrot.slane %v3378_v54, %v15800_v5  ;;  %v16045_v24 = vrot.slane %v3499_v13, %v15797_v62  ;;  %v3334_v36 = vrot.slane %v3326_v25, %v15800_v5 }
 0x736   : > { %v3393_v28 = vrot.slane %v3379_v19, %v15800_v5  ;;  %v3462_v34 = vcombine.low %v16049_v44, %v16037_v18  ;;  %v3463_v46 = vcombine.high %v16049_v44, %v16037_v18  ;;  %v3402_v52 = vrot.slane %v3394_v29, %v15800_v5 }
 0x737   : > { %3566 = vxpose.xlu1.c.b16.start.end [1/1] (short) (narrow) %v3386_v33, 16  ;;  %v3515_v27 = vcombine.high %v16042_v21, %v16033_v16  ;;  %v3530_v39 = vcombine.low %v16053_v49, %v16045_v24  ;;  %v3531_v40 = vcombine.high %v16053_v49, %v16045_v24  ;;  %v3395_v38 = vcombine.high %v3361_v61, %v3377_v20 }
 0x738   : > { %v3341_v23 = vrot.slane %v3327_v32, %v15800_v5  ;;  %v3342_v53 = vcombine.high %v3318_v55, %v18694_v26  ;;  %v3410_v56 = vcombine.high %v3386_v33, %v18694_v26  ;;  %v3430_v57 = vcombine.low %v16020_v63, %v16022_v48 }
 0x739   : > { %3614 = vxpose.xlu0.c.b16.start.end [1/1] (short) (narrow) %v3325_v51, 16  ;;  %v3409_v43 = vrot.slane %v3395_v38, %v15800_v5  ;;  %v3343_v59 = vcombine.high %v3325_v51, %v18694_v26  ;;  %v3411_v0 = vcombine.high %v3393_v28, %v18694_v26  ;;  %v3344_v1 = vcombine.high %v3334_v36, %v18694_v26 }
 0x73a   : > { %v3438_v2 = vrot.slane %v3430_v57, %v15797_v62  ;;  %v3412_v31 = vcombine.high %v3402_v52, %v18694_v26  ;;  %v3345_v63 = vcombine.high %v3341_v23, %v18694_v26  ;;  %v3514_v50 = vcombine.low %v16042_v21, %v16033_v16 }
 0x73b   : > { %3630 = vxpose.xlu1.c.b16.start.end [1/1] (short) (narrow) %v3393_v28, 16  ;;  %v3413_v22 = vcombine.high %v3409_v43, %v18694_v26  ;;  %v16108_v61 = vrot.slane %v3515_v27, %v15800_v5  ;;  %v16115_v32 = vrot.slane %v3462_v34, %v15800_v5 }
 0x73c   : > { %v3446_v48 = vcombine.low %v3422_v4, %v3438_v2  ;;  %v3447_v6 = vcombine.high %v3422_v4, %v3438_v2  ;;  %v3522_v7 = vrot.slane %v3514_v50, %v15800_v5 }
 0x73d   : > { %3678 = vxpose.xlu0.c.b16.start.end [1/1] (short) (narrow) %v3334_v36, 16 }
 0x73e   : > { %v3454_v37 = vrot.slane %v3446_v48, %v15800_v5  ;;  %v3461_v8 = vrot.slane %v3447_v6, %v15800_v5  ;;  %v3546_v9 = vcombine.high %v3522_v7, %v18694_v26 }
 0x73f   : > { %3694 = vxpose.xlu1.c.b16.start.end [1/1] (short) (narrow) %v3402_v52, 16 }
 0x740   : > { %v3478_v42 = vcombine.high %v3454_v37, %v18694_v26  ;;  %v3479_v41 = vcombine.high %v3461_v8, %v18694_v26 }
 0x741   : > { %3742 = vxpose.xlu0.c.b16.start.end [1/1] (short) (narrow) %v3341_v23, 16 }
 0x743   : > { %3758 = vxpose.xlu1.c.b16.start.end [1/1] (short) (narrow) %v3409_v43, 16 }
 0x745   : > { %3582 = vxpose.xlu0.c.b16.start.end [1/1] (short) (narrow) %v3342_v53, 16 }
 0x747   : > { %3598 = vxpose.xlu1.c.b16.start.end [1/1] (short) (narrow) %v3410_v56, 16 }
 0x749   : > { %3646 = vxpose.xlu0.c.b16.start.end [1/1] (short) (narrow) %v3343_v59, 16 }
 0x74b   : > { %3662 = vxpose.xlu1.c.b16.start.end [1/1] (short) (narrow) %v3411_v0, 16 }
 0x74d   : > { %3710 = vxpose.xlu0.c.b16.start.end [1/1] (short) (narrow) %v3344_v1, 16 }
 0x74f   : > { %3726 = vxpose.xlu1.c.b16.start.end [1/1] (short) (narrow) %v3412_v31, 16 }
 0x751   : > { %3774 = vxpose.xlu0.c.b16.start.end [1/1] (short) (narrow) %v3345_v63, 16 }
 0x753   : > { %3790 = vxpose.xlu1.c.b16.start.end [1/1] (short) (narrow) %v3413_v22, 16 }
 0x755   : > { %3806 = vxpose.xlu0.c.b16.start.end [1/1] (short) (narrow) %v3454_v37, 16 }
 0x757   : > { %3822 = vxpose.xlu1.c.b16.start.end [1/1] (short) (narrow) %v3522_v7, 16 }
 0x759   : > { %3870 = vxpose.xlu0.c.b16.start.end [1/1] (short) (narrow) %v3461_v8, 16 }
 0x75b   : > { %3854 = vxpose.xlu1.c.b16.start.end [1/1] (short) (narrow) %v3546_v9, 16 }
 0x75d   : > { %3838 = vxpose.xlu0.c.b16.start.end [1/1] (short) (narrow) %v3478_v42, 16 }
 0x761   : > { %3902 = vxpose.xlu0.c.b16.start.end [1/1] (short) (narrow) %v3479_v41, 16 }
 0x76d   : > { %v16092_v47 = vpop.f32.mrb[4].mxu1 }
 0x76e   : > { %v13586_v30 = vpop.f32.mrb[5].mxu1  ;;  %v3038_v10 = vsel %vm3037_vm2, %v16092_v47, -inf }
 0x76f   : > { %v2905_v45 = vpop.f32.mrb[6].mxu1  ;;  %3039 = vmax.xlane.f32.xlu1 %v3038_v10 }
 0x770   : > { %v13587_v11 = vpop.f32.mrb[7].mxu1 }
 0x775   : > { %v16096_v35 = vpop.f32.mrb[8].mxu1 }
 0x776   : > { %v13594_v12 = vpop.f32.mrb[9].mxu1  ;;  %v3041_v13 = vsel %vm3037_vm2, %v16096_v35, -inf }
 0x777   : > { %v2948_v55 = vpop.f32.mrb[10].mxu1  ;;  %3042 = vmax.xlane.f32.xlu0 %v3041_v13 }
 0x778   : > { %v13595_v14 = vpop.f32.mrb[11].mxu1 }
 0x77d   : > { %v16100_v54 = vpop.f32.mrb[12].mxu1 }
 0x77e   : > { %v13602_v15 = vpop.f32.mrb[13].mxu1  ;;  %v3044_v16 = vsel %vm3037_vm2, %v16100_v54, -inf }
 0x77f   : > { %v2991_v17 = vpop.f32.mrb[14].mxu1 }
 0x780   : > { %v13603_v33 = vpop.f32.mrb[15].mxu1 }
 0x785   : > { %v16102_v19 = vpop.f32.mrb[16].mxu1 }
 0x786   : > { %v13610_v20 = vpop.f32.mrb[17].mxu1  ;;  %v3047_v57 = vsel %vm3037_vm2, %v16102_v19, -inf }
 0x787   : > { %v3034_v51 = vpop.f32.mrb[18].mxu1 }
 0x788   : > { %v13611_v25 = vpop.f32.mrb[19].mxu1 }
 0x79b   : > { %v3558_v28 = vpop.trf.xlu0 }
 0x79c   : > { %3886 = vxpose.xlu1.c.b16.start.end [1/1] (short) (narrow) %v16108_v61, 16 }
 0x79d   : > { %v3574_v29 = vpop.trf.xlu1 }
 0x79f   : > { %v3622_v36 = vpop.trf.xlu0 }
 0x7a0   : > { %v4062_v59 = vcombine.low %v3558_v28, %v3622_v36 }
 0x7a1   : > { %v3638_v52 = vpop.trf.xlu1 }
 0x7a2   : > { %v4112_v0 = vcombine.low %v3574_v29, %v3638_v52  ;;  %v4069_v4 = vrot.slane %v4062_v59, %v15797_v62 }
 0x7a3   : > { %v3686_v38 = vpop.trf.xlu0 }
 0x7a4   : > { %3934 = vxpose.xlu0.c.b16.start.end [1/1] (short) (narrow) %v16115_v32, 16  ;;  %v4119_v22 = vrot.slane %v4112_v0, %v15797_v62 }
 0x7a5   : > { %v3702_v23 = vpop.trf.xlu1 }
 0x7a7   : > { %v3750_v43 = vpop.trf.xlu0 }
 0x7a8   : > { %v4078_v31 = vcombine.low %v3686_v38, %v3750_v43 }
 0x7a9   : > { %3045 = vmax.xlane.f32.xlu1 %v3044_v16  ;;  %v3766_v21 = vpop.trf.xlu1 }
 0x7aa   : > { %v4128_v50 = vcombine.low %v3702_v23, %v3766_v21  ;;  %v4085_v7 = vrot.slane %v4078_v31, %v15797_v62 }
 0x7ab   : > { %v3590_v27 = vpop.trf.xlu0 }
 0x7ac   : > { %v4135_v30 = vrot.slane %v4128_v50, %v15797_v62 }
 0x7ad   : > { %v3606_v53 = vpop.trf.xlu1 }
 0x7af   : > { %v3654_v56 = vpop.trf.xlu0 }
 0x7b0   : > { %v4070_v34 = vcombine.low %v3590_v27, %v3654_v56 }
 0x7b1   : > { %3048 = vmax.xlane.f32.xlu0 %v3047_v57  ;;  %v3670_v60 = vpop.trf.xlu1 }
 0x7b2   : > { %v4120_v1 = vcombine.low %v3606_v53, %v3670_v60  ;;  %v4077_v63 = vrot.slane %v4070_v34, %v15797_v62 }
 0x7b3   : > { %v3718_v2 = vpop.trf.xlu0 }
 0x7b4   : > { %v4127_v37 = vrot.slane %v4120_v1, %v15797_v62  ;;  %v4094_v8 = vcombine.low %v4069_v4, %v4077_v63  ;;  %v3547_v1 = vcombine.high %v16108_v61, %v18694_v26  ;;  %v3480_v4 = vcombine.high %v16115_v32, %v18694_v26 }
 0x7b5   : > { %v3734_v48 = vpop.trf.xlu1  ;;  %v3545_v63 = vrot.slane %v3531_v40, %v15800_v5  ;;  %v3477_v61 = vrot.slane %v3463_v46, %v15800_v5 }
 0x7b6   : > { %v4144_v10 = vcombine.low %v4119_v22, %v4127_v37  ;;  %v4101_v12 = vrot.slane %v4094_v8, %v15800_v5 }
 0x7b7   : > { %v3782_v6 = vpop.trf.xlu0 }
 0x7b8   : > { %v4086_v9 = vcombine.low %v3718_v2, %v3782_v6  ;;  %v4151_v15 = vrot.slane %v4144_v10, %v15800_v5  ;;  %v3538_v2 = vrot.slane %v3530_v39, %v15800_v5 }
 0x7b9   : > { %v3798_v41 = vpop.trf.xlu1 }
 0x7ba   : > { %v4093_v42 = vrot.slane %v4086_v9, %v15797_v62  ;;  %v4136_v45 = vcombine.low %v3734_v48, %v3798_v41  ;;  %v3548_v31 = vcombine.high %v3538_v2, %v18694_v26 }
 0x7bb   : > { %v3814_v11 = vpop.trf.xlu0 }
 0x7bc   : > { %v4102_v13 = vcombine.low %v4085_v7, %v4093_v42  ;;  %v4143_v55 = vrot.slane %v4136_v45, %v15797_v62 }
 0x7bd   : > { %v16172_v39 = vpop.trf.xlu1 }
 0x7be   : > { %v4109_v14 = vrot.slane %v4102_v13, %v15800_v5  ;;  %v4152_v17 = vcombine.low %v4135_v30, %v4143_v55 }
 0x7bf   : > { %v3878_v33 = vpop.trf.xlu0 }
 0x7c0   : > { %v4110_v20 = vcombine.low %v4101_v12, %v4109_v14  ;;  %v16133_v51 = vcombine.high %v4101_v12, %v4109_v14  ;;  %v4159_v25 = vrot.slane %v4152_v17, %v15800_v5  ;;  %v4162_v23 = vcombine.low %v3814_v11, %v3878_v33 }
 0x7c1   : > { %v16174_v48 = vpop.trf.xlu1  ;;  %v3549_v12 = vcombine.high %v3545_v63, %v18694_v26 }
 0x7c2   : > { %v4160_v28 = vcombine.low %v4151_v15, %v4159_v25  ;;  %v16136_v29 = vcombine.high %v4151_v15, %v4159_v25  ;;  %v4265_v52 = vshrl.u32 %v4110_v20, 16  ;;  %v4271_v38 = vshrl.u32 %v16133_v51, 16 }
 0x7c3   : > { %v3846_v36 = vpop.trf.xlu0  ;;  %v16148_v59 = vrot.slane %v4162_v23, %v15797_v62 }
 0x7c4   : > { %v4264_v43 = vpack.i.b16 %v4160_v28, %v4110_v20  ;;  %v4266_v16 = vshrl.u32 %v4160_v28, 16  ;;  %v4270_v21 = vpack.i.b16 %v16136_v29, %v16133_v51  ;;  %v4272_v27 = vshrl.u32 %v16136_v29, 16 }
 0x7c6   : > { %13614 = vmatprep.mubr.msk.bf16.mxu1 %vm3037_vm2, %v4264_v43  ;;  %v16143_v56 = vpack.i.b16 %v4266_v16, %v4265_v52  ;;  %v16145_v57 = vpack.i.b16 %v4272_v27, %v4271_v38 }
 0x7c7   : > { %v3910_v53 = vpop.trf.xlu0 }
 0x7c8   : > { %v4170_v34 = vcombine.low %v3846_v36, %v3910_v53 }
 0x7ca   : > { %v16151_v60 = vrot.slane %v4170_v34, %v15797_v62 }
 0x7cc   : > { %v4194_v0 = vcombine.low %v16148_v59, %v16151_v60 }
 0x7d6   : > { %3918 = vxpose.xlu1.c.b16.start.end [1/1] (short) (narrow) %v3547_v1, 16 }
 0x7da   : > { %3950 = vxpose.xlu1.c.b16.start.end [1/1] (short) (narrow) %v3538_v2, 16 }
 0x7de   : > { %3982 = vxpose.xlu1.c.b16.start.end [1/1] (short) (narrow) %v3548_v31, 16  ;;  %3966 = vxpose.xlu0.c.b16.start.end [1/1] (short) (narrow) %v3480_v4, 16 }
 0x7e2   : > { %4014 = vxpose.xlu1.c.b16.start.end [1/1] (short) (narrow) %v3545_v63, 16  ;;  %3998 = vxpose.xlu0.c.b16.start.end [1/1] (short) (narrow) %v3477_v61, 16 }
 0x7fc   : > { %v3040_v32 = vpop.xlane.xlu1 %3039 }
 0x7fd   : > { %v3050_v22 = vsub.f32 %v16092_v47, %v3040_v32 }
 0x7ff   : > { %v3054_v50 = vmul.f32 1.442695, %v3050_v22 }
 0x801   : > { %14217 = vpow2.f32 %v3054_v50 }
 0x802   : > { %v3894_v6 = vpop.trf.xlu1 }
 0x803   : > { %v4212_v4 = vcombine.low %v16172_v39, %v3894_v6 }
 0x804   : > { %v3043_v37 = vpop.xlane.xlu0 %3042 }
 0x805   : > { %v3051_v24 = vsub.f32 %v16096_v35, %v3043_v37  ;;  %v4219_v50 = vrot.slane %v4212_v4, %v15797_v62  ;;  %v14098_v4 = vld [vmem:[#allocation16 + $0x28] sm:$0xff]  }
 0x807   : > { %v3056_v49 = vmul.f32 1.442695, %v3051_v24 }
 0x809   : > { %14219 = vpow2.f32 %v3056_v49 }
 0x80a   : > { %v3942_v47 = vpop.trf.xlu0 }
 0x80b   : > { %v14218_v40 = vpop.eup %14217 }
 0x80c   : > { %v3062_v18 = vsel %vm3037_vm2, %v14218_v40, 0.0 }
 0x80d   : > { %3063 = vadd.xlane.f32.xlu0 %v3062_v18 }
 0x813   : > { %v14220_v44 = vpop.eup %14219 }
 0x814   : > { %v3065_v46 = vsel %vm3037_vm2, %v14220_v44, 0.0 }
 0x815   : > { %3066 = vadd.xlane.f32.xlu1 %v3065_v46  ;;  %v4201_v46 = vrot.slane %v4194_v0, %v15800_v5 }
 0x836   : > { %v3046_v7 = vpop.xlane.xlu1 %3045 }
 0x837   : > { %v3052_v8 = vsub.f32 %v16100_v54, %v3046_v7  ;;  %v3481_v54 = vcombine.high %v3477_v61, %v18694_v26 }
 0x839   : > { %v3058_v9 = vmul.f32 1.442695, %v3052_v8 }
 0x83b   : > { %14221 = vpow2.f32 %v3058_v9 }
 0x83c   : > { %v3926_v13 = vpop.trf.xlu1 }
 0x83d   : > { %v4220_v34 = vcombine.low %v16174_v48, %v3926_v13 }
 0x83e   : > { %v3049_v42 = vpop.xlane.xlu0 %3048 }
 0x83f   : > { %v3053_v35 = vsub.f32 %v16102_v19, %v3049_v42  ;;  %v4227_v63 = vrot.slane %v4220_v34, %v15797_v62  ;;  %v14095_v34 = vld [vmem:[#allocation16 + $0x10] sm:$0xff]  }
 0x840   : > { %v3958_v55 = vpop.trf.xlu1 }
 0x841   : > { %v3060_v41 = vmul.f32 1.442695, %v3053_v35  ;;  %v4244_v49 = vcombine.low %v4219_v50, %v4227_v63 }
 0x843   : > { %14223 = vpow2.f32 %v3060_v41  ;;  %v4251_v6 = vrot.slane %v4244_v49, %v15800_v5 }
 0x844   : > { %v3974_v19 = vpop.trf.xlu0  ;;  %v3990_v15 = vpop.trf.xlu1 }
 0x845   : > { %v14222_v30 = vpop.eup %14221 }
 0x846   : > { %v3068_v10 = vsel %vm3037_vm2, %v14222_v30, 0.0 }
 0x847   : > { %3069 = vadd.xlane.f32.xlu0 %v3068_v10 }
 0x848   : > { %v4006_v14 = vpop.trf.xlu0  ;;  %v4022_v33 = vpop.trf.xlu1 }
 0x849   : > { %v4178_v1 = vcombine.low %v3942_v47, %v4006_v14  ;;  %v4228_v32 = vcombine.low %v3958_v55, %v4022_v33 }
 0x84b   : > { %v4185_v61 = vrot.slane %v4178_v1, %v15797_v62  ;;  %v4235_v48 = vrot.slane %v4228_v32, %v15797_v62  ;;  %v14096_v1 = vld [vmem:[#allocation16 + $0x18] sm:$0xff]  }
 0x84d   : > { %v16183_v45 = vpop.eup %14223 }
 0x84e   : > { %v3071_v11 = vsel %vm3037_vm2, %v16183_v45, 0.0 }
 0x84f   : > { %3072 = vadd.xlane.f32.xlu1 %v3071_v11 }
 0x874   : > { %4030 = vxpose.xlu0.c.b16.start.end [1/1] (short) (narrow) %v3481_v54, 16 }
 0x87c   : > { %4046 = vxpose.xlu1.c.b16.start.end [1/1] (short) (narrow) %v3549_v12, 16 }
 0x89a   : > { %v3064_v17 = vpop.xlane.xlu0 %3063 }
 0x89b   : > { %14225 = vrcp.f32 %v3064_v17 }
 0x8a2   : > { %v3067_v20 = vpop.xlane.xlu1 %3066 }
 0x8a3   : > { %14227 = vrcp.f32 %v3067_v20 }
 0x8a5   : > { %v14226_v25 = vpop.eup %14225 }
 0x8a6   : > { %v3078_v28 = vmul.f32 %v14226_v25, %v14218_v40 }
 0x8a8   : > { %v3082_v36 = vpack.c.bf16 %v3078_v28, %v3078_v28 }
 0x8aa   : > { %13792 = vmatprep.subr.msk.bf16.mxu1 %vm3037_vm2, %v3082_v36  ;;  %v4293_v52 = vsel %vm3037_vm2, %v3082_v36, 0 }
 0x8ab   : > { %13613 = vmatpush3.bf16.xpose.msra.mxu1 %v4293_v52 }
 0x8ad   : > { %v14228_v38 = vpop.eup %14227 }
 0x8ae   : > { %v3079_v23 = vmul.f32 %v14228_v38, %v14220_v44 }
 0x8b0   : > { %v3083_v43 = vpack.c.bf16 %v3079_v23, %v3079_v23 }
 0x8b2   : > { %13793 = vmatprep.subr.msk.bf16.mxu1 %vm3037_vm2, %v3083_v43  ;;  %v4351_v35 = vsel %vm3037_vm2, %v3083_v43, 0 }
 0x8d4   : > { %v3070_v16 = vpop.xlane.xlu0 %3069 }
 0x8d5   : > { %14229 = vrcp.f32 %v3070_v16 }
 0x8da   : > { %v4038_v27 = vpop.trf.xlu0 }
 0x8db   : > { %v4186_v53 = vcombine.low %v3974_v19, %v4038_v27  ;;  %v14093_v27 = vld [vmem:[#allocation16] sm:$0xff]  }
 0x8dc   : > { %v3073_v2 = vpop.xlane.xlu1 %3072  ;;  %13637 = vmatpush3.bf16.msra.mxu0 %v14093_v27 }
 0x8dd   : > { %v4193_v31 = vrot.slane %v4186_v53, %v15797_v62  ;;  %14231 = vrcp.f32 %v3073_v2  ;;  %v14094_v53 = vld [vmem:[#allocation16 + $0x8] sm:$0xff]   ;;  %13638 = vmatprep.subr.bf16.mxu0 %v18696_v3  ;;  %v14097_v2 = vld [vmem:[#allocation16 + $0x20] sm:$0xff]  }
 0x8df   : > { %v4202_v37 = vcombine.low %v4185_v61, %v4193_v31  ;;  %v14230_v44 = vpop.eup %14229  ;;  %v14099_v31 = vld [vmem:[#allocation16 + $0x30] sm:$0xff]  }
 0x8e0   : > { %v3080_v9 = vmul.f32 %v14230_v44, %v14222_v30  ;;  %13639 = vmatpush3.bf16.msra.mxu0 %v14094_v53 }
 0x8e1   : > { %v4209_v39 = vrot.slane %v4202_v37, %v15800_v5  ;;  %13640 = vmatprep.subr.bf16.mxu0 %v18696_v3 }
 0x8e2   : > { %v4054_v22 = vpop.trf.xlu1  ;;  %v3084_v41 = vpack.c.bf16 %v3080_v9, %v3080_v9 }
 0x8e3   : > { %v4236_v24 = vcombine.low %v3990_v15, %v4054_v22  ;;  %v4210_v8 = vcombine.low %v4201_v46, %v4209_v39 }
 0x8e4   : > { %v4409_v30 = vsel %vm3037_vm2, %v3084_v41, 0  ;;  %13641 = vmatpush3.bf16.msra.mxu0 %v14095_v34  ;;  %v14109_v34 = vld [vmem:[#allocation5] sm:$0xff]  }
 0x8e5   : > { %v4243_v40 = vrot.slane %v4236_v24, %v15797_v62  ;;  %v4277_v60 = vshrl.u32 %v4210_v8, 16  ;;  %13642 = vmatprep.subr.bf16.mxu0 %v18696_v3 }
 0x8e7   : > { %v4252_v18 = vcombine.low %v4235_v48, %v4243_v40  ;;  %v14232_v10 = vpop.eup %14231 }
 0x8e8   : > { %v3081_v0 = vmul.f32 %v14232_v10, %v16183_v45  ;;  %13643 = vmatpush3.bf16.msra.mxu0 %v14096_v1 }
 0x8e9   : > { %v4259_v7 = vrot.slane %v4252_v18, %v15800_v5  ;;  %13644 = vmatprep.subr.bf16.mxu0 %v18696_v3 }
 0x8ea   : > { %v3085_v54 = vpack.c.bf16 %v3081_v0, %v3081_v0 }
 0x8eb   : > { %v4260_v47 = vcombine.low %v4251_v6, %v4259_v7  ;;  %v4261_v12 = vcombine.high %v4251_v6, %v4259_v7 }
 0x8ec   : > { %v4467_v45 = vsel %vm3037_vm2, %v3085_v54, 0  ;;  %13645 = vmatpush3.bf16.msra.mxu0 %v14097_v2  ;;  %v14102_v2 = vld [vmem:[#allocation22 + $0x8] sm:$0xff]  }
 0x8ed   : > { %v4276_v42 = vpack.i.b16 %v4260_v47, %v4210_v8  ;;  %v4278_v59 = vshrl.u32 %v4260_v47, 16  ;;  %v4284_v19 = vshrl.u32 %v4261_v12, 16  ;;  %13646 = vmatprep.subr.bf16.mxu0 %v18696_v3  ;;  %v14100_v8 = vld [vmem:[#allocation16 + $0x38] sm:$0xff]  }
 0x8ef   : > { %13615 = vmatmul.mubr.msk.bf16.vlgmr.msra.gmra.mrb[20].mxu1 %vm3037_vm2, %v4276_v42  ;;  %v4279_v11 = vpack.i.b16 %v4278_v59, %v4277_v60 }
 0x8f0   : > { %13619 = vmatpush3.bf16.xpose.msra.mxu1 %v4351_v35  ;;  %13620 = vmatprep.mubr.msk.bf16.mxu1 %vm3037_vm2, %v16143_v56  ;;  %v4211_v56 = vcombine.high %v4201_v46, %v4209_v39 }
 0x8f1   : > { %13794 = vmatprep.subr.msk.bf16.mxu1 %vm3037_vm2, %v3084_v41  ;;  %13647 = vmatpush3.bf16.msra.mxu0 %v14098_v4  ;;  %v14103_v4 = vld [vmem:[#allocation22 + $0x10] sm:$0xff]  }
 0x8f2   : > { %v4282_v13 = vpack.i.b16 %v4261_v12, %v4211_v56  ;;  %v4283_v55 = vshrl.u32 %v4211_v56, 16  ;;  %13648 = vmatprep.subr.bf16.mxu0 %v18696_v3  ;;  %v14101_v12 = vld [vmem:[#allocation22] sm:$0xff]  }
 0x8f4   : > { %v4285_v51 = vpack.i.b16 %v4284_v19, %v4283_v55 }
 0x8f5   : > { %13649 = vmatpush3.bf16.msra.mxu0 %v14099_v31  ;;  %v14104_v31 = vld [vmem:[#allocation22 + $0x18] sm:$0xff]  }
 0x8f6   : > { %13650 = vmatprep.subr.bf16.mxu0 %v18696_v3 }
 0x8f7   : > { %13621 = vmatmul.mubr.msk.bf16.vlgmr.msra.gmra.mrb[24].mxu1 %vm3037_vm2, %v4279_v11 }
 0x8f8   : > { %13625 = vmatpush3.bf16.xpose.msra.mxu1 %v4409_v30  ;;  %13626 = vmatprep.mubr.msk.bf16.mxu1 %vm3037_vm2, %v4270_v21 }
 0x8f9   : > { %13795 = vmatprep.subr.msk.bf16.mxu1 %vm3037_vm2, %v3085_v54  ;;  %13651 = vmatpush3.bf16.msra.mxu0 %v14100_v8 }
 0x8fa   : > { %13676 = vmatprep.subr.bf16.mxu0 %v14101_v12 }
 0x8ff   : > { %13627 = vmatmul.mubr.msk.bf16.vlgmr.msra.gmra.mrb[28].mxu1 %vm3037_vm2, %v4282_v13 }
 0x900   : > { %13631 = vmatpush3.bf16.xpose.msra.mxu1 %v4467_v45  ;;  %13632 = vmatprep.mubr.msk.bf16.mxu1 %vm3037_vm2, %v16145_v57 }
 0x901   : > { %13656 = vmatprep.subr.bf16.mxu1 %v18696_v3 }
 0x907   : > { %13633 = vmatmul.mubr.msk.bf16.vlgmr.msra.gmra.mrb[32].mxu1 %vm3037_vm2, %v4285_v51 }
 0x908   : > { %13672 = vmatprep.mubr.msk.bf16.mxu1 %vm15017_vm0, %v18696_v3 }
 0x9c2   : > { %v13616_v29 = vpop.f32.mrb[20].mxu1 }
 0x9c3   : > { %v4329_v21 = vpop.f32.mrb[21].mxu1 }
 0x9c4   : > { %4518 = vxpose.xlu0.b32.start [1/4] (short) (narrow) %v4329_v21, 8  ;;  %v13617_v14 = vpop.f32.mrb[22].mxu1 }
 0x9c5   : > { %v4332_v15 = vpop.f32.mrb[23].mxu1 }
 0x9c8   : > { %4519 = vxpose.xlu0.b32.cont [2/4] (short) (narrow) %v4332_v15, 8 }
 0x9ca   : > { %v13622_v17 = vpop.f32.mrb[24].mxu1 }
 0x9cb   : > { %v4387_v33 = vpop.f32.mrb[25].mxu1 }
 0x9cc   : > { %4520 = vxpose.xlu0.b32.cont [3/4] (short) (narrow) %v13616_v29, 8  ;;  %4550 = vxpose.xlu1.b32.start [1/4] (short) (narrow) %v4387_v33, 8  ;;  %v13623_v57 = vpop.f32.mrb[26].mxu1 }
 0x9cd   : > { %v4390_v20 = vpop.f32.mrb[27].mxu1 }
 0x9d0   : > { %4521 = vxpose.xlu0.b32.end [4/4] (short) (narrow) %v13617_v14, 8  ;;  %4551 = vxpose.xlu1.b32.cont [2/4] (short) (narrow) %v4390_v20, 8  ;;  %v14112_v20 = vld [vmem:[#allocation19 + $0x8] sm:$0xff]  }
 0x9d2   : > { %v13628_v25 = vpop.f32.mrb[28].mxu1 }
 0x9d3   : > { %v4445_v28 = vpop.f32.mrb[29].mxu1 }
 0x9d4   : > { %4552 = vxpose.xlu1.b32.cont [3/4] (short) (narrow) %v13622_v17, 8  ;;  %4582 = vxpose.xlu0.b32.start [1/4] (short) (narrow) %v4445_v28, 8  ;;  %v13629_v36 = vpop.f32.mrb[30].mxu1  ;;  %v14114_v28 = vld [vmem:[#allocation19 + $0x18] sm:$0xff]  }
 0x9d5   : > { %v4448_v52 = vpop.f32.mrb[31].mxu1 }
 0x9d8   : > { %4553 = vxpose.xlu1.b32.end [4/4] (short) (narrow) %v13623_v57, 8  ;;  %4583 = vxpose.xlu0.b32.cont [2/4] (short) (narrow) %v4448_v52, 8  ;;  %v14111_v57 = vld [vmem:[#allocation19] sm:$0xff]   ;;  %v14116_v52 = vld [vmem:[#allocation19 + $0x28] sm:$0xff]  }
 0x9d9   : > { %13657 = vmatpush3.bf16.msra.mxu1 %v14111_v57 }
 0x9da   : > { %v13634_v38 = vpop.f32.mrb[32].mxu1  ;;  %13658 = vmatprep.subr.bf16.mxu1 %v18696_v3 }
 0x9db   : > { %v4503_v23 = vpop.f32.mrb[33].mxu1 }
 0x9dc   : > { %4584 = vxpose.xlu0.b32.cont [3/4] (short) (narrow) %v13628_v25, 8  ;;  %4614 = vxpose.xlu1.b32.start [1/4] (short) (narrow) %v4503_v23, 8  ;;  %v13635_v43 = vpop.f32.mrb[34].mxu1  ;;  %v14113_v25 = vld [vmem:[#allocation19 + $0x10] sm:$0xff]  }
 0x9dd   : > { %v4506_v16 = vpop.f32.mrb[35].mxu1  ;;  %13659 = vmatpush3.bf16.msra.mxu1 %v14112_v20 }
 0x9de   : > { %13660 = vmatprep.subr.bf16.mxu1 %v18696_v3 }
 0x9e0   : > { %4585 = vxpose.xlu0.b32.end [4/4] (short) (narrow) %v13629_v36, 8  ;;  %4615 = vxpose.xlu1.b32.cont [2/4] (short) (narrow) %v4506_v16, 8  ;;  %v14115_v36 = vld [vmem:[#allocation19 + $0x20] sm:$0xff]  }
 0x9e1   : > { %13661 = vmatpush3.bf16.msra.mxu1 %v14113_v25 }
 0x9e2   : > { %13662 = vmatprep.subr.bf16.mxu1 %v18696_v3 }
 0x9e4   : > { %4616 = vxpose.xlu1.b32.cont [3/4] (short) (narrow) %v13634_v38, 8 }
 0x9e5   : > { %13663 = vmatpush3.bf16.msra.mxu1 %v14114_v28 }
 0x9e6   : > { %13664 = vmatprep.subr.bf16.mxu1 %v18696_v3 }
 0x9e8   : > { %4617 = vxpose.xlu1.b32.end [4/4] (short) (narrow) %v13635_v43, 8 }
 0x9e9   : > { %13665 = vmatpush3.bf16.msra.mxu1 %v14115_v36 }
 0x9ea   : > { %13666 = vmatprep.subr.bf16.mxu1 %v18696_v3 }
 0x9ed   : > { %13667 = vmatpush3.bf16.msra.mxu1 %v14116_v52 }
 0x9ee   : > { %13668 = vmatprep.subr.bf16.mxu1 %v18696_v3 }
 0xa44   : > { %v4534_v63 = vpop.trf.xlu0 }
 0xa4c   : > { %v4566_v61 = vpop.trf.xlu1 }
 0xa54   : > { %v4598_v32 = vpop.trf.xlu0 }
 0xa55   : > { %v4646_v22 = vcombine.low %v4534_v63, %v4598_v32  ;;  %v4647_v50 = vcombine.high %v4534_v63, %v4598_v32  ;;  %v14105_v63 = vld [vmem:[#allocation22 + $0x20] sm:$0xff]   ;;  %v14107_v32 = vld [vmem:[#allocation22 + $0x30] sm:$0xff]  }
 0xa57   : > { %v4654_v48 = vrot.slane %v4646_v22, %v15797_v62  ;;  %v4661_v40 = vrot.slane %v4647_v50, %v15797_v62  ;;  %v14108_v22 = vld [vmem:[#allocation22 + $0x38] sm:$0xff]   ;;  %v14110_v50 = vld [vmem:[#allocation5 + $0x8] sm:$0xff]  }
 0xa5c   : > { %v4630_v37 = vpop.trf.xlu1 }
 0xa5d   : > { %v4662_v24 = vcombine.low %v4566_v61, %v4630_v37  ;;  %v4663_v49 = vcombine.high %v4566_v61, %v4630_v37  ;;  %v14106_v61 = vld [vmem:[#allocation22 + $0x28] sm:$0xff]  }
 0xa5e   : > { %v14117_v37 = vld [vmem:[#allocation19 + $0x30] sm:$0xff]  }
 0xa5f   : > { %v4670_v39 = vrot.slane %v4662_v24, %v15797_v62  ;;  %v4677_v18 = vrot.slane %v4663_v49, %v15797_v62  ;;  %13669 = vmatpush3.bf16.msra.mxu1 %v14117_v37  ;;  %v14118_v24 = vld [vmem:[#allocation19 + $0x38] sm:$0xff]   ;;  %v14119_v49 = vld [vmem:[#allocation25] sm:$0xff]  }
 0xa60   : > { %13670 = vmatprep.subr.bf16.mxu1 %v18696_v3 }
 0xa61   : > { %v4678_v44 = vcombine.low %v4654_v48, %v4670_v39  ;;  %v4679_v46 = vcombine.high %v4654_v48, %v4670_v39  ;;  %v4694_v6 = vcombine.low %v4661_v40, %v4677_v18  ;;  %v4695_v7 = vcombine.high %v4661_v40, %v4677_v18  ;;  %v13220_v48 = vld [vmem:[#allocation17] ss:$0 sm:$0xff] }
 0xa63   : > { %v4686_v47 = vrot.slane %v4678_v44, %v15800_v5  ;;  %v4693_v9 = vrot.slane %v4679_v46, %v15800_v5  ;;  %v4702_v42 = vrot.slane %v4694_v6, %v15800_v5  ;;  %v4709_v35 = vrot.slane %v4695_v7, %v15800_v5  ;;  %13671 = vmatpush3.bf16.msra.mxu1 %v14118_v24  ;;  %v14259_v46 = vld [vmem:[%s15694_s11] sm:$0xff]  ;;  %s18600_s11 = scalar_lea.hbm %s19109_s0, %s13351_s3 }
 0xa64   : > { %13696 = vmatprep.subr.bf16.mxu1 %v14119_v49 }
 0xa65   : > { %v4714_v41 = vcombine.low %v4686_v47, %v4693_v9  ;;  %v13218_v10 = vcombine.high %v4686_v47, %v4693_v9  ;;  %v4730_v59 = vcombine.low %v4702_v42, %v4709_v35  ;;  %v13219_v60 = vcombine.high %v4702_v42, %v4709_v35  ;;  %v14120_v47 = vld [vmem:[#allocation25 + $0x8] sm:$0xff]   ;;  %v14121_v9 = vld [vmem:[#allocation25 + $0x10] sm:$0xff]   ;;  %v14122_v42 = vld [vmem:[#allocation25 + $0x18] sm:$0xff]  }
 0xa66   : > { %v14123_v35 = vld [vmem:[#allocation25 + $0x20] sm:$0xff]  }
 0xa67   : > { %v4721_v0 = vrot.slane %v4714_v41, %v15797_v62  ;;  %v4729_v11 = vrot.slane %v13218_v10, %v15797_v62  ;;  %v4737_v30 = vrot.slane %v4730_v59, %v15797_v62  ;;  %v4745_v54 = vrot.slane %v13219_v60, %v15797_v62  ;;  %v14124_v41 = vld [vmem:[#allocation25 + $0x28] sm:$0xff]   ;;  %v14125_v10 = vld [vmem:[#allocation25 + $0x30] sm:$0xff]   ;;  %v14126_v59 = vld [vmem:[#allocation25 + $0x38] sm:$0xff]  }
 0xa68   : > { %v13238_v60 = vld [vmem:[#allocation23] ss:$0 sm:$0xff] }
 0xa69   : > { %v4747_v56 = vcombine.high %v4721_v0, %v4729_v11  ;;  %v4763_v13 = vcombine.high %v4737_v30, %v4745_v54  ;;  %v4746_v45 = vcombine.low %v4721_v0, %v4729_v11  ;;  %v4762_v19 = vcombine.low %v4737_v30, %v4745_v54 }
 0xa6b   : > { %v4761_v55 = vrot.slane %v4747_v56, %v15800_v5  ;;  %v4777_v51 = vrot.slane %v4763_v13, %v15800_v5  ;;  %v4754_v29 = vrot.slane %v4746_v45, %v15800_v5  ;;  %v4770_v21 = vrot.slane %v4762_v19, %v15800_v5 }
 0xa6d   : > { %v4780_v14 = vcombine.low %v4761_v55, %v4777_v51  ;;  %v4779_v15 = vcombine.high %v4754_v29, %v4770_v21  ;;  %v4778_v17 = vcombine.low %v4754_v29, %v4770_v21  ;;  %v4781_v33 = vcombine.high %v4761_v55, %v4777_v51 }
 0xa6f   : > { %4787 = vrot.lane.b32.xlu1 %v4780_v14, %s15020_s12  ;;  %4783 = vrot.lane.b32.xlu0 %v4779_v15, %s15018_s9 }
 0xa73   : > { %4791 = vrot.lane.b32.xlu1 %v4781_v33, %s15019_s6 }
 0xae1   : > { %v4788_v38 = vpop.permute.xlu1 %4787  ;;  %v4784_v23 = vpop.permute.xlu0 %4783 }
 0xae2   : > { %v4794_v43 = vsel %vm2864_vm1, %v4778_v17, %v4784_v23 }
 0xae3   : > { %v4796_v27 = vsel %vm4795_vm3, %v4794_v43, %v4788_v38 }
 0xae5   : > { %v4792_v16 = vpop.permute.xlu1 %4791 }
 0xae6   : > { %v4798_v53 = vsel %vm4797_vm4, %v4796_v27, %v4792_v16 }
 0xae7   : > { %v4799_v1 = vpack.c.bf16 %v4798_v53, %v4798_v53 }
 0xae9   : > { %13653 = vmatmul.mubr.bf16.vlgmr.msra.gmra.mrb[8].mxu0 %v4799_v1 }
 0xaea   : > { %13677 = vmatpush3.bf16.msra.mxu0 %v14101_v12  ;;  %13692 = vmatprep.mubr.bf16.mxu0 %v14109_v34 }
 0xaeb   : > { %13678 = vmatprep.subr.bf16.mxu0 %v14102_v2 }
 0xaee   : > { %13679 = vmatpush3.bf16.msra.mxu0 %v14102_v2 }
 0xaef   : > { %13680 = vmatprep.subr.bf16.mxu0 %v14103_v4 }
 0xaf2   : > { %13681 = vmatpush3.bf16.msra.mxu0 %v14103_v4 }
 0xaf3   : > { %13682 = vmatprep.subr.bf16.mxu0 %v14104_v31 }
 0xaf6   : > { %13683 = vmatpush3.bf16.msra.mxu0 %v14104_v31 }
 0xaf7   : > { %13684 = vmatprep.subr.bf16.mxu0 %v14105_v63 }
 0xafa   : > { %13685 = vmatpush3.bf16.msra.mxu0 %v14105_v63 }
 0xafb   : > { %13686 = vmatprep.subr.bf16.mxu0 %v14106_v61 }
 0xafe   : > { %13687 = vmatpush3.bf16.msra.mxu0 %v14106_v61 }
 0xaff   : > { %13688 = vmatprep.subr.bf16.mxu0 %v14107_v32 }
 0xb02   : > { %13689 = vmatpush3.bf16.msra.mxu0 %v14107_v32 }
 0xb03   : > { %13690 = vmatprep.subr.bf16.mxu0 %v14108_v22 }
 0xb06   : > { %13691 = vmatpush3.bf16.msra.mxu0 %v14108_v22 }
 0xb07   : > { %13716 = vmatprep.subr.bf16.mxu0 %v18696_v3 }
 0xb09   : > { %13693 = vmatmul.mubr.bf16.vlgmr.msra.gmra.mrb[12].mxu0 %v14110_v50 }
 0xb0a   : > { %13720 = vmatprep.mubr.msk.bf16.mxu0 %vm15017_vm0, %v18696_v3 }
 0xbbc   : > { %v4905_v40 = vpop.f32.mrb[8].mxu0 }
 0xbbd   : > { %v4906_v39 = vadd.f32 %v13220_v48, %v4905_v40  ;;  %v13654_v18 = vpop.f32.mrb[9].mxu0 }
 0xbbe   : > { %v4908_v44 = vpop.f32.mrb[10].mxu0 }
 0xbbf   : > { %v16268_v6 = vadd.f32 %v14259_v46, %v4906_v39  ;;  %v13655_v7 = vpop.f32.mrb[11].mxu0 }
 0xbc1   : > { %18870 = vst [vmem:[#allocation60_spill] sm:$0xff] %v16268_v6  ;;  %v4912_v8 = vpack.c.bf16 %v16268_v6, %v16268_v6 }
 0xbc3   : > { %13673 = vmatmul.mubr.bf16.vlgmr.msra.gmra.mrb[36].mxu1 %v4912_v8 }
 0xbc4   : > { %13697 = vmatpush3.bf16.msra.mxu1 %v14119_v49  ;;  %13712 = vmatprep.mubr.bf16.mxu1 %v14109_v34 }
 0xbc5   : > { %13698 = vmatprep.subr.bf16.mxu1 %v14120_v47 }
 0xbc8   : > { %13699 = vmatpush3.bf16.msra.mxu1 %v14120_v47 }
 0xbc9   : > { %13700 = vmatprep.subr.bf16.mxu1 %v14121_v9 }
 0xbcc   : > { %13701 = vmatpush3.bf16.msra.mxu1 %v14121_v9 }
 0xbcd   : > { %13702 = vmatprep.subr.bf16.mxu1 %v14122_v42 }
 0xbd0   : > { %13703 = vmatpush3.bf16.msra.mxu1 %v14122_v42 }
 0xbd1   : > { %13704 = vmatprep.subr.bf16.mxu1 %v14123_v35 }
 0xbd4   : > { %13705 = vmatpush3.bf16.msra.mxu1 %v14123_v35 }
 0xbd5   : > { %13706 = vmatprep.subr.bf16.mxu1 %v14124_v41 }
 0xbd8   : > { %13707 = vmatpush3.bf16.msra.mxu1 %v14124_v41 }
 0xbd9   : > { %13708 = vmatprep.subr.bf16.mxu1 %v14125_v10 }
 0xbdc   : > { %v13694_v0 = vpop.f32.mrb[12].mxu0  ;;  %13709 = vmatpush3.bf16.msra.mxu1 %v14125_v10 }
 0xbdd   : > { %v5150_v11 = vadd.f32 %v13694_v0, %v13238_v60  ;;  %v5141_v30 = vpop.f32.mrb[13].mxu0  ;;  %13710 = vmatprep.subr.bf16.mxu1 %v14126_v59 }
 0xbde   : > { %v13695_v54 = vpop.f32.mrb[14].mxu0  ;;  %v5142_v13 = vadd.f32 %v13238_v60, %v5141_v30 }
 0xbdf   : > { %v16272_v12 = vadd.f32 %v13695_v54, %v13238_v60  ;;  %5370 = vrot.lane.b32.xlu0 %v5150_v11, %s15019_s6  ;;  %v5144_v56 = vpop.f32.mrb[15].mxu0 }
 0xbe0   : > { %13711 = vmatpush3.bf16.msra.mxu1 %v14126_v59  ;;  %v16286_v45 = vadd.f32 %v13238_v60, %v5144_v56 }
 0xbe1   : > { %5372 = vrot.lane.b32.xlu1 %v16272_v12, %s15019_s6  ;;  %13724 = vmatprep.subr.bf16.mxu1 %v18696_v3 }
 0xbe3   : > { %5382 = vrot.lane.b32.xlu0 %v5150_v11, %s15020_s12  ;;  %13713 = vmatmul.mubr.bf16.vlgmr.msra.gmra.mrb[40].mxu1 %v14110_v50 }
 0xbe4   : > { %13728 = vmatprep.mubr.msk.bf16.mxu1 %vm15017_vm0, %v18696_v3 }
 0xbe5   : > { %5384 = vrot.lane.b32.xlu1 %v16272_v12, %s15020_s12 }
 0xbe7   : > { %5394 = vrot.lane.b32.xlu0 %v5150_v11, %s15018_s9 }
 0xbe9   : > { %5396 = vrot.lane.b32.xlu1 %v16272_v12, %s15018_s9 }
 0xbeb   : > { %5366 = vrot.lane.b32.xlu0 %v5142_v13, %s15019_s6 }
 0xbed   : > { %5368 = vrot.lane.b32.xlu1 %v16286_v45, %s15019_s6 }
 0xbef   : > { %5378 = vrot.lane.b32.xlu0 %v5142_v13, %s15020_s12 }
 0xbf1   : > { %5380 = vrot.lane.b32.xlu1 %v16286_v45, %s15020_s12 }
 0xbf3   : > { %5390 = vrot.lane.b32.xlu0 %v5142_v13, %s15018_s9 }
 0xbf5   : > { %5392 = vrot.lane.b32.xlu1 %v16286_v45, %s15018_s9 }
 0xc51   : > { %v5371_v19 = vpop.permute.xlu0 %5370 }
 0xc53   : > { %v5373_v52 = vpop.permute.xlu1 %5372 }
 0xc55   : > { %v5383_v55 = vpop.permute.xlu0 %5382 }
 0xc56   : > { %v5538_v51 = vcombine.low %v5150_v11, %v5383_v55  ;;  %v5539_v57 = vcombine.high %v5150_v11, %v5383_v55 }
 0xc57   : > { %v5385_v4 = vpop.permute.xlu1 %5384 }
 0xc58   : > { %v5546_v14 = vrot.slane %v5538_v51, %v15797_v62  ;;  %v5553_v23 = vrot.slane %v5539_v57, %v15797_v62  ;;  %v5606_v42 = vcombine.low %v16272_v12, %v5385_v4 }
 0xc59   : > { %v5395_v29 = vpop.permute.xlu0 %5394 }
 0xc5a   : > { %v5554_v21 = vcombine.low %v5371_v19, %v5395_v29  ;;  %v5555_v15 = vcombine.high %v5371_v19, %v5395_v29  ;;  %v5614_v0 = vrot.slane %v5606_v42, %v15797_v62  ;;  %v5607_v29 = vcombine.high %v16272_v12, %v5385_v4 }
 0xc5b   : > { %v5397_v18 = vpop.permute.xlu1 %5396 }
 0xc5c   : > { %v5562_v17 = vrot.slane %v5554_v21, %v15797_v62  ;;  %v5569_v28 = vrot.slane %v5555_v15, %v15797_v62  ;;  %v5622_v47 = vcombine.low %v5373_v52, %v5397_v18  ;;  %v5623_v19 = vcombine.high %v5373_v52, %v5397_v18 }
 0xc5d   : > { %v5367_v33 = vpop.permute.xlu0 %5366  ;;  %v5621_v57 = vrot.slane %v5607_v29, %v15797_v62 }
 0xc5e   : > { %v5570_v20 = vcombine.low %v5546_v14, %v5562_v17  ;;  %v5571_v25 = vcombine.high %v5546_v14, %v5562_v17  ;;  %v5586_v27 = vcombine.low %v5553_v23, %v5569_v28  ;;  %v5587_v50 = vcombine.high %v5553_v23, %v5569_v28 }
 0xc5f   : > { %v5630_v59 = vrot.slane %v5622_v47, %v15797_v62  ;;  %v5369_v55 = vpop.permute.xlu1 %5368  ;;  %v5637_v17 = vrot.slane %v5623_v19, %v15797_v62 }
 0xc60   : > { %v5578_v36 = vrot.slane %v5570_v20, %v15800_v5  ;;  %v5585_v16 = vrot.slane %v5571_v25, %v15800_v5  ;;  %v5594_v22 = vrot.slane %v5586_v27, %v15800_v5  ;;  %v5601_v44 = vrot.slane %v5587_v50, %v15800_v5 }
 0xc61   : > { %v5379_v38 = vpop.permute.xlu0 %5378  ;;  %v5638_v54 = vcombine.low %v5614_v0, %v5630_v59  ;;  %v5639_v14 = vcombine.high %v5614_v0, %v5630_v59 }
 0xc62   : > { %v5690_v43 = vpack.c.bf16 %v5578_v36, %v5578_v36  ;;  %v5402_v53 = vcombine.low %v5142_v13, %v5379_v38  ;;  %v5692_v31 = vpack.c.bf16 %v5585_v16, %v5585_v16  ;;  %v5403_v63 = vcombine.high %v5142_v13, %v5379_v38 }
 0xc63   : > { %v5694_v40 = vpack.c.bf16 %v5594_v22, %v5594_v22  ;;  %v5696_v9 = vpack.c.bf16 %v5601_v44, %v5601_v44  ;;  %v5602_v60 = vcombine.high %v5578_v36, %v18696_v3  ;;  %v5603_v13 = vcombine.high %v5585_v16, %v18696_v3  ;;  %v5381_v20 = vpop.permute.xlu1 %5380 }
 0xc64   : > { %6368 = vxpose.xlu1.c.b16.start.end [1/1] (short) (narrow) %v5690_v43, 32  ;;  %v5410_v61 = vrot.slane %v5402_v53, %v15797_v62  ;;  %v5417_v48 = vrot.slane %v5403_v63, %v15797_v62  ;;  %v5646_v21 = vrot.slane %v5638_v54, %v15800_v5  ;;  %v5653_v28 = vrot.slane %v5639_v14, %v15800_v5 }
 0xc65   : > { %v5391_v34 = vpop.permute.xlu0 %5390  ;;  %v5691_v56 = vpack.c.bf16 %v5602_v60, %v5602_v60  ;;  %v5693_v15 = vpack.c.bf16 %v5603_v13, %v5603_v13  ;;  %v5654_v36 = vcombine.low %v5621_v57, %v5637_v17  ;;  %v5605_v12 = vcombine.high %v5601_v44, %v18696_v3 }
 0xc66   : > { %v5418_v1 = vcombine.low %v5367_v33, %v5391_v34  ;;  %v5419_v2 = vcombine.high %v5367_v33, %v5391_v34  ;;  %v5604_v33 = vcombine.high %v5594_v22, %v18696_v3  ;;  %v5698_v25 = vpack.c.bf16 %v5646_v21, %v5646_v21 }
 0xc67   : > { %v5700_v38 = vpack.c.bf16 %v5653_v28, %v5653_v28  ;;  %v5393_v23 = vpop.permute.xlu1 %5392  ;;  %v5662_v43 = vrot.slane %v5654_v36, %v15800_v5  ;;  %v5655_v16 = vcombine.high %v5621_v57, %v5637_v17  ;;  %v5697_v27 = vpack.c.bf16 %v5605_v12, %v5605_v12  ;;  %v13229_v17 = vld [vmem:[#allocation20] ss:$0 sm:$0xff] }
 0xc68   : > { %v5426_v32 = vrot.slane %v5418_v1, %v15797_v62  ;;  %v5433_v37 = vrot.slane %v5419_v2, %v15797_v62  ;;  %v5695_v52 = vpack.c.bf16 %v5604_v33, %v5604_v33  ;;  %v5486_v34 = vcombine.low %v5369_v55, %v5393_v23 }
 0xc69   : > { %6400 = vxpose.xlu1.c.b16.start.end [1/1] (short) (narrow) %v5692_v31, 32  ;;  %v5702_v1 = vpack.c.bf16 %v5662_v43, %v5662_v43  ;;  %v5470_v2 = vcombine.low %v16286_v45, %v5381_v20  ;;  %v5669_v4 = vrot.slane %v5655_v16, %v15800_v5  ;;  %v5471_v18 = vcombine.high %v16286_v45, %v5381_v20 }
 0xc6a   : > { %v5434_v24 = vcombine.low %v5410_v61, %v5426_v32  ;;  %v5435_v49 = vcombine.high %v5410_v61, %v5426_v32  ;;  %v5450_v46 = vcombine.low %v5417_v48, %v5433_v37  ;;  %v5451_v41 = vcombine.high %v5417_v48, %v5433_v37 }
 0xc6b   : > { %v5494_v63 = vrot.slane %v5486_v34, %v15797_v62  ;;  %v5478_v32 = vrot.slane %v5470_v2, %v15797_v62  ;;  %v5704_v22 = vpack.c.bf16 %v5669_v4, %v5669_v4  ;;  %v5487_v48 = vcombine.high %v5369_v55, %v5393_v23 }
 0xc6c   : > { %v16309_v39 = vrot.slane %v5434_v24, %v15800_v5  ;;  %v5449_v8 = vrot.slane %v5435_v49, %v15800_v5  ;;  %v5458_v35 = vrot.slane %v5450_v46, %v15800_v5  ;;  %v5465_v30 = vrot.slane %v5451_v41, %v15800_v5 }
 0xc6d   : > { %v5502_v37 = vcombine.low %v5478_v32, %v5494_v63  ;;  %v5503_v46 = vcombine.high %v5478_v32, %v5494_v63  ;;  %v5501_v47 = vrot.slane %v5487_v48, %v15797_v62  ;;  %v5671_v0 = vcombine.high %v5653_v28, %v18696_v3  ;;  %v13249_v28 = vld [vmem:[#allocation26] ss:$0 sm:$0xff] }
 0xc6e   : > { %6432 = vxpose.xlu1.c.b16.start.end [1/1] (short) (narrow) %v5694_v40, 32  ;;  %v5674_v7 = vpack.c.bf16 %v16309_v39, %v16309_v39  ;;  %v5676_v10 = vpack.c.bf16 %v5449_v8, %v5449_v8  ;;  %v5678_v11 = vpack.c.bf16 %v5458_v35, %v5458_v35  ;;  %v5680_v51 = vpack.c.bf16 %v5465_v30, %v5465_v30 }
 0xc6f   : > { %v5467_v53 = vcombine.high %v5449_v8, %v18696_v3  ;;  %v5468_v61 = vcombine.high %v5458_v35, %v18696_v3  ;;  %v5466_v50 = vcombine.high %v16309_v39, %v18696_v3  ;;  %v5469_v49 = vcombine.high %v5465_v30, %v18696_v3 }
 0xc70   : > { %6112 = vxpose.xlu0.c.b16.start.end [1/1] (short) (narrow) %v5674_v7, 32  ;;  %v5510_v44 = vrot.slane %v5502_v37, %v15800_v5  ;;  %v5670_v39 = vcombine.high %v5646_v21, %v18696_v3  ;;  %v5485_v35 = vrot.slane %v5471_v18, %v15797_v62  ;;  %v5517_v59 = vrot.slane %v5503_v46, %v15800_v5 }
 0xc71   : > { %v5677_v31 = vpack.c.bf16 %v5467_v53, %v5467_v53  ;;  %v5679_v24 = vpack.c.bf16 %v5468_v61, %v5468_v61  ;;  %v5675_v40 = vpack.c.bf16 %v5466_v50, %v5466_v50  ;;  %v5681_v8 = vpack.c.bf16 %v5469_v49, %v5469_v49 }
 0xc72   : > { %v5518_v45 = vcombine.low %v5485_v35, %v5501_v47  ;;  %v5699_v60 = vpack.c.bf16 %v5670_v39, %v5670_v39  ;;  %v5519_v54 = vcombine.high %v5485_v35, %v5501_v47  ;;  %v5672_v13 = vcombine.high %v5662_v43, %v18696_v3 }
 0xc73   : > { %6464 = vxpose.xlu1.c.b16.start.end [1/1] (short) (narrow) %v5696_v9, 32  ;;  %v5673_v29 = vcombine.high %v5669_v4, %v18696_v3  ;;  %v5535_v20 = vcombine.high %v5517_v59, %v18696_v3 }
 0xc74   : > { %v5526_v30 = vrot.slane %v5518_v45, %v15800_v5  ;;  %v5533_v55 = vrot.slane %v5519_v54, %v15800_v5 }
 0xc75   : > { %6144 = vxpose.xlu0.c.b16.start.end [1/1] (short) (narrow) %v5676_v10, 32  ;;  %v5682_v10 = vpack.c.bf16 %v5510_v44, %v5510_v44  ;;  %v5705_v14 = vpack.c.bf16 %v5673_v29, %v5673_v29 }
 0xc76   : > { %v5686_v19 = vpack.c.bf16 %v5526_v30, %v5526_v30  ;;  %v5688_v21 = vpack.c.bf16 %v5533_v55, %v5533_v55  ;;  %v5536_v36 = vcombine.high %v5526_v30, %v18696_v3 }
 0xc78   : > { %6176 = vxpose.xlu1.c.b16.start.end [1/1] (short) (narrow) %v5678_v11, 32  ;;  %v5684_v11 = vpack.c.bf16 %v5517_v59, %v5517_v59  ;;  %v5687_v43 = vpack.c.bf16 %v5536_v36, %v5536_v36 }
 0xc7a   : > { %6384 = vxpose.xlu0.c.b16.start.end [1/1] (short) (narrow) %v5691_v56, 32  ;;  %v5701_v56 = vpack.c.bf16 %v5671_v0, %v5671_v0 }
 0xc7d   : > { %6208 = vxpose.xlu1.c.b16.start.end [1/1] (short) (narrow) %v5680_v51, 32  ;;  %v5703_v51 = vpack.c.bf16 %v5672_v13, %v5672_v13 }
 0xc7f   : > { %6416 = vxpose.xlu0.c.b16.start.end [1/1] (short) (narrow) %v5693_v15, 32  ;;  %v5534_v15 = vcombine.high %v5510_v44, %v18696_v3 }
 0xc81   : > { %v5683_v33 = vpack.c.bf16 %v5534_v15, %v5534_v15 }
 0xc82   : > { %6496 = vxpose.xlu1.c.b16.start.end [1/1] (short) (narrow) %v5698_v25, 32  ;;  %v5685_v25 = vpack.c.bf16 %v5535_v20, %v5535_v20 }
 0xc84   : > { %6448 = vxpose.xlu0.c.b16.start.end [1/1] (short) (narrow) %v5695_v52, 32 }
 0xc87   : > { %6528 = vxpose.xlu1.c.b16.start.end [1/1] (short) (narrow) %v5700_v38, 32 }
 0xc89   : > { %6480 = vxpose.xlu0.c.b16.start.end [1/1] (short) (narrow) %v5697_v27, 32  ;;  %v5537_v27 = vcombine.high %v5533_v55, %v18696_v3 }
 0xc8b   : > { %v5689_v34 = vpack.c.bf16 %v5537_v27, %v5537_v27 }
 0xc8c   : > { %6560 = vxpose.xlu1.c.b16.start.end [1/1] (short) (narrow) %v5702_v1, 32 }
 0xc8e   : > { %6160 = vxpose.xlu0.c.b16.start.end [1/1] (short) (narrow) %v5677_v31, 32 }
 0xc91   : > { %6592 = vxpose.xlu1.c.b16.start.end [1/1] (short) (narrow) %v5704_v22, 32 }
 0xc93   : > { %6192 = vxpose.xlu0.c.b16.start.end [1/1] (short) (narrow) %v5679_v24, 32 }
 0xc96   : > { %6128 = vxpose.xlu1.c.b16.start.end [1/1] (short) (narrow) %v5675_v40, 32  ;;  %v5018_v7 = vpop.f32.mrb[36].mxu1 }
 0xc97   : > { %v13674_v9 = vpop.f32.mrb[37].mxu1  ;;  %v16351_v57 = vadd.f32 %v13229_v17, %v5018_v7 }
 0xc98   : > { %6224 = vxpose.xlu0.c.b16.start.end [1/1] (short) (narrow) %v5681_v8, 32  ;;  %v5021_v42 = vpop.f32.mrb[38].mxu1 }
 0xc99   : > { %v13675_v41 = vpop.f32.mrb[39].mxu1 }
 0xc9b   : > { %6240 = vxpose.xlu1.c.b16.start.end [1/1] (short) (narrow) %v5682_v10, 32 }
 0xc9d   : > { %6512 = vxpose.xlu0.c.b16.start.end [1/1] (short) (narrow) %v5699_v60, 32 }
 0xca0   : > { %6272 = vxpose.xlu1.c.b16.start.end [1/1] (short) (narrow) %v5684_v11, 32 }
 0xca2   : > { %6544 = vxpose.xlu0.c.b16.start.end [1/1] (short) (narrow) %v5701_v56, 32 }
 0xca5   : > { %6304 = vxpose.xlu1.c.b16.start.end [1/1] (short) (narrow) %v5686_v19, 32 }
 0xca7   : > { %6576 = vxpose.xlu0.c.b16.start.end [1/1] (short) (narrow) %v5703_v51, 32 }
 0xcaa   : > { %6336 = vxpose.xlu1.c.b16.start.end [1/1] (short) (narrow) %v5688_v21, 32 }
 0xcac   : > { %6608 = vxpose.xlu0.c.b16.start.end [1/1] (short) (narrow) %v5705_v14, 32 }
 0xcb1   : > { %6256 = vxpose.xlu0.c.b16.start.end [1/1] (short) (narrow) %v5683_v33, 32 }
 0xcb2   : > { %5277 = vrot.lane.b32.xlu1 %v16351_v57, %s15019_s6 }
 0xcb6   : > { %6288 = vxpose.xlu0.c.b16.start.end [1/1] (short) (narrow) %v5685_v25, 32  ;;  %5283 = vrot.lane.b32.xlu1 %v16351_v57, %s15018_s9  ;;  %v13714_v52 = vpop.f32.mrb[40].mxu1 }
 0xcb7   : > { %v16359_v12 = vadd.f32 %v13714_v52, %v13249_v28  ;;  %v5261_v38 = vpop.f32.mrb[41].mxu1 }
 0xcb8   : > { %v13715_v23 = vpop.f32.mrb[42].mxu1  ;;  %v16368_v1 = vadd.f32 %v13249_v28, %v5261_v38 }
 0xcb9   : > { %18871 = vst [vmem:[#allocation61_spill] sm:$0xff] %v16359_v12  ;;  %v5264_v16 = vpop.f32.mrb[43].mxu1  ;;  %v16380_v31 = vadd.f32 %v13715_v23, %v13249_v28 }
 0xcba   : > { %5714 = vrot.lane.b32.xlu1 %v16359_v12, %s15019_s6  ;;  %v16364_v53 = vadd.f32 %v13249_v28, %v5264_v16  ;;  %18872 = vst [vmem:[#allocation62_spill] sm:$0xff] %v16368_v1 }
 0xcbb   : > { %6320 = vxpose.xlu0.c.b16.start.end [1/1] (short) (narrow) %v5687_v43, 32  ;;  %18873 = vst [vmem:[#allocation63_spill] sm:$0xff] %v16380_v31 }
 0xcbe   : > { %5726 = vrot.lane.b32.xlu1 %v16359_v12, %s15020_s12 }
 0xcc0   : > { %6352 = vxpose.xlu0.c.b16.start.end [1/1] (short) (narrow) %v5689_v34, 32 }
 0xcc2   : > { %5722 = vrot.lane.b32.xlu1 %v16368_v1, %s15020_s12 }
 0xcc6   : > { %5734 = vrot.lane.b32.xlu1 %v16368_v1, %s15018_s9 }
 0xcca   : > { %v16374_v2 = vpop.trf.xlu1 }
 0xccd   : > { %5280 = vrot.lane.b32.xlu0 %v16351_v57, %s15020_s12 }
 0xcce   : > { %v6377_v4 = vpop.trf.xlu1 }
 0xcd1   : > { %5710 = vrot.lane.b32.xlu0 %v16368_v1, %s15019_s6 }
 0xcd2   : > { %v16382_v63 = vpop.trf.xlu1 }
 0xcd5   : > { %5716 = vrot.lane.b32.xlu0 %v16380_v31, %s15019_s6 }
 0xcd6   : > { %v6409_v61 = vpop.trf.xlu1  ;;  %v16386_v32 = vpop.trf.xlu0 }
 0xcd9   : > { %5728 = vrot.lane.b32.xlu0 %v16380_v31, %s15020_s12 }
 0xcda   : > { %v16390_v22 = vpop.trf.xlu1  ;;  %v6121_v50 = vpop.trf.xlu0 }
 0xcde   : > { %v6441_v37 = vpop.trf.xlu1  ;;  %v16392_v24 = vpop.trf.xlu0 }
 0xcdf   : > { %v7440_v40 = vcombine.low %v6377_v4, %v6441_v37  ;;  %v7441_v18 = vcombine.high %v6377_v4, %v6441_v37 }
 0xce1   : > { %v16397_v7 = vrot.slane %v7440_v40, %v15797_v62  ;;  %v16400_v8 = vrot.slane %v7441_v18, %v15797_v62 }
 0xce2   : > { %v16394_v49 = vpop.trf.xlu1  ;;  %v6153_v48 = vpop.trf.xlu0 }
 0xce6   : > { %v6473_v44 = vpop.trf.xlu1  ;;  %v6392_v46 = vpop.trf.xlu0 }
 0xce7   : > { %v7456_v47 = vcombine.low %v6409_v61, %v6473_v44  ;;  %v7457_v9 = vcombine.high %v6409_v61, %v6473_v44 }
 0xce9   : > { %v16403_v39 = vrot.slane %v7456_v47, %v15797_v62  ;;  %v16406_v42 = vrot.slane %v7457_v9, %v15797_v62 }
 0xcea   : > { %v16408_v35 = vpop.trf.xlu1  ;;  %v16410_v41 = vpop.trf.xlu0 }
 0xceb   : > { %18874 = vst [vmem:[#allocation64_spill] sm:$0xff] %v16410_v41  ;;  %v7504_v10 = vcombine.low %v16397_v7, %v16403_v39  ;;  %v7505_v59 = vcombine.high %v16397_v7, %v16403_v39 }
 0xcee   : > { %v6185_v0 = vpop.trf.xlu1  ;;  %v6424_v11 = vpop.trf.xlu0 }
 0xcef   : > { %v7168_v56 = vcombine.low %v6121_v50, %v6185_v0  ;;  %v7169_v13 = vcombine.high %v6121_v50, %v6185_v0 }
 0xcf1   : > { %v16425_v21 = vrot.slane %v7168_v56, %v15797_v62  ;;  %v16428_v14 = vrot.slane %v7169_v13, %v15797_v62 }
 0xcf2   : > { %v16420_v30 = vpop.trf.xlu1  ;;  %v16422_v54 = vpop.trf.xlu0 }
 0xcf3   : > { %18875 = vst [vmem:[#allocation65_spill] sm:$0xff] %v16422_v54 }
 0xcf6   : > { %v6217_v19 = vpop.trf.xlu1  ;;  %v6456_v55 = vpop.trf.xlu0 }
 0xcf7   : > { %v7184_v51 = vcombine.low %v6153_v48, %v6217_v19  ;;  %v7185_v29 = vcombine.high %v6153_v48, %v6217_v19  ;;  %v7032_v38 = vcombine.low %v6392_v46, %v6456_v55  ;;  %v7033_v23 = vcombine.high %v6392_v46, %v6456_v55 }
 0xcf9   : > { %v16431_v15 = vrot.slane %v7184_v51, %v15797_v62  ;;  %v16434_v17 = vrot.slane %v7185_v29, %v15797_v62  ;;  %v16449_v4 = vrot.slane %v7032_v38, %v15797_v62  ;;  %v16452_v61 = vrot.slane %v7033_v23, %v15797_v62 }
 0xcfa   : > { %v16436_v33 = vpop.trf.xlu1  ;;  %v16438_v20 = vpop.trf.xlu0 }
 0xcfb   : > { %18876 = vst [vmem:[#allocation66_spill] sm:$0xff] %v16438_v20 }
 0xcfe   : > { %v6505_v43 = vpop.trf.xlu1  ;;  %v6488_v16 = vpop.trf.xlu0 }
 0xcff   : > { %v7048_v27 = vcombine.low %v6424_v11, %v6488_v16  ;;  %v7049_v34 = vcombine.high %v6424_v11, %v6488_v16 }
 0xd01   : > { %v16455_v50 = vrot.slane %v7048_v27, %v15797_v62  ;;  %v16458_v37 = vrot.slane %v7049_v34, %v15797_v62 }
 0xd02   : > { %v16460_v48 = vpop.trf.xlu1  ;;  %v16462_v40 = vpop.trf.xlu0 }
 0xd03   : > { %18877 = vst [vmem:[#allocation67_spill] sm:$0xff] %v16462_v40 }
 0xd06   : > { %v6537_v9 = vpop.trf.xlu1  ;;  %v6168_v0 = vpop.trf.xlu0 }
 0xd0a   : > { %v16472_v11 = vpop.trf.xlu1  ;;  %v16474_v56 = vpop.trf.xlu0 }
 0xd0e   : > { %v6569_v13 = vpop.trf.xlu1  ;;  %v6200_v19 = vpop.trf.xlu0 }
 0xd0f   : > { %v7472_v55 = vcombine.low %v6505_v43, %v6569_v13  ;;  %v7473_v51 = vcombine.high %v6505_v43, %v6569_v13 }
 0xd11   : > { %v7480_v27 = vrot.slane %v7472_v55, %v15797_v62  ;;  %v7487_v34 = vrot.slane %v7473_v51, %v15797_v62 }
 0xd12   : > { %v16476_v29 = vpop.trf.xlu1  ;;  %v16478_v38 = vpop.trf.xlu0 }
 0xd16   : > { %v6601_v23 = vpop.trf.xlu1  ;;  %v6232_v16 = vpop.trf.xlu0 }
 0xd17   : > { %v7488_v26 = vcombine.low %v6537_v9, %v6601_v23  ;;  %v7489_v52 = vcombine.high %v6537_v9, %v6601_v23  ;;  %v6776_v3 = vcombine.low %v6168_v0, %v6232_v16  ;;  %v6777_v44 = vcombine.high %v6168_v0, %v6232_v16 }
 0xd19   : > { %v7496_v36 = vrot.slane %v7488_v26, %v15797_v62  ;;  %v7503_v28 = vrot.slane %v7489_v52, %v15797_v62  ;;  %v16487_v55 = vrot.slane %v6776_v3, %v15797_v62  ;;  %v16490_v9 = vrot.slane %v6777_v44, %v15797_v62 }
 0xd1a   : > { %v16484_v25 = vpop.trf.xlu0  ;;  %v6136_v43 = vpop.trf.xlu1 }
 0xd1b   : > { %v6760_v13 = vcombine.low %v6136_v43, %v6200_v19  ;;  %v6761_v18 = vcombine.high %v6136_v43, %v6200_v19  ;;  %v7536_v47 = vcombine.low %v7480_v27, %v7496_v36  ;;  %v7537_v46 = vcombine.high %v7480_v27, %v7496_v36 }
 0xd1c   : > { %v7552_v60 = vcombine.low %v7487_v34, %v7503_v28  ;;  %v7553_v45 = vcombine.high %v7487_v34, %v7503_v28  ;;  %v7512_v43 = vrot.slane %v7504_v10, %v15800_v5 }
 0xd1d   : > { %v16493_v0 = vrot.slane %v6760_v13, %v15797_v62  ;;  %v16496_v26 = vrot.slane %v6761_v18, %v15797_v62  ;;  %v7544_v23 = vrot.slane %v7536_v47, %v15800_v5  ;;  %v7551_v16 = vrot.slane %v7537_v46, %v15800_v5 }
 0xd1e   : > { %v16498_v52 = vpop.trf.xlu0  ;;  %v16500_v51 = vpop.trf.xlu1  ;;  %v7560_v27 = vrot.slane %v7552_v60, %v15800_v5  ;;  %v7567_v34 = vrot.slane %v7553_v45, %v15800_v5  ;;  %v7519_v13 = vrot.slane %v7505_v59, %v15800_v5  ;;  %v18879_v46 = vcombine.low %v16400_v8, %v16406_v42 }
 0xd1f   : > { %v18880_v45 = vcombine.high %v16400_v8, %v16406_v42  ;;  %v16534_v3 = vcombine.low %v7512_v43, %v7544_v23  ;;  %v16536_v10 = vcombine.high %v7512_v43, %v7544_v23 }
 0xd20   : > { %v7528_v47 = vrot.slane %v18879_v46, %v15800_v5  ;;  %v16538_v36 = vcombine.low %v7519_v13, %v7551_v16  ;;  %v16540_v7 = vcombine.high %v7519_v13, %v7551_v16 }
 0xd21   : > { %v7535_v60 = vrot.slane %v18880_v45, %v15800_v5  ;;  %18881 = vst [vmem:[#allocation69_spill] sm:$0xff] %v16534_v3  ;;  %18882 = vst [vmem:[#allocation70_spill] sm:$0xff] %v16536_v10 }
 0xd22   : > { %v16510_v19 = vpop.trf.xlu0  ;;  %v16512_v18 = vpop.trf.xlu1  ;;  %18883 = vst [vmem:[#allocation71_spill] sm:$0xff] %v16538_v36  ;;  %18884 = vst [vmem:[#allocation72_spill] sm:$0xff] %v16540_v7  ;;  %v16542_v39 = vcombine.low %v7528_v47, %v7560_v27  ;;  %v16544_v59 = vcombine.high %v7528_v47, %v7560_v27  ;;  %v6897_v7 = vcombine.high %v16374_v2, %v16390_v22 }
 0xd23   : > { %18878 = vst [vmem:[#allocation68_spill] sm:$0xff] %v16510_v19  ;;  %v16546_v58 = vcombine.low %v7535_v60, %v7567_v34  ;;  %v16548_v46 = vcombine.high %v7535_v60, %v7567_v34 }
 0xd24   : > { %18885 = vst [vmem:[#allocation73_spill] sm:$0xff] %v16542_v39  ;;  %18886 = vst [vmem:[#allocation74_spill] sm:$0xff] %v16544_v59  ;;  %v6896_v39 = vcombine.low %v16374_v2, %v16390_v22  ;;  %v6912_v22 = vcombine.low %v16382_v63, %v16394_v49 }
 0xd25   : > { %18887 = vst [vmem:[#allocation75_spill] sm:$0xff] %v16546_v58  ;;  %18888 = vst [vmem:[#allocation76_spill] sm:$0xff] %v16548_v46 }
 0xd26   : > { %v6552_v44 = vpop.trf.xlu0  ;;  %v6249_v28 = vpop.trf.xlu1  ;;  %v6904_v3 = vrot.slane %v6896_v39, %v15797_v62 }
 0xd2a   : > { %v16550_v6 = vpop.trf.xlu0  ;;  %v16552_v8 = vpop.trf.xlu1 }
 0xd2b   : > { %18889 = vst [vmem:[#allocation77_spill] sm:$0xff] %v16550_v6 }
 0xd2e   : > { %v6584_v42 = vpop.trf.xlu0  ;;  %v6281_v45 = vpop.trf.xlu1 }
 0xd2f   : > { %v7065_v23 = vcombine.high %v16498_v52, %v6584_v42 }
 0xd31   : > { %v7079_v34 = vrot.slane %v7065_v23, %v15797_v62  ;;  %v6928_v23 = vcombine.low %v16436_v33, %v16472_v11 }
 0xd32   : > { %v16555_v43 = vpop.trf.xlu0  ;;  %v16557_v16 = vpop.trf.xlu1 }
 0xd33   : > { %18890 = vst [vmem:[#allocation78_spill] sm:$0xff] %v16555_v43 }
 0xd36   : > { %v6616_v13 = vpop.trf.xlu0  ;;  %v6313_v1 = vpop.trf.xlu1 }
 0xd37   : > { %v7081_v27 = vcombine.high %v6552_v44, %v6616_v13  ;;  %v7200_v47 = vcombine.low %v6249_v28, %v6313_v1  ;;  %v7201_v31 = vcombine.high %v6249_v28, %v6313_v1  ;;  %v7080_v41 = vcombine.low %v6552_v44, %v6616_v13 }
 0xd38   : > { %v7064_v44 = vcombine.low %v16498_v52, %v6584_v42 }
 0xd39   : > { %v7095_v60 = vrot.slane %v7081_v27, %v15797_v62  ;;  %v6944_v27 = vcombine.low %v16460_v48, %v16476_v29  ;;  %v16583_v2 = vrot.slane %v7201_v31, %v15797_v62  ;;  %v16624_v52 = vrot.slane %v7080_v41, %v15797_v62 }
 0xd3a   : > { %v16561_v12 = vpop.trf.xlu0  ;;  %v16563_v46 = vpop.trf.xlu1  ;;  %v18895_v41 = vcombine.high %v16452_v61, %v16458_v37 }
 0xd3b   : > { %18891 = vst [vmem:[#allocation79_spill] sm:$0xff] %v16561_v12  ;;  %v7144_v58 = vcombine.low %v7079_v34, %v7095_v60  ;;  %v7145_v59 = vcombine.high %v7079_v34, %v7095_v60  ;;  %v16577_v34 = vrot.slane %v6897_v7, %v15797_v62  ;;  %v16580_v60 = vrot.slane %v7200_v47, %v15797_v62 }
 0xd3c   : > { %v6640_v7 = vcombine.low %v16392_v24, %v16420_v30  ;;  %v6641_v47 = vcombine.high %v16392_v24, %v16420_v30  ;;  %v7321_v12 = vcombine.high %v16474_v56, %v16484_v25 }
 0xd3d   : > { %18892 = vst [vmem:[#allocation80_spill] sm:$0xff] %v16577_v34  ;;  %v7152_v13 = vrot.slane %v7144_v58, %v15800_v5  ;;  %v7159_v58 = vrot.slane %v7145_v59, %v15800_v5  ;;  %v6929_v59 = vcombine.high %v16436_v33, %v16472_v11 }
 0xd3e   : > { %v16569_v36 = vpop.trf.xlu0  ;;  %v6345_v10 = vpop.trf.xlu1  ;;  %v6648_v24 = vrot.slane %v6640_v7, %v15797_v62 }
 0xd3f   : > { %v7216_v1 = vcombine.low %v6281_v45, %v6345_v10  ;;  %v7217_v28 = vcombine.high %v6281_v45, %v6345_v10  ;;  %v6913_v10 = vcombine.high %v16382_v63, %v16394_v49  ;;  %v6624_v45 = vcombine.low %v16386_v32, %v16408_v35 }
 0xd40   : > { %v16604_v63 = vrot.slane %v6928_v23, %v15797_v62  ;;  %v16607_v49 = vrot.slane %v6944_v27, %v15797_v62  ;;  %v6625_v27 = vcombine.high %v16386_v32, %v16408_v35  ;;  %v6945_v32 = vcombine.high %v16460_v48, %v16476_v29 }
 0xd41   : > { %v16598_v31 = vrot.slane %v7216_v1, %v15797_v62  ;;  %v16601_v20 = vrot.slane %v7217_v28, %v15797_v62  ;;  %v6920_v28 = vrot.slane %v6912_v22, %v15797_v62  ;;  %v16621_v23 = vrot.slane %v6913_v10, %v15797_v62 }
 0xd42   : > { %v16591_v39 = vpop.trf.xlu0  ;;  %v6632_v30 = vrot.slane %v6624_v45, %v15797_v62  ;;  %v18894_v22 = vcombine.low %v16452_v61, %v16458_v37  ;;  %v7127_v1 = vrot.slane %v18895_v41, %v15800_v5  ;;  %v16646_v35 = vrot.slane %v7064_v44, %v15797_v62 }
 0xd43   : > { %v7264_v19 = vcombine.low %v16580_v60, %v16598_v31  ;;  %18893 = vst [vmem:[#allocation81_spill] sm:$0xff] %v16621_v23  ;;  %v16649_v45 = vrot.slane %v6641_v47, %v15797_v62  ;;  %v6992_v7 = vcombine.low %v16604_v63, %v16607_v49  ;;  %v6960_v61 = vcombine.low %v6904_v3, %v6920_v28 }
 0xd44   : > { %v7120_v10 = vrot.slane %v18894_v22, %v15800_v5  ;;  %v6961_v37 = vcombine.high %v6904_v3, %v6920_v28  ;;  %v7128_v33 = vcombine.low %v16646_v35, %v16624_v52  ;;  %v16661_v48 = vcombine.low %v7127_v1, %v7159_v58 }
 0xd45   : > { %18896 = vst [vmem:[#allocation82_spill] sm:$0xff] %v16649_v45  ;;  %v6976_v29 = vcombine.low %v16577_v34, %v16621_v23  ;;  %v16666_v47 = vrot.slane %v6625_v27, %v15797_v62  ;;  %v6688_v44 = vcombine.low %v6632_v30, %v6648_v24  ;;  %v6689_v41 = vcombine.high %v6632_v30, %v6648_v24  ;;  %v5278_v34 = vpop.permute.xlu1 %5277 }
 0xd46   : > { %v16627_v42 = vpop.trf.xlu0  ;;  %v16653_v22 = vcombine.low %v7120_v10, %v7152_v13  ;;  %v16655_v43 = vcombine.high %v7120_v10, %v7152_v13  ;;  %18899 = vst [vmem:[#allocation85_spill] sm:$0xff] %v16661_v48  ;;  %v16669_v13 = vrot.slane %v6929_v59, %v15797_v62  ;;  %v16672_v3 = vrot.slane %v6945_v32, %v15797_v62 }
 0xd47   : > { %18900 = vst [vmem:[#allocation86_spill] sm:$0xff] %v16666_v47  ;;  %v6704_v28 = vcombine.low %v16666_v47, %v16649_v45  ;;  %v7000_v10 = vrot.slane %v6992_v7, %v15800_v5  ;;  %v16677_v54 = vcombine.high %v7127_v1, %v7159_v58  ;;  %v6968_v40 = vrot.slane %v6960_v61, %v15800_v5 }
 0xd48   : > { %18897 = vst [vmem:[#allocation83_spill] sm:$0xff] %v16653_v22  ;;  %18898 = vst [vmem:[#allocation84_spill] sm:$0xff] %v16655_v43  ;;  %v6656_v27 = vcombine.low %v16512_v18, %v16557_v16  ;;  %v16683_v24 = vrot.slane %v7128_v33, %v15800_v5  ;;  %v6672_v30 = vcombine.low %v16552_v8, %v16563_v46 }
 0xd49   : > { %18901 = vst [vmem:[#allocation87_spill] sm:$0xff] %v16669_v13  ;;  %18902 = vst [vmem:[#allocation88_spill] sm:$0xff] %v16672_v3  ;;  %v16690_v32 = vrot.slane %v6688_v44, %v15800_v5  ;;  %v16693_v7 = vrot.slane %v6689_v41, %v15800_v5  ;;  %v6975_v1 = vrot.slane %v6961_v37, %v15800_v5 }
 0xd4a   : > { %v16659_v11 = vpop.trf.xlu0  ;;  %18903 = vst [vmem:[#allocation89_spill] sm:$0xff] %v16677_v54  ;;  %v16697_v58 = vrot.slane %v6976_v29, %v15800_v5  ;;  %v18905_v61 = vcombine.low %v16449_v4, %v16455_v50  ;;  %v6993_v6 = vcombine.high %v16604_v63, %v16607_v49  ;;  %v7008_v44 = vcombine.low %v16669_v13, %v16672_v3 }
 0xd4b   : > { %v7320_v41 = vcombine.low %v16474_v56, %v16484_v25  ;;  %v18906_v37 = vcombine.low %v16425_v21, %v16431_v15  ;;  %v16715_v54 = vcombine.low %v6968_v40, %v7000_v10  ;;  %v16721_v63 = vrot.slane %v6656_v27, %v15797_v62 }
 0xd4c   : > { %18904 = vst [vmem:[#allocation90_spill] sm:$0xff] %v16697_v58  ;;  %v7104_v33 = vrot.slane %v18905_v61, %v15800_v5  ;;  %v16718_v61 = vrot.slane %v6704_v28, %v15800_v5  ;;  %v16724_v49 = vrot.slane %v6672_v30, %v15797_v62  ;;  %v7272_v48 = vrot.slane %v7264_v19, %v15800_v5 }
 0xd4d   : > { %v7240_v29 = vrot.slane %v18906_v37, %v15800_v5  ;;  %v18907_v25 = vcombine.high %v16425_v21, %v16431_v15  ;;  %v18908_v28 = vcombine.low %v16428_v14, %v16434_v17  ;;  %v7304_v30 = vcombine.low %v16500_v51, %v16478_v38 }
 0xd4e   : > { %v16687_v59 = vpop.trf.xlu0  ;;  %v16730_v37 = vcombine.low %v7104_v33, %v16683_v24  ;;  %v7305_v19 = vcombine.high %v16500_v51, %v16478_v38  ;;  %v18909_v23 = vcombine.high %v16449_v4, %v16455_v50  ;;  %v16753_v21 = vrot.slane %v7320_v41, %v15797_v62 }
 0xd4f   : > { %v7247_v56 = vrot.slane %v18907_v25, %v15800_v5  ;;  %v16740_v27 = vrot.slane %v18908_v28, %v15800_v5  ;;  %v7007_v15 = vrot.slane %v6993_v6, %v15800_v5  ;;  %v16757_v25 = vrot.slane %v7008_v44, %v15800_v5 }
 0xd50   : > { %v16750_v13 = vrot.slane %v18909_v23, %v15800_v5  ;;  %v16760_v28 = vrot.slane %v7321_v12, %v15797_v62  ;;  %v6792_v38 = vcombine.low %v16569_v36, %v16687_v59  ;;  %v16764_v51 = vcombine.high %v6968_v40, %v7000_v10 }
 0xd51   : > { %18910 = vst [vmem:[#allocation91_spill] sm:$0xff] %v16757_v25  ;;  %v7844_v4 = vshrl.u32 %v16715_v54, 16  ;;  %v6720_v50 = vcombine.low %v16721_v63, %v16724_v49  ;;  %v18912_v6 = vcombine.high %v16580_v60, %v16598_v31  ;;  %v7845_v12 = vshrl.u32 %v16730_v37, 16 }
 0xd52   : > { %v16727_v43 = vpop.trf.xlu0  ;;  %18911 = vst [vmem:[#allocation92_spill] sm:$0xff] %v16764_v51  ;;  %v16776_v41 = vcombine.low %v7240_v29, %v7272_v48  ;;  %v16779_v3 = vrot.slane %v7304_v30, %v15797_v62  ;;  %v16782_v40 = vrot.slane %v7305_v19, %v15797_v62  ;;  %v16786_v47 = vcombine.high %v7240_v29, %v7272_v48  ;;  %v5284_v29 = vpop.permute.xlu1 %5283 }
 0xd53   : > { %v7279_v23 = vrot.slane %v18912_v6, %v15800_v5  ;;  %v18913_v60 = vcombine.low %v16493_v0, %v16487_v55  ;;  %v18914_v6 = vcombine.high %v16493_v0, %v16487_v55  ;;  %v16798_v30 = vcombine.low %v6975_v1, %v7007_v15 }
 0xd54   : > { %v16800_v19 = vpack.i.b16 %v7845_v12, %v7844_v4  ;;  %v6657_v22 = vcombine.high %v16512_v18, %v16557_v16  ;;  %v7129_v48 = vcombine.high %v16646_v35, %v16624_v52  ;;  %v6800_v58 = vrot.slane %v6792_v38, %v15797_v62 }
 0xd55   : > { %v6832_v31 = vrot.slane %v18913_v60, %v15800_v5  ;;  %v16796_v45 = vrot.slane %v18914_v6, %v15800_v5  ;;  %v6728_v25 = vrot.slane %v6720_v50, %v15800_v5  ;;  %v16811_v0 = vcombine.high %v6975_v1, %v7007_v15 }
 0xd56   : > { %v16773_v44 = vpop.trf.xlu0  ;;  %18915 = vst [vmem:[#allocation93_spill] sm:$0xff] %v16800_v19  ;;  %v18916_v4 = vcombine.low %v16496_v26, %v16490_v9  ;;  %v16819_v18 = vcombine.low %v7247_v56, %v7279_v23  ;;  %v6673_v1 = vcombine.high %v16552_v8, %v16563_v46  ;;  %v5302_v15 = vcombine.low %v5278_v34, %v5284_v29 }
 0xd57   : > { %v6808_v10 = vcombine.low %v16627_v42, %v16773_v44  ;;  %v5303_v50 = vcombine.high %v5278_v34, %v5284_v29  ;;  %v16830_v6 = vrot.slane %v6657_v22, %v15797_v62  ;;  %v16837_v52 = vcombine.high %v7104_v33, %v16683_v24 }
 0xd58   : > { %v16817_v12 = vrot.slane %v18916_v4, %v15800_v5  ;;  %v16833_v4 = vrot.slane %v7129_v48, %v15800_v5  ;;  %v6721_v35 = vcombine.high %v16721_v63, %v16724_v49  ;;  %v16842_v46 = vcombine.high %v16690_v32, %v6728_v25 }
 0xd59   : > { %v6816_v60 = vrot.slane %v6808_v10, %v15797_v62  ;;  %18917 = vst [vmem:[#allocation94_spill] sm:$0xff] %v16837_v52  ;;  %v16845_v8 = vcombine.low %v16690_v32, %v6728_v25  ;;  %v16847_v34 = vcombine.high %v7247_v56, %v7279_v23  ;;  %v16856_v33 = vrot.slane %v6673_v1, %v15797_v62 }
 0xd5a   : > { %v16809_v55 = vpop.trf.xlu0  ;;  %v5310_v63 = vrot.slane %v5302_v15, %v15797_v62  ;;  %v5317_v49 = vrot.slane %v5303_v50, %v15797_v62  ;;  %v7842_v29 = vpack.i.b16 %v16730_v37, %v16715_v54  ;;  %v7336_v50 = vcombine.low %v16591_v39, %v16727_v43 }
 0xd5b   : > { %v6856_v38 = vcombine.low %v6800_v58, %v6816_v60  ;;  %v6857_v10 = vcombine.high %v6800_v58, %v6816_v60  ;;  %18918 = vst [vmem:[#allocation95_spill] sm:$0xff] %v16847_v34  ;;  %v6735_v60 = vrot.slane %v6721_v35, %v15800_v5  ;;  %v16883_v54 = vcombine.low %v16750_v13, %v16833_v4 }
 0xd5d   : > { %v6864_v16 = vrot.slane %v6856_v38, %v15800_v5  ;;  %v6871_v32 = vrot.slane %v6857_v10, %v15800_v5  ;;  %v6809_v10 = vcombine.high %v16627_v42, %v16773_v44  ;;  %v7353_v42 = vcombine.high %v16659_v11, %v16809_v55 }
 0xd5e   : > { %v5281_v19 = vpop.permute.xlu0 %5280 }
 0xd5f   : > { %v5286_v22 = vcombine.low %v16351_v57, %v5281_v19  ;;  %v5287_v58 = vcombine.high %v16351_v57, %v5281_v19  ;;  %v16851_v48 = vcombine.high %v6832_v31, %v6864_v16  ;;  %v16853_v24 = vcombine.low %v6832_v31, %v6864_v16 }
 0xd60   : > { %v7352_v31 = vcombine.low %v16659_v11, %v16809_v55  ;;  %v7850_v19 = vpack.i.b16 %v16837_v52, %v16764_v51 }
 0xd61   : > { %v5294_v56 = vrot.slane %v5286_v22, %v15797_v62  ;;  %v5301_v25 = vrot.slane %v5287_v58, %v15797_v62  ;;  %v7722_v57 = vpack.i.b16 %v16851_v48, %v16842_v46  ;;  %v7714_v23 = vpack.i.b16 %v16853_v24, %v16845_v8 }
 0xd62   : > { %v16879_v22 = vcombine.low %v16796_v45, %v6871_v32  ;;  %v7360_v44 = vrot.slane %v7352_v31, %v15797_v62  ;;  %v16905_v31 = vrot.slane %v6809_v10, %v15797_v62 }
 0xd63   : > { %v5318_v16 = vcombine.low %v5294_v56, %v5310_v63  ;;  %v5319_v38 = vcombine.high %v5294_v56, %v5310_v63  ;;  %v5334_v1 = vcombine.low %v5301_v25, %v5317_v49  ;;  %v5335_v15 = vcombine.high %v5301_v25, %v5317_v49  ;;  %8000 = vxpose.xlu0.c.b16.start [1/2] (short) (narrow) %v7722_v57, 16 }
 0xd64   : > { %7968 = vxpose.xlu1.c.b16.start [1/2] (short) (narrow) %v7714_v23, 16  ;;  %v6793_v49 = vcombine.high %v16569_v36, %v16687_v59  ;;  %v16895_v56 = vcombine.low %v16693_v7, %v6735_v60  ;;  %v18919_v25 = vmov 0.0   ;;  %v7337_v36 = vcombine.high %v16591_v39, %v16727_v43 }
 0xd65   : > { %v5326_v37 = vrot.slane %v5318_v16, %v15800_v5  ;;  %v5333_v35 = vrot.slane %v5319_v38, %v15800_v5  ;;  %v5342_v58 = vrot.slane %v5334_v1, %v15800_v5  ;;  %v5349_v63 = vrot.slane %v5335_v15, %v15800_v5 }
 0xd66   : > { %v7344_v59 = vrot.slane %v7336_v50, %v15797_v62  ;;  %v7730_v51 = vpack.i.b16 %v16879_v22, %v16895_v56  ;;  %v16910_v52 = vrot.slane %v6793_v49, %v15797_v62  ;;  %v16919_v39 = vrot.slane %v7353_v42, %v15797_v62 }
 0xd67   : > { %v5350_v57 = vcombine.high %v5326_v37, %v18919_v25  ;;  %v5351_v23 = vcombine.high %v5333_v35, %v18919_v25  ;;  %v5352_v16 = vcombine.high %v5342_v58, %v18919_v25  ;;  %v5353_v38 = vcombine.high %v5349_v63, %v18919_v25  ;;  %8001 = vxpose.xlu0.c.b16.end [2/2] (short) (narrow) %v7850_v19, 16 }
 0xd68   : > { %v13258_v11 = vpack.c.bf16 %v5342_v58, %v5326_v37  ;;  %v13259_v55 = vpack.c.bf16 %v5349_v63, %v5333_v35  ;;  %7969 = vxpose.xlu1.c.b16.end [2/2] (short) (narrow) %v7842_v29, 16  ;;  %v7400_v19 = vcombine.low %v7344_v59, %v7360_v44  ;;  %v7401_v29 = vcombine.high %v7344_v59, %v7360_v44 }
 0xd69   : > { %v13260_v1 = vpack.c.bf16 %v5352_v16, %v5350_v57  ;;  %v13261_v15 = vpack.c.bf16 %v5353_v38, %v5351_v23  ;;  %v6736_v37 = vcombine.low %v16830_v6, %v16856_v33  ;;  %v7858_v58 = vpack.i.b16 %v16883_v54, %v16798_v30 }
 0xd6a   : > { %v16913_v25 = vrot.slane %v13258_v11, %v15797_v62  ;;  %v16916_v43 = vrot.slane %v13259_v55, %v15797_v62  ;;  %v16937_v63 = vcombine.high %v16750_v13, %v16833_v4  ;;  %v7351_v49 = vrot.slane %v7337_v36, %v15797_v62 }
 0xd6b   : > { %v16922_v50 = vrot.slane %v13260_v1, %v15797_v62  ;;  %v16925_v10 = vrot.slane %v13261_v15, %v15797_v62  ;;  %8032 = vxpose.xlu0.c.b16.start [1/2] (short) (narrow) %v7730_v51, 16  ;;  %v6872_v51 = vcombine.low %v16910_v52, %v16905_v31  ;;  %v16945_v44 = vcombine.high %v16796_v45, %v6871_v32 }
 0xd6c   : > { %5712 = vrot.lane.b32.xlu1 %v16364_v53, %s15019_s6  ;;  %v18920_v57 = vcombine.low %v16779_v3, %v16753_v21  ;;  %v18921_v13 = vcombine.high %v16779_v3, %v16753_v21  ;;  %v7385_v16 = vcombine.high %v16782_v40, %v16760_v28  ;;  %v7408_v38 = vrot.slane %v7400_v19, %v15800_v5 }
 0xd6d   : > { %v18922_v45 = vcombine.low %v16782_v40, %v16760_v28  ;;  %v7415_v36 = vrot.slane %v7401_v29, %v15800_v5  ;;  %v7416_v59 = vcombine.low %v7351_v49, %v16919_v39  ;;  %v16965_v11 = vcombine.high %v16693_v7, %v6735_v60 }
 0xd6e   : > { %v7376_v23 = vrot.slane %v18920_v57, %v15800_v5  ;;  %v7383_v4 = vrot.slane %v18921_v13, %v15800_v5  ;;  %v18923_v3 = vcombine.low %v16583_v2, %v16601_v20  ;;  %v7866_v55 = vpack.i.b16 %v16937_v63, %v16811_v0 }
 0xd6f   : > { %v7392_v32 = vrot.slane %v18922_v45, %v15800_v5  ;;  %8033 = vxpose.xlu0.c.b16.end [2/2] (short) (narrow) %v7858_v58, 16  ;;  %v6744_v1 = vrot.slane %v6736_v37, %v15800_v5  ;;  %v7716_v28 = vshrl.u32 %v16845_v8, 16  ;;  %v6880_v40 = vrot.slane %v6872_v51, %v15800_v5 }
 0xd70   : > { %v7288_v21 = vrot.slane %v18923_v3, %v15800_v5  ;;  %v7738_v15 = vpack.i.b16 %v16945_v44, %v16965_v11  ;;  %v7717_v7 = vshrl.u32 %v16853_v24, 16  ;;  %v7780_v60 = vshrl.u32 %v16776_v41, 16 }
 0xd71   : > { %v16980_v19 = vcombine.low %v7376_v23, %v7408_v38  ;;  %v16982_v29 = vcombine.high %v7376_v23, %v7408_v38  ;;  %v7788_v58 = vshrl.u32 %v16786_v47, 16  ;;  %v7796_v57 = vshrl.u32 %v16819_v18, 16 }
 0xd72   : > { %v7424_v37 = vrot.slane %v7416_v59, %v15800_v5  ;;  %v16987_v8 = vpack.i.b16 %v7717_v7, %v7716_v28  ;;  %v16989_v51 = vcombine.low %v7383_v4, %v7415_v36  ;;  %v16991_v13 = vcombine.high %v7383_v4, %v7415_v36 }
 0xd73   : > { %8064 = vxpose.xlu0.c.b16.start [1/2] (short) (narrow) %v7738_v15, 16  ;;  %v7781_v24 = vshrl.u32 %v16980_v19, 16  ;;  %v7789_v23 = vshrl.u32 %v16982_v29, 16  ;;  %v7417_v3 = vcombine.high %v7351_v49, %v16919_v39  ;;  %v17001_v59 = vcombine.low %v16817_v12, %v6880_v40 }
 0xd74   : > { %v7797_v28 = vshrl.u32 %v16989_v51, 16  ;;  %v7804_v7 = vshrl.u32 %v16847_v34, 16  ;;  %v7805_v45 = vshrl.u32 %v16991_v13, 16  ;;  %v17013_v38 = vcombine.low %v16718_v61, %v6744_v1 }
 0xd75   : > { %v17006_v36 = vpack.i.b16 %v7781_v24, %v7780_v60  ;;  %v17008_v15 = vpack.i.b16 %v7789_v23, %v7788_v58  ;;  %v17020_v42 = vcombine.low %v16740_v27, %v7288_v21  ;;  %v18925_v60 = vcombine.high %v16583_v2, %v16601_v20  ;;  %v18928_v20 = vld [vmem:[#allocation91_spill] sm:$0xff]  ;;  %v18929_v2 = vld [vmem:[#allocation90_spill] sm:$0xff] }
 0xd76   : > { %v17015_v39 = vpack.i.b16 %v7797_v28, %v7796_v57  ;;  %v17026_v24 = vpack.i.b16 %v7805_v45, %v7804_v7  ;;  %v17028_v23 = vcombine.low %v7392_v32, %v7424_v37  ;;  %v18927_v57 = vcombine.high %v16428_v14, %v16434_v17 }
 0xd77   : > { %8065 = vxpose.xlu0.c.b16.end [2/2] (short) (narrow) %v7866_v55, 16  ;;  %18924 = vst [vmem:[#allocation96_spill] sm:$0xff] %v17020_v42  ;;  %v7295_v58 = vrot.slane %v18925_v60, %v15800_v5  ;;  %v17031_v55 = vcombine.high %v16740_v27, %v7288_v21  ;;  %v7431_v49 = vrot.slane %v7417_v3, %v15800_v5  ;;  %v7812_v7 = vshrl.u32 %v17020_v42, 16 }
 0xd78   : > { %18926 = vst [vmem:[#allocation97_spill] sm:$0xff] %v17028_v23  ;;  %v7263_v28 = vrot.slane %v18927_v57, %v15800_v5  ;;  %v7746_v4 = vpack.i.b16 %v17001_v59, %v17013_v38  ;;  %v17040_v35 = vcombine.high %v7392_v32, %v7424_v37  ;;  %v17044_v45 = vcombine.low %v18929_v2, %v18928_v20  ;;  %v18930_v32 = vld [vmem:[#allocation83_spill] sm:$0xff] }
 0xd79   : > { %v7813_v27 = vshrl.u32 %v17028_v23, 16  ;;  %v7399_v14 = vrot.slane %v7385_v16, %v15800_v5  ;;  %v7820_v17 = vshrl.u32 %v17031_v55, 16  ;;  %v6873_v21 = vcombine.high %v16910_v52, %v16905_v31 }
 0xd7a   : > { %v7821_v3 = vshrl.u32 %v17040_v35, 16  ;;  %v7874_v37 = vpack.i.b16 %v18930_v32, %v17044_v45  ;;  %v17059_v34 = vcombine.low %v7263_v28, %v7295_v58  ;;  %v17064_v16 = vcombine.high %v16817_v12, %v6880_v40 }
 0xd7b   : > { %8096 = vxpose.xlu0.c.b16.start [1/2] (short) (narrow) %v7746_v4, 16  ;;  %v17055_v60 = vpack.i.b16 %v7813_v27, %v7812_v7  ;;  %v17068_v42 = vcombine.low %v7399_v14, %v7431_v49  ;;  %v6737_v23 = vcombine.high %v16830_v6, %v16856_v33  ;;  %v17073_v7 = vcombine.high %v16718_v61, %v6744_v1  ;;  %v18933_v61 = vld [vmem:[#allocation82_spill] sm:$0xff] }
 0xd7c   : > { %v17066_v4 = vpack.i.b16 %v7821_v3, %v7820_v17  ;;  %v17075_v27 = vcombine.high %v7263_v28, %v7295_v58  ;;  %v17077_v57 = vcombine.high %v7399_v14, %v7431_v49  ;;  %v18931_v52 = vcombine.low %v16913_v25, %v16916_v43  ;;  %v18934_v33 = vld [vmem:[#allocation86_spill] sm:$0xff]  ;;  %v18935_v17 = vld [vmem:[#allocation88_spill] sm:$0xff]  ;;  %v18936_v3 = vld [vmem:[#allocation87_spill] sm:$0xff] }
 0xd7d   : > { %v7828_v31 = vshrl.u32 %v17059_v34, 16  ;;  %v7829_v40 = vshrl.u32 %v17068_v42, 16  ;;  %v6705_v1 = vcombine.high %v18934_v33, %v18933_v61  ;;  %v6887_v28 = vrot.slane %v6873_v21, %v15800_v5 }
 0xd7e   : > { %v17083_v12 = vrot.slane %v18931_v52, %v15800_v5  ;;  %v7836_v49 = vshrl.u32 %v17075_v27, 16  ;;  %v7837_v58 = vshrl.u32 %v17077_v57, 16  ;;  %v7754_v25 = vpack.i.b16 %v17064_v16, %v17073_v7 }
 0xd7f   : > { %8097 = vxpose.xlu0.c.b16.end [2/2] (short) (narrow) %v7874_v37, 16  ;;  %v17096_v43 = vpack.i.b16 %v7829_v40, %v7828_v31  ;;  %v7009_v37 = vcombine.high %v18936_v3, %v18935_v17  ;;  %v18937_v61 = vcombine.low %v16922_v50, %v16925_v10  ;;  %v17112_v21 = vcombine.high %v18929_v2, %v18928_v20  ;;  %v18944_v2 = vld [vmem:[#allocation80_spill] sm:$0xff] }
 0xd80   : > { %18932 = vst [vmem:[#allocation91_spill] sm:$0xff] %v17083_v12  ;;  %v17102_v52 = vpack.i.b16 %v7837_v58, %v7836_v49  ;;  %v6751_v31 = vrot.slane %v6737_v23, %v15800_v5  ;;  %v18939_v40 = vcombine.high %v16496_v26, %v16490_v9  ;;  %v18940_v49 = vmov 0   ;;  %v18943_v23 = vld [vmem:[#allocation81_spill] sm:$0xff]  ;;  %v18945_v9 = vld [vmem:[#allocation84_spill] sm:$0xff] }
 0xd81   : > { %v17108_v33 = vrot.slane %v18937_v61, %v15800_v5  ;;  %v17121_v58 = vcombine.high %v17083_v12, %v18940_v49  ;;  %v6103_v10 = vshrl.u32 %v17083_v12, 16  ;;  %v6977_v3 = vcombine.high %v18944_v2, %v18943_v23 }
 0xd82   : > { %v6855_v17 = vrot.slane %v18939_v40, %v15800_v5  ;;  %v7882_v26 = vpack.i.b16 %v18945_v9, %v17112_v21  ;;  %v6719_v61 = vrot.slane %v6705_v1, %v15800_v5  ;;  %v7023_v23 = vrot.slane %v7009_v37, %v15800_v5 }
 0xd83   : > { %18938 = vst [vmem:[#allocation90_spill] sm:$0xff] %v17108_v33  ;;  %8128 = vxpose.xlu0.c.b16.start [1/2] (short) (narrow) %v7754_v25, 16  ;;  %18941 = vst [vmem:[#allocation83_spill] sm:$0xff] %v17121_v58  ;;  %v6104_v25 = vshrl.u32 %v17108_v33, 16  ;;  %v17129_v20 = vcombine.high %v17108_v33, %v18940_v49  ;;  %v6109_v6 = vshrl.u32 %v17121_v58, 16  ;;  %v7724_v50 = vshrl.u32 %v16842_v46, 16 }
 0xd84   : > { %v17136_v40 = vcombine.low %v6855_v17, %v6887_v28  ;;  %v17144_v12 = vcombine.low %v6719_v61, %v6751_v31  ;;  %v18949_v33 = vld [vmem:[#allocation94_spill] sm:$0xff] }
 0xd85   : > { %18942 = vst [vmem:[#allocation82_spill] sm:$0xff] %v17129_v20  ;;  %v17138_v14 = vpack.i.b16 %v6104_v25, %v6103_v10  ;;  %v6110_v49 = vshrl.u32 %v17129_v20, 16  ;;  %v7725_v10 = vshrl.u32 %v16851_v48, 16  ;;  %v6991_v25 = vrot.slane %v6977_v3, %v15800_v5 }
 0xd86   : > { %v7762_v1 = vpack.i.b16 %v17136_v40, %v17144_v12  ;;  %v7853_v37 = vshrl.u32 %v18949_v33, 16  ;;  %v17162_v48 = vcombine.high %v6719_v61, %v6751_v31  ;;  %v7860_v31 = vshrl.u32 %v16798_v30, 16 }
 0xd87   : > { %18946 = vst [vmem:[#allocation86_spill] sm:$0xff] %v17138_v14  ;;  %8129 = vxpose.xlu0.c.b16.end [2/2] (short) (narrow) %v7882_v26, 16  ;;  %v17147_v2 = vpack.i.b16 %v6110_v49, %v6109_v6  ;;  %v17154_v58 = vcombine.low %v6991_v25, %v7023_v23  ;;  %v7726_v20 = vpack.i.b16 %v7725_v10, %v7724_v50  ;;  %v18948_v26 = vld [vmem:[#allocation85_spill] sm:$0xff]  ;;  %v18950_v49 = vld [vmem:[#allocation92_spill] sm:$0xff]  ;;  %v7732_v50 = vshrl.u32 %v16895_v56, 16 }
 0xd88   : > { %v17159_v6 = vcombine.high %v6855_v17, %v6887_v28  ;;  %v7031_v10 = vcombine.high %v6991_v25, %v7023_v23  ;;  %v18951_v28 = vld [vmem:[#allocation89_spill] sm:$0xff]  ;;  %v7741_v61 = vshrl.u32 %v16945_v44, 16  ;;  %v7868_v56 = vshrl.u32 %v16811_v0, 16 }
 0xd89   : > { %18947 = vst [vmem:[#allocation88_spill] sm:$0xff] %v17147_v2  ;;  %v7890_v14 = vpack.i.b16 %v18948_v26, %v17154_v58  ;;  %v7852_v2 = vshrl.u32 %v18950_v49, 16  ;;  %v7749_v23 = vshrl.u32 %v17001_v59, 16  ;;  %v7748_v30 = vshrl.u32 %v17013_v38, 16 }
 0xd8a   : > { %v7770_v46 = vpack.i.b16 %v17159_v6, %v17162_v48  ;;  %v7898_v17 = vpack.i.b16 %v18951_v28, %v7031_v10  ;;  %v7757_v0 = vshrl.u32 %v17064_v16, 16  ;;  %v7756_v49 = vshrl.u32 %v17073_v7, 16  ;;  %v18957_v16 = vld [vmem:[#allocation68_spill] sm:$0xff] }
 0xd8b   : > { %8160 = vxpose.xlu0.c.b16.start [1/2] (short) (narrow) %v7762_v1, 16  ;;  %v7854_v3 = vpack.i.b16 %v7853_v37, %v7852_v2  ;;  %v7733_v1 = vshrl.u32 %v16879_v22, 16  ;;  %v7740_v22 = vshrl.u32 %v16965_v11, 16  ;;  %v7869_v37 = vshrl.u32 %v16937_v63, 16 }
 0xd8c   : > { %v7750_v44 = vpack.i.b16 %v7749_v23, %v7748_v30  ;;  %v7877_v11 = vshrl.u32 %v18930_v32, 16  ;;  %v7876_v63 = vshrl.u32 %v17044_v45, 16  ;;  %v7885_v59 = vshrl.u32 %v18945_v9, 16  ;;  %v18955_v45 = vld [vmem:[#allocation65_spill] sm:$0xff]  ;;  %v18959_v9 = vld [vmem:[#allocation64_spill] sm:$0xff] }
 0xd8d   : > { %v7734_v33 = vpack.i.b16 %v7733_v1, %v7732_v50  ;;  %v7742_v2 = vpack.i.b16 %v7741_v61, %v7740_v22  ;;  %v7884_v38 = vshrl.u32 %v17112_v21, 16  ;;  %v18953_v1 = vld [vmem:[#allocation77_spill] sm:$0xff]  ;;  %v7765_v32 = vshrl.u32 %v17136_v40, 16  ;;  %v18958_v61 = vld [vmem:[#allocation66_spill] sm:$0xff] }
 0xd8e   : > { %v7878_v25 = vpack.i.b16 %v7877_v11, %v7876_v63  ;;  %v7764_v7 = vshrl.u32 %v17144_v12, 16  ;;  %v7576_v22 = vcombine.low %v18959_v9, %v18958_v61  ;;  %v7773_v12 = vshrl.u32 %v17159_v6, 16 }
 0xd8f   : > { %8016 = vxpose.xlu1.c.b16.start [1/2] (short) (narrow) %v7726_v20, 16  ;;  %8161 = vxpose.xlu0.c.b16.end [2/2] (short) (narrow) %v7890_v14, 16  ;;  %v7861_v14 = vshrl.u32 %v16883_v54, 16  ;;  %v7870_v54 = vpack.i.b16 %v7869_v37, %v7868_v56  ;;  %v7893_v37 = vshrl.u32 %v18948_v26, 16  ;;  %v7772_v63 = vshrl.u32 %v17162_v48, 16  ;;  %v18961_v48 = vld [vmem:[#allocation69_spill] sm:$0xff] }
 0xd90   : > { %v7584_v23 = vrot.slane %v7576_v22, %v15797_v62 }
 0xd91   : > { %v7862_v20 = vpack.i.b16 %v7861_v14, %v7860_v31  ;;  %v18956_v31 = vld [vmem:[#allocation78_spill] sm:$0xff]  ;;  %v7774_v26 = vpack.i.b16 %v7773_v12, %v7772_v63 }
 0xd93   : > { %8017 = vxpose.xlu1.c.b16.end [2/2] (short) (narrow) %v7854_v3, 16  ;;  %8192 = vxpose.xlu0.c.b16.start [1/2] (short) (narrow) %v7770_v46, 16  ;;  %v7758_v3 = vpack.i.b16 %v7757_v0, %v7756_v49  ;;  %v18952_v46 = vld [vmem:[#allocation79_spill] sm:$0xff]  ;;  %v7901_v0 = vshrl.u32 %v18951_v28, 16 }
 0xd94   : > { %v7624_v50 = vcombine.low %v18953_v1, %v18952_v46 }
 0xd96   : > { %v7632_v21 = vrot.slane %v7624_v50, %v15797_v62  ;;  %v18960_v50 = vld [vmem:[#allocation93_spill] sm:$0xff] }
 0xd97   : > { %8048 = vxpose.xlu1.c.b16.start [1/2] (short) (narrow) %v7734_v33, 16  ;;  %8193 = vxpose.xlu0.c.b16.end [2/2] (short) (narrow) %v7898_v17, 16  ;;  %v7886_v33 = vpack.i.b16 %v7885_v59, %v7884_v38  ;;  %v18954_v17 = vld [vmem:[#allocation67_spill] sm:$0xff]  ;;  %v17209_v38 = vpop.permute.xlu0 %5710 }
 0xd98   : > { %v7592_v14 = vcombine.low %v18955_v45, %v18954_v17 }
 0xd9a   : > { %v7600_v56 = vrot.slane %v7592_v14, %v15797_v62 }
 0xd9b   : > { %8049 = vxpose.xlu1.c.b16.end [2/2] (short) (narrow) %v7862_v20, 16  ;;  %v7608_v20 = vcombine.low %v18957_v16, %v18956_v31 }
 0xd9c   : > { %v7640_v11 = vcombine.low %v7584_v23, %v7600_v56 }
 0xd9d   : > { %v7616_v40 = vrot.slane %v7608_v20, %v15797_v62  ;;  %v7641_v20 = vcombine.high %v7584_v23, %v7600_v56  ;;  %v7593_v23 = vcombine.high %v18955_v45, %v18954_v17  ;;  %v18965_v17 = vld [vmem:[#allocation71_spill] sm:$0xff] }
 0xd9e   : > { %v7648_v49 = vrot.slane %v7640_v11, %v15800_v5  ;;  %v7924_v45 = vshrl.u32 %v18965_v17, 16 }
 0xd9f   : > { %8080 = vxpose.xlu1.c.b16.start [1/2] (short) (narrow) %v7742_v2, 16  ;;  %v7766_v2 = vpack.i.b16 %v7765_v32, %v7764_v7  ;;  %v7672_v30 = vcombine.low %v7616_v40, %v7632_v21  ;;  %v7673_v32 = vcombine.high %v7616_v40, %v7632_v21  ;;  %v17217_v7 = vpop.permute.xlu0 %5716  ;;  %v18963_v21 = vld [vmem:[#allocation70_spill] sm:$0xff] }
 0xda0   : > { %5724 = vrot.lane.b32.xlu0 %v16364_v53, %s15020_s12 }
 0xda1   : > { %v7687_v22 = vrot.slane %v7673_v32, %v15800_v5 }
 0xda3   : > { %8081 = vxpose.xlu1.c.b16.end [2/2] (short) (narrow) %v7870_v54, 16  ;;  %v7892_v54 = vshrl.u32 %v17154_v58, 16 }
 0xda4   : > { %5736 = vrot.lane.b32.xlu0 %v16364_v53, %s15018_s9 }
 0xda7   : > { %8112 = vxpose.xlu1.c.b16.start [1/2] (short) (narrow) %v7750_v44, 16  ;;  %v7894_v44 = vpack.i.b16 %v7893_v37, %v7892_v54  ;;  %v7916_v37 = vshrl.u32 %v18963_v21, 16  ;;  %v18964_v54 = vpack.i.b16 %v16982_v29, %v16786_v47  ;;  %v7607_v47 = vrot.slane %v7593_v23, %v15797_v62 }
 0xdab   : > { %8113 = vxpose.xlu1.c.b16.end [2/2] (short) (narrow) %v7878_v25, 16  ;;  %v7680_v25 = vrot.slane %v7672_v30, %v15800_v5  ;;  %v7609_v30 = vcombine.high %v18957_v16, %v18956_v31 }
 0xdad   : > { %v7704_v59 = vcombine.low %v7648_v49, %v7680_v25  ;;  %v7705_v14 = vcombine.high %v7648_v49, %v7680_v25  ;;  %v7623_v29 = vrot.slane %v7609_v30, %v15797_v62  ;;  %v17251_v49 = vpop.permute.xlu1 %5714  ;;  %v18974_v30 = vld [vmem:[#allocation74_spill] sm:$0xff] }
 0xdaf   : > { %8144 = vxpose.xlu1.c.b16.start [1/2] (short) (narrow) %v7758_v3, 16  ;;  %v7900_v3 = vshrl.u32 %v7031_v10, 16  ;;  %v7909_v6 = vshrl.u32 %v7704_v59, 16  ;;  %v18962_v10 = vpack.i.b16 %v16980_v19, %v16776_v41  ;;  %v7625_v41 = vcombine.high %v18953_v1, %v18952_v46  ;;  %v17226_v19 = vpop.permute.xlu0 %5728 }
 0xdb0   : > { %v7577_v46 = vcombine.high %v18959_v9, %v18958_v61  ;;  %v18966_v61 = vpack.i.b16 %v16989_v51, %v16819_v18 }
 0xdb1   : > { %v7902_v58 = vpack.i.b16 %v7901_v0, %v7900_v3  ;;  %v7639_v1 = vrot.slane %v7625_v41, %v15797_v62 }
 0xdb2   : > { %v7591_v31 = vrot.slane %v7577_v46, %v15797_v62 }
 0xdb3   : > { %8145 = vxpose.xlu1.c.b16.end [2/2] (short) (narrow) %v7886_v33, 16  ;;  %v7908_v33 = vshrl.u32 %v18961_v48, 16  ;;  %v7688_v16 = vcombine.low %v7623_v29, %v7639_v1 }
 0xdb4   : > { %v7656_v9 = vcombine.low %v7591_v31, %v7607_v47 }
 0xdb5   : > { %v7910_v28 = vpack.i.b16 %v7909_v6, %v7908_v33  ;;  %v7696_v0 = vrot.slane %v7688_v16, %v15800_v5  ;;  %v17259_v33 = vpop.permute.xlu1 %5726 }
 0xdb6   : > { %v7664_v3 = vrot.slane %v7656_v9, %v15800_v5 }
 0xdb7   : > { %8176 = vxpose.xlu1.c.b16.start [1/2] (short) (narrow) %v7766_v2, 16  ;;  %v7917_v2 = vshrl.u32 %v7705_v14, 16 }
 0xdb8   : > { %v7708_v18 = vcombine.low %v7664_v3, %v7696_v0 }
 0xdb9   : > { %v7918_v56 = vpack.i.b16 %v7917_v2, %v7916_v37  ;;  %v7709_v2 = vcombine.high %v7664_v3, %v7696_v0  ;;  %v7657_v37 = vcombine.high %v7591_v31, %v7607_v47  ;;  %v18975_v47 = vpack.i.b16 %v17040_v35, %v17031_v55 }
 0xdbb   : > { %8177 = vxpose.xlu1.c.b16.end [2/2] (short) (narrow) %v7894_v44, 16  ;;  %v7671_v23 = vrot.slane %v7657_v37, %v15800_v5  ;;  %v7946_v31 = vpack.i.b16 %v7709_v2, %v18974_v30 }
 0xdbf   : > { %8208 = vxpose.xlu1.c.b16.start [1/2] (short) (narrow) %v7774_v26, 16 }
 0xdc2   : > { %7984 = vxpose.xlu0.c.b16.start [1/2] (short) (narrow) %v16987_v8, 16  ;;  %v7906_v8 = vpack.i.b16 %v7704_v59, %v18961_v48 }
 0xdc3   : > { %8209 = vxpose.xlu1.c.b16.end [2/2] (short) (narrow) %v7902_v58, 16  ;;  %v18967_v58 = vld [vmem:[#allocation72_spill] sm:$0xff] }
 0xdc4   : > { %v7932_v59 = vshrl.u32 %v18967_v58, 16 }
 0xdc6   : > { %7985 = vxpose.xlu0.c.b16.end [2/2] (short) (narrow) %v18960_v50, 16  ;;  %v18968_v50 = vld [vmem:[#allocation95_spill] sm:$0xff] }
 0xdc7   : > { %8240 = vxpose.xlu1.c.b16.start [1/2] (short) (narrow) %v17006_v36, 16  ;;  %v7655_v36 = vrot.slane %v7641_v20, %v15800_v5  ;;  %v18969_v48 = vpack.i.b16 %v16991_v13, %v18968_v50  ;;  %v7689_v20 = vcombine.high %v7623_v29, %v7639_v1  ;;  %v18972_v13 = vld [vmem:[#allocation96_spill] sm:$0xff] }
 0xdc9   : > { %v7706_v40 = vcombine.low %v7655_v36, %v7687_v22  ;;  %v17239_v12 = vpop.trf.xlu0  ;;  %v7707_v63 = vcombine.high %v7655_v36, %v7687_v22  ;;  %v18971_v36 = vld [vmem:[#allocation97_spill] sm:$0xff] }
 0xdca   : > { %8224 = vxpose.xlu0.c.b16.start [1/2] (short) (narrow) %v18962_v10, 16 }
 0xdcb   : > { %8241 = vxpose.xlu1.c.b16.end [2/2] (short) (narrow) %v7910_v28, 16  ;;  %v7925_v44 = vshrl.u32 %v7706_v40, 16  ;;  %v7922_v26 = vpack.i.b16 %v7706_v40, %v18965_v17  ;;  %v7930_v32 = vpack.i.b16 %v7707_v63, %v18967_v58  ;;  %v7941_v28 = vshrl.u32 %v7708_v18, 16 }
 0xdcd   : > { %v7926_v11 = vpack.i.b16 %v7925_v44, %v7924_v45 }
 0xdce   : > { %8225 = vxpose.xlu0.c.b16.end [2/2] (short) (narrow) %v7906_v8, 16  ;;  %v17264_v8 = vpop.permute.xlu1 %5722 }
 0xdcf   : > { %8272 = vxpose.xlu1.c.b16.start [1/2] (short) (narrow) %v17008_v15, 16  ;;  %v7914_v15 = vpack.i.b16 %v7705_v14, %v18963_v21  ;;  %v18970_v14 = vld [vmem:[#allocation73_spill] sm:$0xff]  ;;  %v18973_v21 = vpack.i.b16 %v18971_v36, %v18972_v13 }
 0xdd0   : > { %v7938_v41 = vpack.i.b16 %v7708_v18, %v18970_v14 }
 0xdd1   : > { %v8040_v25 = vpop.trf.xlu0 }
 0xdd2   : > { %8256 = vxpose.xlu0.c.b16.start [1/2] (short) (narrow) %v18964_v54, 16  ;;  %v17271_v40 = vpop.permute.xlu1 %5734 }
 0xdd3   : > { %8273 = vxpose.xlu1.c.b16.end [2/2] (short) (narrow) %v7918_v56, 16  ;;  %v7703_v56 = vrot.slane %v7689_v20, %v15800_v5  ;;  %v18981_v20 = vld [vmem:[#allocation63_spill] sm:$0xff] }
 0xdd5   : > { %v7710_v44 = vcombine.low %v7671_v23, %v7703_v56  ;;  %v7711_v55 = vcombine.high %v7671_v23, %v7703_v56 }
 0xdd6   : > { %8257 = vxpose.xlu0.c.b16.end [2/2] (short) (narrow) %v7914_v15, 16  ;;  %v7948_v15 = vshrl.u32 %v18974_v30, 16  ;;  %v7976_v46 = vpop.trf.xlu1 }
 0xdd7   : > { %8304 = vxpose.xlu1.c.b16.start [1/2] (short) (narrow) %v17015_v39, 16  ;;  %v7933_v39 = vshrl.u32 %v7707_v63, 16  ;;  %v8480_v29 = vcombine.low %v7976_v46, %v8040_v25  ;;  %v7957_v16 = vshrl.u32 %v7710_v44, 16 }
 0xdd9   : > { %v7934_v6 = vpack.i.b16 %v7933_v39, %v7932_v59  ;;  %v8072_v51 = vpop.trf.xlu0 }
 0xdda   : > { %8288 = vxpose.xlu0.c.b16.start [1/2] (short) (narrow) %v18966_v61, 16  ;;  %v8488_v17 = vcombine.low %v17239_v12, %v8072_v51  ;;  %v18976_v61 = vld [vmem:[#allocation75_spill] sm:$0xff]  ;;  %v18977_v12 = vpack.i.b16 %v17068_v42, %v17059_v34  ;;  %v18978_v34 = vld [vmem:[#allocation76_spill] sm:$0xff] }
 0xddb   : > { %8305 = vxpose.xlu1.c.b16.end [2/2] (short) (narrow) %v7926_v11, 16  ;;  %v7956_v9 = vshrl.u32 %v18976_v61, 16  ;;  %v7954_v3 = vpack.i.b16 %v7710_v44, %v18976_v61  ;;  %v7964_v42 = vshrl.u32 %v18978_v34, 16 }
 0xddc   : > { %v8495_v11 = vrot.slane %v8488_v17, %v15797_v62 }
 0xddd   : > { %v7958_v35 = vpack.i.b16 %v7957_v16, %v7956_v9 }
 0xdde   : > { %8289 = vxpose.xlu0.c.b16.end [2/2] (short) (narrow) %v7922_v26, 16  ;;  %v17291_v59 = vpop.permute.xlu1 %5712 }
 0xddf   : > { %8336 = vxpose.xlu1.c.b16.start [1/2] (short) (narrow) %v17026_v24, 16  ;;  %v7940_v24 = vshrl.u32 %v18970_v14, 16  ;;  %v7962_v14 = vpack.i.b16 %v7711_v55, %v18978_v34 }
 0xde1   : > { %v8104_v10 = vpop.trf.xlu0  ;;  %v7942_v22 = vpack.i.b16 %v7941_v28, %v7940_v24  ;;  %v18980_v24 = vld [vmem:[#allocation61_spill] sm:$0xff] }
 0xde2   : > { %8320 = vxpose.xlu0.c.b16.start [1/2] (short) (narrow) %v18969_v48, 16 }
 0xde3   : > { %8337 = vxpose.xlu1.c.b16.end [2/2] (short) (narrow) %v7934_v6, 16 }
 0xde6   : > { %8321 = vxpose.xlu0.c.b16.end [2/2] (short) (narrow) %v7930_v32, 16  ;;  %v18979_v32 = vpack.i.b16 %v17077_v57, %v17075_v27 }
 0xde7   : > { %8368 = vxpose.xlu1.c.b16.start [1/2] (short) (narrow) %v17055_v60, 16  ;;  %v7949_v60 = vshrl.u32 %v7709_v2, 16 }
 0xde9   : > { %v8136_v54 = vpop.trf.xlu0  ;;  %v7950_v1 = vpack.i.b16 %v7949_v60, %v7948_v15 }
 0xdea   : > { %8352 = vxpose.xlu0.c.b16.start [1/2] (short) (narrow) %v18973_v21, 16 }
 0xdeb   : > { %8369 = vxpose.xlu1.c.b16.end [2/2] (short) (narrow) %v7942_v22, 16 }
 0xdee   : > { %8353 = vxpose.xlu0.c.b16.end [2/2] (short) (narrow) %v7938_v41, 16 }
 0xdef   : > { %8400 = vxpose.xlu1.c.b16.start [1/2] (short) (narrow) %v17066_v4, 16  ;;  %v8487_v4 = vrot.slane %v8480_v29, %v15797_v62 }
 0xdf1   : > { %v8168_v45 = vpop.trf.xlu0  ;;  %v8512_v26 = vcombine.low %v8487_v4, %v8495_v11 }
 0xdf2   : > { %8384 = vxpose.xlu0.c.b16.start [1/2] (short) (narrow) %v18975_v47, 16  ;;  %v8496_v63 = vcombine.low %v8104_v10, %v8168_v45 }
 0xdf3   : > { %8401 = vxpose.xlu1.c.b16.end [2/2] (short) (narrow) %v7950_v1, 16  ;;  %v8519_v6 = vrot.slane %v8512_v26, %v15800_v5 }
 0xdf4   : > { %v8503_v0 = vrot.slane %v8496_v63, %v15797_v62 }
 0xdf5   : > { %v8024_v48 = vpop.trf.xlu1 }
 0xdf6   : > { %8385 = vxpose.xlu0.c.b16.end [2/2] (short) (narrow) %v7946_v31, 16 }
 0xdf7   : > { %8432 = vxpose.xlu1.c.b16.start [1/2] (short) (narrow) %v17096_v43, 16  ;;  %v7965_v43 = vshrl.u32 %v7711_v55, 16  ;;  %v18982_v55 = vmov 0.0  }
 0xdf9   : > { %v8200_v25 = vpop.trf.xlu0  ;;  %v7966_v50 = vpack.i.b16 %v7965_v43, %v7964_v42 }
 0xdfa   : > { %8416 = vxpose.xlu0.c.b16.start [1/2] (short) (narrow) %v18977_v12, 16  ;;  %v8504_v39 = vcombine.low %v8136_v54, %v8200_v25 }
 0xdfb   : > { %8433 = vxpose.xlu1.c.b16.end [2/2] (short) (narrow) %v7958_v35, 16 }
 0xdfc   : > { %v8511_v58 = vrot.slane %v8504_v39, %v15797_v62 }
 0xdfe   : > { %8417 = vxpose.xlu0.c.b16.end [2/2] (short) (narrow) %v7954_v3, 16  ;;  %v8520_v18 = vcombine.low %v8503_v0, %v8511_v58 }
 0xdff   : > { %8464 = vxpose.xlu1.c.b16.start [1/2] (short) (narrow) %v17102_v52, 16  ;;  %v8056_v52 = vpop.trf.xlu1 }
 0xe00   : > { %v8527_v51 = vrot.slane %v8520_v18, %v15800_v5 }
 0xe02   : > { %8448 = vxpose.xlu0.c.b16.start [1/2] (short) (narrow) %v18979_v32, 16  ;;  %v17300_v28 = vcombine.high %v8519_v6, %v8527_v51  ;;  %v8528_v47 = vcombine.low %v8519_v6, %v8527_v51 }
 0xe03   : > { %8465 = vxpose.xlu1.c.b16.end [2/2] (short) (narrow) %v7966_v50, 16 }
 0xe04   : > { %v8684_v45 = vshrl.u32 %v8528_v47, 16  ;;  %v8692_v16 = vshrl.u32 %v17300_v28, 16 }
 0xe05   : > { %v8088_v10 = vpop.trf.xlu1 }
 0xe06   : > { %8449 = vxpose.xlu0.c.b16.end [2/2] (short) (narrow) %v7962_v14, 16  ;;  %v8538_v21 = vcombine.low %v8024_v48, %v8088_v10 }
 0xe07   : > { %5738 = vrot.lane.b32.xlu1 %v18980_v24, %s15018_s9 }
 0xe08   : > { %v8545_v23 = vrot.slane %v8538_v21, %v15797_v62 }
 0xe0d   : > { %v8120_v22 = vpop.trf.xlu1 }
 0xe0f   : > { %5740 = vrot.lane.b32.xlu0 %v18981_v20, %s15018_s9 }
 0xe12   : > { %v17307_v36 = vpop.permute.xlu0 %5724 }
 0xe15   : > { %v8152_v2 = vpop.trf.xlu1 }
 0xe16   : > { %v17309_v13 = vpop.permute.xlu0 %5736 }
 0xe1d   : > { %v8184_v57 = vpop.trf.xlu1 }
 0xe1e   : > { %v8546_v27 = vcombine.low %v8120_v22, %v8184_v57 }
 0xe20   : > { %v8553_v41 = vrot.slane %v8546_v27, %v15797_v62 }
 0xe25   : > { %v8216_v37 = vpop.trf.xlu1 }
 0xe26   : > { %v8554_v56 = vcombine.low %v8152_v2, %v8216_v37 }
 0xe28   : > { %v7992_v60 = vpop.trf.xlu0  ;;  %v8561_v54 = vrot.slane %v8554_v56, %v15797_v62 }
 0xe29   : > { %v8530_v30 = vcombine.low %v7992_v60, %v8056_v52 }
 0xe2a   : > { %v8570_v15 = vcombine.low %v8553_v41, %v8561_v54 }
 0xe2b   : > { %v8537_v46 = vrot.slane %v8530_v30, %v15797_v62 }
 0xe2c   : > { %v8577_v44 = vrot.slane %v8570_v15, %v15800_v5 }
 0xe2d   : > { %v8562_v1 = vcombine.low %v8537_v46, %v8545_v23  ;;  %v8248_v25 = vpop.trf.xlu1 }
 0xe2f   : > { %v8569_v29 = vrot.slane %v8562_v1, %v15800_v5 }
 0xe30   : > { %v8232_v12 = vpop.trf.xlu0 }
 0xe31   : > { %v8578_v17 = vcombine.low %v8569_v29, %v8577_v44  ;;  %v17317_v31 = vcombine.high %v8569_v29, %v8577_v44 }
 0xe33   : > { %v8682_v4 = vpack.i.b16 %v8578_v17, %v8528_v47  ;;  %v8685_v11 = vshrl.u32 %v8578_v17, 16  ;;  %v8690_v63 = vpack.i.b16 %v17317_v31, %v17300_v28  ;;  %v8693_v61 = vshrl.u32 %v17317_v31, 16 }
 0xe35   : > { %13717 = vmatpush3.bf16.msra.mxu0 %v8682_v4  ;;  %v8686_v9 = vpack.i.b16 %v8685_v11, %v8684_v45  ;;  %v17323_v35 = vpack.i.b16 %v8693_v61, %v8692_v16  ;;  %v8280_v26 = vpop.trf.xlu1 }
 0xe36   : > { %13718 = vmatprep.subr.bf16.mxu0 %v18982_v55 }
 0xe37   : > { %13725 = vmatpush3.bf16.msra.mxu1 %v8686_v9 }
 0xe38   : > { %13726 = vmatprep.subr.bf16.mxu1 %v18982_v55  ;;  %v8264_v0 = vpop.trf.xlu0 }
 0xe3d   : > { %v8312_v39 = vpop.trf.xlu1 }
 0xe3e   : > { %v8630_v50 = vcombine.low %v8248_v25, %v8312_v39  ;;  %v18984_v39 = vld [vmem:[#allocation91_spill] sm:$0xff] }
 0xe40   : > { %v8296_v3 = vpop.trf.xlu0  ;;  %v8637_v10 = vrot.slane %v8630_v50, %v15797_v62 }
 0xe41   : > { %v8580_v48 = vcombine.low %v8232_v12, %v8296_v3 }
 0xe43   : > { %v8587_v22 = vrot.slane %v8580_v48, %v15797_v62 }
 0xe45   : > { %v8344_v58 = vpop.trf.xlu1 }
 0xe46   : > { %v8638_v32 = vcombine.low %v8280_v26, %v8344_v58  ;;  %v5882_v26 = vcombine.low %v18980_v24, %v17259_v33 }
 0xe48   : > { %v8328_v43 = vpop.trf.xlu0  ;;  %v8645_v2 = vrot.slane %v8638_v32, %v15797_v62  ;;  %v5890_v50 = vrot.slane %v5882_v26, %v15797_v62 }
 0xe49   : > { %v8588_v28 = vcombine.low %v8264_v0, %v8328_v43  ;;  %v18983_v0 = vld [vmem:[#allocation90_spill] sm:$0xff] }
 0xe4a   : > { %v8662_v54 = vcombine.low %v8637_v10, %v8645_v2  ;;  %v18985_v3 = vpack.i.b16 %v18983_v0, %v18984_v39  ;;  %v18988_v10 = vld [vmem:[#allocation83_spill] sm:$0xff] }
 0xe4b   : > { %v8595_v57 = vrot.slane %v8588_v28, %v15797_v62 }
 0xe4c   : > { %v8669_v47 = vrot.slane %v8662_v54, %v15800_v5 }
 0xe4d   : > { %v8376_v6 = vpop.trf.xlu1  ;;  %v8612_v23 = vcombine.low %v8587_v22, %v8595_v57  ;;  %v18990_v57 = vld [vmem:[#allocation88_spill] sm:$0xff] }
 0xe4f   : > { %v8619_v29 = vrot.slane %v8612_v23, %v15800_v5 }
 0xe50   : > { %v8360_v18 = vpop.trf.xlu0 }
 0xe55   : > { %v8408_v34 = vpop.trf.xlu1 }
 0xe58   : > { %v8392_v42 = vpop.trf.xlu0 }
 0xe5d   : > { %v8440_v51 = vpop.trf.xlu1 }
 0xe5e   : > { %v8646_v14 = vcombine.low %v8376_v6, %v8440_v51 }
 0xe60   : > { %v8424_v52 = vpop.trf.xlu0  ;;  %v8653_v37 = vrot.slane %v8646_v14, %v15797_v62 }
 0xe61   : > { %v8596_v27 = vcombine.low %v8360_v18, %v8424_v52  ;;  %v18987_v52 = vld [vmem:[#allocation82_spill] sm:$0xff] }
 0xe62   : > { %v18989_v22 = vpack.i.b16 %v18987_v52, %v18988_v10 }
 0xe63   : > { %v8603_v30 = vrot.slane %v8596_v27, %v15797_v62 }
 0xe65   : > { %v8472_v21 = vpop.trf.xlu1 }
 0xe66   : > { %v8654_v41 = vcombine.low %v8408_v34, %v8472_v21  ;;  %v18986_v34 = vld [vmem:[#allocation86_spill] sm:$0xff] }
 0xe68   : > { %v8661_v56 = vrot.slane %v8654_v41, %v15797_v62  ;;  %v8456_v60 = vpop.trf.xlu0 }
 0xe69   : > { %v8604_v15 = vcombine.low %v8392_v42, %v8456_v60  ;;  %v18991_v60 = vld [vmem:[#allocation62_spill] sm:$0xff] }
 0xe6a   : > { %v8670_v46 = vcombine.low %v8653_v37, %v8661_v56  ;;  %v5762_v37 = vcombine.low %v17209_v38, %v17271_v40  ;;  %v5746_v54 = vcombine.low %v18991_v60, %v17264_v8 }
 0xe6b   : > { %v8611_v1 = vrot.slane %v8604_v15, %v15797_v62 }
 0xe6c   : > { %v8677_v44 = vrot.slane %v8670_v46, %v15800_v5  ;;  %v5770_v46 = vrot.slane %v5762_v37, %v15797_v62 }
 0xe6d   : > { %v8620_v17 = vcombine.low %v8603_v30, %v8611_v1 }
 0xe6e   : > { %v8678_v31 = vcombine.low %v8669_v47, %v8677_v44  ;;  %v8679_v12 = vcombine.high %v8669_v47, %v8677_v44  ;;  %v5754_v44 = vrot.slane %v5746_v54, %v15797_v62  ;;  %v5814_v54 = vcombine.low %v16364_v53, %v17307_v36 }
 0xe6f   : > { %v8627_v45 = vrot.slane %v8620_v17, %v15800_v5 }
 0xe70   : > { %v8701_v61 = vshrl.u32 %v8678_v31, 16  ;;  %v8709_v51 = vshrl.u32 %v8679_v12, 16  ;;  %v5778_v17 = vcombine.low %v5754_v44, %v5770_v46 }
 0xe71   : > { %v8628_v16 = vcombine.low %v8619_v29, %v8627_v45  ;;  %v8629_v25 = vcombine.high %v8619_v29, %v8627_v45 }
 0xe73   : > { %v8698_v4 = vpack.i.b16 %v8678_v31, %v8628_v16  ;;  %v8700_v11 = vshrl.u32 %v8628_v16, 16  ;;  %v8708_v43 = vshrl.u32 %v8629_v25, 16  ;;  %v8706_v42 = vpack.i.b16 %v8679_v12, %v8629_v25 }
 0xe74   : > { %v5763_v31 = vcombine.high %v17209_v38, %v17271_v40 }
 0xe75   : > { %13719 = vmatpush3.bf16.msra.mxu0 %v8698_v4  ;;  %v8702_v9 = vpack.i.b16 %v8701_v61, %v8700_v11  ;;  %v5747_v11 = vcombine.high %v18991_v60, %v17264_v8  ;;  %v5786_v61 = vrot.slane %v5778_v17, %v15800_v5 }
 0xe76   : > { %13732 = vmatprep.subr.bf16.mxu0 %v18982_v55  ;;  %v5777_v12 = vrot.slane %v5763_v31, %v15797_v62  ;;  %v5831_v31 = vcombine.high %v17291_v59, %v17309_v13 }
 0xe77   : > { %13727 = vmatpush3.bf16.msra.mxu1 %v8702_v9  ;;  %v5779_v9 = vcombine.high %v5754_v44, %v5770_v46  ;;  %v5761_v0 = vrot.slane %v5747_v11, %v15797_v62  ;;  %v5810_v38 = vcombine.high %v5786_v61, %v18982_v55  ;;  %v5822_v44 = vrot.slane %v5814_v54, %v15797_v62 }
 0xe78   : > { %13721 = vmatmul.mubr.msk.bf16.vlgmr.msra.gmra.mrb[16].mxu0 %vm2864_vm1, %v18985_v3  ;;  %13740 = vmatprep.subr.bf16.mxu1 %v18982_v55  ;;  %v5815_v11 = vcombine.high %v16364_v53, %v17307_v36 }
 0xe79   : > { %v5739_v58 = vpop.permute.xlu1 %5738  ;;  %13733 = vmatpush3.bf16.msra.mxu0 %v8690_v63  ;;  %13736 = vmatprep.mubr.msk.bf16.mxu0 %vm15017_vm0, %v18982_v55  ;;  %v5883_v63 = vcombine.high %v18980_v24, %v17259_v33  ;;  %v5793_v39 = vrot.slane %v5779_v9, %v15800_v5  ;;  %v5794_v3 = vcombine.low %v5761_v0, %v5777_v12 }
 0xe7a   : > { %v5898_v6 = vcombine.low %v17251_v49, %v5739_v58  ;;  %v5899_v18 = vcombine.high %v17251_v49, %v5739_v58  ;;  %13729 = vmatmul.mubr.msk.bf16.vlgmr.msra.gmra.mrb[44].mxu1 %vm2864_vm1, %v18986_v34  ;;  %13734 = vmatprep.subr.bf16.mxu0 %v18982_v55  ;;  %v8710_v49 = vpack.i.b16 %v8709_v51, %v8708_v43 }
 0xe7b   : > { %13741 = vmatpush3.bf16.msra.mxu1 %v17323_v35  ;;  %13744 = vmatprep.mubr.msk.bf16.mxu1 %vm15017_vm0, %v18982_v55  ;;  %v5897_v14 = vrot.slane %v5883_v63, %v15797_v62  ;;  %v6018_v58 = vpack.c.bf16 %v5786_v61, %v5786_v61  ;;  %v6019_v43 = vpack.c.bf16 %v5810_v38, %v5810_v38 }
 0xe7c   : > { %v5906_v48 = vrot.slane %v5898_v6, %v15797_v62  ;;  %13742 = vmatprep.subr.bf16.mxu1 %v18982_v55  ;;  %v5913_v32 = vrot.slane %v5899_v18, %v15797_v62  ;;  %v5811_v6 = vcombine.high %v5793_v39, %v18982_v55  ;;  %v5950_v18 = vcombine.low %v18981_v20, %v17226_v19 }
 0xe7d   : > { %13735 = vmatpush3.bf16.msra.mxu0 %v8706_v42  ;;  %v5802_v34 = vrot.slane %v5794_v3, %v15800_v5  ;;  %v5795_v42 = vcombine.high %v5761_v0, %v5777_v12  ;;  %v6020_v51 = vpack.c.bf16 %v5793_v39, %v5793_v39  ;;  %v5845_v12 = vrot.slane %v5831_v31, %v15797_v62 }
 0xe7e   : > { %v5914_v28 = vcombine.low %v5890_v50, %v5906_v48  ;;  %v5915_v35 = vcombine.high %v5890_v50, %v5906_v48  ;;  %v5930_v2 = vcombine.low %v5897_v14, %v5913_v32  ;;  %v5931_v30 = vcombine.high %v5897_v14, %v5913_v32 }
 0xe7f   : > { %13743 = vmatpush3.bf16.msra.mxu1 %v8710_v49  ;;  %v6021_v50 = vpack.c.bf16 %v5811_v6, %v5811_v6  ;;  %v5958_v48 = vrot.slane %v5950_v18, %v15797_v62  ;;  %v5812_v49 = vcombine.high %v5802_v34, %v18982_v55  ;;  %v5809_v32 = vrot.slane %v5795_v42, %v15800_v5 }
 0xe80   : > { %13737 = vmatmul.mubr.msk.bf16.vlgmr.msra.gmra.mrb[20].mxu0 %vm2864_vm1, %v18989_v22  ;;  %v5922_v33 = vrot.slane %v5914_v28, %v15800_v5  ;;  %v5929_v24 = vrot.slane %v5915_v35, %v15800_v5  ;;  %v5938_v23 = vrot.slane %v5930_v2, %v15800_v5  ;;  %v5945_v29 = vrot.slane %v5931_v30, %v15800_v5 }
 0xe81   : > { %v5741_v40 = vpop.permute.xlu0 %5740  ;;  %v6022_v35 = vpack.c.bf16 %v5802_v34, %v5802_v34  ;;  %v6023_v52 = vpack.c.bf16 %v5812_v49, %v5812_v49  ;;  %v5813_v10 = vcombine.high %v5809_v32, %v18982_v55  ;;  %v5951_v22 = vcombine.high %v18981_v20, %v17226_v19 }
 0xe82   : > { %13745 = vmatmul.mubr.msk.bf16.vlgmr.msra.gmra.mrb[48].mxu1 %vm2864_vm1, %v18990_v57  ;;  %v6034_v27 = vpack.c.bf16 %v5922_v33, %v5922_v33  ;;  %v5946_v21 = vcombine.high %v5922_v33, %v18982_v55  ;;  %v5947_v56 = vcombine.high %v5929_v24, %v18982_v55  ;;  %v6036_v15 = vpack.c.bf16 %v5929_v24, %v5929_v24 }
 0xe83   : > { %v5948_v47 = vcombine.high %v5938_v23, %v18982_v55  ;;  %v6038_v45 = vpack.c.bf16 %v5938_v23, %v5938_v23  ;;  %v5949_v4 = vcombine.high %v5945_v29, %v18982_v55  ;;  %v6040_v25 = vpack.c.bf16 %v5945_v29, %v5945_v29 }
 0xe84   : > { %9188 = vxpose.xlu0.c.b16.start.end [1/1] (short) (narrow) %v6034_v27, 32  ;;  %v6035_v41 = vpack.c.bf16 %v5946_v21, %v5946_v21  ;;  %v6037_v1 = vpack.c.bf16 %v5947_v56, %v5947_v56  ;;  %v5966_v8 = vcombine.low %v17217_v7, %v5741_v40  ;;  %v5967_v14 = vcombine.high %v17217_v7, %v5741_v40 }
 0xe85   : > { %v6039_v16 = vpack.c.bf16 %v5948_v47, %v5948_v47  ;;  %v6041_v26 = vpack.c.bf16 %v5949_v4, %v5949_v4  ;;  %v6024_v2 = vpack.c.bf16 %v5809_v32, %v5809_v32  ;;  %v6025_v27 = vpack.c.bf16 %v5813_v10, %v5813_v10 }
 0xe86   : > { %9204 = vxpose.xlu1.c.b16.start.end [1/1] (short) (narrow) %v6035_v41, 32  ;;  %v5974_v63 = vrot.slane %v5966_v8, %v15797_v62  ;;  %v5981_v57 = vrot.slane %v5967_v14, %v15797_v62  ;;  %v5965_v21 = vrot.slane %v5951_v22, %v15797_v62  ;;  %v5830_v19 = vcombine.low %v17291_v59, %v17309_v13 }
 0xe87   : > { %v5829_v0 = vrot.slane %v5815_v11, %v15797_v62 }
 0xe88   : > { %v5982_v28 = vcombine.low %v5958_v48, %v5974_v63  ;;  %v5983_v24 = vcombine.high %v5958_v48, %v5974_v63  ;;  %v5998_v41 = vcombine.low %v5965_v21, %v5981_v57  ;;  %v5999_v30 = vcombine.high %v5965_v21, %v5981_v57 }
 0xe89   : > { %9220 = vxpose.xlu0.c.b16.start.end [1/1] (short) (narrow) %v6036_v15, 32  ;;  %v5838_v46 = vrot.slane %v5830_v19, %v15797_v62  ;;  %v5862_v38 = vcombine.low %v5829_v0, %v5845_v12  ;;  %v5863_v3 = vcombine.high %v5829_v0, %v5845_v12 }
 0xe8a   : > { %v5990_v33 = vrot.slane %v5982_v28, %v15800_v5  ;;  %v5997_v37 = vrot.slane %v5983_v24, %v15800_v5  ;;  %v6006_v23 = vrot.slane %v5998_v41, %v15800_v5  ;;  %v6013_v29 = vrot.slane %v5999_v30, %v15800_v5 }
 0xe8b   : > { %9236 = vxpose.xlu1.c.b16.start.end [1/1] (short) (narrow) %v6037_v1, 32  ;;  %v5846_v17 = vcombine.low %v5822_v44, %v5838_v46  ;;  %v5847_v9 = vcombine.high %v5822_v44, %v5838_v46  ;;  %v5870_v39 = vrot.slane %v5862_v38, %v15800_v5  ;;  %v5877_v6 = vrot.slane %v5863_v3, %v15800_v5 }
 0xe8c   : > { %v6014_v7 = vcombine.high %v5990_v33, %v18982_v55  ;;  %v6042_v56 = vpack.c.bf16 %v5990_v33, %v5990_v33  ;;  %v6015_v60 = vcombine.high %v5997_v37, %v18982_v55  ;;  %v6044_v15 = vpack.c.bf16 %v5997_v37, %v5997_v37 }
 0xe8d   : > { %v6016_v47 = vcombine.high %v6006_v23, %v18982_v55  ;;  %v6017_v4 = vcombine.high %v6013_v29, %v18982_v55  ;;  %v5854_v61 = vrot.slane %v5846_v17, %v15800_v5  ;;  %v5861_v13 = vrot.slane %v5847_v9, %v15800_v5 }
 0xe8e   : > { %9252 = vxpose.xlu0.c.b16.start.end [1/1] (short) (narrow) %v6038_v45, 32  ;;  %v6043_v20 = vpack.c.bf16 %v6014_v7, %v6014_v7  ;;  %v6045_v1 = vpack.c.bf16 %v6015_v60, %v6015_v60  ;;  %v6046_v45 = vpack.c.bf16 %v6006_v23, %v6006_v23  ;;  %v6030_v18 = vpack.c.bf16 %v5870_v39, %v5870_v39 }
 0xe8f   : > { %v5878_v59 = vcombine.high %v5854_v61, %v18982_v55  ;;  %v6026_v40 = vpack.c.bf16 %v5854_v61, %v5854_v61  ;;  %v5879_v36 = vcombine.high %v5861_v13, %v18982_v55  ;;  %v5881_v42 = vcombine.high %v5877_v6, %v18982_v55 }
 0xe90   : > { %9268 = vxpose.xlu1.c.b16.start.end [1/1] (short) (narrow) %v6039_v16, 32  ;;  %v6047_v16 = vpack.c.bf16 %v6016_v47, %v6016_v47 }
 0xe91   : > { %v6027_v53 = vpack.c.bf16 %v5878_v59, %v5878_v59  ;;  %v6029_v8 = vpack.c.bf16 %v5879_v36, %v5879_v36  ;;  %v6033_v63 = vpack.c.bf16 %v5881_v42, %v5881_v42 }
 0xe93   : > { %9284 = vxpose.xlu0.c.b16.start.end [1/1] (short) (narrow) %v6040_v25, 32  ;;  %v6048_v25 = vpack.c.bf16 %v6013_v29, %v6013_v29 }
 0xe95   : > { %9300 = vxpose.xlu1.c.b16.start.end [1/1] (short) (narrow) %v6041_v26, 32  ;;  %v6049_v26 = vpack.c.bf16 %v6017_v4, %v6017_v4 }
 0xe98   : > { %8932 = vxpose.xlu0.c.b16.start.end [1/1] (short) (narrow) %v6018_v58, 32  ;;  %v6028_v58 = vpack.c.bf16 %v5861_v13, %v5861_v13 }
 0xe9a   : > { %8948 = vxpose.xlu1.c.b16.start.end [1/1] (short) (narrow) %v6019_v43, 32  ;;  %v5880_v43 = vcombine.high %v5870_v39, %v18982_v55 }
 0xe9c   : > { %v6031_v34 = vpack.c.bf16 %v5880_v43, %v5880_v43 }
 0xe9d   : > { %8964 = vxpose.xlu0.c.b16.start.end [1/1] (short) (narrow) %v6020_v51, 32  ;;  %v6032_v51 = vpack.c.bf16 %v5877_v6, %v5877_v6 }
 0xe9f   : > { %8980 = vxpose.xlu1.c.b16.start.end [1/1] (short) (narrow) %v6021_v50, 32 }
 0xea2   : > { %8996 = vxpose.xlu0.c.b16.start.end [1/1] (short) (narrow) %v6022_v35, 32 }
 0xea4   : > { %9012 = vxpose.xlu1.c.b16.start.end [1/1] (short) (narrow) %v6023_v52, 32 }
 0xea7   : > { %9028 = vxpose.xlu0.c.b16.start.end [1/1] (short) (narrow) %v6024_v2, 32 }
 0xea9   : > { %9044 = vxpose.xlu1.c.b16.start.end [1/1] (short) (narrow) %v6025_v27, 32 }
 0xeac   : > { %9316 = vxpose.xlu0.c.b16.start.end [1/1] (short) (narrow) %v6042_v56, 32 }
 0xeae   : > { %9332 = vxpose.xlu1.c.b16.start.end [1/1] (short) (narrow) %v6043_v20, 32 }
 0xeb1   : > { %9348 = vxpose.xlu0.c.b16.start.end [1/1] (short) (narrow) %v6044_v15, 32 }
 0xeb3   : > { %9364 = vxpose.xlu1.c.b16.start.end [1/1] (short) (narrow) %v6045_v1, 32 }
 0xeb6   : > { %9380 = vxpose.xlu0.c.b16.start.end [1/1] (short) (narrow) %v6046_v45, 32 }
 0xeb8   : > { %9396 = vxpose.xlu1.c.b16.start.end [1/1] (short) (narrow) %v6047_v16, 32 }
 0xebb   : > { %9412 = vxpose.xlu0.c.b16.start.end [1/1] (short) (narrow) %v6048_v25, 32 }
 0xebd   : > { %9428 = vxpose.xlu1.c.b16.start.end [1/1] (short) (narrow) %v6049_v26, 32 }
 0xec0   : > { %9060 = vxpose.xlu0.c.b16.start.end [1/1] (short) (narrow) %v6026_v40, 32 }
 0xec2   : > { %9076 = vxpose.xlu1.c.b16.start.end [1/1] (short) (narrow) %v6027_v53, 32 }
 0xec5   : > { %9092 = vxpose.xlu0.c.b16.start.end [1/1] (short) (narrow) %v6028_v58, 32 }
 0xec7   : > { %9108 = vxpose.xlu1.c.b16.start.end [1/1] (short) (narrow) %v6029_v8, 32 }
 0xeca   : > { %9124 = vxpose.xlu0.c.b16.start.end [1/1] (short) (narrow) %v6030_v18, 32 }
 0xecc   : > { %9140 = vxpose.xlu1.c.b16.start.end [1/1] (short) (narrow) %v6031_v34, 32 }
 0xecf   : > { %9156 = vxpose.xlu0.c.b16.start.end [1/1] (short) (narrow) %v6032_v51, 32 }
 0xed1   : > { %9172 = vxpose.xlu1.c.b16.start.end [1/1] (short) (narrow) %v6033_v63, 32 }
 0xeea   : > { %v17436_v50 = vpop.trf.xlu0 }
 0xeec   : > { %v17438_v48 = vpop.trf.xlu1 }
 0xeee   : > { %v17440_v49 = vpop.trf.xlu0 }
 0xef0   : > { %v17442_v32 = vpop.trf.xlu1 }
 0xef2   : > { %v17444_v28 = vpop.trf.xlu0 }
 0xef4   : > { %v17446_v35 = vpop.trf.xlu1 }
 0xef6   : > { %v17448_v14 = vpop.trf.xlu0 }
 0xef8   : > { %v17450_v52 = vpop.trf.xlu1 }
 0xefa   : > { %v17452_v10 = vpop.trf.xlu0 }
 0xefc   : > { %v17454_v22 = vpop.trf.xlu1 }
 0xefe   : > { %v17456_v33 = vpop.trf.xlu0 }
 0xeff   : > { %v10261_v21 = vcombine.high %v17440_v49, %v17456_v33 }
 0xf00   : > { %v17458_v24 = vpop.trf.xlu1 }
 0xf01   : > { %v10397_v7 = vcombine.high %v17442_v32, %v17458_v24  ;;  %v17477_v20 = vrot.slane %v10261_v21, %v15797_v62 }
 0xf02   : > { %v17460_v2 = vpop.trf.xlu0 }
 0xf03   : > { %v17486_v23 = vrot.slane %v10397_v7, %v15797_v62 }
 0xf04   : > { %v17462_v57 = vpop.trf.xlu1 }
 0xf06   : > { %v17464_v27 = vpop.trf.xlu0 }
 0xf07   : > { %v10277_v37 = vcombine.high %v17448_v14, %v17464_v27 }
 0xf08   : > { %v17472_v41 = vpop.trf.xlu1 }
 0xf09   : > { %v10413_v56 = vcombine.high %v17450_v52, %v17472_v41  ;;  %v17480_v60 = vrot.slane %v10277_v37, %v15797_v62 }
 0xf0a   : > { %v8940_v19 = vpop.trf.xlu0 }
 0xf0b   : > { %v17483_v54 = vrot.slane %v10413_v56, %v15797_v62  ;;  %v10341_v15 = vcombine.high %v17477_v20, %v17480_v60 }
 0xf0c   : > { %v8956_v30 = vpop.trf.xlu1 }
 0xf0d   : > { %v10477_v46 = vcombine.high %v17486_v23, %v17483_v54 }
 0xf0e   : > { %v8941_v1 = vpop.trf.xlu0 }
 0xf10   : > { %v8957_v44 = vpop.trf.xlu1 }
 0xf12   : > { %v8972_v47 = vpop.trf.xlu0 }
 0xf14   : > { %v8988_v29 = vpop.trf.xlu1 }
 0xf16   : > { %v8973_v17 = vpop.trf.xlu0 }
 0xf18   : > { %v8989_v45 = vpop.trf.xlu1 }
 0xf1a   : > { %v9004_v31 = vpop.trf.xlu0 }
 0xf1b   : > { %v9444_v16 = vcombine.low %v8940_v19, %v9004_v31  ;;  %v9445_v4 = vcombine.high %v8940_v19, %v9004_v31 }
 0xf1c   : > { %v9020_v11 = vpop.trf.xlu1 }
 0xf1d   : > { %v9580_v61 = vcombine.low %v8956_v30, %v9020_v11  ;;  %v9581_v9 = vcombine.high %v8956_v30, %v9020_v11  ;;  %v17493_v36 = vrot.slane %v9444_v16, %v15797_v62  ;;  %v17496_v39 = vrot.slane %v9445_v4, %v15797_v62 }
 0xf1e   : > { %v9005_v25 = vpop.trf.xlu0 }
 0xf1f   : > { %v9988_v12 = vcombine.low %v8941_v1, %v9005_v25  ;;  %v9989_v26 = vcombine.high %v8941_v1, %v9005_v25  ;;  %v17505_v18 = vrot.slane %v9580_v61, %v15797_v62  ;;  %v17508_v34 = vrot.slane %v9581_v9, %v15797_v62 }
 0xf20   : > { %v9021_v0 = vpop.trf.xlu1 }
 0xf21   : > { %v10124_v59 = vcombine.low %v8957_v44, %v9021_v0  ;;  %v10125_v13 = vcombine.high %v8957_v44, %v9021_v0  ;;  %v17525_v44 = vrot.slane %v9988_v12, %v15797_v62  ;;  %v9716_v12 = vcombine.low %v17436_v50, %v17452_v10 }
 0xf22   : > { %v9036_v38 = vpop.trf.xlu0 }
 0xf23   : > { %v9460_v40 = vcombine.low %v8972_v47, %v9036_v38  ;;  %v9461_v53 = vcombine.high %v8972_v47, %v9036_v38  ;;  %v17528_v47 = vrot.slane %v9989_v26, %v15797_v62  ;;  %v9732_v26 = vcombine.low %v17444_v28, %v17460_v2 }
 0xf24   : > { %v9052_v3 = vpop.trf.xlu1 }
 0xf25   : > { %v17499_v58 = vrot.slane %v9460_v40, %v15797_v62  ;;  %v17502_v8 = vrot.slane %v9461_v53, %v15797_v62  ;;  %v9596_v43 = vcombine.low %v8988_v29, %v9052_v3  ;;  %v9597_v6 = vcombine.high %v8988_v29, %v9052_v3 }
 0xf26   : > { %v9037_v42 = vpop.trf.xlu0  ;;  %v17561_v3 = vrot.slane %v10124_v59, %v15797_v62  ;;  %v9869_v59 = vcombine.high %v17446_v35, %v17462_v57 }
 0xf27   : > { %v9508_v51 = vcombine.low %v17493_v36, %v17499_v58  ;;  %v9509_v63 = vcombine.high %v17493_v36, %v17499_v58  ;;  %v9524_v21 = vcombine.low %v17496_v39, %v17502_v8  ;;  %v9525_v7 = vcombine.high %v17496_v39, %v17502_v8 }
 0xf28   : > { %v17519_v37 = vrot.slane %v9596_v43, %v15797_v62  ;;  %v17522_v56 = vrot.slane %v9597_v6, %v15797_v62  ;;  %v10004_v19 = vcombine.low %v8973_v17, %v9037_v42  ;;  %v10005_v30 = vcombine.high %v8973_v17, %v9037_v42  ;;  %v9053_v1 = vpop.trf.xlu1 }
 0xf29   : > { %v10140_v9 = vcombine.low %v8989_v45, %v9053_v1  ;;  %v10141_v25 = vcombine.high %v8989_v45, %v9053_v1  ;;  %v17564_v43 = vrot.slane %v10125_v13, %v15797_v62  ;;  %v9868_v1 = vcombine.low %v17446_v35, %v17462_v57 }
 0xf2a   : > { %v9644_v29 = vcombine.low %v17505_v18, %v17519_v37  ;;  %v17538_v17 = vpop.trf.xlu0  ;;  %v17541_v11 = vrot.slane %v10004_v19, %v15797_v62  ;;  %v17544_v61 = vrot.slane %v10005_v30, %v15797_v62  ;;  %v9733_v30 = vcombine.high %v17444_v28, %v17460_v2 }
 0xf2b   : > { %v17567_v6 = vrot.slane %v10140_v9, %v15797_v62  ;;  %v17570_v42 = vrot.slane %v10141_v25, %v15797_v62  ;;  %v10276_v13 = vcombine.low %v17448_v14, %v17464_v27  ;;  %v9717_v35 = vcombine.high %v17436_v50, %v17452_v10 }
 0xf2c   : > { %v17550_v0 = vpop.trf.xlu1  ;;  %v9852_v14 = vcombine.low %v17438_v48, %v17454_v22  ;;  %v9740_v57 = vrot.slane %v9732_v26, %v15797_v62  ;;  %v9853_v27 = vcombine.high %v17438_v48, %v17454_v22  ;;  %v10260_v25 = vcombine.low %v17440_v49, %v17456_v33 }
 0xf2d   : > { %v10412_v45 = vcombine.low %v17450_v52, %v17472_v41  ;;  %v9724_v9 = vrot.slane %v9716_v12, %v15797_v62  ;;  %v10396_v50 = vcombine.low %v17442_v32, %v17458_v24  ;;  %v9747_v10 = vrot.slane %v9733_v30, %v15797_v62 }
 0xf2e   : > { %v17572_v19 = vpop.trf.xlu0  ;;  %v9876_v26 = vrot.slane %v9868_v1, %v15797_v62  ;;  %v9883_v53 = vrot.slane %v9869_v59, %v15797_v62  ;;  %v10284_v48 = vrot.slane %v10276_v13, %v15797_v62  ;;  %v9731_v49 = vrot.slane %v9717_v35, %v15797_v62 }
 0xf2f   : > { %v9860_v52 = vrot.slane %v9852_v14, %v15797_v62  ;;  %v9780_v33 = vcombine.low %v9724_v9, %v9740_v57  ;;  %v9867_v41 = vrot.slane %v9853_v27, %v15797_v62  ;;  %v10268_v12 = vrot.slane %v10260_v25, %v15797_v62 }
 0xf30   : > { %v17590_v2 = vpop.trf.xlu1  ;;  %v9781_v32 = vcombine.high %v9724_v9, %v9740_v57  ;;  %v10420_v24 = vrot.slane %v10412_v45, %v15797_v62  ;;  %v10404_v1 = vrot.slane %v10396_v50, %v15797_v62  ;;  %v9796_v59 = vcombine.low %v9731_v49, %v9747_v10 }
 0xf31   : > { %v9916_v13 = vcombine.low %v9860_v52, %v9876_v26  ;;  %v9917_v40 = vcombine.high %v9860_v52, %v9876_v26  ;;  %v9932_v38 = vcombine.low %v9867_v41, %v9883_v53  ;;  %v10324_v4 = vcombine.low %v10268_v12, %v10284_v48 }
 0xf32   : > { %v17603_v28 = vpop.trf.xlu0  ;;  %v10325_v35 = vcombine.high %v10268_v12, %v10284_v48  ;;  %v10340_v14 = vcombine.low %v17477_v20, %v17480_v60  ;;  %v9797_v27 = vcombine.high %v9731_v49, %v9747_v10  ;;  %v10476_v9 = vcombine.low %v17486_v23, %v17483_v54 }
 0xf33   : > { %v17629_v45 = vrot.slane %v9780_v33, %v15800_v5  ;;  %v9933_v25 = vcombine.high %v9867_v41, %v9883_v53  ;;  %v10460_v57 = vcombine.low %v10404_v1, %v10420_v24  ;;  %v10461_v50 = vcombine.high %v10404_v1, %v10420_v24 }
 0xf34   : > { %v17612_v22 = vpop.trf.xlu1  ;;  %v17632_v26 = vrot.slane %v9781_v32, %v15800_v5  ;;  %v17636_v52 = vrot.slane %v9916_v13, %v15800_v5  ;;  %v17639_v10 = vrot.slane %v9917_v40, %v15800_v5  ;;  %v17642_v49 = vrot.slane %v9796_v59, %v15800_v5 }
 0xf35   : > { %v17645_v33 = vrot.slane %v10324_v4, %v15800_v5  ;;  %v17648_v53 = vrot.slane %v10325_v35, %v15800_v5  ;;  %v17651_v41 = vrot.slane %v10340_v14, %v15800_v5  ;;  %v17654_v32 = vrot.slane %v9932_v38, %v15800_v5 }
 0xf36   : > { %v17619_v30 = vpop.trf.xlu0  ;;  %v17660_v40 = vrot.slane %v10341_v15, %v15800_v5  ;;  %v17663_v24 = vrot.slane %v10476_v9, %v15800_v5  ;;  %v17667_v1 = vrot.slane %v9797_v27, %v15800_v5  ;;  %v17670_v13 = vrot.slane %v9933_v25, %v15800_v5 }
 0xf37   : > { %18992 = vst [vmem:[#allocation87_spill] sm:$0xff] %v17651_v41  ;;  %v17673_v38 = vrot.slane %v10460_v57, %v15800_v5  ;;  %v17676_v35 = vrot.slane %v10461_v50, %v15800_v5  ;;  %v17682_v20 = vrot.slane %v10477_v46, %v15800_v5  ;;  %v17688_v60 = vrot.slane %v9508_v51, %v15800_v5 }
 0xf38   : > { %v17624_v16 = vpop.trf.xlu1  ;;  %18993 = vst [vmem:[#allocation81_spill] sm:$0xff] %v17660_v40  ;;  %18994 = vst [vmem:[#allocation80_spill] sm:$0xff] %v17663_v24  ;;  %v17694_v15 = vrot.slane %v9509_v63, %v15800_v5  ;;  %v17702_v54 = vrot.slane %v9524_v21, %v15800_v5  ;;  %v17708_v23 = vrot.slane %v9525_v7, %v15800_v5 }
 0xf39   : > { %18995 = vst [vmem:[#allocation84_spill] sm:$0xff] %v17682_v20  ;;  %v17714_v46 = vrot.slane %v9644_v29, %v15800_v5  ;;  %v18996_v51 = vcombine.high %v17505_v18, %v17519_v37  ;;  %v18997_v39 = vcombine.low %v17508_v34, %v17522_v56  ;;  %v18998_v29 = vcombine.high %v17508_v34, %v17522_v56 }
 0xf3a   : > { %v9388_v31 = vpop.trf.xlu0  ;;  %v18999_v18 = vcombine.low %v17525_v44, %v17541_v11  ;;  %v19001_v34 = vcombine.low %v17528_v47, %v17544_v61  ;;  %v19002_v25 = vcombine.high %v17528_v47, %v17544_v61 }
 0xf3b   : > { %v9749_v48 = vcombine.high %v17538_v17, %v9388_v31  ;;  %v9748_v36 = vcombine.low %v17538_v17, %v9388_v31  ;;  %v17721_v63 = vrot.slane %v18996_v51, %v15800_v5  ;;  %v17727_v8 = vrot.slane %v18997_v39, %v15800_v5 }
 0xf3c   : > { %v9404_v12 = vpop.trf.xlu1  ;;  %v17735_v31 = vrot.slane %v18998_v29, %v15800_v5  ;;  %v17741_v37 = vrot.slane %v18999_v18, %v15800_v5  ;;  %v19000_v17 = vcombine.high %v17525_v44, %v17541_v11  ;;  %v17754_v56 = vrot.slane %v19001_v34, %v15800_v5 }
 0xf3d   : > { %v9885_v4 = vcombine.high %v17550_v0, %v9404_v12  ;;  %v17760_v57 = vrot.slane %v19002_v25, %v15800_v5  ;;  %v19003_v11 = vcombine.low %v17561_v3, %v17567_v6  ;;  %v9756_v47 = vrot.slane %v9748_v36, %v15797_v62 }
 0xf3e   : > { %v9389_v59 = vpop.trf.xlu0  ;;  %v9763_v61 = vrot.slane %v9749_v48, %v15797_v62  ;;  %v19005_v18 = vcombine.low %v17564_v43, %v17570_v42 }
 0xf3f   : > { %v10292_v14 = vcombine.low %v17572_v19, %v9389_v59  ;;  %v10293_v27 = vcombine.high %v17572_v19, %v9389_v59  ;;  %v17747_v19 = vrot.slane %v19000_v17, %v15800_v5  ;;  %v9899_v17 = vrot.slane %v9885_v4, %v15797_v62 }
 0xf40   : > { %v9405_v58 = vpop.trf.xlu1 }
 0xf41   : > { %v10428_v21 = vcombine.low %v17590_v2, %v9405_v58  ;;  %v10429_v7 = vcombine.high %v17590_v2, %v9405_v58  ;;  %v9884_v2 = vcombine.low %v17550_v0, %v9404_v12  ;;  %v17768_v0 = vrot.slane %v19003_v11, %v15800_v5 }
 0xf42   : > { %v9420_v9 = vpop.trf.xlu0  ;;  %v19004_v12 = vcombine.high %v17561_v3, %v17567_v6  ;;  %v17786_v3 = vrot.slane %v19005_v18, %v15800_v5  ;;  %v19006_v6 = vcombine.high %v17564_v43, %v17570_v42  ;;  %v10300_v42 = vrot.slane %v10292_v14, %v15797_v62 }
 0xf43   : > { %v9764_v50 = vcombine.low %v17603_v28, %v9420_v9  ;;  %v9765_v44 = vcombine.high %v17603_v28, %v9420_v9  ;;  %v9892_v36 = vrot.slane %v9884_v2, %v15797_v62  ;;  %v10307_v2 = vrot.slane %v10293_v27, %v15797_v62 }
 0xf44   : > { %v17774_v59 = vrot.slane %v19004_v12, %v15800_v5  ;;  %v9436_v58 = vpop.trf.xlu1  ;;  %v17792_v48 = vrot.slane %v19006_v6, %v15800_v5  ;;  %v10436_v4 = vrot.slane %v10428_v21, %v15797_v62  ;;  %v10443_v27 = vrot.slane %v10429_v7, %v15797_v62 }
 0xf45   : > { %v9772_v51 = vrot.slane %v9764_v50, %v15797_v62  ;;  %v9779_v28 = vrot.slane %v9765_v44, %v15797_v62  ;;  %v9900_v39 = vcombine.low %v17612_v22, %v9436_v58  ;;  %v9901_v29 = vcombine.high %v17612_v22, %v9436_v58 }
 0xf46   : > { %v9421_v9 = vpop.trf.xlu0 }
 0xf47   : > { %v9812_v34 = vcombine.low %v9756_v47, %v9772_v51  ;;  %v9813_v25 = vcombine.high %v9756_v47, %v9772_v51  ;;  %v9828_v22 = vcombine.low %v9763_v61, %v9779_v28  ;;  %v9829_v50 = vcombine.high %v9763_v61, %v9779_v28 }
 0xf48   : > { %v9908_v44 = vrot.slane %v9900_v39, %v15797_v62  ;;  %v9915_v11 = vrot.slane %v9901_v29, %v15797_v62  ;;  %v10308_v12 = vcombine.low %v17619_v30, %v9421_v9  ;;  %v10309_v58 = vcombine.high %v17619_v30, %v9421_v9  ;;  %v9437_v43 = vpop.trf.xlu1 }
 0xf49   : > { %v9820_v18 = vrot.slane %v9812_v34, %v15800_v5  ;;  %v10444_v30 = vcombine.low %v17624_v16, %v9437_v43  ;;  %v10445_v14 = vcombine.high %v17624_v16, %v9437_v43  ;;  %v9827_v21 = vrot.slane %v9813_v25, %v15800_v5 }
 0xf4a   : > { %v9948_v47 = vcombine.low %v9892_v36, %v9908_v44  ;;  %v9949_v51 = vcombine.high %v9892_v36, %v9908_v44  ;;  %v9964_v61 = vcombine.low %v9899_v17, %v9915_v11  ;;  %v9965_v28 = vcombine.high %v9899_v17, %v9915_v11  ;;  %v17804_v39 = vpop.trf.xlu0 }
 0xf4b   : > { %v10316_v29 = vrot.slane %v10308_v12, %v15797_v62  ;;  %v10323_v6 = vrot.slane %v10309_v58, %v15797_v62  ;;  %v17810_v9 = vpop.f32.mrb[16].mxu0  ;;  %v17815_v36 = vrot.slane %v9828_v22, %v15800_v5  ;;  %v10452_v43 = vrot.slane %v10444_v30, %v15797_v62 }
 0xf4c   : > { %19007 = vst [vmem:[#allocation85_spill] sm:$0xff] %v17810_v9  ;;  %v9956_v17 = vrot.slane %v9948_v47, %v15800_v5  ;;  %v17818_v34 = vpop.trf.xlu1  ;;  %v13722_v44 = vpop.f32.mrb[17].mxu0  ;;  %v10459_v7 = vrot.slane %v10445_v14, %v15797_v62  ;;  %v17827_v9 = vcombine.low %v17629_v45, %v9820_v18  ;;  %v9979_v41 = vrot.slane %v9965_v28, %v15800_v5 }
 0xf4d   : > { %v10356_v11 = vcombine.low %v10300_v42, %v10316_v29  ;;  %v10357_v12 = vcombine.high %v10300_v42, %v10316_v29  ;;  %v10372_v58 = vcombine.low %v10307_v2, %v10323_v6  ;;  %v10373_v55 = vcombine.high %v10307_v2, %v10323_v6  ;;  %v8752_v20 = vpop.f32.mrb[18].mxu0  ;;  %v17820_v16 = vpop.f32.mrb[44].mxu1 }
 0xf4e   : > { %19008 = vst [vmem:[#allocation94_spill] sm:$0xff] %v17820_v16  ;;  %v17824_v25 = vpop.trf.xlu0  ;;  %v13723_v22 = vpop.f32.mrb[19].mxu0  ;;  %v17830_v47 = vcombine.low %v17636_v52, %v9956_v17  ;;  %v17833_v42 = vrot.slane %v9829_v50, %v15800_v5  ;;  %v9963_v20 = vrot.slane %v9949_v51, %v15800_v5  ;;  %v9972_v2 = vrot.slane %v9964_v61, %v15800_v5 }
 0xf4f   : > { %v17838_v29 = vrot.slane %v10373_v55, %v15800_v5  ;;  %v13730_v6 = vpop.f32.mrb[45].mxu1  ;;  %v10492_v30 = vcombine.low %v10436_v4, %v10452_v43  ;;  %v10493_v14 = vcombine.high %v10436_v4, %v10452_v43  ;;  %v10508_v44 = vcombine.low %v10443_v27, %v10459_v7 }
 0xf50   : > { %v10509_v22 = vcombine.high %v10443_v27, %v10459_v7  ;;  %v8795_v16 = vpop.f32.mrb[46].mxu1  ;;  %v17840_v24 = vpop.trf.xlu1  ;;  %v17844_v50 = vrot.slane %v10356_v11, %v15800_v5  ;;  %v17847_v51 = vrot.slane %v10357_v12, %v15800_v5  ;;  %v17854_v4 = vrot.slane %v10372_v58, %v15800_v5 }
 0xf51   : > { %19009 = vst [vmem:[#allocation92_spill] sm:$0xff] %v17838_v29  ;;  %v17851_v55 = vcombine.high %v17660_v40, %v17838_v29  ;;  %v13731_v61 = vpop.f32.mrb[47].mxu1  ;;  %v10664_v28 = vshrl.u32 %v17827_v9, 16  ;;  %v10665_v11 = vshrl.u32 %v17830_v47, 16  ;;  %v17863_v12 = vrot.slane %v10492_v30, %v15800_v5 }
 0xf52   : > { %19011 = vst [vmem:[#allocation79_spill] sm:$0xff] %v17854_v4  ;;  %v17856_v27 = vpop.trf.xlu0  ;;  %v17868_v7 = vcombine.high %v17629_v45, %v9820_v18  ;;  %v17871_v58 = vcombine.high %v17636_v52, %v9956_v17  ;;  %v17874_v6 = vcombine.low %v17632_v26, %v9827_v21  ;;  %v17877_v61 = vrot.slane %v10493_v14, %v15800_v5 }
 0xf53   : > { %19010 = vst [vmem:[#allocation89_spill] sm:$0xff] %v17851_v55  ;;  %v17865_v43 = vpop.f32.mrb[20].mxu0  ;;  %v17880_v16 = vrot.slane %v10508_v44, %v15800_v5  ;;  %v17888_v45 = vcombine.high %v17639_v10, %v9963_v20  ;;  %v17891_v52 = vrot.slane %v10509_v22, %v15800_v5  ;;  %v17897_v44 = vcombine.high %v17632_v26, %v9827_v21 }
 0xf54   : > { %19012 = vst [vmem:[#allocation77_spill] sm:$0xff] %v17865_v43  ;;  %19013 = vst [vmem:[#allocation67_spill] sm:$0xff] %v17874_v6  ;;  %v17882_v55 = vpop.trf.xlu1  ;;  %v13738_v30 = vpop.f32.mrb[21].mxu0  ;;  %v17885_v43 = vcombine.low %v17639_v10, %v9963_v20  ;;  %v10673_v14 = vshrl.u32 %v17871_v58, 16  ;;  %v17905_v10 = vpack.i.b16 %v10665_v11, %v10664_v28  ;;  %v10672_v22 = vshrl.u32 %v17868_v7, 16 }
 0xf55   : > { %19014 = vst [vmem:[#allocation65_spill] sm:$0xff] %v17880_v16  ;;  %19016 = vst [vmem:[#allocation68_spill] sm:$0xff] %v17891_v52  ;;  %v8838_v18 = vpop.f32.mrb[22].mxu0  ;;  %v17893_v17 = vpop.f32.mrb[48].mxu1  ;;  %v17901_v30 = vcombine.low %v17642_v49, %v17815_v36  ;;  %v17932_v21 = vcombine.low %v17667_v1, %v17833_v42 }
 0xf56   : > { %19015 = vst [vmem:[#allocation78_spill] sm:$0xff] %v17885_v43  ;;  %19017 = vst [vmem:[#allocation66_spill] sm:$0xff] %v17893_v17  ;;  %v17903_v40 = vpop.trf.xlu0  ;;  %v13739_v29 = vpop.f32.mrb[23].mxu0  ;;  %v17921_v20 = vpack.i.b16 %v10673_v14, %v10672_v22  ;;  %v17925_v18 = vcombine.high %v17642_v49, %v17815_v36  ;;  %v17939_v22 = vcombine.low %v17670_v13, %v9979_v41 }
 0xf57   : > { %19018 = vst [vmem:[#allocation64_spill] sm:$0xff] %v17901_v30  ;;  %v13746_v17 = vpop.f32.mrb[49].mxu1  ;;  %v17917_v29 = vcombine.low %v17654_v32, %v9972_v2 }
 0xf58   : > { %v8881_v28 = vpop.f32.mrb[50].mxu1  ;;  %v17919_v11 = vpop.trf.xlu1  ;;  %19020 = vst [vmem:[#allocation69_spill] sm:$0xff] %v17925_v18  ;;  %v17928_v17 = vcombine.high %v17654_v32, %v9972_v2  ;;  %v10704_v36 = vshrl.u32 %v17925_v18, 16  ;;  %v10713_v32 = vshrl.u32 %v17939_v22, 16  ;;  %v17957_v18 = vcombine.high %v17667_v1, %v17833_v42 }
 0xf59   : > { %19019 = vst [vmem:[#allocation93_spill] sm:$0xff] %v17917_v29  ;;  %v13747_v52 = vpop.f32.mrb[51].mxu1  ;;  %v10696_v28 = vshrl.u32 %v17901_v30, 16  ;;  %v10697_v14 = vshrl.u32 %v17917_v29, 16 }
 0xf5a   : > { %19021 = vst [vmem:[#allocation70_spill] sm:$0xff] %v17928_v17  ;;  %v9132_v49 = vpop.trf.xlu0  ;;  %v10705_v2 = vshrl.u32 %v17928_v17, 16  ;;  %v10712_v52 = vshrl.u32 %v17932_v21, 16  ;;  %19022 = vst [vmem:[#allocation71_spill] sm:$0xff] %v17957_v18  ;;  %v17960_v17 = vcombine.high %v17670_v13, %v9979_v41  ;;  %v10720_v1 = vshrl.u32 %v17957_v18, 16 }
 0xf5b   : > { %v9476_v16 = vcombine.low %v17804_v39, %v9132_v49  ;;  %v9477_v26 = vcombine.high %v17804_v39, %v9132_v49  ;;  %v17948_v30 = vpack.i.b16 %v10697_v14, %v10696_v28 }
 0xf5c   : > { %v9148_v6 = vpop.trf.xlu1  ;;  %v17952_v43 = vpack.i.b16 %v10705_v2, %v10704_v36  ;;  %19023 = vst [vmem:[#allocation72_spill] sm:$0xff] %v17960_v17  ;;  %v17966_v36 = vpack.i.b16 %v10713_v32, %v10712_v52  ;;  %v10721_v42 = vshrl.u32 %v17960_v17, 16  ;;  %v17984_v32 = vcombine.low %v17673_v38, %v17863_v12 }
 0xf5d   : > { %v9484_v4 = vrot.slane %v9476_v16, %v15797_v62  ;;  %v9491_v39 = vrot.slane %v9477_v26, %v15797_v62  ;;  %v9612_v28 = vcombine.low %v17818_v34, %v9148_v6  ;;  %v9613_v14 = vcombine.high %v17818_v34, %v9148_v6 }
 0xf5e   : > { %v9133_v49 = vpop.trf.xlu0  ;;  %v17976_v34 = vpack.i.b16 %v10721_v42, %v10720_v1  ;;  %v17980_v6 = vcombine.low %v17645_v33, %v17844_v50  ;;  %19026 = vst [vmem:[#allocation97_spill] sm:$0xff] %v17984_v32  ;;  %v17988_v52 = vcombine.high %v17645_v33, %v17844_v50  ;;  %v18002_v33 = vcombine.high %v17673_v38, %v17863_v12 }
 0xf5f   : > { %v9620_v41 = vrot.slane %v9612_v28, %v15797_v62  ;;  %v9627_v13 = vrot.slane %v9613_v14, %v15797_v62  ;;  %v10020_v16 = vcombine.low %v17824_v25, %v9133_v49  ;;  %v10021_v26 = vcombine.high %v17824_v25, %v9133_v49 }
 0xf60   : > { %v9149_v29 = vpop.trf.xlu1  ;;  %19024 = vst [vmem:[#allocation95_spill] sm:$0xff] %v17976_v34  ;;  %19025 = vst [vmem:[#allocation73_spill] sm:$0xff] %v17980_v6  ;;  %v10728_v2 = vshrl.u32 %v17980_v6, 16  ;;  %v10729_v34 = vshrl.u32 %v17984_v32, 16  ;;  %v10736_v32 = vshrl.u32 %v17988_v52, 16  ;;  %v10737_v38 = vshrl.u32 %v18002_v33, 16 }
 0xf61   : > { %19027 = vst [vmem:[#allocation96_spill] sm:$0xff] %v17988_v52  ;;  %v10028_v28 = vrot.slane %v10020_v16, %v15797_v62  ;;  %v17992_v14 = vrot.slane %v10021_v26, %v15797_v62  ;;  %v10156_v25 = vcombine.low %v17840_v24, %v9149_v29  ;;  %v10157_v49 = vcombine.high %v17840_v24, %v9149_v29 }
 0xf62   : > { %v9164_v1 = vpop.trf.xlu0  ;;  %19028 = vst [vmem:[#allocation74_spill] sm:$0xff] %v18002_v33  ;;  %v18012_v42 = vpack.i.b16 %v10729_v34, %v10728_v2  ;;  %v18026_v2 = vcombine.low %v17648_v53, %v17847_v51  ;;  %v18030_v34 = vcombine.low %v17676_v35, %v17877_v61 }
 0xf63   : > { %v18005_v50 = vrot.slane %v10156_v25, %v15797_v62  ;;  %v18008_v16 = vrot.slane %v10157_v49, %v15797_v62  ;;  %v9492_v24 = vcombine.low %v17856_v27, %v9164_v1  ;;  %v9493_v29 = vcombine.high %v17856_v27, %v9164_v1 }
 0xf64   : > { %v9180_v26 = vpop.trf.xlu1  ;;  %19029 = vst [vmem:[#allocation75_spill] sm:$0xff] %v18012_v42  ;;  %v18022_v27 = vpack.i.b16 %v10737_v38, %v10736_v32  ;;  %19031 = vst [vmem:[#allocation61_spill] sm:$0xff] %v18026_v2  ;;  %v18034_v1 = vcombine.high %v17648_v53, %v17847_v51 }
 0xf65   : > { %v9500_v12 = vrot.slane %v9492_v24, %v15797_v62  ;;  %v9507_v25 = vrot.slane %v9493_v29, %v15797_v62  ;;  %v9628_v49 = vcombine.low %v17882_v55, %v9180_v26  ;;  %v9629_v18 = vcombine.high %v17882_v55, %v9180_v26  ;;  %19032 = vst [vmem:[#allocation63_spill] sm:$0xff] %v18030_v34 }
 0xf66   : > { %v9165_v17 = vpop.trf.xlu0  ;;  %19030 = vst [vmem:[#allocation76_spill] sm:$0xff] %v18022_v27  ;;  %19033 = vst [vmem:[#allocation90_spill] sm:$0xff] %v18034_v1 }
 0xf67   : > { %v9540_v24 = vcombine.low %v9484_v4, %v9500_v12  ;;  %v9541_v29 = vcombine.high %v9484_v4, %v9500_v12  ;;  %v9556_v6 = vcombine.low %v9491_v39, %v9507_v25  ;;  %v9557_v52 = vcombine.high %v9491_v39, %v9507_v25 }
 0xf68   : > { %v9636_v55 = vrot.slane %v9628_v49, %v15797_v62  ;;  %v9643_v32 = vrot.slane %v9629_v18, %v15797_v62  ;;  %v10036_v26 = vcombine.low %v17903_v40, %v9165_v17  ;;  %v10037_v38 = vcombine.high %v17903_v40, %v9165_v17  ;;  %v9181_v27 = vpop.trf.xlu1 }
 0xf69   : > { %v9548_v33 = vrot.slane %v9540_v24, %v15800_v5  ;;  %v9555_v42 = vrot.slane %v9541_v29, %v15800_v5  ;;  %v9564_v53 = vrot.slane %v9556_v6, %v15800_v5  ;;  %v18044_v51 = vrot.slane %v9557_v52, %v15800_v5 }
 0xf6a   : > { %v9676_v4 = vcombine.low %v9620_v41, %v9636_v55  ;;  %v9677_v39 = vcombine.high %v9620_v41, %v9636_v55  ;;  %v9692_v12 = vcombine.low %v9627_v13, %v9643_v32  ;;  %v9693_v25 = vcombine.high %v9627_v13, %v9643_v32 }
 0xf6b   : > { %v10044_v18 = vrot.slane %v10036_v26, %v15797_v62  ;;  %v10051_v49 = vrot.slane %v10037_v38, %v15797_v62  ;;  %v10172_v40 = vcombine.low %v17919_v11, %v9181_v27  ;;  %v10173_v17 = vcombine.high %v17919_v11, %v9181_v27 }
 0xf6c   : > { %v9684_v24 = vrot.slane %v9676_v4, %v15800_v5  ;;  %v9691_v29 = vrot.slane %v9677_v39, %v15800_v5  ;;  %v9700_v6 = vrot.slane %v9692_v12, %v15800_v5  ;;  %v18054_v52 = vrot.slane %v9693_v25, %v15800_v5 }
 0xf6d   : > { %v10084_v41 = vcombine.low %v10028_v28, %v10044_v18  ;;  %v10085_v55 = vcombine.high %v10028_v28, %v10044_v18  ;;  %v10100_v13 = vcombine.low %v17992_v14, %v10051_v49  ;;  %v10101_v32 = vcombine.high %v17992_v14, %v10051_v49 }
 0xf6e   : > { %v10180_v26 = vrot.slane %v10172_v40, %v15797_v62  ;;  %v10187_v38 = vrot.slane %v10173_v17, %v15797_v62  ;;  %v9572_v11 = vcombine.low %v17688_v60, %v9548_v33  ;;  %v9708_v27 = vcombine.low %v17714_v46, %v9684_v24 }
 0xf6f   : > { %v18063_v4 = vrot.slane %v10084_v41, %v15800_v5  ;;  %v18066_v39 = vrot.slane %v10085_v55, %v15800_v5  ;;  %v18069_v28 = vrot.slane %v10100_v13, %v15800_v5  ;;  %v18072_v12 = vrot.slane %v10101_v32, %v15800_v5 }
 0xf70   : > { %v10220_v14 = vcombine.low %v18005_v50, %v10180_v26  ;;  %v10221_v25 = vcombine.high %v18005_v50, %v10180_v26  ;;  %v10236_v18 = vcombine.low %v18008_v16, %v10187_v38  ;;  %v10237_v49 = vcombine.high %v18008_v16, %v10187_v38 }
 0xf71   : > { %v18080_v40 = vcombine.high %v17760_v57, %v18072_v12  ;;  %v10534_v17 = vpack.i.b16 %v9708_v27, %v9572_v11  ;;  %v10536_v41 = vshrl.u32 %v9572_v11, 16  ;;  %v10537_v55 = vshrl.u32 %v9708_v27, 16 }
 0xf72   : > { %v10228_v13 = vrot.slane %v10220_v14, %v15800_v5  ;;  %v18084_v32 = vrot.slane %v10221_v25, %v15800_v5  ;;  %v18087_v62 = vrot.slane %v10236_v18, %v15800_v5  ;;  %v18090_v50 = vrot.slane %v10237_v49, %v15800_v5 }
 0xf73   : > { %10788 = vxpose.xlu0.c.b16.start [1/2] (short) (narrow) %v10534_v17, 16  ;;  %v10538_v16 = vpack.i.b16 %v10537_v55, %v10536_v41  ;;  %v9573_v26 = vcombine.high %v17688_v60, %v9548_v33  ;;  %v9709_v38 = vcombine.high %v17714_v46, %v9684_v24  ;;  %v18095_v11 = vcombine.low %v17694_v15, %v9555_v42 }
 0xf74   : > { %v18099_v27 = vcombine.high %v17792_v48, %v18090_v50  ;;  %v18102_v14 = vcombine.low %v17721_v63, %v9691_v29  ;;  %v18105_v25 = vcombine.high %v17694_v15, %v9555_v42  ;;  %v18108_v18 = vcombine.high %v17721_v63, %v9691_v29 }
 0xf75   : > { %10804 = vxpose.xlu1.c.b16.start [1/2] (short) (narrow) %v10538_v16, 16  ;;  %v10542_v60 = vpack.i.b16 %v9709_v38, %v9573_v26  ;;  %v10544_v33 = vshrl.u32 %v9573_v26, 16  ;;  %v10545_v46 = vshrl.u32 %v9709_v38, 16  ;;  %v10552_v24 = vshrl.u32 %v18095_v11, 16 }
 0xf76   : > { %v10550_v49 = vpack.i.b16 %v18102_v14, %v18095_v11  ;;  %v10553_v17 = vshrl.u32 %v18102_v14, 16  ;;  %v10560_v15 = vshrl.u32 %v18105_v25, 16  ;;  %v19034_v63 = vpack.i.b16 %v17830_v47, %v17827_v9 }
 0xf77   : > { %v10546_v42 = vpack.i.b16 %v10545_v46, %v10544_v33  ;;  %v10561_v29 = vshrl.u32 %v18108_v18, 16  ;;  %v18122_v55 = vcombine.low %v17702_v54, %v9564_v53  ;;  %v18125_v16 = vcombine.low %v17727_v8, %v9700_v6 }
 0xf78   : > { %10789 = vxpose.xlu0.c.b16.end [2/2] (short) (narrow) %v19034_v63, 16  ;;  %v10554_v26 = vpack.i.b16 %v10553_v17, %v10552_v24  ;;  %v18128_v38 = vcombine.high %v17702_v54, %v9564_v53  ;;  %v18131_v11 = vcombine.high %v17727_v8, %v9700_v6  ;;  %v18135_v9 = vcombine.low %v17708_v23, %v18044_v51 }
 0xf79   : > { %10805 = vxpose.xlu1.c.b16.end [2/2] (short) (narrow) %v17905_v10, 16  ;;  %v18138_v47 = vpack.i.b16 %v10561_v29, %v10560_v15  ;;  %v10568_v33 = vshrl.u32 %v18122_v55, 16  ;;  %v10569_v46 = vshrl.u32 %v18125_v16, 16  ;;  %v18150_v6 = vcombine.low %v17735_v31, %v18054_v52 }
 0xf7a   : > { %v10576_v8 = vshrl.u32 %v18128_v38, 16  ;;  %v10577_v53 = vshrl.u32 %v18131_v11, 16  ;;  %v10584_v24 = vshrl.u32 %v18135_v9, 16  ;;  %v18157_v17 = vcombine.high %v17708_v23, %v18044_v51 }
 0xf7b   : > { %v18152_v10 = vpack.i.b16 %v10569_v46, %v10568_v33  ;;  %v18161_v15 = vcombine.high %v17735_v31, %v18054_v52  ;;  %v10585_v54 = vshrl.u32 %v18150_v6, 16  ;;  %v18177_v52 = vcombine.low %v17768_v0, %v10228_v13 }
 0xf7c   : > { %10820 = vxpose.xlu0.c.b16.start [1/2] (short) (narrow) %v10542_v60, 16  ;;  %v18163_v63 = vpack.i.b16 %v10577_v53, %v10576_v8  ;;  %v18170_v60 = vcombine.low %v17741_v37, %v18063_v4  ;;  %v10592_v51 = vshrl.u32 %v18157_v17, 16  ;;  %v18184_v8 = vcombine.high %v17741_v37, %v18063_v4 }
 0xf7d   : > { %10836 = vxpose.xlu1.c.b16.start [1/2] (short) (narrow) %v10546_v42, 16  ;;  %v10593_v31 = vshrl.u32 %v18161_v15, 16  ;;  %v18179_v33 = vpack.i.b16 %v10585_v54, %v10584_v24  ;;  %v18187_v42 = vcombine.high %v17768_v0, %v10228_v13  ;;  %v19035_v53 = vpack.i.b16 %v17871_v58, %v17868_v7 }
 0xf7e   : > { %v10600_v46 = vshrl.u32 %v18170_v60, 16  ;;  %v10601_v54 = vshrl.u32 %v18177_v52, 16  ;;  %v18199_v24 = vcombine.low %v17747_v19, %v18066_v39  ;;  %v10608_v0 = vshrl.u32 %v18184_v8, 16 }
 0xf7f   : > { %v18192_v23 = vpack.i.b16 %v10593_v31, %v10592_v51  ;;  %v10609_v4 = vshrl.u32 %v18187_v42, 16  ;;  %v18207_v7 = vcombine.low %v17774_v59, %v18084_v32  ;;  %v10744_v31 = vshrl.u32 %v18026_v2, 16 }
 0xf80   : > { %10821 = vxpose.xlu0.c.b16.end [2/2] (short) (narrow) %v19035_v53, 16  ;;  %19036 = vst [vmem:[#allocation91_spill] sm:$0xff] %v18199_v24  ;;  %v18210_v58 = vpack.i.b16 %v10601_v54, %v10600_v46  ;;  %v10616_v13 = vshrl.u32 %v18199_v24, 16  ;;  %v10745_v14 = vshrl.u32 %v18030_v34, 16  ;;  %v18225_v46 = vcombine.high %v17747_v19, %v18066_v39  ;;  %v19045_v19 = vld [vmem:[#allocation67_spill] sm:$0xff] }
 0xf81   : > { %10837 = vxpose.xlu1.c.b16.end [2/2] (short) (narrow) %v17921_v20, 16  ;;  %v18216_v53 = vpack.i.b16 %v10609_v4, %v10608_v0  ;;  %v10617_v29 = vshrl.u32 %v18207_v7, 16  ;;  %v10689_v20 = vshrl.u32 %v17888_v45, 16  ;;  %v18229_v54 = vcombine.high %v17774_v59, %v18084_v32 }
 0xf82   : > { %19037 = vst [vmem:[#allocation86_spill] sm:$0xff] %v18225_v46  ;;  %v18233_v0 = vcombine.high %v17676_v35, %v17877_v61  ;;  %v10688_v4 = vshrl.u32 %v17897_v44, 16  ;;  %v18238_v37 = vpack.i.b16 %v10745_v14, %v10744_v31  ;;  %v10624_v39 = vshrl.u32 %v18225_v46, 16  ;;  %v19044_v31 = vld [vmem:[#allocation78_spill] sm:$0xff] }
 0xf83   : > { %19038 = vst [vmem:[#allocation82_spill] sm:$0xff] %v18229_v54  ;;  %v18236_v51 = vpack.i.b16 %v10617_v29, %v10616_v13  ;;  %v10625_v59 = vshrl.u32 %v18229_v54, 16  ;;  %v18250_v32 = vcombine.low %v17754_v56, %v18069_v28  ;;  %v18254_v14 = vcombine.low %v17786_v3, %v18087_v62  ;;  %v19043_v29 = vld [vmem:[#allocation87_spill] sm:$0xff]  ;;  %v19049_v54 = vld [vmem:[#allocation65_spill] sm:$0xff] }
 0xf84   : > { %10852 = vxpose.xlu0.c.b16.start [1/2] (short) (narrow) %v10550_v49, 16  ;;  %19039 = vst [vmem:[#allocation83_spill] sm:$0xff] %v18233_v0  ;;  %19041 = vst [vmem:[#allocation62_spill] sm:$0xff] %v18238_v37  ;;  %v10752_v49 = vshrl.u32 %v18034_v1, 16  ;;  %v10753_v61 = vshrl.u32 %v18233_v0, 16  ;;  %v19046_v41 = vpack.i.b16 %v19044_v31, %v19045_v19  ;;  %v19047_v35 = vshrl.u32 %v19045_v19, 16 }
 0xf85   : > { %19040 = vst [vmem:[#allocation88_spill] sm:$0xff] %v18236_v51  ;;  %10868 = vxpose.xlu1.c.b16.start [1/2] (short) (narrow) %v10554_v26, 16  ;;  %v19042_v26 = vld [vmem:[#allocation79_spill] sm:$0xff]  ;;  %v19048_v5 = vshrl.u32 %v19044_v31, 16  ;;  %v10690_v0 = vpack.i.b16 %v10689_v20, %v10688_v4  ;;  %v18267_v46 = vpack.i.b16 %v10625_v59, %v10624_v39  ;;  %v19050_v37 = vld [vmem:[#allocation80_spill] sm:$0xff]  ;;  %v10630_v51 = vpack.i.b16 %v18254_v14, %v18250_v32 }
 0xf86   : > { %v18258_v13 = vcombine.low %v19043_v29, %v19042_v26  ;;  %v18271_v2 = vcombine.low %v19050_v37, %v19049_v54  ;;  %v18273_v34 = vpack.i.b16 %v10753_v61, %v10752_v49  ;;  %v10632_v24 = vshrl.u32 %v18250_v32, 16  ;;  %v19052_v61 = vld [vmem:[#allocation92_spill] sm:$0xff] }
 0xf87   : > { %v10682_v1 = vpack.i.b16 %v19048_v5, %v19047_v35  ;;  %v18285_v19 = vcombine.high %v17754_v56, %v18069_v28  ;;  %v18291_v39 = vcombine.high %v17786_v3, %v18087_v62  ;;  %v18299_v59 = vcombine.high %v19050_v37, %v19049_v54  ;;  %v19054_v31 = vld [vmem:[#allocation68_spill] sm:$0xff] }
 0xf88   : > { %10853 = vxpose.xlu0.c.b16.end [2/2] (short) (narrow) %v19046_v41, 16  ;;  %v10633_v41 = vshrl.u32 %v18254_v14, 16  ;;  %v10758_v5 = vpack.i.b16 %v18271_v2, %v18258_v13  ;;  %v10760_v20 = vshrl.u32 %v18258_v13, 16  ;;  %v10761_v4 = vshrl.u32 %v18271_v2, 16 }
 0xf89   : > { %10869 = vxpose.xlu1.c.b16.end [2/2] (short) (narrow) %v10682_v1, 16  ;;  %v18295_v1 = vcombine.high %v19043_v29, %v19042_v26  ;;  %v19051_v35 = vpack.i.b16 %v18108_v18, %v18105_v25  ;;  %v10640_v28 = vshrl.u32 %v18285_v19, 16  ;;  %v18309_v62 = vcombine.low %v17760_v57, %v18072_v12  ;;  %v19053_v26 = vld [vmem:[#allocation81_spill] sm:$0xff] }
 0xf8a   : > { %v18287_v49 = vpack.i.b16 %v10633_v41, %v10632_v24  ;;  %v18304_v56 = vpack.i.b16 %v10761_v4, %v10760_v20  ;;  %v18313_v3 = vcombine.low %v17792_v48, %v18090_v50  ;;  %v10638_v24 = vpack.i.b16 %v18291_v39, %v18285_v19  ;;  %v19055_v41 = vld [vmem:[#allocation84_spill] sm:$0xff] }
 0xf8b   : > { %v10641_v37 = vshrl.u32 %v18291_v39, 16  ;;  %v10766_v25 = vpack.i.b16 %v18299_v59, %v18295_v1  ;;  %v10768_v18 = vshrl.u32 %v18295_v1, 16  ;;  %v10769_v54 = vshrl.u32 %v18299_v59, 16 }
 0xf8c   : > { %10884 = vxpose.xlu0.c.b16.start [1/2] (short) (narrow) %v19051_v35, 16  ;;  %v10648_v48 = vshrl.u32 %v18309_v62, 16  ;;  %v10649_v12 = vshrl.u32 %v18313_v3, 16  ;;  %v18331_v29 = vcombine.low %v19053_v26, %v19052_v61  ;;  %v18335_v20 = vcombine.low %v19055_v41, %v19054_v31 }
 0xf8d   : > { %10900 = vxpose.xlu1.c.b16.start [1/2] (short) (narrow) %v18138_v47, 16  ;;  %v18327_v50 = vpack.i.b16 %v10641_v37, %v10640_v28  ;;  %v18339_v47 = vcombine.high %v19055_v41, %v19054_v31  ;;  %v19056_v4 = vpack.i.b16 %v17888_v45, %v17897_v44  ;;  %v18344_v35 = vpack.i.b16 %v10769_v54, %v10768_v18  ;;  %v19057_v44 = vld [vmem:[#allocation89_spill] sm:$0xff] }
 0xf8e   : > { %v18346_v28 = vpack.i.b16 %v10649_v12, %v10648_v48  ;;  %v10656_v37 = vshrl.u32 %v18080_v40, 16  ;;  %v10657_v61 = vshrl.u32 %v18099_v27, 16  ;;  %v10776_v57 = vshrl.u32 %v18331_v29, 16 }
 0xf8f   : > { %v10777_v31 = vshrl.u32 %v18335_v20, 16  ;;  %v10784_v18 = vshrl.u32 %v19057_v44, 16  ;;  %v10785_v54 = vshrl.u32 %v18339_v47, 16  ;;  %v10782_v48 = vpack.i.b16 %v18339_v47, %v19057_v44 }
 0xf90   : > { %10885 = vxpose.xlu0.c.b16.end [2/2] (short) (narrow) %v19056_v4, 16  ;;  %v18356_v45 = vpack.i.b16 %v10657_v61, %v10656_v37  ;;  %v19058_v4 = vpack.i.b16 %v18125_v16, %v18122_v55  ;;  %v19060_v37 = vld [vmem:[#allocation64_spill] sm:$0xff]  ;;  %v19062_v41 = vpack.i.b16 %v18131_v11, %v18128_v38  ;;  %v19066_v16 = vpack.i.b16 %v18150_v6, %v18135_v9  ;;  %v19072_v9 = vld [vmem:[#allocation95_spill] sm:$0xff] }
 0xf91   : > { %10901 = vxpose.xlu1.c.b16.end [2/2] (short) (narrow) %v10690_v0, 16  ;;  %v18362_v12 = vpack.i.b16 %v10777_v31, %v10776_v57  ;;  %v18367_v26 = vpack.i.b16 %v10785_v54, %v10784_v18  ;;  %v19059_v0 = vld [vmem:[#allocation93_spill] sm:$0xff]  ;;  %v19063_v57 = vld [vmem:[#allocation70_spill] sm:$0xff]  ;;  %v19068_v38 = vpack.i.b16 %v18161_v15, %v18157_v17  ;;  %v19069_v11 = vld [vmem:[#allocation72_spill] sm:$0xff]  ;;  %v19073_v6 = vpack.i.b16 %v18177_v52, %v18170_v60 }
 0xf92   : > { %v19061_v61 = vpack.i.b16 %v19059_v0, %v19060_v37  ;;  %v19064_v31 = vld [vmem:[#allocation69_spill] sm:$0xff]  ;;  %v19077_v17 = vld [vmem:[#allocation75_spill] sm:$0xff]  ;;  %v19078_v15 = vpack.i.b16 %v18187_v42, %v18184_v8  ;;  %v19082_v60 = vld [vmem:[#allocation76_spill] sm:$0xff] }
 0xf93   : > { %v19065_v55 = vpack.i.b16 %v19063_v57, %v19064_v31  ;;  %v19083_v52 = vld [vmem:[#allocation91_spill] sm:$0xff]  ;;  %v19087_v54 = vld [vmem:[#allocation61_spill] sm:$0xff]  ;;  %v19089_v8 = vld [vmem:[#allocation62_spill] sm:$0xff] }
 0xf94   : > { %10916 = vxpose.xlu0.c.b16.start [1/2] (short) (narrow) %v19058_v4, 16  ;;  %v19086_v18 = vld [vmem:[#allocation63_spill] sm:$0xff]  ;;  %v19090_v42 = vld [vmem:[#allocation82_spill] sm:$0xff] }
 0xf95   : > { %10932 = vxpose.xlu1.c.b16.start [1/2] (short) (narrow) %v18152_v10, 16  ;;  %v19088_v4 = vpack.i.b16 %v19086_v18, %v19087_v54  ;;  %v19093_v37 = vld [vmem:[#allocation83_spill] sm:$0xff] }
 0xf98   : > { %10917 = vxpose.xlu0.c.b16.end [2/2] (short) (narrow) %v19061_v61, 16  ;;  %v19094_v61 = vld [vmem:[#allocation90_spill] sm:$0xff] }
 0xf99   : > { %10933 = vxpose.xlu1.c.b16.end [2/2] (short) (narrow) %v17948_v30, 16  ;;  %v19067_v30 = vpack.i.b16 %v17939_v22, %v17932_v21  ;;  %v19074_v21 = vld [vmem:[#allocation97_spill] sm:$0xff]  ;;  %v19095_v57 = vpack.i.b16 %v19093_v37, %v19094_v61 }
 0xf9a   : > { %v19075_v22 = vld [vmem:[#allocation73_spill] sm:$0xff] }
 0xf9c   : > { %10948 = vxpose.xlu0.c.b16.start [1/2] (short) (narrow) %v19062_v41, 16  ;;  %v19085_v41 = vld [vmem:[#allocation88_spill] sm:$0xff] }
 0xf9d   : > { %10964 = vxpose.xlu1.c.b16.start [1/2] (short) (narrow) %v18163_v63, 16  ;;  %v19079_v63 = vld [vmem:[#allocation74_spill] sm:$0xff] }
 0xfa0   : > { %10949 = vxpose.xlu0.c.b16.end [2/2] (short) (narrow) %v19065_v55, 16  ;;  %v19097_v55 = vld [vmem:[#allocation94_spill] sm:$0xff] }
 0xfa1   : > { %10965 = vxpose.xlu1.c.b16.end [2/2] (short) (narrow) %v17952_v43, 16  ;;  %v19070_v43 = vld [vmem:[#allocation71_spill] sm:$0xff] }
 0xfa2   : > { %v19071_v10 = vpack.i.b16 %v19069_v11, %v19070_v43 }
 0xfa4   : > { %10980 = vxpose.xlu0.c.b16.start [1/2] (short) (narrow) %v19066_v16, 16  ;;  %v8887_v16 = vsel %vm2864_vm1, %v19097_v55, -inf }
 0xfa5   : > { %10996 = vxpose.xlu1.c.b16.start [1/2] (short) (narrow) %v18179_v33, 16 }
 0xfa8   : > { %10981 = vxpose.xlu0.c.b16.end [2/2] (short) (narrow) %v19067_v30, 16 }
 0xfa9   : > { %10997 = vxpose.xlu1.c.b16.end [2/2] (short) (narrow) %v17966_v36, 16  ;;  %v19076_v36 = vpack.i.b16 %v19074_v21, %v19075_v22 }
 0xfac   : > { %11012 = vxpose.xlu0.c.b16.start [1/2] (short) (narrow) %v19068_v38, 16 }
 0xfad   : > { %11028 = vxpose.xlu1.c.b16.start [1/2] (short) (narrow) %v18192_v23, 16  ;;  %v19080_v23 = vld [vmem:[#allocation96_spill] sm:$0xff] }
 0xfae   : > { %v19081_v33 = vpack.i.b16 %v19079_v63, %v19080_v23 }
 0xfb0   : > { %11013 = vxpose.xlu0.c.b16.end [2/2] (short) (narrow) %v19071_v10, 16 }
 0xfb1   : > { %11029 = vxpose.xlu1.c.b16.end [2/2] (short) (narrow) %v19072_v9, 16 }
 0xfb4   : > { %11044 = vxpose.xlu0.c.b16.start [1/2] (short) (narrow) %v19073_v6, 16 }
 0xfb5   : > { %11060 = vxpose.xlu1.c.b16.start [1/2] (short) (narrow) %v18210_v58, 16  ;;  %v19084_v58 = vpack.i.b16 %v18207_v7, %v19083_v52  ;;  %v19096_v7 = vld [vmem:[#allocation85_spill] sm:$0xff]  ;;  %v19098_v52 = vld [vmem:[#allocation58_spill] sm:$0xff] }
 0xfb6   : > { %v8884_v31 = vsel %vm2864_vm1, %v19096_v7, -inf }
 0xfb8   : > { %11045 = vxpose.xlu0.c.b16.end [2/2] (short) (narrow) %v19076_v36, 16 }
 0xfb9   : > { %11061 = vxpose.xlu1.c.b16.end [2/2] (short) (narrow) %v19077_v17, 16 }
 0xfbc   : > { %11076 = vxpose.xlu0.c.b16.start [1/2] (short) (narrow) %v19078_v15, 16 }
 0xfbd   : > { %11092 = vxpose.xlu1.c.b16.start [1/2] (short) (narrow) %v18216_v53, 16  ;;  %v19091_v53 = vld [vmem:[#allocation86_spill] sm:$0xff] }
 0xfbe   : > { %v19092_v0 = vpack.i.b16 %v19090_v42, %v19091_v53 }
 0xfc0   : > { %11077 = vxpose.xlu0.c.b16.end [2/2] (short) (narrow) %v19081_v33, 16 }
 0xfc1   : > { %11093 = vxpose.xlu1.c.b16.end [2/2] (short) (narrow) %v19082_v60, 16 }
 0xfc4   : > { %11108 = vxpose.xlu0.c.b16.start [1/2] (short) (narrow) %v19084_v58, 16 }
 0xfc5   : > { %11124 = vxpose.xlu1.c.b16.start [1/2] (short) (narrow) %v19085_v41, 16 }
 0xfc8   : > { %11109 = vxpose.xlu0.c.b16.end [2/2] (short) (narrow) %v19088_v4, 16 }
 0xfc9   : > { %11125 = vxpose.xlu1.c.b16.end [2/2] (short) (narrow) %v19089_v8, 16 }
 0xfcc   : > { %11140 = vxpose.xlu0.c.b16.start [1/2] (short) (narrow) %v19092_v0, 16  ;;  %v19099_v0 = vld [vmem:[#allocation59_spill] sm:$0xff] }
 0xfcd   : > { %11156 = vxpose.xlu1.c.b16.start [1/2] (short) (narrow) %v18267_v46, 16 }
 0xfd0   : > { %11141 = vxpose.xlu0.c.b16.end [2/2] (short) (narrow) %v19095_v57, 16 }
 0xfd1   : > { %11157 = vxpose.xlu1.c.b16.end [2/2] (short) (narrow) %v18273_v34, 16 }
 0xfda   : > { %v10796_v30 = vpop.trf.xlu0 }
 0xfdb   : > { %v10812_v38 = vpop.trf.xlu1 }
 0xfdd   : > { %8885 = vmax.xlane.f32.xlu0 %v8884_v31 }
 0xfde   : > { %8888 = vmax.xlane.f32.xlu1 %v8887_v16 }
 0xfe2   : > { %v10828_v11 = vpop.trf.xlu0 }
 0xfe3   : > { %v10844_v43 = vpop.trf.xlu1 }
 0xfea   : > { %v10860_v10 = vpop.trf.xlu0 }
 0xfeb   : > { %v10876_v46 = vpop.trf.xlu1  ;;  %v11300_v17 = vcombine.low %v10796_v30, %v10860_v10  ;;  %v19100_v30 = vld [vmem:[#allocation66_spill] sm:$0xff] }
 0xfec   : > { %v11350_v23 = vcombine.low %v10812_v38, %v10876_v46  ;;  %v8893_v38 = vsel %vm2864_vm1, %v19100_v30, -inf  ;;  %v19101_v46 = vld [vmem:[#allocation77_spill] sm:$0xff] }
 0xfed   : > { %v11307_v58 = vrot.slane %v11300_v17, %v19098_v52 }
 0xff2   : > { %v10892_v9 = vpop.trf.xlu0 }
 0xff3   : > { %v10908_v6 = vpop.trf.xlu1  ;;  %v11308_v15 = vcombine.low %v10828_v11, %v10892_v9  ;;  %v8890_v9 = vsel %vm2864_vm1, %v19101_v46, -inf }
 0xff4   : > { %v11358_v33 = vcombine.low %v10844_v43, %v10908_v6 }
 0xff5   : > { %v11315_v41 = vrot.slane %v11308_v15, %v19098_v52 }
 0xff6   : > { %v11365_v32 = vrot.slane %v11358_v33, %v19098_v52 }
 0xff7   : > { %v11332_v54 = vcombine.low %v11307_v58, %v11315_v41 }
 0xff9   : > { %v11339_v37 = vrot.slane %v11332_v54, %v19099_v0 }
 0xffa   : > { %v10924_v21 = vpop.trf.xlu0 }
 0xffb   : > { %v10940_v22 = vpop.trf.xlu1 }
0x1002   : > { %v10956_v36 = vpop.trf.xlu0 }
0x1003   : > { %v10972_v34 = vpop.trf.xlu1 }
0x100a   : > { %11172 = vxpose.xlu0.c.b16.start [1/2] (short) (narrow) %v10630_v51, 16  ;;  %v10988_v63 = vpop.trf.xlu0  ;;  %v11357_v51 = vrot.slane %v11350_v23, %v19098_v52 }
0x100b   : > { %11188 = vxpose.xlu1.c.b16.start [1/2] (short) (narrow) %v18287_v49, 16  ;;  %v11004_v60 = vpop.trf.xlu1  ;;  %v11316_v18 = vcombine.low %v10924_v21, %v10988_v63 }
0x100c   : > { %v11366_v14 = vcombine.low %v10940_v22, %v11004_v60  ;;  %v11382_v13 = vcombine.low %v11357_v51, %v11365_v32 }
0x100d   : > { %v11323_v4 = vrot.slane %v11316_v18, %v19098_v52 }
0x100e   : > { %11173 = vxpose.xlu0.c.b16.end [2/2] (short) (narrow) %v10758_v5, 16  ;;  %v11373_v5 = vrot.slane %v11366_v14, %v19098_v52  ;;  %v11389_v57 = vrot.slane %v11382_v13, %v19099_v0 }
0x100f   : > { %11189 = vxpose.xlu1.c.b16.end [2/2] (short) (narrow) %v18304_v56, 16 }
0x1012   : > { %v11020_v49 = vpop.trf.xlu0 }
0x1013   : > { %v11324_v8 = vcombine.low %v10956_v36, %v11020_v49  ;;  %v11036_v2 = vpop.trf.xlu1 }
0x1014   : > { %v11374_v53 = vcombine.low %v10972_v34, %v11036_v2 }
0x1015   : > { %v11331_v42 = vrot.slane %v11324_v8, %v19098_v52 }
0x1016   : > { %v11381_v61 = vrot.slane %v11374_v53, %v19098_v52 }
0x1017   : > { %v11340_v56 = vcombine.low %v11323_v4, %v11331_v42 }
0x1018   : > { %v11390_v16 = vcombine.low %v11373_v5, %v11381_v61  ;;  %v19102_v61 = vpack.i.b16 %v18313_v3, %v18309_v62 }
0x1019   : > { %v11347_v31 = vrot.slane %v11340_v56, %v19099_v0 }
0x101a   : > { %v11397_v10 = vrot.slane %v11390_v16, %v19099_v0  ;;  %v11052_v36 = vpop.trf.xlu0 }
0x101b   : > { %8894 = vmax.xlane.f32.xlu0 %v8893_v38  ;;  %v11348_v11 = vcombine.low %v11339_v37, %v11347_v31  ;;  %v18455_v43 = vcombine.high %v11339_v37, %v11347_v31  ;;  %v11068_v15 = vpop.trf.xlu1 }
0x101c   : > { %8891 = vmax.xlane.f32.xlu1 %v8890_v9  ;;  %v11398_v6 = vcombine.low %v11389_v57, %v11397_v10  ;;  %v18460_v21 = vcombine.high %v11389_v57, %v11397_v10  ;;  %v19103_v57 = vpack.i.b16 %v18335_v20, %v18331_v29 }
0x101d   : > { %v11503_v22 = vshrl.u32 %v11348_v11, 16  ;;  %v11509_v53 = vshrl.u32 %v18455_v43, 16 }
0x101e   : > { %v11502_v34 = vpack.i.b16 %v11398_v6, %v11348_v11  ;;  %v11504_v17 = vshrl.u32 %v11398_v6, 16  ;;  %v11508_v42 = vpack.i.b16 %v18460_v21, %v18455_v43  ;;  %v11510_v37 = vshrl.u32 %v18460_v21, 16 }
0x101f   : > { %v19106_v43 = vmov 0  }
0x1020   : > { %13750 = vmatprep.mubr.msk.bf16.mxu0 %vm2864_vm1, %v11502_v34  ;;  %v11505_v63 = vpack.i.b16 %v11504_v17, %v11503_v22  ;;  %v18484_v56 = vpack.i.b16 %v11510_v37, %v11509_v53 }
0x1022   : > { %13756 = vmatprep.mubr.msk.bf16.mxu1 %vm2864_vm1, %v11505_v63  ;;  %v11084_v23 = vpop.trf.xlu0 }
0x1023   : > { %v11100_v33 = vpop.trf.xlu1 }
0x102a   : > { %v11116_v60 = vpop.trf.xlu0 }
0x102b   : > { %v11400_v58 = vcombine.low %v11052_v36, %v11116_v60  ;;  %v11132_v41 = vpop.trf.xlu1 }
0x102c   : > { %v11450_v18 = vcombine.low %v11068_v15, %v11132_v41 }
0x102d   : > { %v18465_v32 = vrot.slane %v11400_v58, %v19098_v52 }
0x102e   : > { %v18468_v54 = vrot.slane %v11450_v18, %v19098_v52 }
0x1032   : > { %v11148_v51 = vpop.trf.xlu0 }
0x1033   : > { %v11408_v14 = vcombine.low %v11084_v23, %v11148_v51  ;;  %v11164_v49 = vpop.trf.xlu1 }
0x1034   : > { %v11458_v8 = vcombine.low %v11100_v33, %v11164_v49 }
0x1035   : > { %v18471_v4 = vrot.slane %v11408_v14, %v19098_v52 }
0x1036   : > { %v18476_v13 = vrot.slane %v11458_v8, %v19098_v52 }
0x1037   : > { %v11432_v2 = vcombine.low %v18465_v32, %v18471_v4 }
0x1038   : > { %v11482_v5 = vcombine.low %v18468_v54, %v18476_v13 }
0x1048   : > { %11204 = vxpose.xlu0.c.b16.start [1/2] (short) (narrow) %v10638_v24, 16 }
0x1049   : > { %11220 = vxpose.xlu1.c.b16.start [1/2] (short) (narrow) %v18327_v50, 16 }
0x104c   : > { %11205 = vxpose.xlu0.c.b16.end [2/2] (short) (narrow) %v10766_v25, 16 }
0x104d   : > { %11221 = vxpose.xlu1.c.b16.end [2/2] (short) (narrow) %v18344_v35, 16 }
0x1050   : > { %11236 = vxpose.xlu0.c.b16.start [1/2] (short) (narrow) %v19102_v61, 16 }
0x1051   : > { %11252 = vxpose.xlu1.c.b16.start [1/2] (short) (narrow) %v18346_v28, 16 }
0x1054   : > { %11237 = vxpose.xlu0.c.b16.end [2/2] (short) (narrow) %v19103_v57, 16 }
0x1055   : > { %11253 = vxpose.xlu1.c.b16.end [2/2] (short) (narrow) %v18362_v12, 16 }
0x106a   : > { %v8886_v19 = vpop.xlane.xlu0 %8885 }
0x106b   : > { %v8896_v39 = vsub.f32 %v19096_v7, %v8886_v19  ;;  %v8889_v24 = vpop.xlane.xlu1 %8888 }
0x106c   : > { %v8897_v59 = vsub.f32 %v19097_v55, %v8889_v24 }
0x106d   : > { %v8900_v1 = vmul.f32 1.442695, %v8896_v39  ;;  %v11489_v39 = vrot.slane %v11482_v5, %v19099_v0 }
0x106e   : > { %v8902_v25 = vmul.f32 1.442695, %v8897_v59 }
0x106f   : > { %14233 = vpow2.f32 %v8900_v1 }
0x1070   : > { %14235 = vpow2.f32 %v8902_v25  ;;  %v11180_v20 = vpop.trf.xlu0 }
0x1071   : > { %v11196_v35 = vpop.trf.xlu1 }
0x1079   : > { %v14234_v62 = vpop.eup %14233 }
0x107a   : > { %v8908_v3 = vsel %vm2864_vm1, %v14234_v62, 0.0  ;;  %v14236_v50 = vpop.eup %14235 }
0x107b   : > { %8909 = vadd.xlane.f32.xlu0 %v8908_v3  ;;  %v8911_v29 = vsel %vm2864_vm1, %v14236_v50, 0.0 }
0x107c   : > { %8912 = vadd.xlane.f32.xlu1 %v8911_v29 }
0x10a8   : > { %v8895_v28 = vpop.xlane.xlu0 %8894 }
0x10a9   : > { %v8899_v12 = vsub.f32 %v19100_v30, %v8895_v28  ;;  %v8892_v7 = vpop.xlane.xlu1 %8891  ;;  %v19104_v30 = vpack.i.b16 %v18099_v27, %v18080_v40 }
0x10aa   : > { %v8898_v55 = vsub.f32 %v19101_v46, %v8892_v7 }
0x10ab   : > { %v8906_v31 = vmul.f32 1.442695, %v8899_v12 }
0x10ac   : > { %v8904_v16 = vmul.f32 1.442695, %v8898_v55 }
0x10ad   : > { %14237 = vpow2.f32 %v8906_v31 }
0x10ae   : > { %14239 = vpow2.f32 %v8904_v16  ;;  %v11212_v46 = vpop.trf.xlu0  ;;  %v19105_v16 = vmov 0.0  }
0x10af   : > { %v11228_v6 = vpop.trf.xlu1 }
0x10b6   : > { %v11244_v22 = vpop.trf.xlu0 }
0x10b7   : > { %v14238_v38 = vpop.eup %14237  ;;  %v11260_v36 = vpop.trf.xlu1  ;;  %v11416_v58 = vcombine.low %v11180_v20, %v11244_v22 }
0x10b8   : > { %v8917_v11 = vsel %vm2864_vm1, %v14238_v38, 0.0  ;;  %v14240_v10 = vpop.eup %14239  ;;  %v11466_v33 = vcombine.low %v11196_v35, %v11260_v36 }
0x10b9   : > { %8918 = vadd.xlane.f32.xlu1 %v8917_v11  ;;  %v8914_v9 = vsel %vm2864_vm1, %v14240_v10, 0.0  ;;  %v11423_v53 = vrot.slane %v11416_v58, %v19098_v52 }
0x10ba   : > { %8915 = vadd.xlane.f32.xlu0 %v8914_v9  ;;  %v11473_v51 = vrot.slane %v11466_v33, %v19098_v52 }
0x10e6   : > { %11284 = vxpose.xlu1.c.b16.start [1/2] (short) (narrow) %v18356_v45, 16 }
0x10e7   : > { %11268 = vxpose.xlu0.c.b16.start [1/2] (short) (narrow) %v19104_v30, 16 }
0x10ea   : > { %11285 = vxpose.xlu1.c.b16.end [2/2] (short) (narrow) %v18367_v26, 16 }
0x10eb   : > { %11269 = vxpose.xlu0.c.b16.end [2/2] (short) (narrow) %v10782_v48, 16 }
0x1108   : > { %v8910_v34 = vpop.xlane.xlu0 %8909 }
0x1109   : > { %14241 = vrcp.f32 %v8910_v34  ;;  %v8913_v17 = vpop.xlane.xlu1 %8912 }
0x110a   : > { %14243 = vrcp.f32 %v8913_v17 }
0x1113   : > { %v14242_v15 = vpop.eup %14241 }
0x1114   : > { %v8924_v45 = vmul.f32 %v14242_v15, %v14234_v62  ;;  %v14244_v63 = vpop.eup %14243  ;;  %v11439_v62 = vrot.slane %v11432_v2, %v19099_v0 }
0x1115   : > { %v8925_v40 = vmul.f32 %v14244_v63, %v14236_v50  ;;  %v14127_v63 = vld [vmem:[#allocation28] sm:$0xff]  }
0x1116   : > { %v8928_v23 = vpack.c.bf16 %v8924_v45, %v8924_v45 }
0x1117   : > { %v8929_v26 = vpack.c.bf16 %v8925_v40, %v8925_v40  ;;  %v14129_v40 = vld [vmem:[#allocation28 + $0x10] sm:$0xff]  }
0x1118   : > { %13796 = vmatprep.subr.msk.bf16.mxu0 %vm2864_vm1, %v8928_v23  ;;  %v11531_v27 = vsel %vm2864_vm1, %v8928_v23, 0  ;;  %v14128_v23 = vld [vmem:[#allocation28 + $0x8] sm:$0xff]  }
0x1119   : > { %13749 = vmatpush3.bf16.xpose.msra.mxu0 %v11531_v27  ;;  %13797 = vmatprep.subr.msk.bf16.mxu1 %vm2864_vm1, %v8929_v26  ;;  %v11589_v47 = vsel %vm2864_vm1, %v8929_v26, 0  ;;  %v14130_v27 = vld [vmem:[#allocation28 + $0x18] sm:$0xff]   ;;  %v14131_v26 = vld [vmem:[#allocation28 + $0x20] sm:$0xff]  }
0x111a   : > { %13755 = vmatpush3.bf16.xpose.msra.mxu1 %v11589_v47  ;;  %v14132_v47 = vld [vmem:[#allocation28 + $0x28] sm:$0xff]  }
0x1146   : > { %v8919_v44 = vpop.xlane.xlu1 %8918 }
0x1147   : > { %14245 = vrcp.f32 %v8919_v44  ;;  %v8916_v48 = vpop.xlane.xlu0 %8915 }
0x1148   : > { %14247 = vrcp.f32 %v8916_v48 }
0x114c   : > { %v11292_v60 = vpop.trf.xlu1 }
0x114d   : > { %v11474_v41 = vcombine.low %v11228_v6, %v11292_v60  ;;  %v11276_v18 = vpop.trf.xlu0 }
0x114e   : > { %v11424_v49 = vcombine.low %v11212_v46, %v11276_v18 }
0x114f   : > { %v11481_v14 = vrot.slane %v11474_v41, %v19098_v52 }
0x1150   : > { %v11431_v61 = vrot.slane %v11424_v49, %v19098_v52 }
0x1151   : > { %v14246_v8 = vpop.eup %14245  ;;  %v11490_v37 = vcombine.low %v11473_v51, %v11481_v14 }
0x1152   : > { %v8927_v57 = vmul.f32 %v14246_v8, %v14238_v38  ;;  %v14248_v19 = vpop.eup %14247  ;;  %v11440_v1 = vcombine.low %v11423_v53, %v11431_v61 }
0x1153   : > { %v11497_v24 = vrot.slane %v11490_v37, %v19099_v0  ;;  %v8926_v25 = vmul.f32 %v14248_v19, %v14240_v10 }
0x1154   : > { %v8931_v59 = vpack.c.bf16 %v8927_v57, %v8927_v57  ;;  %v11447_v29 = vrot.slane %v11440_v1, %v19099_v0 }
0x1155   : > { %v11498_v3 = vcombine.low %v11489_v39, %v11497_v24  ;;  %v11499_v50 = vcombine.high %v11489_v39, %v11497_v24  ;;  %v8930_v20 = vpack.c.bf16 %v8926_v25, %v8926_v25  ;;  %v14133_v39 = vld [vmem:[#allocation28 + $0x30] sm:$0xff]  }
0x1156   : > { %13799 = vmatprep.subr.msk.bf16.mxu1 %vm2864_vm1, %v8931_v59  ;;  %v11448_v35 = vcombine.low %v11439_v62, %v11447_v29  ;;  %v11449_v54 = vcombine.high %v11439_v62, %v11447_v29  ;;  %v11705_v55 = vsel %vm2864_vm1, %v8931_v59, 0 }
0x1157   : > { %v11516_v13 = vshrl.u32 %v11498_v3, 16  ;;  %v11522_v5 = vshrl.u32 %v11499_v50, 16  ;;  %13798 = vmatprep.subr.msk.bf16.mxu0 %vm2864_vm1, %v8930_v20  ;;  %v11647_v32 = vsel %vm2864_vm1, %v8930_v20, 0 }
0x1158   : > { %v11514_v28 = vpack.i.b16 %v11498_v3, %v11448_v35  ;;  %v11515_v12 = vshrl.u32 %v11448_v35, 16  ;;  %v11520_v7 = vpack.i.b16 %v11499_v50, %v11449_v54  ;;  %v11521_v31 = vshrl.u32 %v11449_v54, 16 }
0x115a   : > { %13751 = vmatmul.mubr.msk.bf16.vlgmr.msra.gmra.mrb[24].mxu0 %vm2864_vm1, %v11514_v28  ;;  %v11517_v4 = vpack.i.b16 %v11516_v13, %v11515_v12  ;;  %v11523_v2 = vpack.i.b16 %v11522_v5, %v11521_v31  ;;  %v14134_v5 = vld [vmem:[#allocation28 + $0x38] sm:$0xff]  }
0x115b   : > { %13761 = vmatpush3.bf16.xpose.msra.mxu0 %v11647_v32  ;;  %13762 = vmatprep.mubr.msk.bf16.mxu0 %vm2864_vm1, %v11508_v42 }
0x115c   : > { %13757 = vmatmul.mubr.msk.bf16.vlgmr.msra.gmra.mrb[52].mxu1 %vm2864_vm1, %v11517_v4  ;;  %13772 = vmatprep.subr.bf16.mxu0 %v19105_v16 }
0x115d   : > { %13767 = vmatpush3.bf16.xpose.msra.mxu1 %v11705_v55  ;;  %13768 = vmatprep.mubr.msk.bf16.mxu1 %vm2864_vm1, %v18484_v56 }
0x1162   : > { %13763 = vmatmul.mubr.msk.bf16.vlgmr.msra.gmra.mrb[28].mxu0 %vm2864_vm1, %v11520_v7 }
0x1163   : > { %13788 = vmatprep.mubr.msk.bf16.mxu0 %vm15017_vm0, %v19105_v16  ;;  %13773 = vmatpush3.bf16.msra.mxu0 %v14127_v63  ;;  %v14135_v63 = vld [vmem:[#allocation31] ss:$16 sps:$4 sm:$0xff]  }
0x1164   : > { %13769 = vmatmul.mubr.msk.bf16.vlgmr.msra.gmra.mrb[56].mxu1 %vm2864_vm1, %v11523_v2  ;;  %13774 = vmatprep.subr.bf16.mxu0 %v19105_v16 }
0x1165   : > { %12406 = vmatprep.mubr.bf16.mxu1 %v19106_v43 }
0x1167   : > { %13775 = vmatpush3.bf16.msra.mxu0 %v14128_v23  ;;  %v14137_v23 = vld [vmem:[#allocation31 + $0x4] ss:$16 sps:$4 sm:$0xff]  }
0x1168   : > { %13776 = vmatprep.subr.bf16.mxu0 %v19105_v16  ;;  %12374 = vmatprep.subr.bf16.mxu1 %v14137_v23  ;;  %v14205_v23 = vld [vmem:[#allocation34 + $0x28] sm:$0xff]  }
0x1169   : > { %12375 = vmatpush1.bf16.msra.mxu1 %v14135_v63  ;;  %v14204_v63 = vld [vmem:[#allocation34 + $0xe8] sm:$0xff]  }
0x116b   : > { %13777 = vmatpush3.bf16.msra.mxu0 %v14129_v40  ;;  %v14138_v40 = vld [vmem:[#allocation31 + $0x8] ss:$16 sps:$4 sm:$0xff]  }
0x116c   : > { %13778 = vmatprep.subr.bf16.mxu0 %v19105_v16 }
0x116f   : > { %13779 = vmatpush3.bf16.msra.mxu0 %v14130_v27  ;;  %v14140_v27 = vld [vmem:[#allocation31 + $0xc] ss:$16 sps:$4 sm:$0xff]  }
0x1170   : > { %13780 = vmatprep.subr.bf16.mxu0 %v19105_v16 }
0x1173   : > { %13781 = vmatpush3.bf16.msra.mxu0 %v14131_v26  ;;  %v14143_v26 = vld [vmem:[#allocation31 + $0x24] ss:$16 sps:$4 sm:$0xff]  }
0x1174   : > { %13782 = vmatprep.subr.bf16.mxu0 %v19105_v16  ;;  %12376 = vmatprep.subr.bf16.mxu1 %v14143_v26  ;;  %v14208_v26 = vld [vmem:[#allocation34 + $0xf0] sm:$0xff]  }
0x1177   : > { %13783 = vmatpush3.bf16.msra.mxu0 %v14132_v47  ;;  %v14146_v47 = vld [vmem:[#allocation31 + $0x2c] ss:$16 sps:$4 sm:$0xff]  }
0x1178   : > { %13784 = vmatprep.subr.bf16.mxu0 %v19105_v16 }
0x117b   : > { %13785 = vmatpush3.bf16.msra.mxu0 %v14133_v39  ;;  %v14164_v39 = vld [vmem:[#allocation31 + $0x8c] ss:$16 sps:$4 sm:$0xff]  }
0x117c   : > { %13786 = vmatprep.subr.bf16.mxu0 %v19105_v16 }
0x117f   : > { %13787 = vmatpush3.bf16.msra.mxu0 %v14134_v5 }
0x1180   : > { %12415 = vmatprep.subr.bf16.mxu0 %v14140_v27  ;;  %v14207_v27 = vld [vmem:[#allocation34 + $0x70] sm:$0xff]  }
0x122d   : > { %v13752_v21 = vpop.f32.mrb[24].mxu0 }
0x122e   : > { %v11567_v42 = vpop.f32.mrb[25].mxu0 }
0x122f   : > { %v13758_v38 = vpop.f32.mrb[52].mxu1  ;;  %11756 = vxpose.xlu0.b32.start [1/4] (short) (narrow) %v11567_v42, 8  ;;  %v13753_v11 = vpop.f32.mrb[26].mxu0 }
0x1230   : > { %v11570_v10 = vpop.f32.mrb[27].mxu0  ;;  %v11625_v9 = vpop.f32.mrb[53].mxu1 }
0x1231   : > { %11788 = vxpose.xlu1.b32.start [1/4] (short) (narrow) %v11625_v9, 8  ;;  %v13759_v30 = vpop.f32.mrb[54].mxu1 }
0x1232   : > { %v11628_v46 = vpop.f32.mrb[55].mxu1 }
0x1233   : > { %11757 = vxpose.xlu0.b32.cont [2/4] (short) (narrow) %v11570_v10, 8 }
0x1235   : > { %11789 = vxpose.xlu1.b32.cont [2/4] (short) (narrow) %v11628_v46, 8  ;;  %v13764_v56 = vpop.f32.mrb[28].mxu0 }
0x1236   : > { %v11683_v6 = vpop.f32.mrb[29].mxu0 }
0x1237   : > { %v13770_v22 = vpop.f32.mrb[56].mxu1  ;;  %11758 = vxpose.xlu0.b32.cont [3/4] (short) (narrow) %v13752_v21, 8  ;;  %v13765_v36 = vpop.f32.mrb[30].mxu0 }
0x1238   : > { %v11686_v34 = vpop.f32.mrb[31].mxu0  ;;  %v11741_v17 = vpop.f32.mrb[57].mxu1 }
0x1239   : > { %11790 = vxpose.xlu1.b32.cont [3/4] (short) (narrow) %v13758_v38, 8  ;;  %v13771_v15 = vpop.f32.mrb[58].mxu1 }
0x123a   : > { %v11744_v45 = vpop.f32.mrb[59].mxu1 }
0x123b   : > { %11759 = vxpose.xlu0.b32.end [4/4] (short) (narrow) %v13753_v11, 8 }
0x123d   : > { %11791 = vxpose.xlu1.b32.end [4/4] (short) (narrow) %v13759_v30, 8 }
0x123f   : > { %11820 = vxpose.xlu0.b32.start [1/4] (short) (narrow) %v11683_v6, 8 }
0x1241   : > { %11852 = vxpose.xlu1.b32.start [1/4] (short) (narrow) %v11741_v17, 8  ;;  %v19107_v17 = vld [vmem:[#allocation60_spill] sm:$0xff] }
0x1243   : > { %11821 = vxpose.xlu0.b32.cont [2/4] (short) (narrow) %v11686_v34, 8 }
0x1245   : > { %11853 = vxpose.xlu1.b32.cont [2/4] (short) (narrow) %v11744_v45, 8 }
0x1247   : > { %11822 = vxpose.xlu0.b32.cont [3/4] (short) (narrow) %v13764_v56, 8  ;;  %v13276_v56 = vld [vmem:[#allocation29] ss:$0 sm:$0xff] }
0x1249   : > { %11854 = vxpose.xlu1.b32.cont [3/4] (short) (narrow) %v13770_v22, 8 }
0x124b   : > { %11823 = vxpose.xlu0.b32.end [4/4] (short) (narrow) %v13765_v36, 8 }
0x124d   : > { %11855 = vxpose.xlu1.b32.end [4/4] (short) (narrow) %v13771_v15, 8 }
0x12af   : > { %v11772_v44 = vpop.trf.xlu0 }
0x12b1   : > { %v11804_v48 = vpop.trf.xlu1 }
0x12bf   : > { %v11836_v33 = vpop.trf.xlu0 }
0x12c0   : > { %v11884_v60 = vcombine.low %v11772_v44, %v11836_v33  ;;  %v11885_v58 = vcombine.high %v11772_v44, %v11836_v33  ;;  %v14144_v44 = vld [vmem:[#allocation31 + $0x28] ss:$16 sps:$4 sm:$0xff]   ;;  %v14152_v33 = vld [vmem:[#allocation31 + $0x4c] ss:$16 sps:$4 sm:$0xff]  }
0x12c1   : > { %v11868_v41 = vpop.trf.xlu1 }
0x12c2   : > { %v11900_v18 = vcombine.low %v11804_v48, %v11868_v41  ;;  %v11901_v51 = vcombine.high %v11804_v48, %v11868_v41  ;;  %v11892_v14 = vrot.slane %v11884_v60, %v19098_v52  ;;  %v11899_v49 = vrot.slane %v11885_v58, %v19098_v52  ;;  %v14149_v48 = vld [vmem:[#allocation31 + $0x44] ss:$16 sps:$4 sm:$0xff]   ;;  %v14147_v60 = vld [vmem:[#allocation31 + $0x40] ss:$16 sps:$4 sm:$0xff]   ;;  %v14150_v58 = vld [vmem:[#allocation31 + $0x48] ss:$16 sps:$4 sm:$0xff]  }
0x12c3   : > { %v14155_v41 = vld [vmem:[#allocation31 + $0x64] ss:$16 sps:$4 sm:$0xff]  }
0x12c4   : > { %v11908_v8 = vrot.slane %v11900_v18, %v19098_v52  ;;  %v11915_v53 = vrot.slane %v11901_v51, %v19098_v52  ;;  %v14158_v18 = vld [vmem:[#allocation31 + $0x6c] ss:$16 sps:$4 sm:$0xff]   ;;  %v14153_v51 = vld [vmem:[#allocation31 + $0x60] ss:$16 sps:$4 sm:$0xff]  }
0x12c6   : > { %v11916_v37 = vcombine.low %v11892_v14, %v11908_v8  ;;  %v11917_v61 = vcombine.high %v11892_v14, %v11908_v8  ;;  %v11932_v57 = vcombine.low %v11899_v49, %v11915_v53  ;;  %v11933_v19 = vcombine.high %v11899_v49, %v11915_v53  ;;  %v14156_v14 = vld [vmem:[#allocation31 + $0x68] ss:$16 sps:$4 sm:$0xff]  }
0x12c8   : > { %v11924_v24 = vrot.slane %v11916_v37, %v19099_v0  ;;  %v11931_v1 = vrot.slane %v11917_v61, %v19099_v0  ;;  %v11940_v59 = vrot.slane %v11932_v57, %v19099_v0  ;;  %v11947_v25 = vrot.slane %v11933_v19, %v19099_v0  ;;  %v14159_v61 = vld [vmem:[#allocation31 + $0x80] ss:$16 sps:$4 sm:$0xff]   ;;  %v14161_v57 = vld [vmem:[#allocation31 + $0x84] ss:$16 sps:$4 sm:$0xff]   ;;  %v14162_v19 = vld [vmem:[#allocation31 + $0x88] ss:$16 sps:$4 sm:$0xff]  }
0x12ca   : > { %v11952_v62 = vcombine.low %v11924_v24, %v11931_v1  ;;  %v13274_v3 = vcombine.high %v11924_v24, %v11931_v1  ;;  %v11968_v50 = vcombine.low %v11940_v59, %v11947_v25  ;;  %v13275_v29 = vcombine.high %v11940_v59, %v11947_v25  ;;  %v14167_v24 = vld [vmem:[#allocation31 + $0xa4] ss:$16 sps:$4 sm:$0xff]   ;;  %v14170_v1 = vld [vmem:[#allocation31 + $0xac] ss:$16 sps:$4 sm:$0xff]   ;;  %v14165_v59 = vld [vmem:[#allocation31 + $0xa0] ss:$16 sps:$4 sm:$0xff]  }
0x12cb   : > { %v14168_v25 = vld [vmem:[#allocation31 + $0xa8] ss:$16 sps:$4 sm:$0xff]  }
0x12cc   : > { %v11959_v20 = vrot.slane %v11952_v62, %v19098_v52  ;;  %v11967_v35 = vrot.slane %v13274_v3, %v19098_v52  ;;  %v11975_v54 = vrot.slane %v11968_v50, %v19098_v52  ;;  %v11983_v13 = vrot.slane %v13275_v29, %v19098_v52  ;;  %v14173_v62 = vld [vmem:[#allocation31 + $0xc4] ss:$16 sps:$4 sm:$0xff]   ;;  %v14176_v3 = vld [vmem:[#allocation31 + $0xcc] ss:$16 sps:$4 sm:$0xff]   ;;  %v14171_v50 = vld [vmem:[#allocation31 + $0xc0] ss:$16 sps:$4 sm:$0xff]  }
0x12cd   : > { %v14174_v29 = vld [vmem:[#allocation31 + $0xc8] ss:$16 sps:$4 sm:$0xff]  }
0x12ce   : > { %v11985_v28 = vcombine.high %v11959_v20, %v11967_v35  ;;  %v12001_v12 = vcombine.high %v11975_v54, %v11983_v13  ;;  %v11984_v7 = vcombine.low %v11959_v20, %v11967_v35  ;;  %v12000_v31 = vcombine.low %v11975_v54, %v11983_v13  ;;  %v14179_v20 = vld [vmem:[#allocation31 + $0xe4] ss:$16 sps:$4 sm:$0xff]   ;;  %v14182_v35 = vld [vmem:[#allocation31 + $0xec] ss:$16 sps:$4 sm:$0xff]   ;;  %v14177_v54 = vld [vmem:[#allocation31 + $0xe0] ss:$16 sps:$4 sm:$0xff]  }
0x12cf   : > { %v14180_v13 = vld [vmem:[#allocation31 + $0xe8] ss:$16 sps:$4 sm:$0xff]  }
0x12d0   : > { %v11999_v32 = vrot.slane %v11985_v28, %v19099_v0  ;;  %v12015_v4 = vrot.slane %v12001_v12, %v19099_v0  ;;  %v11992_v2 = vrot.slane %v11984_v7, %v19099_v0  ;;  %v12008_v55 = vrot.slane %v12000_v31, %v19099_v0 }
0x12d2   : > { %v12018_v16 = vcombine.low %v11999_v32, %v12015_v4  ;;  %v12017_v21 = vcombine.high %v11992_v2, %v12008_v55  ;;  %v12016_v42 = vcombine.low %v11992_v2, %v12008_v55  ;;  %v12019_v52 = vcombine.high %v11999_v32, %v12015_v4  ;;  %v14183_v4 = vld [vmem:[#allocation34 + $0x40] sm:$0xff]  }
0x12d3   : > { %v14184_v2 = vld [vmem:[#allocation34 + $0xc0] sm:$0xff]  }
0x12d4   : > { %12025 = vrot.lane.b32.xlu1 %v12018_v16, %s15020_s12  ;;  %12021 = vrot.lane.b32.xlu0 %v12017_v21, %s15018_s9  ;;  %v14185_v55 = vld [vmem:[#allocation34] sm:$0xff]   ;;  %v14187_v21 = vld [vmem:[#allocation34 + $0x48] sm:$0xff]   ;;  %s12842_s9 = scalar_lea.sflag [#allocation4], %s15688_s18  ;;  %s14884_s12 = scalar_lea.vmem %s14883_s5, 256 }
0x12d5   : > { %v14186_v16 = vld [vmem:[#allocation34 + $0x80] sm:$0xff]  }
0x12d8   : > { %12029 = vrot.lane.b32.xlu1 %v12019_v52, %s15019_s6  ;;  %v14189_v52 = vld [vmem:[#allocation34 + $0x8] sm:$0xff]   ;;  %s14878_s6 = scalar_lea.vmem %s18602_s20, 128 }
0x12d9   : > { %p14879_p12 = scmp.ne.s32.totalorder %s18602_s20, %s14878_s6  ;;  %p14886_p0 = scmp.lt.s32.totalorder %s14884_s12, %s14878_s6 }
0x12db   : > { %p14880_p1 = pnand %p14879_p12, %p19110_p13  ;;  %p14887_p6 = por %p14886_p0, %p14885_p2 }
0x12dd   : > { %p14881_p3 = pneg %p14880_p1 }
0x12df   : > { %p14888_p10 = pnand %p14887_p6, %p14881_p3 }
0x1346   : > { %v12026_v38 = vpop.permute.xlu1 %12025  ;;  %v12022_v11 = vpop.permute.xlu0 %12021 }
0x1347   : > { %v12032_v10 = vsel %vm2864_vm1, %v12016_v42, %v12022_v11  ;;  %v14188_v42 = vld [vmem:[#allocation34 + $0xc8] sm:$0xff]   ;;  %v14191_v11 = vld [vmem:[#allocation34 + $0x50] sm:$0xff]  }
0x1348   : > { %v12033_v30 = vsel %vm4795_vm3, %v12032_v10, %v12026_v38  ;;  %v14190_v38 = vld [vmem:[#allocation34 + $0x88] sm:$0xff]   ;;  %v14192_v10 = vld [vmem:[#allocation34 + $0xd0] sm:$0xff]  }
0x134a   : > { %v12030_v9 = vpop.permute.xlu1 %12029 }
0x134b   : > { %v12034_v46 = vsel %vm4797_vm4, %v12033_v30, %v12030_v9  ;;  %v14193_v9 = vld [vmem:[#allocation34 + $0x10] sm:$0xff]  }
0x134c   : > { %v12035_v0 = vpack.c.bf16 %v12034_v46, %v12034_v46  ;;  %v14194_v30 = vld [vmem:[#allocation34 + $0x90] sm:$0xff]   ;;  %v14195_v46 = vld [vmem:[#allocation34 + $0x58] sm:$0xff]  }
0x134e   : > { %13789 = vmatmul.mubr.bf16.vlgmr.msra.gmra.mrb[32].mxu0 %v12035_v0  ;;  %v14196_v0 = vld [vmem:[#allocation34 + $0xd8] sm:$0xff]  }
0x134f   : > { %12447 = vmatprep.mubr.bf16.mxu0 %v19106_v43  ;;  %v14141_v43 = vld [vmem:[#allocation31 + $0x20] ss:$16 sps:$4 sm:$0xff]   ;;  %12416 = vmatpush1.bf16.msra.mxu0 %v14138_v40 }
0x1350   : > { %12417 = vmatprep.subr.bf16.mxu0 %v14146_v47  ;;  %12377 = vmatpush1.bf16.msra.mxu1 %v14141_v43  ;;  %v14206_v40 = vld [vmem:[#allocation34 + $0xa8] sm:$0xff]   ;;  %v14209_v47 = vld [vmem:[#allocation34 + $0x30] sm:$0xff]  }
0x1351   : > { %12378 = vmatprep.subr.bf16.mxu1 %v14149_v48  ;;  %v14210_v43 = vld [vmem:[#allocation34 + $0xb0] sm:$0xff]   ;;  %v14212_v48 = vld [vmem:[#allocation34 + $0xf8] sm:$0xff]  }
0x1353   : > { %12418 = vmatpush1.bf16.msra.mxu0 %v14144_v44  ;;  %v14211_v44 = vld [vmem:[#allocation34 + $0x78] sm:$0xff]  }
0x1354   : > { %12419 = vmatprep.subr.bf16.mxu0 %v14152_v33  ;;  %12379 = vmatpush1.bf16.msra.mxu1 %v14147_v60  ;;  %v14213_v33 = vld [vmem:[#allocation34 + $0x38] sm:$0xff]  }
0x1355   : > { %12380 = vmatprep.subr.bf16.mxu1 %v14155_v41  ;;  %v14214_v60 = vld [vmem:[#allocation34 + $0xb8] sm:$0xff]  }
0x1357   : > { %12420 = vmatpush1.bf16.msra.mxu0 %v14150_v58  ;;  %v19108_v58 = vld [vmem:[#allocation57_spill] sm:$0xff] }
0x1358   : > { %12421 = vmatprep.subr.bf16.mxu0 %v14158_v18  ;;  %12381 = vmatpush1.bf16.msra.mxu1 %v14153_v51  ;;  %v12196_v41 = vsub.s32 0, %v19108_v58  ;;  %v12204_v18 = vsub.s32 2, %v19108_v58  ;;  %v12192_v51 = vld [vmem:[#allocation32] sm:$0xf] }
0x1359   : > { %12382 = vmatprep.subr.bf16.mxu1 %v14161_v57 }
0x135b   : > { %12422 = vmatpush1.bf16.msra.mxu0 %v14156_v14  ;;  %v12200_v14 = vsub.s32 1, %v19108_v58 }
0x135c   : > { %12423 = vmatprep.subr.bf16.mxu0 %v14164_v39  ;;  %12383 = vmatpush1.bf16.msra.mxu1 %v14159_v61 }
0x135d   : > { %12384 = vmatprep.subr.bf16.mxu1 %v14167_v24 }
0x135f   : > { %12424 = vmatpush1.bf16.msra.mxu0 %v14162_v19 }
0x1360   : > { %12425 = vmatprep.subr.bf16.mxu0 %v14170_v1  ;;  %12385 = vmatpush1.bf16.msra.mxu1 %v14165_v59 }
0x1361   : > { %12386 = vmatprep.subr.bf16.mxu1 %v14173_v62 }
0x1363   : > { %12426 = vmatpush1.bf16.msra.mxu0 %v14168_v25 }
0x1364   : > { %12427 = vmatprep.subr.bf16.mxu0 %v14176_v3  ;;  %12387 = vmatpush1.bf16.msra.mxu1 %v14171_v50 }
0x1365   : > { %12388 = vmatprep.subr.bf16.mxu1 %v14179_v20 }
0x1367   : > { %12428 = vmatpush1.bf16.msra.mxu0 %v14174_v29 }
0x1368   : > { %12429 = vmatprep.subr.bf16.mxu0 %v14182_v35  ;;  %12389 = vmatpush1.bf16.msra.mxu1 %v14177_v54 }
0x1369   : > { %13476 = vmatprep.subr.bf16.mxu1 %v14183_v4 }
0x136b   : > { %12430 = vmatpush1.bf16.msra.mxu0 %v14180_v13 }
0x136c   : > { %13498 = vmatprep.subr.bf16.mxu0 %v14184_v2 }
0x1421   : > { %v12141_v6 = vpop.f32.mrb[32].mxu0 }
0x1422   : > { %v12142_v22 = vadd.f32 %v13276_v56, %v12141_v6  ;;  %v13790_v36 = vpop.f32.mrb[33].mxu0  ;;  %v14197_v56 = vld [vmem:[#allocation34 + $0x18] sm:$0xff]  }
0x1423   : > { %v12144_v34 = vpop.f32.mrb[34].mxu0  ;;  %v14198_v6 = vld [vmem:[#allocation34 + $0x98] sm:$0xff]   ;;  %v14200_v36 = vld [vmem:[#allocation34 + $0xe0] sm:$0xff]  }
0x1424   : > { %v18585_v15 = vadd.f32 %v12142_v22, %v19107_v17  ;;  %v13791_v45 = vpop.f32.mrb[35].mxu0  ;;  %v14199_v22 = vld [vmem:[#allocation34 + $0x60] sm:$0xff]  }
0x1425   : > { %v14201_v34 = vld [vmem:[#allocation34 + $0x20] sm:$0xff]   ;;  %v14203_v45 = vld [vmem:[#allocation34 + $0x68] sm:$0xff]  }
0x1426   : > { %12148 = vadd.xlane.f32.xlu0 %v18585_v15  ;;  %v14202_v17 = vld [vmem:[#allocation34 + $0xa0] sm:$0xff]  }
0x14b3   : > { %v12149_v49 = vpop.xlane.xlu0 %12148 }
0x14b4   : > { %v12150_v8 = vmul.f32 0.0078125, %v12149_v49  ;;  %v12208_v49 = vsub.s32 3, %v19108_v58 }
0x14b6   : > { %v12151_v53 = vsub.f32 %v18585_v15, %v12150_v8  ;;  %v12197_v8 = vrot.slane %v12192_v51, %v12196_v41  ;;  %v12209_v61 = vrot.slane %v12192_v51, %v12208_v49  ;;  %v13317_v41 = vld [vmem:[#allocation35] ss:$0 sm:$0xff] }
0x14b8   : > { %v12152_v37 = vmul.f32 %v12151_v53, %v12151_v53 }
0x14ba   : > { %12153 = vadd.xlane.f32.xlu1 %v12152_v37  ;;  %v12201_v37 = vrot.slane %v12192_v51, %v12200_v14 }
0x1547   : > { %v12154_v5 = vpop.xlane.xlu1 %12153 }
0x1548   : > { %v12155_v28 = vmul.f32 0.0078125, %v12154_v5 }
0x154a   : > { %v12156_v12 = vadd.f32 1e-06, %v12155_v28 }
0x154c   : > { %14249 = vrsqrt.f32 %v12156_v12 }
0x1556   : > { %v14250_v7 = vpop.eup %14249 }
0x1557   : > { %v12158_v31 = vmul.f32 %v14250_v7, %v12151_v53  ;;  %v12205_v53 = vrot.slane %v12192_v51, %v12204_v18 }
0x1559   : > { %v12159_v32 = vpack.c.bf16 %v12158_v31, %v12158_v31 }
0x155b   : > { %12407 = vmatmul.mubr.bf16.vlgmr.msra.gmra.mrb[60].mxu1 %v12159_v32  ;;  %12448 = vmatmul.mubr.bf16.vlgmr.msra.gmra.mrb[36].mxu0 %v12159_v32 }
0x155c   : > { %13477 = vmatpush3.bf16.msra.mxu1 %v14185_v55  ;;  %13499 = vmatpush3.bf16.msra.mxu0 %v14186_v16 }
0x155d   : > { %13478 = vmatprep.subr.bf16.mxu1 %v14187_v21  ;;  %13500 = vmatprep.subr.bf16.mxu0 %v14188_v42 }
0x1560   : > { %13479 = vmatpush3.bf16.msra.mxu1 %v14189_v52  ;;  %13501 = vmatpush3.bf16.msra.mxu0 %v14190_v38 }
0x1561   : > { %13480 = vmatprep.subr.bf16.mxu1 %v14191_v11  ;;  %13502 = vmatprep.subr.bf16.mxu0 %v14192_v10 }
0x1564   : > { %13481 = vmatpush3.bf16.msra.mxu1 %v14193_v9  ;;  %13503 = vmatpush3.bf16.msra.mxu0 %v14194_v30 }
0x1565   : > { %13482 = vmatprep.subr.bf16.mxu1 %v14195_v46  ;;  %13504 = vmatprep.subr.bf16.mxu0 %v14196_v0 }
0x1568   : > { %13483 = vmatpush3.bf16.msra.mxu1 %v14197_v56  ;;  %13505 = vmatpush3.bf16.msra.mxu0 %v14198_v6 }
0x1569   : > { %13484 = vmatprep.subr.bf16.mxu1 %v14199_v22  ;;  %13506 = vmatprep.subr.bf16.mxu0 %v14200_v36 }
0x156c   : > { %13485 = vmatpush3.bf16.msra.mxu1 %v14201_v34  ;;  %13507 = vmatpush3.bf16.msra.mxu0 %v14202_v17 }
0x156d   : > { %13486 = vmatprep.subr.bf16.mxu1 %v14203_v45  ;;  %13508 = vmatprep.subr.bf16.mxu0 %v14204_v63 }
0x1570   : > { %13487 = vmatpush3.bf16.msra.mxu1 %v14205_v23  ;;  %13509 = vmatpush3.bf16.msra.mxu0 %v14206_v40 }
0x1571   : > { %13488 = vmatprep.subr.bf16.mxu1 %v14207_v27  ;;  %13510 = vmatprep.subr.bf16.mxu0 %v14208_v26 }
0x1574   : > { %13489 = vmatpush3.bf16.msra.mxu1 %v14209_v47  ;;  %13511 = vmatpush3.bf16.msra.mxu0 %v14210_v43 }
0x1575   : > { %13490 = vmatprep.subr.bf16.mxu1 %v14211_v44  ;;  %13512 = vmatprep.subr.bf16.mxu0 %v14212_v48 }
0x1578   : > { %13491 = vmatpush3.bf16.msra.mxu1 %v14213_v33  ;;  %13513 = vmatpush3.bf16.msra.mxu0 %v14214_v60 }
0x162e   : > { %v12408_v57 = vpop.f32.mrb[60].mxu1  ;;  %v12449_v19 = vpop.f32.mrb[36].mxu0 }
0x162f   : > { %v12409_v39 = vadd.f32 %v12408_v57, %v12197_v8  ;;  %v12450_v24 = vadd.f32 %v12449_v19, %v12205_v53  ;;  %v12410_v1 = vpop.f32.mrb[61].mxu1  ;;  %v12451_v59 = vpop.f32.mrb[37].mxu0 }
0x1630   : > { %v12411_v25 = vadd.f32 %v12410_v1, %v12201_v37  ;;  %v12452_v62 = vadd.f32 %v12451_v59, %v12209_v61  ;;  %v12412_v3 = vpop.f32.mrb[62].mxu1  ;;  %v12453_v50 = vpop.f32.mrb[38].mxu0 }
0x1631   : > { %v12456_v29 = vmul.f32 %v12409_v39, %v12409_v39  ;;  %v12458_v20 = vmul.f32 %v12450_v24, %v12450_v24  ;;  %v12413_v35 = vpop.f32.mrb[63].mxu1  ;;  %v12454_v54 = vpop.f32.mrb[39].mxu0 }
0x1632   : > { %v12457_v13 = vmul.f32 %v12411_v25, %v12411_v25  ;;  %v12459_v5 = vmul.f32 %v12452_v62, %v12452_v62 }
0x1633   : > { %v12460_v28 = vmul.f32 %v12456_v29, %v12409_v39  ;;  %v12462_v12 = vmul.f32 %v12458_v20, %v12450_v24 }
0x1634   : > { %v12461_v7 = vmul.f32 %v12457_v13, %v12411_v25  ;;  %v12463_v31 = vmul.f32 %v12459_v5, %v12452_v62 }
0x1635   : > { %v12464_v32 = vmul.f32 0.044715, %v12460_v28  ;;  %v12466_v4 = vmul.f32 0.044715, %v12462_v12 }
0x1636   : > { %v12465_v2 = vmul.f32 0.044715, %v12461_v7  ;;  %v12467_v55 = vmul.f32 0.044715, %v12463_v31 }
0x1637   : > { %v12468_v16 = vadd.f32 %v12464_v32, %v12409_v39  ;;  %v12470_v21 = vadd.f32 %v12466_v4, %v12450_v24 }
0x1638   : > { %v12469_v42 = vadd.f32 %v12465_v2, %v12411_v25  ;;  %v12471_v52 = vadd.f32 %v12467_v55, %v12452_v62 }
0x1639   : > { %v12472_v38 = vmul.f32 0.7978846, %v12468_v16  ;;  %v12474_v11 = vmul.f32 0.7978846, %v12470_v21 }
0x163a   : > { %v12473_v10 = vmul.f32 0.7978846, %v12469_v42  ;;  %v12475_v9 = vmul.f32 0.7978846, %v12471_v52 }
0x163b   : > { %14251 = vtanh.f32 %v12472_v38 }
0x163c   : > { %14253 = vtanh.f32 %v12474_v11 }
0x163d   : > { %14255 = vtanh.f32 %v12473_v10 }
0x163e   : > { %14257 = vtanh.f32 %v12475_v9 }
0x1645   : > { %v14252_v30 = vpop.eup %14251 }
0x1646   : > { %v14254_v46 = vpop.eup %14253  ;;  %v12480_v0 = vadd.f32 1.0, %v14252_v30 }
0x1647   : > { %v14256_v56 = vpop.eup %14255  ;;  %v12482_v6 = vadd.f32 1.0, %v14254_v46 }
0x1648   : > { %v14258_v22 = vpop.eup %14257  ;;  %v12481_v36 = vadd.f32 1.0, %v14256_v56  ;;  %v12484_v34 = vmul.f32 0.5, %v12480_v0 }
0x1649   : > { %v12483_v17 = vadd.f32 1.0, %v14258_v22  ;;  %v12486_v45 = vmul.f32 0.5, %v12482_v6 }
0x164a   : > { %v12485_v63 = vmul.f32 0.5, %v12481_v36  ;;  %v12488_v40 = vmul.f32 %v12484_v34, %v12409_v39 }
0x164b   : > { %v12487_v23 = vmul.f32 0.5, %v12483_v17  ;;  %v12490_v26 = vmul.f32 %v12486_v45, %v12450_v24 }
0x164c   : > { %v12489_v27 = vmul.f32 %v12485_v63, %v12411_v25  ;;  %v12492_v48 = vpack.c.bf16 %v12488_v40, %v12488_v40 }
0x164d   : > { %v12491_v47 = vmul.f32 %v12487_v23, %v12452_v62  ;;  %v12494_v33 = vpack.c.bf16 %v12490_v26, %v12490_v26 }
0x164e   : > { %v12493_v43 = vpack.c.bf16 %v12489_v27, %v12489_v27 }
0x164f   : > { %v12495_v44 = vpack.c.bf16 %v12491_v47, %v12491_v47 }
0x1650   : > { %12791 = vmatprep.mubr.bf16.mxu1 %v12493_v43 }
0x1651   : > { %12831 = vmatprep.mubr.bf16.mxu0 %v12495_v44  ;;  %12792 = vmatmul.mubr.bf16.vlgmr.msra.gmra.mrb[64].mxu1 %v12492_v48 }
0x1652   : > { %12832 = vmatmul.mubr.bf16.vlgmr.msra.gmra.mrb[40].mxu0 %v12494_v33 }
0x1724   : > { %v13492_v60 = vpop.f32.mrb[64].mxu1 }
0x1725   : > { %v13514_v58 = vpop.f32.mrb[40].mxu0  ;;  %v13493_v18 = vpop.f32.mrb[65].mxu1 }
0x1726   : > { %v13494_v51 = vadd.f32 %v13493_v18, %v13492_v60  ;;  %v13515_v14 = vpop.f32.mrb[41].mxu0  ;;  %v13495_v49 = vpop.f32.mrb[66].mxu1 }
0x1727   : > { %v13516_v8 = vadd.f32 %v13515_v14, %v13514_v58  ;;  %v13517_v53 = vpop.f32.mrb[42].mxu0  ;;  %v13496_v37 = vpop.f32.mrb[67].mxu1 }
0x1728   : > { %v12794_v61 = vadd.f32 %v13494_v51, %v13317_v41  ;;  %v13518_v57 = vpop.f32.mrb[43].mxu0 }
0x172a   : > { %v12834_v19 = vadd.f32 %v13516_v8, %v12794_v61 }
0x172c   : > { %v12839_v39 = vadd.f32 %v12834_v19, %v18585_v15 }
0x172e   : > { %12840 = vst [vmem:[%s983_s22] sm:$0xff] %v12839_v39 }
0x172f   : > { %14891 = shalt.err (!%p14888_p10)
}
0x1730   : > { %s14892_s18 = scalar_lea.hbm %s18600_s11, 128  ;;  %s14896_s8 = scalar_lea.hbm %s19109_s0, 256 }
0x1731   : > { %p14893_p11 = scmp.ne.s32.totalorder %s18600_s11, %s14892_s18  ;;  %p14897_p9 = scmp.lt.u32.totalorder %s18600_s11, %s19109_s0 }
0x1732   : > { %p14898_p7 = scmp.lt.u32.totalorder %s14896_s8, %s14892_s18  ;;  %p14900_p12 = scmp.lt.u32.totalorder %s14892_s18, %s18600_s11 }
0x1733   : > { %p14894_p8 = pnand %p14893_p11, %p19110_p13 }
0x1734   : > { %p14899_p4 = por %p14898_p7, %p14897_p9 }
0x1735   : > { %p14895_p5 = pneg %p14894_p8 }
0x1736   : > { %p14901_p1 = por %p14900_p12, %p14899_p4 }
0x1738   : > { %p14902_p3 = pnand %p14901_p1, %p14895_p5 }
0x173a   : > { %14905 = shalt.err (!%p14902_p3)
}
0x173b   : > { %13886 = dma.vmem_to_hbm [thread:$0]  (%p19110_p13), %s18602_s20, 128, %s18600_s11, %s12842_s9  }
0x173c PF: > { %s19111_s6 = sld [smem:[#allocation51_spill]]  ;;  %s19112_s5 = sld [smem:[#allocation54_spill]] }
0x173d   : > { %p19113_p2 = scmp.ne.s32.totalorder %s18838_s28, 0 }
0x1742   : > { %s12867_s12 = sand.u32 1, %s19111_s6   ;;  %p19114_p0 = scmp.ge.s32.totalorder %s19112_s5, 2 }
0x1743   : > { %s12868_s3 = scalar_lea.sflag [#allocation4], %s12867_s12 }
0x1744   : > { %p13957_p6 = pnand %p19114_p0, %p19113_p2 }
0x1746   : > { %14971 = dma.done.wait (!%p13957_p6), %s12868_s3, 128  }
0x1747   : > { %14973 = vsyncadd (!%p13957_p6), %s12868_s3, 4294967168  ;;  %s19115_s3 = sld [smem:[#allocation52_spill]]  ;;  %s19116_s28 = sld [smem:[#allocation53_spill]] }
0x1748   : > { %p46_p10 = scmp.ge.s32.totalorder %s15618_s30, 4  }
0x174a   :  { %48 = sbr.rel (!%p46_p10) target bundleno = 34 (0x22), region = 237 }
0x1751   :  { %12873 = vsyncpa [#allocation3], 1 }
0x1752   :  { %12875 = vsyncpa [#allocation3 + $0x1], 1 }
0x1753   :  { %12876 = vsyncpa [#allocation6], 1 }
0x1754   :  { %12877 = vsyncpa [#allocation9], 1 }
0x1755   :  { %12878 = vsyncpa [#allocation12], 1 }
0x1756   :  { %12879 = vsyncpa [#allocation15], 1 }
0x1757   :  { %12880 = vsyncpa [#allocation18], 1 }
0x1758   :  { %12881 = vsyncpa [#allocation21], 1 }
0x1759   :  { %12882 = vsyncpa [#allocation24], 1 }
0x175a   :  { %12883 = vsyncpa [#allocation27], 1 }
0x175b   :  { %12884 = vsyncpa [#allocation30], 1 }
0x175c   :  { %12885 = vsyncpa [#allocation33], 1 }
0x175d   :  { %12886 = vsyncpa [#allocation36], 1 }
0x175e   :  { %12887 = vsyncpa [#allocation4], 1 }
0x175f   :  { %12889 = vsyncpa [#allocation4 + $0x1], 1 }

</bundles_post_ra>
